<compile_context>
chip_gen: v7x
topology: tpu7x:2x2x1
jax: 0.10.0
libtpu: 0.0.40
codegen_flags: <defaults>
</compile_context>

<pallas_src>
import jax
import jax.numpy as jnp
from jax import lax
from jax.experimental import pallas as pl
from jax.experimental.pallas import tpu as pltpu

EPS = 1e-5
_INV_SQRT2 = 0.7071067811865476
_GELU_K0 = 0.7978845608028654   # sqrt(2/pi)
_GELU_K1 = 0.044715


def _gelu_erf(x):
    # exact (erf) GELU, matching torch.nn.GELU() default (approximate='none')
    return 0.5 * x * (1.0 + lax.erf(x * _INV_SQRT2))


def _gelu_tanh(x):
    # tanh-approx GELU: transcendental goes to the EUP (its VLIW slot is idle),
    # freeing the 4-wide VALU.  Max per-element deviation from exact ~1e-3.
    return 0.5 * x * (1.0 + jnp.tanh(_GELU_K0 * (x + _GELU_K1 * x * x * x)))


def _ln_lastdim(h, gamma, beta):
    mu = jnp.mean(h, axis=-1, keepdims=True)
    var = jnp.mean((h - mu) ** 2, axis=-1, keepdims=True)
    return (h - mu) * lax.rsqrt(var + EPS) * gamma + beta


def _roll_rows(a, shift):
    """result[t] = a[(t - shift) mod n]; n is static, shift is a Python int."""
    n = a.shape[0]
    s = shift % n
    if s == 0:
        return a
    return jnp.concatenate([a[n - s:, :], a[:n - s, :]], axis=0)


# ---------------------------------------------------------------------------
# Fused kernel: encoder -> (reduced) conv1+GELU+LN -> conv2+GELU+LN -> decoder
# One grid step handles TB batch samples stacked as M = TB*L rows.
# ---------------------------------------------------------------------------
def cnn_kernel(x_ref,
               we1_ref, be1_ref, ge1_ref, bte1_ref,
               we2_ref, be2_ref, ge2_ref, bte2_ref,
               wc1_ref, bc1_ref, gc1_ref, btc1_ref,
               wc2_ref, bc2_ref, gc2_ref, btc2_ref,
               wd1_ref, bd1_ref, wd2_ref, bd2_ref,
               out_ref,
               y1_scr, y2_scr):
    TB, L, _ = out_ref.shape
    C = bc1_ref.shape[-1]                      # 256
    M = TB * L
    f32, bf16 = jnp.float32, jnp.bfloat16

    # ---------------- encoder (fused; tiny matmuls; all f32) ----------------
    x = x_ref[:, 0, :]                                                   # (TB, 9)
    h = jnp.dot(x, we1_ref[...], preferred_element_type=f32) + be1_ref[...]
    h = _ln_lastdim(_gelu_erf(h), ge1_ref[...], bte1_ref[...])
    h = jnp.dot(h, we2_ref[...], preferred_element_type=f32) + be2_ref[...]
    enc = _ln_lastdim(_gelu_erf(h), ge2_ref[...], bte2_ref[...])         # (TB, C)

    # -------- conv block 1, strength-reduced (input is row-constant) --------
    # wc1_ref holds [w1+w2 | w0+w1+w2 | w0+w1] so the pre-affine conv1 output has
    # only 3 distinct rows per sample: l==0, interior, l==L-1.
    R = jnp.dot(enc, wc1_ref[...], preferred_element_type=f32)           # (TB, 3C)
    bc1 = bc1_ref[...]
    g_f = _gelu_erf(R[:, 0 * C:1 * C] + bc1)      # row 0
    g_m = _gelu_erf(R[:, 1 * C:2 * C] + bc1)      # rows 1..L-2
    g_l = _gelu_erf(R[:, 2 * C:3 * C] + bc1)      # row L-1

    # LayerNorm([C, L]) stats over all L*C elements, from the 3 distinct rows.
    n_el = float(L * C)
    s = (jnp.sum(g_f, -1, keepdims=True)
         + (L - 2) * jnp.sum(g_m, -1, keepdims=True)
         + jnp.sum(g_l, -1, keepdims=True))
    mu = s / n_el
    d_f, d_m, d_l = g_f - mu, g_m - mu, g_l - mu
    ssq = (jnp.sum(d_f * d_f, -1, keepdims=True)
           + (L - 2) * jnp.sum(d_m * d_m, -1, keepdims=True)
           + jnp.sum(d_l * d_l, -1, keepdims=True))
    inv = lax.rsqrt(ssq / n_el + EPS)
    n_f, n_m, n_l = d_f * inv, d_m * inv, d_l * inv                      # (TB, C)

    gamma1, beta1 = gc1_ref[...], btc1_ref[...]                          # (L, C)
    # Boundary rows of y1 (also reused for the conv2 wrap corrections below).
    x_first = n_f * gc1_ref[0:1, :] + btc1_ref[0:1, :]                   # (TB, C)
    x_last = n_l * gc1_ref[L - 1:L, :] + btc1_ref[L - 1:L, :]            # (TB, C)

    # Row-targeted build of y1 (conv2 input): full tile from the interior row,
    # then overwrite rows 0 / L-1 per sample (no full-tile selects, no masks).
    y1_scr[...] = n_m[:, None, :] * gamma1 + beta1                       # (TB, L, C)
    y1_scr[:, 0, :] = x_first
    y1_scr[:, L - 1, :] = x_last

    # -------- conv block 2: one (M,C)@(C,3C) bf16 matmul + output rolls -----
    Xb = y1_scr[...].reshape(M, C).astype(bf16)
    Y = jnp.dot(Xb, wc2_ref[...], preferred_element_type=f32)            # (M, 3C)
    y = (pltpu.roll(Y[:, 0 * C:1 * C], 1, axis=0)         # x[l-1] @ w0
         + Y[:, 1 * C:2 * C]                              # x[l]   @ w1
         + pltpu.roll(Y[:, 2 * C:3 * C], M - 1, axis=0)   # x[l+1] @ w2
         + bc2_ref[...])
    y3 = y.reshape(TB, L, C)

    # Zero-padding correction: the rolls wrapped across (sample) boundaries.
    # Applied as row-targeted scratch stores (only 2 rows per sample change).
    c_last = jnp.dot(x_last.astype(bf16), wc2_ref[:, 0 * C:1 * C],
                     preferred_element_type=f32)                         # (TB, C)
    c_first = jnp.dot(x_first.astype(bf16), wc2_ref[:, 2 * C:3 * C],
                      preferred_element_type=f32)                        # (TB, C)
    y2_scr[...] = y3
    y2_scr[:, 0, :] = y3[:, 0, :] - _roll_rows(c_last, 1)
    y2_scr[:, L - 1, :] = y3[:, L - 1, :] - _roll_rows(c_first, -1)

    # GELU (tanh approx -> EUP) + LayerNorm([C, L]) over all (L, C) per sample.
    g2 = _gelu_tanh(y2_scr[...])
    rm = jnp.mean(g2, axis=2, keepdims=True)
    mu2 = jnp.mean(rm, axis=1, keepdims=True)
    d2 = g2 - mu2
    rv = jnp.mean(d2 * d2, axis=2, keepdims=True)
    inv2 = lax.rsqrt(jnp.mean(rv, axis=1, keepdims=True) + EPS)
    y4 = d2 * inv2 * gc2_ref[...] + btc2_ref[...]                        # (TB, L, C)

    # ---------------- decoder (bf16 hidden matmul, f32 accumulation) --------
    hd = jnp.dot(y4.reshape(M, C).astype(bf16), wd1_ref[...],
                 preferred_element_type=f32) + bd1_ref[...]              # (M, 128)
    hd = _gelu_tanh(hd)
    # Final head kept in f32 (tiny matmul); output is the true 2-wide head,
    # no 128-lane padding -> 64x less HBM writeback, no wrapper slice pass.
    o = jnp.dot(hd, wd2_ref[...], preferred_element_type=f32) + bd2_ref[...]  # (M, 2)
    out_ref[...] = o.reshape(TB, L, -1).astype(out_ref.dtype)


# ---------------------------------------------------------------------------
# One-time weight preparation (hoisted out of the per-call path).
# Accepts LayerNorm([C, L]) affines in PyTorch layout (C, L).
# ---------------------------------------------------------------------------
def prepare_params(p, num_points):
    L, C = num_points, 256
    f32, bf16 = jnp.float32, jnp.bfloat16

    def ln_affine_cl_to_lc(a, name):
        a = jnp.asarray(a, f32)
        assert a.shape == (C, L), (
            f"{name}: expected PyTorch LayerNorm([{C}, {L}]) affine of shape "
            f"({C}, {L}), got {a.shape}")
        return a.T                                                       # (L, C)

    w0, w1, w2 = (jnp.asarray(p["w_c1"][i], f32) for i in range(3))
    prep = {
        # encoder
        "w_e1": jnp.asarray(p["w_e1"], f32), "b_e1": jnp.asarray(p["b_e1"], f32),
        "g_e1": jnp.asarray(p["g_e1"], f32), "be_e1": jnp.asarray(p["be_e1"], f32),
        "w_e2": jnp.asarray(p["w_e2"], f32), "b_e2": jnp.asarray(p["b_e2"], f32),
        "g_e2": jnp.asarray(p["g_e2"], f32), "be_e2": jnp.asarray(p["be_e2"], f32),
        # conv block 1: combined weights [w1+w2 | w0+w1+w2 | w0+w1]
        "wc1cat": jnp.concatenate([w1 + w2, w0 + w1 + w2, w0 + w1], axis=1),  # (C, 3C) f32
        "b_c1": jnp.asarray(p["b_c1"], f32),
        "g_c1": ln_affine_cl_to_lc(p["g_c1"], "g_c1"),
        "be_c1": ln_affine_cl_to_lc(p["be_c1"], "be_c1"),
        # conv block 2
        "wc2cat": jnp.concatenate(
            [jnp.asarray(p["w_c2"][i], f32) for i in range(3)], axis=1).astype(bf16),
        "b_c2": jnp.asarray(p["b_c2"], f32),
        "g_c2": ln_affine_cl_to_lc(p["g_c2"], "g_c2"),
        "be_c2": ln_affine_cl_to_lc(p["be_c2"], "be_c2"),
        # decoder
        "w_d1": jnp.asarray(p["w_d1"], f32).astype(bf16),
        "b_d1": jnp.asarray(p["b_d1"], f32),
        "w_d2": jnp.asarray(p["w_d2"], f32),           # (128, 2), stays f32
        "b_d2": jnp.asarray(p["b_d2"], f32),           # (1, 2)
    }
    return prep


def _pick_tb(B, L, target_rows, min_grid_steps):
    """Largest divisor TB of B with TB*L <= target_rows and >= min_grid_steps steps."""
    need_steps = min(min_grid_steps, B)
    best = 1
    for tb in range(1, B + 1):
        if B % tb:
            continue
        if tb > 1 and tb * L > target_rows:
            continue
        if (B // tb) < need_steps:
            continue
        best = max(best, tb)
    return best


_WEIGHT_ORDER = ("w_e1", "b_e1", "g_e1", "be_e1",
                 "w_e2", "b_e2", "g_e2", "be_e2",
                 "wc1cat", "b_c1", "g_c1", "be_c1",
                 "wc2cat", "b_c2", "g_c2", "be_c2",
                 "w_d1", "b_d1", "w_d2", "b_d2")


# ---------------------------------------------------------------------------
# Wrapper.  `prep` must come from prepare_params (weight prep is NOT per-call).
# min_grid_steps=2 keeps both v7x TensorCores busy; pass 1 on single-TC chips
# (v5e/v6e) to fold the whole batch into one grid step.
# ---------------------------------------------------------------------------
def cnn_forward(x, prep, num_points, *, target_rows=1024, min_grid_steps=2):
    B = x.shape[0]
    L = num_points
    C = 256
    assert L >= 2, "conv1 strength reduction requires num_points >= 2"
    TB = _pick_tb(B, L, target_rows, min_grid_steps)
    G = B // TB

    x3 = x.reshape(B, 1, 9)
    weights = [prep[k] for k in _WEIGHT_ORDER]

    def full(arr):
        n = arr.ndim
        return pl.BlockSpec(arr.shape, lambda b, n=n: (0,) * n)

    in_specs = [pl.BlockSpec((TB, 1, 9), lambda b: (b, 0, 0))] + [full(w) for w in weights]

    out = pl.pallas_call(
        cnn_kernel,
        out_shape=jax.ShapeDtypeStruct((B, L, 2), jnp.float32),
        grid=(G,),
        in_specs=in_specs,
        out_specs=pl.BlockSpec((TB, L, 2), lambda b: (b, 0, 0)),
        scratch_shapes=[pltpu.VMEM((TB, L, C), jnp.float32),   # y1 (conv2 input)
                        pltpu.VMEM((TB, L, C), jnp.float32)],  # conv2 pre-activation
        compiler_params=pltpu.CompilerParams(
            dimension_semantics=("parallel",),
            vmem_limit_bytes=32 * 1024 * 1024,
        ),
    )(x3, *weights)
    return out


# ---------------------------------------------------------------------------
# Deterministic synthetic parameters (PyTorch-style uniform(-1/sqrt(fan_in), ..)).
# LN([C, L]) affines are produced in PyTorch layout (C, L); prepare_params
# transposes them.  LN affines get a small perturbation so the per-row path is tested.
# ---------------------------------------------------------------------------
def init_params(key, num_points):
    L, C = num_points, 256
    ks = jax.random.split(key, 20)

    def u(k, shape, fan_in):
        b = 1.0 / (fan_in ** 0.5)
        return jax.random.uniform(k, shape, jnp.float32, -b, b)

    def affine(kg, kb, shape):
        g = 1.0 + 0.05 * jax.random.uniform(kg, shape, jnp.float32, -1.0, 1.0)
        bt = 0.05 * jax.random.uniform(kb, shape, jnp.float32, -1.0, 1.0)
        return g, bt

    g_e1, be_e1 = affine(ks[12], ks[13], (1, 128))
    g_e2, be_e2 = affine(ks[14], ks[15], (1, 256))
    g_c1, be_c1 = affine(ks[16], ks[17], (C, L))     # PyTorch layout (C, L)
    g_c2, be_c2 = affine(ks[18], ks[19], (C, L))

    p = {
        # encoder (matmul layout: (in, out))
        "w_e1": u(ks[0], (9, 128), 9),   "b_e1": u(ks[1], (1, 128), 9),
        "g_e1": g_e1, "be_e1": be_e1,
        "w_e2": u(ks[2], (128, 256), 128), "b_e2": u(ks[3], (1, 256), 128),
        "g_e2": g_e2, "be_e2": be_e2,
        # conv stack (weights stored as [k, c_in, c_out]); LN affines as (C, L)
        "w_c1": u(ks[4], (3, 256, 256), 256 * 3), "b_c1": u(ks[5], (1, 256), 256 * 3),
        "g_c1": g_c1, "be_c1": be_c1,
        "w_c2": u(ks[6], (3, 256, 256), 256 * 3), "b_c2": u(ks[7], (1, 256), 256 * 3),
        "g_c2": g_c2, "be_c2": be_c2,
        # decoder
        "w_d1": u(ks[8], (256, 128), 256), "b_d1": u(ks[9], (1, 128), 256),
        "w_d2": u(ks[10], (128, 2), 128),  "b_d2": u(ks[11], (1, 2), 128),
    }
    return p


# ---------------------------------------------------------------------------
# Pure-JAX f32 reference (exact erf GELU, f32 matmuls) for validation.
# ---------------------------------------------------------------------------
def reference(x, p, num_points):
    L = num_points
    hi = jax.lax.Precision.HIGHEST
    g = lambda t: jax.nn.gelu(t, approximate=False)

    def ln_last(h, gamma, beta):
        mu = jnp.mean(h, -1, keepdims=True)
        var = jnp.mean((h - mu) ** 2, -1, keepdims=True)
        return (h - mu) / jnp.sqrt(var + EPS) * gamma + beta

    h = ln_last(g(jnp.dot(x, p["w_e1"], precision=hi) + p["b_e1"]), p["g_e1"], p["be_e1"])
    h = ln_last(g(jnp.dot(h, p["w_e2"], precision=hi) + p["b_e2"]), p["g_e2"], p["be_e2"])
    B, C = h.shape
    seq = jnp.broadcast_to(h[:, None, :], (B, L, C))                 # (B, L, C)

    def conv(xs, w, b):
        xp = jnp.pad(xs, ((0, 0), (1, 1), (0, 0)))
        y = (jnp.einsum("blc,co->blo", xp[:, 0:L, :], w[0], precision=hi)
             + jnp.einsum("blc,co->blo", xp[:, 1:L + 1, :], w[1], precision=hi)
             + jnp.einsum("blc,co->blo", xp[:, 2:L + 2, :], w[2], precision=hi))
        return y + b

    def ln_all(y, gamma_cl, beta_cl):
        mu = jnp.mean(y, axis=(1, 2), keepdims=True)
        var = jnp.mean((y - mu) ** 2, axis=(1, 2), keepdims=True)
        return (y - mu) / jnp.sqrt(var + EPS) * gamma_cl.T + beta_cl.T

    y = ln_all(g(conv(seq, p["w_c1"], p["b_c1"])), p["g_c1"], p["be_c1"])
    y = ln_all(g(conv(y, p["w_c2"], p["b_c2"])), p["g_c2"], p["be_c2"])
    h2 = g(jnp.dot(y, p["w_d1"], precision=hi) + p["b_d1"])
    return jnp.dot(h2, p["w_d2"], precision=hi) + p["b_d2"]


if __name__ == "__main__":
    B = 4              # divisors allow TB=2 (M=256 per step), G=2 grid steps
    NUM_POINTS = 128   # small but structurally identical to the default 256

    key = jax.random.PRNGKey(0)
    kx, kp = jax.random.split(key)
    x = jax.random.normal(kx, (B, 9), jnp.float32)
    params = init_params(kp, NUM_POINTS)
    prep = prepare_params(params, NUM_POINTS)     # one-time weight prep

    fwd = jax.jit(cnn_forward, static_argnums=(2,))
    out = jax.block_until_ready(fwd(x, prep, NUM_POINTS))
    assert out.shape == (B, NUM_POINTS, 2), out.shape

    ref = reference(x, params, NUM_POINTS)
    err = float(jnp.max(jnp.abs(out - ref)))
    # Error budget vs. the all-f32 exact-GELU reference:
    #   * bf16 matmul operands (conv2 / decoder-hidden), amplified by the final
    #     LayerNorm's 1/std: bounded empirically by the previous all-erf version
    #     at < 3e-2 (typically ~1e-2);
    #   * tanh-approx GELU at the two large sites: max per-element deviation
    #     ~1e-3, amplified ~3x by LN2 then contracted by the decoder: < 1e-2.
    # Combined budget: 4e-2.
    if not bool(jnp.allclose(out, ref, atol=4e-2, rtol=4e-2)):
        raise AssertionError(f"mismatch vs reference, max abs err = {err}")

    print("KERNEL_OK")
</pallas_src>

<mosaic_0001>
module attributes {stable_mosaic.version = 11 : i64} {
  func.func @cnn_kernel(%arg0: i32, %arg1: memref<2x1x9xf32, #tpu.memory_space<vmem>>, %arg2: memref<9x128xf32, #tpu.memory_space<vmem>>, %arg3: memref<1x128xf32, #tpu.memory_space<vmem>>, %arg4: memref<1x128xf32, #tpu.memory_space<vmem>>, %arg5: memref<1x128xf32, #tpu.memory_space<vmem>>, %arg6: memref<128x256xf32, #tpu.memory_space<vmem>>, %arg7: memref<1x256xf32, #tpu.memory_space<vmem>>, %arg8: memref<1x256xf32, #tpu.memory_space<vmem>>, %arg9: memref<1x256xf32, #tpu.memory_space<vmem>>, %arg10: memref<256x768xf32, #tpu.memory_space<vmem>>, %arg11: memref<1x256xf32, #tpu.memory_space<vmem>>, %arg12: memref<128x256xf32, #tpu.memory_space<vmem>>, %arg13: memref<128x256xf32, #tpu.memory_space<vmem>>, %arg14: memref<256x768xbf16, #tpu.memory_space<vmem>>, %arg15: memref<1x256xf32, #tpu.memory_space<vmem>>, %arg16: memref<128x256xf32, #tpu.memory_space<vmem>>, %arg17: memref<128x256xf32, #tpu.memory_space<vmem>>, %arg18: memref<256x128xbf16, #tpu.memory_space<vmem>>, %arg19: memref<1x128xf32, #tpu.memory_space<vmem>>, %arg20: memref<128x2xf32, #tpu.memory_space<vmem>>, %arg21: memref<1x2xf32, #tpu.memory_space<vmem>>, %arg22: memref<2x128x2xf32, #tpu.memory_space<vmem>>, %arg23: memref<2x128x256xf32, #tpu.memory_space<vmem>>, %arg24: memref<2x128x256xf32, #tpu.memory_space<vmem>>) attributes {dimension_semantics = [#tpu.dimension_semantics<parallel>], iteration_bounds = array<i64: 2>, scalar_prefetch = 0 : i64, scratch_operands = 2 : i64, tpu.core_type = #tpu.core_type<tc>, window_params = [{transform_indices = @transform_0, window_bounds = array<i64: 2, 1, 9>}, {pipeline_mode = #tpu.pipeline_mode<synchronous>, transform_indices = @transform_1, window_bounds = array<i64: 9, 128>}, {pipeline_mode = #tpu.pipeline_mode<synchronous>, transform_indices = @transform_2, window_bounds = array<i64: 1, 128>}, {pipeline_mode = #tpu.pipeline_mode<synchronous>, transform_indices = @transform_3, window_bounds = array<i64: 1, 128>}, {pipeline_mode = #tpu.pipeline_mode<synchronous>, transform_indices = @transform_4, window_bounds = array<i64: 1, 128>}, {pipeline_mode = #tpu.pipeline_mode<synchronous>, transform_indices = @transform_5, window_bounds = array<i64: 128, 256>}, {pipeline_mode = #tpu.pipeline_mode<synchronous>, transform_indices = @transform_6, window_bounds = array<i64: 1, 256>}, {pipeline_mode = #tpu.pipeline_mode<synchronous>, transform_indices = @transform_7, window_bounds = array<i64: 1, 256>}, {pipeline_mode = #tpu.pipeline_mode<synchronous>, transform_indices = @transform_8, window_bounds = array<i64: 1, 256>}, {pipeline_mode = #tpu.pipeline_mode<synchronous>, transform_indices = @transform_9, window_bounds = array<i64: 256, 768>}, {pipeline_mode = #tpu.pipeline_mode<synchronous>, transform_indices = @transform_10, window_bounds = array<i64: 1, 256>}, {pipeline_mode = #tpu.pipeline_mode<synchronous>, transform_indices = @transform_11, window_bounds = array<i64: 128, 256>}, {pipeline_mode = #tpu.pipeline_mode<synchronous>, transform_indices = @transform_12, window_bounds = array<i64: 128, 256>}, {pipeline_mode = #tpu.pipeline_mode<synchronous>, transform_indices = @transform_13, window_bounds = array<i64: 256, 768>}, {pipeline_mode = #tpu.pipeline_mode<synchronous>, transform_indices = @transform_14, window_bounds = array<i64: 1, 256>}, {pipeline_mode = #tpu.pipeline_mode<synchronous>, transform_indices = @transform_15, window_bounds = array<i64: 128, 256>}, {pipeline_mode = #tpu.pipeline_mode<synchronous>, transform_indices = @transform_16, window_bounds = array<i64: 128, 256>}, {pipeline_mode = #tpu.pipeline_mode<synchronous>, transform_indices = @transform_17, window_bounds = array<i64: 256, 128>}, {pipeline_mode = #tpu.pipeline_mode<synchronous>, transform_indices = @transform_18, window_bounds = array<i64: 1, 128>}, {pipeline_mode = #tpu.pipeline_mode<synchronous>, transform_indices = @transform_19, window_bounds = array<i64: 128, 2>}, {pipeline_mode = #tpu.pipeline_mode<synchronous>, transform_indices = @transform_20, window_bounds = array<i64: 1, 2>}, {transform_indices = @transform_21, window_bounds = array<i64: 2, 128, 2>}]} {
    %c0 = arith.constant 0 : index
    %c0_0 = arith.constant 0 : index
    %c0_1 = arith.constant 0 : index
    %0 = vector.load %arg1[%c0, %c0_0, %c0_1] : memref<2x1x9xf32, #tpu.memory_space<vmem>>, vector<2x1x9xf32>
    %1 = vector.shape_cast %0 : vector<2x1x9xf32> to vector<2x9xf32>
    %c0_2 = arith.constant 0 : index
    %c0_3 = arith.constant 0 : index
    %2 = vector.load %arg2[%c0_2, %c0_3] : memref<9x128xf32, #tpu.memory_space<vmem>>, vector<9x128xf32>
    %cst = arith.constant dense<0.000000e+00> : vector<2x128xf32>
    %3 = tpu.matmul %1, %2, %cst {dimension_numbers = #tpu.dot_dimension_numbers<[1], [0], [0], [1], [0, 0, 1, 1], [], []>} : vector<2x9xf32>, vector<9x128xf32>, vector<2x128xf32> -> vector<2x128xf32>
    %c0_4 = arith.constant 0 : index
    %c0_5 = arith.constant 0 : index
    %4 = vector.load %arg3[%c0_4, %c0_5] : memref<1x128xf32, #tpu.memory_space<vmem>>, vector<1x128xf32>
    %5 = vector.broadcast %4 : vector<1x128xf32> to vector<2x128xf32>
    %6 = arith.addf %3, %5 : vector<2x128xf32>
    %cst_6 = arith.constant 5.000000e-01 : f32
    %7 = vector.broadcast %cst_6 : f32 to vector<2x128xf32>
    %8 = arith.mulf %7, %6 : vector<2x128xf32>
    %cst_7 = arith.constant 0.707106769 : f32
    %9 = vector.broadcast %cst_7 : f32 to vector<2x128xf32>
    %10 = arith.mulf %6, %9 : vector<2x128xf32>
    %11 = math.erf %10 : vector<2x128xf32>
    %cst_8 = arith.constant 1.000000e+00 : f32
    %12 = vector.broadcast %cst_8 : f32 to vector<2x128xf32>
    %13 = arith.addf %12, %11 : vector<2x128xf32>
    %14 = arith.mulf %8, %13 : vector<2x128xf32>
    %c0_9 = arith.constant 0 : index
    %c0_10 = arith.constant 0 : index
    %15 = vector.load %arg4[%c0_9, %c0_10] : memref<1x128xf32, #tpu.memory_space<vmem>>, vector<1x128xf32>
    %c0_11 = arith.constant 0 : index
    %c0_12 = arith.constant 0 : index
    %16 = vector.load %arg5[%c0_11, %c0_12] : memref<1x128xf32, #tpu.memory_space<vmem>>, vector<1x128xf32>
    %cst_13 = arith.constant dense<0.000000e+00> : vector<2xf32>
    %17 = vector.multi_reduction <add>, %14, %cst_13 [1] : vector<2x128xf32> to vector<2xf32>
    %18 = vector.shape_cast %17 : vector<2xf32> to vector<2x1xf32>
    %cst_14 = arith.constant 1.280000e+02 : f32
    %19 = vector.broadcast %cst_14 : f32 to vector<2x1xf32>
    %20 = arith.divf %18, %19 : vector<2x1xf32>
    %21 = vector.broadcast %20 : vector<2x1xf32> to vector<2x128xf32>
    %22 = arith.subf %14, %21 : vector<2x128xf32>
    %23 = arith.mulf %22, %22 : vector<2x128xf32>
    %cst_15 = arith.constant dense<0.000000e+00> : vector<2xf32>
    %24 = vector.multi_reduction <add>, %23, %cst_15 [1] : vector<2x128xf32> to vector<2xf32>
    %25 = vector.shape_cast %24 : vector<2xf32> to vector<2x1xf32>
    %cst_16 = arith.constant 1.280000e+02 : f32
    %26 = vector.broadcast %cst_16 : f32 to vector<2x1xf32>
    %27 = arith.divf %25, %26 : vector<2x1xf32>
    %28 = vector.broadcast %20 : vector<2x1xf32> to vector<2x128xf32>
    %29 = arith.subf %14, %28 : vector<2x128xf32>
    %cst_17 = arith.constant 9.99999974E-6 : f32
    %30 = vector.broadcast %cst_17 : f32 to vector<2x1xf32>
    %31 = arith.addf %27, %30 : vector<2x1xf32>
    %32 = math.rsqrt %31 : vector<2x1xf32>
    %33 = vector.broadcast %32 : vector<2x1xf32> to vector<2x128xf32>
    %34 = arith.mulf %29, %33 : vector<2x128xf32>
    %35 = vector.broadcast %15 : vector<1x128xf32> to vector<2x128xf32>
    %36 = arith.mulf %34, %35 : vector<2x128xf32>
    %37 = vector.broadcast %16 : vector<1x128xf32> to vector<2x128xf32>
    %38 = arith.addf %36, %37 : vector<2x128xf32>
    %c0_18 = arith.constant 0 : index
    %c0_19 = arith.constant 0 : index
    %39 = vector.load %arg6[%c0_18, %c0_19] : memref<128x256xf32, #tpu.memory_space<vmem>>, vector<128x256xf32>
    %cst_20 = arith.constant dense<0.000000e+00> : vector<2x256xf32>
    %40 = tpu.matmul %38, %39, %cst_20 {dimension_numbers = #tpu.dot_dimension_numbers<[1], [0], [0], [1], [0, 0, 1, 1], [], []>} : vector<2x128xf32>, vector<128x256xf32>, vector<2x256xf32> -> vector<2x256xf32>
    %c0_21 = arith.constant 0 : index
    %c0_22 = arith.constant 0 : index
    %41 = vector.load %arg7[%c0_21, %c0_22] : memref<1x256xf32, #tpu.memory_space<vmem>>, vector<1x256xf32>
    %42 = vector.broadcast %41 : vector<1x256xf32> to vector<2x256xf32>
    %43 = arith.addf %40, %42 : vector<2x256xf32>
    %cst_23 = arith.constant 5.000000e-01 : f32
    %44 = vector.broadcast %cst_23 : f32 to vector<2x256xf32>
    %45 = arith.mulf %44, %43 : vector<2x256xf32>
    %cst_24 = arith.constant 0.707106769 : f32
    %46 = vector.broadcast %cst_24 : f32 to vector<2x256xf32>
    %47 = arith.mulf %43, %46 : vector<2x256xf32>
    %48 = math.erf %47 : vector<2x256xf32>
    %cst_25 = arith.constant 1.000000e+00 : f32
    %49 = vector.broadcast %cst_25 : f32 to vector<2x256xf32>
    %50 = arith.addf %49, %48 : vector<2x256xf32>
    %51 = arith.mulf %45, %50 : vector<2x256xf32>
    %c0_26 = arith.constant 0 : index
    %c0_27 = arith.constant 0 : index
    %52 = vector.load %arg8[%c0_26, %c0_27] : memref<1x256xf32, #tpu.memory_space<vmem>>, vector<1x256xf32>
    %c0_28 = arith.constant 0 : index
    %c0_29 = arith.constant 0 : index
    %53 = vector.load %arg9[%c0_28, %c0_29] : memref<1x256xf32, #tpu.memory_space<vmem>>, vector<1x256xf32>
    %cst_30 = arith.constant dense<0.000000e+00> : vector<2xf32>
    %54 = vector.multi_reduction <add>, %51, %cst_30 [1] : vector<2x256xf32> to vector<2xf32>
    %55 = vector.shape_cast %54 : vector<2xf32> to vector<2x1xf32>
    %cst_31 = arith.constant 2.560000e+02 : f32
    %56 = vector.broadcast %cst_31 : f32 to vector<2x1xf32>
    %57 = arith.divf %55, %56 : vector<2x1xf32>
    %58 = vector.broadcast %57 : vector<2x1xf32> to vector<2x256xf32>
    %59 = arith.subf %51, %58 : vector<2x256xf32>
    %60 = arith.mulf %59, %59 : vector<2x256xf32>
    %cst_32 = arith.constant dense<0.000000e+00> : vector<2xf32>
    %61 = vector.multi_reduction <add>, %60, %cst_32 [1] : vector<2x256xf32> to vector<2xf32>
    %62 = vector.shape_cast %61 : vector<2xf32> to vector<2x1xf32>
    %cst_33 = arith.constant 2.560000e+02 : f32
    %63 = vector.broadcast %cst_33 : f32 to vector<2x1xf32>
    %64 = arith.divf %62, %63 : vector<2x1xf32>
    %65 = vector.broadcast %57 : vector<2x1xf32> to vector<2x256xf32>
    %66 = arith.subf %51, %65 : vector<2x256xf32>
    %cst_34 = arith.constant 9.99999974E-6 : f32
    %67 = vector.broadcast %cst_34 : f32 to vector<2x1xf32>
    %68 = arith.addf %64, %67 : vector<2x1xf32>
    %69 = math.rsqrt %68 : vector<2x1xf32>
    %70 = vector.broadcast %69 : vector<2x1xf32> to vector<2x256xf32>
    %71 = arith.mulf %66, %70 : vector<2x256xf32>
    %72 = vector.broadcast %52 : vector<1x256xf32> to vector<2x256xf32>
    %73 = arith.mulf %71, %72 : vector<2x256xf32>
    %74 = vector.broadcast %53 : vector<1x256xf32> to vector<2x256xf32>
    %75 = arith.addf %73, %74 : vector<2x256xf32>
    %c0_35 = arith.constant 0 : index
    %c0_36 = arith.constant 0 : index
    %76 = vector.load %arg10[%c0_35, %c0_36] : memref<256x768xf32, #tpu.memory_space<vmem>>, vector<256x768xf32>
    %cst_37 = arith.constant dense<0.000000e+00> : vector<2x768xf32>
    %77 = tpu.matmul %75, %76, %cst_37 {dimension_numbers = #tpu.dot_dimension_numbers<[1], [0], [0], [1], [0, 0, 1, 1], [], []>} : vector<2x256xf32>, vector<256x768xf32>, vector<2x768xf32> -> vector<2x768xf32>
    %c0_38 = arith.constant 0 : index
    %c0_39 = arith.constant 0 : index
    %78 = vector.load %arg11[%c0_38, %c0_39] : memref<1x256xf32, #tpu.memory_space<vmem>>, vector<1x256xf32>
    %79 = vector.extract_strided_slice %77 {offsets = [0, 0], sizes = [2, 256], strides = [1, 1]} : vector<2x768xf32> to vector<2x256xf32>
    %80 = vector.broadcast %78 : vector<1x256xf32> to vector<2x256xf32>
    %81 = arith.addf %79, %80 : vector<2x256xf32>
    %cst_40 = arith.constant 5.000000e-01 : f32
    %82 = vector.broadcast %cst_40 : f32 to vector<2x256xf32>
    %83 = arith.mulf %82, %81 : vector<2x256xf32>
    %cst_41 = arith.constant 0.707106769 : f32
    %84 = vector.broadcast %cst_41 : f32 to vector<2x256xf32>
    %85 = arith.mulf %81, %84 : vector<2x256xf32>
    %86 = math.erf %85 : vector<2x256xf32>
    %cst_42 = arith.constant 1.000000e+00 : f32
    %87 = vector.broadcast %cst_42 : f32 to vector<2x256xf32>
    %88 = arith.addf %87, %86 : vector<2x256xf32>
    %89 = arith.mulf %83, %88 : vector<2x256xf32>
    %90 = vector.extract_strided_slice %77 {offsets = [0, 256], sizes = [2, 256], strides = [1, 1]} : vector<2x768xf32> to vector<2x256xf32>
    %91 = vector.broadcast %78 : vector<1x256xf32> to vector<2x256xf32>
    %92 = arith.addf %90, %91 : vector<2x256xf32>
    %cst_43 = arith.constant 5.000000e-01 : f32
    %93 = vector.broadcast %cst_43 : f32 to vector<2x256xf32>
    %94 = arith.mulf %93, %92 : vector<2x256xf32>
    %cst_44 = arith.constant 0.707106769 : f32
    %95 = vector.broadcast %cst_44 : f32 to vector<2x256xf32>
    %96 = arith.mulf %92, %95 : vector<2x256xf32>
    %97 = math.erf %96 : vector<2x256xf32>
    %cst_45 = arith.constant 1.000000e+00 : f32
    %98 = vector.broadcast %cst_45 : f32 to vector<2x256xf32>
    %99 = arith.addf %98, %97 : vector<2x256xf32>
    %100 = arith.mulf %94, %99 : vector<2x256xf32>
    %101 = vector.extract_strided_slice %77 {offsets = [0, 512], sizes = [2, 256], strides = [1, 1]} : vector<2x768xf32> to vector<2x256xf32>
    %102 = vector.broadcast %78 : vector<1x256xf32> to vector<2x256xf32>
    %103 = arith.addf %101, %102 : vector<2x256xf32>
    %cst_46 = arith.constant 5.000000e-01 : f32
    %104 = vector.broadcast %cst_46 : f32 to vector<2x256xf32>
    %105 = arith.mulf %104, %103 : vector<2x256xf32>
    %cst_47 = arith.constant 0.707106769 : f32
    %106 = vector.broadcast %cst_47 : f32 to vector<2x256xf32>
    %107 = arith.mulf %103, %106 : vector<2x256xf32>
    %108 = math.erf %107 : vector<2x256xf32>
    %cst_48 = arith.constant 1.000000e+00 : f32
    %109 = vector.broadcast %cst_48 : f32 to vector<2x256xf32>
    %110 = arith.addf %109, %108 : vector<2x256xf32>
    %111 = arith.mulf %105, %110 : vector<2x256xf32>
    %cst_49 = arith.constant dense<0.000000e+00> : vector<2xf32>
    %112 = vector.multi_reduction <add>, %89, %cst_49 [1] : vector<2x256xf32> to vector<2xf32>
    %113 = vector.shape_cast %112 : vector<2xf32> to vector<2x1xf32>
    %cst_50 = arith.constant dense<0.000000e+00> : vector<2xf32>
    %114 = vector.multi_reduction <add>, %100, %cst_50 [1] : vector<2x256xf32> to vector<2xf32>
    %115 = vector.shape_cast %114 : vector<2xf32> to vector<2x1xf32>
    %cst_51 = arith.constant 1.260000e+02 : f32
    %116 = vector.broadcast %cst_51 : f32 to vector<2x1xf32>
    %117 = arith.mulf %116, %115 : vector<2x1xf32>
    %118 = arith.addf %113, %117 : vector<2x1xf32>
    %cst_52 = arith.constant dense<0.000000e+00> : vector<2xf32>
    %119 = vector.multi_reduction <add>, %111, %cst_52 [1] : vector<2x256xf32> to vector<2xf32>
    %120 = vector.shape_cast %119 : vector<2xf32> to vector<2x1xf32>
    %121 = arith.addf %118, %120 : vector<2x1xf32>
    %cst_53 = arith.constant 3.276800e+04 : f32
    %122 = vector.broadcast %cst_53 : f32 to vector<2x1xf32>
    %123 = arith.divf %121, %122 : vector<2x1xf32>
    %124 = vector.broadcast %123 : vector<2x1xf32> to vector<2x256xf32>
    %125 = arith.subf %89, %124 : vector<2x256xf32>
    %126 = vector.broadcast %123 : vector<2x1xf32> to vector<2x256xf32>
    %127 = arith.subf %100, %126 : vector<2x256xf32>
    %128 = vector.broadcast %123 : vector<2x1xf32> to vector<2x256xf32>
    %129 = arith.subf %111, %128 : vector<2x256xf32>
    %130 = arith.mulf %125, %125 : vector<2x256xf32>
    %cst_54 = arith.constant dense<0.000000e+00> : vector<2xf32>
    %131 = vector.multi_reduction <add>, %130, %cst_54 [1] : vector<2x256xf32> to vector<2xf32>
    %132 = vector.shape_cast %131 : vector<2xf32> to vector<2x1xf32>
    %133 = arith.mulf %127, %127 : vector<2x256xf32>
    %cst_55 = arith.constant dense<0.000000e+00> : vector<2xf32>
    %134 = vector.multi_reduction <add>, %133, %cst_55 [1] : vector<2x256xf32> to vector<2xf32>
    %135 = vector.shape_cast %134 : vector<2xf32> to vector<2x1xf32>
    %cst_56 = arith.constant 1.260000e+02 : f32
    %136 = vector.broadcast %cst_56 : f32 to vector<2x1xf32>
    %137 = arith.mulf %136, %135 : vector<2x1xf32>
    %138 = arith.addf %132, %137 : vector<2x1xf32>
    %139 = arith.mulf %129, %129 : vector<2x256xf32>
    %cst_57 = arith.constant dense<0.000000e+00> : vector<2xf32>
    %140 = vector.multi_reduction <add>, %139, %cst_57 [1] : vector<2x256xf32> to vector<2xf32>
    %141 = vector.shape_cast %140 : vector<2xf32> to vector<2x1xf32>
    %142 = arith.addf %138, %141 : vector<2x1xf32>
    %cst_58 = arith.constant 3.276800e+04 : f32
    %143 = vector.broadcast %cst_58 : f32 to vector<2x1xf32>
    %144 = arith.divf %142, %143 : vector<2x1xf32>
    %cst_59 = arith.constant 9.99999974E-6 : f32
    %145 = vector.broadcast %cst_59 : f32 to vector<2x1xf32>
    %146 = arith.addf %144, %145 : vector<2x1xf32>
    %147 = math.rsqrt %146 : vector<2x1xf32>
    %148 = vector.broadcast %147 : vector<2x1xf32> to vector<2x256xf32>
    %149 = arith.mulf %125, %148 : vector<2x256xf32>
    %150 = vector.broadcast %147 : vector<2x1xf32> to vector<2x256xf32>
    %151 = arith.mulf %127, %150 : vector<2x256xf32>
    %152 = vector.broadcast %147 : vector<2x1xf32> to vector<2x256xf32>
    %153 = arith.mulf %129, %152 : vector<2x256xf32>
    %c0_60 = arith.constant 0 : index
    %c0_61 = arith.constant 0 : index
    %154 = vector.load %arg12[%c0_60, %c0_61] : memref<128x256xf32, #tpu.memory_space<vmem>>, vector<128x256xf32>
    %c0_62 = arith.constant 0 : index
    %c0_63 = arith.constant 0 : index
    %155 = vector.load %arg13[%c0_62, %c0_63] : memref<128x256xf32, #tpu.memory_space<vmem>>, vector<128x256xf32>
    %c0_64 = arith.constant 0 : index
    %c0_65 = arith.constant 0 : index
    %156 = vector.load %arg12[%c0_64, %c0_65] : memref<128x256xf32, #tpu.memory_space<vmem>>, vector<1x256xf32>
    %157 = vector.broadcast %156 : vector<1x256xf32> to vector<2x256xf32>
    %158 = arith.mulf %149, %157 : vector<2x256xf32>
    %c0_66 = arith.constant 0 : index
    %c0_67 = arith.constant 0 : index
    %159 = vector.load %arg13[%c0_66, %c0_67] : memref<128x256xf32, #tpu.memory_space<vmem>>, vector<1x256xf32>
    %160 = vector.broadcast %159 : vector<1x256xf32> to vector<2x256xf32>
    %161 = arith.addf %158, %160 : vector<2x256xf32>
    %c127 = arith.constant 127 : index
    %c0_68 = arith.constant 0 : index
    %162 = vector.load %arg12[%c127, %c0_68] : memref<128x256xf32, #tpu.memory_space<vmem>>, vector<1x256xf32>
    %163 = vector.broadcast %162 : vector<1x256xf32> to vector<2x256xf32>
    %164 = arith.mulf %153, %163 : vector<2x256xf32>
    %c127_69 = arith.constant 127 : index
    %c0_70 = arith.constant 0 : index
    %165 = vector.load %arg13[%c127_69, %c0_70] : memref<128x256xf32, #tpu.memory_space<vmem>>, vector<1x256xf32>
    %166 = vector.broadcast %165 : vector<1x256xf32> to vector<2x256xf32>
    %167 = arith.addf %164, %166 : vector<2x256xf32>
    %168 = vector.shape_cast %151 : vector<2x256xf32> to vector<2x1x256xf32>
    %169 = vector.shape_cast %154 : vector<128x256xf32> to vector<1x128x256xf32>
    %170 = vector.broadcast %168 : vector<2x1x256xf32> to vector<2x128x256xf32>
    %171 = vector.broadcast %169 : vector<1x128x256xf32> to vector<2x128x256xf32>
    %172 = arith.mulf %170, %171 : vector<2x128x256xf32>
    %173 = vector.shape_cast %155 : vector<128x256xf32> to vector<1x128x256xf32>
    %174 = vector.broadcast %173 : vector<1x128x256xf32> to vector<2x128x256xf32>
    %175 = arith.addf %172, %174 : vector<2x128x256xf32>
    %c0_71 = arith.constant 0 : index
    %c0_72 = arith.constant 0 : index
    %c0_73 = arith.constant 0 : index
    %176 = vector.load %arg23[%c0_71, %c0_72, %c0_73] : memref<2x128x256xf32, #tpu.memory_space<vmem>>, vector<2x128x256xf32>
    tpu.vector_store %arg23[%c0_71, %c0_72, %c0_73], %175 {strides = array<i32>} : memref<2x128x256xf32, #tpu.memory_space<vmem>>, vector<2x128x256xf32>,
    %c0_74 = arith.constant 0 : index
    %c0_75 = arith.constant 0 : index
    %c0_76 = arith.constant 0 : index
    %177 = vector.load %arg23[%c0_74, %c0_75, %c0_76] : memref<2x128x256xf32, #tpu.memory_space<vmem>>, vector<2x1x256xf32>
    %178 = vector.shape_cast %177 : vector<2x1x256xf32> to vector<2x256xf32>
    %179 = vector.shape_cast %161 : vector<2x256xf32> to vector<2x1x256xf32>
    tpu.vector_store %arg23[%c0_74, %c0_75, %c0_76], %179 {strides = array<i32>} : memref<2x128x256xf32, #tpu.memory_space<vmem>>, vector<2x1x256xf32>,
    %c0_77 = arith.constant 0 : index
    %c127_78 = arith.constant 127 : index
    %c0_79 = arith.constant 0 : index
    %180 = vector.load %arg23[%c0_77, %c127_78, %c0_79] : memref<2x128x256xf32, #tpu.memory_space<vmem>>, vector<2x1x256xf32>
    %181 = vector.shape_cast %180 : vector<2x1x256xf32> to vector<2x256xf32>
    %182 = vector.shape_cast %167 : vector<2x256xf32> to vector<2x1x256xf32>
    tpu.vector_store %arg23[%c0_77, %c127_78, %c0_79], %182 {strides = array<i32>} : memref<2x128x256xf32, #tpu.memory_space<vmem>>, vector<2x1x256xf32>,
    %c0_80 = arith.constant 0 : index
    %c0_81 = arith.constant 0 : index
    %c0_82 = arith.constant 0 : index
    %183 = vector.load %arg23[%c0_80, %c0_81, %c0_82] : memref<2x128x256xf32, #tpu.memory_space<vmem>>, vector<2x128x256xf32>
    %184 = vector.shape_cast %183 : vector<2x128x256xf32> to vector<256x256xf32>
    %185 = arith.truncf %184 : vector<256x256xf32> to vector<256x256xbf16>
    %c0_83 = arith.constant 0 : index
    %c0_84 = arith.constant 0 : index
    %186 = vector.load %arg14[%c0_83, %c0_84] : memref<256x768xbf16, #tpu.memory_space<vmem>>, vector<256x768xbf16>
    %cst_85 = arith.constant dense<0.000000e+00> : vector<256x768xf32>
    %187 = tpu.matmul %185, %186, %cst_85 {dimension_numbers = #tpu.dot_dimension_numbers<[1], [0], [0], [1], [0, 0, 1, 1], [], []>} : vector<256x256xbf16>, vector<256x768xbf16>, vector<256x768xf32> -> vector<256x768xf32>
    %188 = vector.extract_strided_slice %187 {offsets = [0, 0], sizes = [256, 256], strides = [1, 1]} : vector<256x768xf32> to vector<256x256xf32>
    %c1_i32 = arith.constant 1 : i32
    %189 = tpu.dynamic_rotate %188 by %c1_i32 dim 0 : vector<256x256xf32>, i32 -> vector<256x256xf32>
    %190 = vector.extract_strided_slice %187 {offsets = [0, 256], sizes = [256, 256], strides = [1, 1]} : vector<256x768xf32> to vector<256x256xf32>
    %191 = arith.addf %189, %190 : vector<256x256xf32>
    %192 = vector.extract_strided_slice %187 {offsets = [0, 512], sizes = [256, 256], strides = [1, 1]} : vector<256x768xf32> to vector<256x256xf32>
    %c255_i32 = arith.constant 255 : i32
    %193 = tpu.dynamic_rotate %192 by %c255_i32 dim 0 : vector<256x256xf32>, i32 -> vector<256x256xf32>
    %194 = arith.addf %191, %193 : vector<256x256xf32>
    %c0_86 = arith.constant 0 : index
    %c0_87 = arith.constant 0 : index
    %195 = vector.load %arg15[%c0_86, %c0_87] : memref<1x256xf32, #tpu.memory_space<vmem>>, vector<1x256xf32>
    %196 = vector.broadcast %195 : vector<1x256xf32> to vector<256x256xf32>
    %197 = arith.addf %194, %196 : vector<256x256xf32>
    %198 = vector.shape_cast %197 : vector<256x256xf32> to vector<2x128x256xf32>
    %199 = arith.truncf %167 : vector<2x256xf32> to vector<2x256xbf16>
    %c0_88 = arith.constant 0 : index
    %c0_89 = arith.constant 0 : index
    %200 = vector.load %arg14[%c0_88, %c0_89] : memref<256x768xbf16, #tpu.memory_space<vmem>>, vector<256x256xbf16>
    %cst_90 = arith.constant dense<0.000000e+00> : vector<2x256xf32>
    %201 = tpu.matmul %199, %200, %cst_90 {dimension_numbers = #tpu.dot_dimension_numbers<[1], [0], [0], [1], [0, 0, 1, 1], [], []>} : vector<2x256xbf16>, vector<256x256xbf16>, vector<2x256xf32> -> vector<2x256xf32>
    %202 = arith.truncf %161 : vector<2x256xf32> to vector<2x256xbf16>
    %c0_91 = arith.constant 0 : index
    %c512 = arith.constant 512 : index
    %203 = vector.load %arg14[%c0_91, %c512] : memref<256x768xbf16, #tpu.memory_space<vmem>>, vector<256x256xbf16>
    %cst_92 = arith.constant dense<0.000000e+00> : vector<2x256xf32>
    %204 = tpu.matmul %202, %203, %cst_92 {dimension_numbers = #tpu.dot_dimension_numbers<[1], [0], [0], [1], [0, 0, 1, 1], [], []>} : vector<2x256xbf16>, vector<256x256xbf16>, vector<2x256xf32> -> vector<2x256xf32>
    %c0_93 = arith.constant 0 : index
    %c0_94 = arith.constant 0 : index
    %c0_95 = arith.constant 0 : index
    %205 = vector.load %arg24[%c0_93, %c0_94, %c0_95] : memref<2x128x256xf32, #tpu.memory_space<vmem>>, vector<2x128x256xf32>
    tpu.vector_store %arg24[%c0_93, %c0_94, %c0_95], %198 {strides = array<i32>} : memref<2x128x256xf32, #tpu.memory_space<vmem>>, vector<2x128x256xf32>,
    %206 = vector.extract_strided_slice %198 {offsets = [0, 0, 0], sizes = [2, 1, 256], strides = [1, 1, 1]} : vector<2x128x256xf32> to vector<2x1x256xf32>
    %207 = vector.shape_cast %206 : vector<2x1x256xf32> to vector<2x256xf32>
    %208 = vector.extract_strided_slice %201 {offsets = [1, 0], sizes = [1, 256], strides = [1, 1]} : vector<2x256xf32> to vector<1x256xf32>
    %209 = vector.extract_strided_slice %201 {offsets = [0, 0], sizes = [1, 256], strides = [1, 1]} : vector<2x256xf32> to vector<1x256xf32>
    %210 = tpu.concatenate %208, %209 in 0 : vector<1x256xf32>, vector<1x256xf32> -> vector<2x256xf32>
    %211 = arith.subf %207, %210 : vector<2x256xf32>
    %c0_96 = arith.constant 0 : index
    %c0_97 = arith.constant 0 : index
    %c0_98 = arith.constant 0 : index
    %212 = vector.load %arg24[%c0_96, %c0_97, %c0_98] : memref<2x128x256xf32, #tpu.memory_space<vmem>>, vector<2x1x256xf32>
    %213 = vector.shape_cast %212 : vector<2x1x256xf32> to vector<2x256xf32>
    %214 = vector.shape_cast %211 : vector<2x256xf32> to vector<2x1x256xf32>
    tpu.vector_store %arg24[%c0_96, %c0_97, %c0_98], %214 {strides = array<i32>} : memref<2x128x256xf32, #tpu.memory_space<vmem>>, vector<2x1x256xf32>,
    %215 = vector.extract_strided_slice %198 {offsets = [0, 127, 0], sizes = [2, 1, 256], strides = [1, 1, 1]} : vector<2x128x256xf32> to vector<2x1x256xf32>
    %216 = vector.shape_cast %215 : vector<2x1x256xf32> to vector<2x256xf32>
    %217 = vector.extract_strided_slice %204 {offsets = [1, 0], sizes = [1, 256], strides = [1, 1]} : vector<2x256xf32> to vector<1x256xf32>
    %218 = vector.extract_strided_slice %204 {offsets = [0, 0], sizes = [1, 256], strides = [1, 1]} : vector<2x256xf32> to vector<1x256xf32>
    %219 = tpu.concatenate %217, %218 in 0 : vector<1x256xf32>, vector<1x256xf32> -> vector<2x256xf32>
    %220 = arith.subf %216, %219 : vector<2x256xf32>
    %c0_99 = arith.constant 0 : index
    %c127_100 = arith.constant 127 : index
    %c0_101 = arith.constant 0 : index
    %221 = vector.load %arg24[%c0_99, %c127_100, %c0_101] : memref<2x128x256xf32, #tpu.memory_space<vmem>>, vector<2x1x256xf32>
    %222 = vector.shape_cast %221 : vector<2x1x256xf32> to vector<2x256xf32>
    %223 = vector.shape_cast %220 : vector<2x256xf32> to vector<2x1x256xf32>
    tpu.vector_store %arg24[%c0_99, %c127_100, %c0_101], %223 {strides = array<i32>} : memref<2x128x256xf32, #tpu.memory_space<vmem>>, vector<2x1x256xf32>,
    %c0_102 = arith.constant 0 : index
    %c0_103 = arith.constant 0 : index
    %c0_104 = arith.constant 0 : index
    %224 = vector.load %arg24[%c0_102, %c0_103, %c0_104] : memref<2x128x256xf32, #tpu.memory_space<vmem>>, vector<2x128x256xf32>
    %cst_105 = arith.constant 5.000000e-01 : f32
    %225 = vector.broadcast %cst_105 : f32 to vector<2x128x256xf32>
    %226 = arith.mulf %225, %224 : vector<2x128x256xf32>
    %cst_106 = arith.constant 4.471500e-02 : f32
    %227 = vector.broadcast %cst_106 : f32 to vector<2x128x256xf32>
    %228 = arith.mulf %227, %224 : vector<2x128x256xf32>
    %229 = arith.mulf %228, %224 : vector<2x128x256xf32>
    %230 = arith.mulf %229, %224 : vector<2x128x256xf32>
    %231 = arith.addf %224, %230 : vector<2x128x256xf32>
    %cst_107 = arith.constant 0.797884583 : f32
    %232 = vector.broadcast %cst_107 : f32 to vector<2x128x256xf32>
    %233 = arith.mulf %232, %231 : vector<2x128x256xf32>
    %234 = math.tanh %233 : vector<2x128x256xf32>
    %cst_108 = arith.constant 1.000000e+00 : f32
    %235 = vector.broadcast %cst_108 : f32 to vector<2x128x256xf32>
    %236 = arith.addf %235, %234 : vector<2x128x256xf32>
    %237 = arith.mulf %226, %236 : vector<2x128x256xf32>
    %cst_109 = arith.constant dense<0.000000e+00> : vector<2x128xf32>
    %238 = vector.multi_reduction <add>, %237, %cst_109 [2] : vector<2x128x256xf32> to vector<2x128xf32>
    %239 = vector.shape_cast %238 : vector<2x128xf32> to vector<2x128x1xf32>
    %cst_110 = arith.constant 2.560000e+02 : f32
    %240 = vector.broadcast %cst_110 : f32 to vector<2x128x1xf32>
    %241 = arith.divf %239, %240 : vector<2x128x1xf32>
    %cst_111 = arith.constant dense<0.000000e+00> : vector<2x1xf32>
    %242 = vector.multi_reduction <add>, %241, %cst_111 [1] : vector<2x128x1xf32> to vector<2x1xf32>
    %243 = vector.shape_cast %242 : vector<2x1xf32> to vector<2x1x1xf32>
    %cst_112 = arith.constant 1.280000e+02 : f32
    %244 = vector.broadcast %cst_112 : f32 to vector<2x1x1xf32>
    %245 = arith.divf %243, %244 : vector<2x1x1xf32>
    %246 = vector.broadcast %245 : vector<2x1x1xf32> to vector<2x128x256xf32>
    %247 = arith.subf %237, %246 : vector<2x128x256xf32>
    %248 = arith.mulf %247, %247 : vector<2x128x256xf32>
    %cst_113 = arith.constant dense<0.000000e+00> : vector<2x128xf32>
    %249 = vector.multi_reduction <add>, %248, %cst_113 [2] : vector<2x128x256xf32> to vector<2x128xf32>
    %250 = vector.shape_cast %249 : vector<2x128xf32> to vector<2x128x1xf32>
    %cst_114 = arith.constant 2.560000e+02 : f32
    %251 = vector.broadcast %cst_114 : f32 to vector<2x128x1xf32>
    %252 = arith.divf %250, %251 : vector<2x128x1xf32>
    %cst_115 = arith.constant dense<0.000000e+00> : vector<2x1xf32>
    %253 = vector.multi_reduction <add>, %252, %cst_115 [1] : vector<2x128x1xf32> to vector<2x1xf32>
    %254 = vector.shape_cast %253 : vector<2x1xf32> to vector<2x1x1xf32>
    %cst_116 = arith.constant 1.280000e+02 : f32
    %255 = vector.broadcast %cst_116 : f32 to vector<2x1x1xf32>
    %256 = arith.divf %254, %255 : vector<2x1x1xf32>
    %cst_117 = arith.constant 9.99999974E-6 : f32
    %257 = vector.broadcast %cst_117 : f32 to vector<2x1x1xf32>
    %258 = arith.addf %256, %257 : vector<2x1x1xf32>
    %259 = math.rsqrt %258 : vector<2x1x1xf32>
    %260 = vector.broadcast %259 : vector<2x1x1xf32> to vector<2x128x256xf32>
    %261 = arith.mulf %247, %260 : vector<2x128x256xf32>
    %c0_118 = arith.constant 0 : index
    %c0_119 = arith.constant 0 : index
    %262 = vector.load %arg16[%c0_118, %c0_119] : memref<128x256xf32, #tpu.memory_space<vmem>>, vector<128x256xf32>
    %263 = vector.shape_cast %262 : vector<128x256xf32> to vector<1x128x256xf32>
    %264 = vector.broadcast %263 : vector<1x128x256xf32> to vector<2x128x256xf32>
    %265 = arith.mulf %261, %264 : vector<2x128x256xf32>
    %c0_120 = arith.constant 0 : index
    %c0_121 = arith.constant 0 : index
    %266 = vector.load %arg17[%c0_120, %c0_121] : memref<128x256xf32, #tpu.memory_space<vmem>>, vector<128x256xf32>
    %267 = vector.shape_cast %266 : vector<128x256xf32> to vector<1x128x256xf32>
    %268 = vector.broadcast %267 : vector<1x128x256xf32> to vector<2x128x256xf32>
    %269 = arith.addf %265, %268 : vector<2x128x256xf32>
    %270 = vector.shape_cast %269 : vector<2x128x256xf32> to vector<256x256xf32>
    %271 = arith.truncf %270 : vector<256x256xf32> to vector<256x256xbf16>
    %c0_122 = arith.constant 0 : index
    %c0_123 = arith.constant 0 : index
    %272 = vector.load %arg18[%c0_122, %c0_123] : memref<256x128xbf16, #tpu.memory_space<vmem>>, vector<256x128xbf16>
    %cst_124 = arith.constant dense<0.000000e+00> : vector<256x128xf32>
    %273 = tpu.matmul %271, %272, %cst_124 {dimension_numbers = #tpu.dot_dimension_numbers<[1], [0], [0], [1], [0, 0, 1, 1], [], []>} : vector<256x256xbf16>, vector<256x128xbf16>, vector<256x128xf32> -> vector<256x128xf32>
    %c0_125 = arith.constant 0 : index
    %c0_126 = arith.constant 0 : index
    %274 = vector.load %arg19[%c0_125, %c0_126] : memref<1x128xf32, #tpu.memory_space<vmem>>, vector<1x128xf32>
    %275 = vector.broadcast %274 : vector<1x128xf32> to vector<256x128xf32>
    %276 = arith.addf %273, %275 : vector<256x128xf32>
    %cst_127 = arith.constant 5.000000e-01 : f32
    %277 = vector.broadcast %cst_127 : f32 to vector<256x128xf32>
    %278 = arith.mulf %277, %276 : vector<256x128xf32>
    %cst_128 = arith.constant 4.471500e-02 : f32
    %279 = vector.broadcast %cst_128 : f32 to vector<256x128xf32>
    %280 = arith.mulf %279, %276 : vector<256x128xf32>
    %281 = arith.mulf %280, %276 : vector<256x128xf32>
    %282 = arith.mulf %281, %276 : vector<256x128xf32>
    %283 = arith.addf %276, %282 : vector<256x128xf32>
    %cst_129 = arith.constant 0.797884583 : f32
    %284 = vector.broadcast %cst_129 : f32 to vector<256x128xf32>
    %285 = arith.mulf %284, %283 : vector<256x128xf32>
    %286 = math.tanh %285 : vector<256x128xf32>
    %cst_130 = arith.constant 1.000000e+00 : f32
    %287 = vector.broadcast %cst_130 : f32 to vector<256x128xf32>
    %288 = arith.addf %287, %286 : vector<256x128xf32>
    %289 = arith.mulf %278, %288 : vector<256x128xf32>
    %c0_131 = arith.constant 0 : index
    %c0_132 = arith.constant 0 : index
    %290 = vector.load %arg20[%c0_131, %c0_132] : memref<128x2xf32, #tpu.memory_space<vmem>>, vector<128x2xf32>
    %cst_133 = arith.constant dense<0.000000e+00> : vector<256x2xf32>
    %291 = tpu.matmul %289, %290, %cst_133 {dimension_numbers = #tpu.dot_dimension_numbers<[1], [0], [0], [1], [0, 0, 1, 1], [], []>} : vector<256x128xf32>, vector<128x2xf32>, vector<256x2xf32> -> vector<256x2xf32>
    %c0_134 = arith.constant 0 : index
    %c0_135 = arith.constant 0 : index
    %292 = vector.load %arg21[%c0_134, %c0_135] : memref<1x2xf32, #tpu.memory_space<vmem>>, vector<1x2xf32>
    %293 = vector.broadcast %292 : vector<1x2xf32> to vector<256x2xf32>
    %294 = arith.addf %291, %293 : vector<256x2xf32>
    %295 = vector.shape_cast %294 : vector<256x2xf32> to vector<2x128x2xf32>
    %c0_136 = arith.constant 0 : index
    %c0_137 = arith.constant 0 : index
    %c0_138 = arith.constant 0 : index
    %296 = vector.load %arg22[%c0_136, %c0_137, %c0_138] : memref<2x128x2xf32, #tpu.memory_space<vmem>>, vector<2x128x2xf32>
    tpu.vector_store %arg22[%c0_136, %c0_137, %c0_138], %295 {strides = array<i32>} : memref<2x128x2xf32, #tpu.memory_space<vmem>>, vector<2x128x2xf32>,
    return
  }
  func.func @transform_0(%arg0: i32) -> (i32, i32, i32) {
    %c0_i32 = arith.constant 0 : i32
    %c0_i32_0 = arith.constant 0 : i32
    %c0_i32_1 = arith.constant 0 : i32
    return %arg0, %c0_i32, %c0_i32_0 : i32, i32, i32
  }
  func.func @transform_1(%arg0: i32) -> (i32, i32) {
    %c0_i32 = arith.constant 0 : i32
    %c0_i32_0 = arith.constant 0 : i32
    %c0_i32_1 = arith.constant 0 : i32
    return %c0_i32, %c0_i32_0 : i32, i32
  }
  func.func @transform_2(%arg0: i32) -> (i32, i32) {
    %c0_i32 = arith.constant 0 : i32
    %c0_i32_0 = arith.constant 0 : i32
    %c0_i32_1 = arith.constant 0 : i32
    return %c0_i32, %c0_i32_0 : i32, i32
  }
  func.func @transform_3(%arg0: i32) -> (i32, i32) {
    %c0_i32 = arith.constant 0 : i32
    %c0_i32_0 = arith.constant 0 : i32
    %c0_i32_1 = arith.constant 0 : i32
    return %c0_i32, %c0_i32_0 : i32, i32
  }
  func.func @transform_4(%arg0: i32) -> (i32, i32) {
    %c0_i32 = arith.constant 0 : i32
    %c0_i32_0 = arith.constant 0 : i32
    %c0_i32_1 = arith.constant 0 : i32
    return %c0_i32, %c0_i32_0 : i32, i32
  }
  func.func @transform_5(%arg0: i32) -> (i32, i32) {
    %c0_i32 = arith.constant 0 : i32
    %c0_i32_0 = arith.constant 0 : i32
    %c0_i32_1 = arith.constant 0 : i32
    return %c0_i32, %c0_i32_0 : i32, i32
  }
  func.func @transform_6(%arg0: i32) -> (i32, i32) {
    %c0_i32 = arith.constant 0 : i32
    %c0_i32_0 = arith.constant 0 : i32
    %c0_i32_1 = arith.constant 0 : i32
    return %c0_i32, %c0_i32_0 : i32, i32
  }
  func.func @transform_7(%arg0: i32) -> (i32, i32) {
    %c0_i32 = arith.constant 0 : i32
    %c0_i32_0 = arith.constant 0 : i32
    %c0_i32_1 = arith.constant 0 : i32
    return %c0_i32, %c0_i32_0 : i32, i32
  }
  func.func @transform_8(%arg0: i32) -> (i32, i32) {
    %c0_i32 = arith.constant 0 : i32
    %c0_i32_0 = arith.constant 0 : i32
    %c0_i32_1 = arith.constant 0 : i32
    return %c0_i32, %c0_i32_0 : i32, i32
  }
  func.func @transform_9(%arg0: i32) -> (i32, i32) {
    %c0_i32 = arith.constant 0 : i32
    %c0_i32_0 = arith.constant 0 : i32
    %c0_i32_1 = arith.constant 0 : i32
    return %c0_i32, %c0_i32_0 : i32, i32
  }
  func.func @transform_10(%arg0: i32) -> (i32, i32) {
    %c0_i32 = arith.constant 0 : i32
    %c0_i32_0 = arith.constant 0 : i32
    %c0_i32_1 = arith.constant 0 : i32
    return %c0_i32, %c0_i32_0 : i32, i32
  }
  func.func @transform_11(%arg0: i32) -> (i32, i32) {
    %c0_i32 = arith.constant 0 : i32
    %c0_i32_0 = arith.constant 0 : i32
    %c0_i32_1 = arith.constant 0 : i32
    return %c0_i32, %c0_i32_0 : i32, i32
  }
  func.func @transform_12(%arg0: i32) -> (i32, i32) {
    %c0_i32 = arith.constant 0 : i32
    %c0_i32_0 = arith.constant 0 : i32
    %c0_i32_1 = arith.constant 0 : i32
    return %c0_i32, %c0_i32_0 : i32, i32
  }
  func.func @transform_13(%arg0: i32) -> (i32, i32) {
    %c0_i32 = arith.constant 0 : i32
    %c0_i32_0 = arith.constant 0 : i32
    %c0_i32_1 = arith.constant 0 : i32
    return %c0_i32, %c0_i32_0 : i32, i32
  }
  func.func @transform_14(%arg0: i32) -> (i32, i32) {
    %c0_i32 = arith.constant 0 : i32
    %c0_i32_0 = arith.constant 0 : i32
    %c0_i32_1 = arith.constant 0 : i32
    return %c0_i32, %c0_i32_0 : i32, i32
  }
  func.func @transform_15(%arg0: i32) -> (i32, i32) {
    %c0_i32 = arith.constant 0 : i32
    %c0_i32_0 = arith.constant 0 : i32
    %c0_i32_1 = arith.constant 0 : i32
    return %c0_i32, %c0_i32_0 : i32, i32
  }
  func.func @transform_16(%arg0: i32) -> (i32, i32) {
    %c0_i32 = arith.constant 0 : i32
    %c0_i32_0 = arith.constant 0 : i32
    %c0_i32_1 = arith.constant 0 : i32
    return %c0_i32, %c0_i32_0 : i32, i32
  }
  func.func @transform_17(%arg0: i32) -> (i32, i32) {
    %c0_i32 = arith.constant 0 : i32
    %c0_i32_0 = arith.constant 0 : i32
    %c0_i32_1 = arith.constant 0 : i32
    return %c0_i32, %c0_i32_0 : i32, i32
  }
  func.func @transform_18(%arg0: i32) -> (i32, i32) {
    %c0_i32 = arith.constant 0 : i32
    %c0_i32_0 = arith.constant 0 : i32
    %c0_i32_1 = arith.constant 0 : i32
    return %c0_i32, %c0_i32_0 : i32, i32
  }
  func.func @transform_19(%arg0: i32) -> (i32, i32) {
    %c0_i32 = arith.constant 0 : i32
    %c0_i32_0 = arith.constant 0 : i32
    %c0_i32_1 = arith.constant 0 : i32
    return %c0_i32, %c0_i32_0 : i32, i32
  }
  func.func @transform_20(%arg0: i32) -> (i32, i32) {
    %c0_i32 = arith.constant 0 : i32
    %c0_i32_0 = arith.constant 0 : i32
    %c0_i32_1 = arith.constant 0 : i32
    return %c0_i32, %c0_i32_0 : i32, i32
  }
  func.func @transform_21(%arg0: i32) -> (i32, i32, i32) {
    %c0_i32 = arith.constant 0 : i32
    %c0_i32_0 = arith.constant 0 : i32
    %c0_i32_1 = arith.constant 0 : i32
    return %arg0, %c0_i32, %c0_i32_0 : i32, i32, i32
  }
}

</mosaic_0001>

<bundles_post_ra>
// kernel: cnn_forward.1
= control target key start
LH: loop header
LB: loop body
LE: loop exit
PB: predicated region body
PF: predicated region fallthrough
CT: control target
= control target key end

     0   :  { %s11893_s0 = inlined_call_operand.vmem [shape: f32[4,1,9], index: 0, kind: input, shape index: {}]   ;;  %s11894_s1 = inlined_call_operand.vmem [shape: f32[9,128], index: 1, kind: input, shape index: {}]   ;;  %s11895_s2 = inlined_call_operand.vmem [shape: f32[1,128], index: 2, kind: input, shape index: {}]   ;;  %s11896_s3 = inlined_call_operand.vmem [shape: f32[1,128], index: 3, kind: input, shape index: {}]   ;;  %s11897_s4 = inlined_call_operand.vmem [shape: f32[1,128], index: 4, kind: input, shape index: {}]   ;;  %s11898_s5 = inlined_call_operand.hbm [shape: f32[128,256], index: 5, kind: input, shape index: {}]   ;;  %s11899_s6 = inlined_call_operand.vmem [shape: f32[1,256], index: 6, kind: input, shape index: {}]   ;;  %s11900_s7 = inlined_call_operand.vmem [shape: f32[1,256], index: 7, kind: input, shape index: {}]   ;;  %s11901_s8 = inlined_call_operand.vmem [shape: f32[1,256], index: 8, kind: input, shape index: {}]   ;;  %s11902_s9 = inlined_call_operand.hbm [shape: f32[256,768], index: 9, kind: input, shape index: {}]   ;;  %s11903_s10 = inlined_call_operand.vmem [shape: f32[1,256], index: 10, kind: input, shape index: {}]   ;;  %s11904_s11 = inlined_call_operand.hbm [shape: f32[128,256], index: 11, kind: input, shape index: {}]   ;;  %s11905_s12 = inlined_call_operand.hbm [shape: f32[128,256], index: 12, kind: input, shape index: {}]   ;;  %s11906_s13 = inlined_call_operand.hbm [shape: bf16[256,768], index: 13, kind: input, shape index: {}]   ;;  %s11907_s14 = inlined_call_operand.vmem [shape: f32[1,256], index: 14, kind: input, shape index: {}]   ;;  %s11908_s15 = inlined_call_operand.hbm [shape: f32[128,256], index: 15, kind: input, shape index: {}]   ;;  %s11909_s16 = inlined_call_operand.hbm [shape: f32[128,256], index: 16, kind: input, shape index: {}]   ;;  %s11910_s17 = inlined_call_operand.vmem [shape: bf16[256,128], index: 17, kind: input, shape index: {}]   ;;  %s11911_s18 = inlined_call_operand.vmem [shape: f32[1,128], index: 18, kind: input, shape index: {}]   ;;  %s11912_s19 = inlined_call_operand.vmem [shape: f32[128,2], index: 19, kind: input, shape index: {}]   ;;  %s11913_s20 = inlined_call_operand.vmem [shape: f32[1,2], index: 20, kind: input, shape index: {}]   ;;  %s11914_s21 = inlined_call_operand.vmem [shape: f32[4,128,2], index: 21, kind: output, shape index: {}]  }
   0x1   :  { %12097 = sst [smem:[#allocation93_spill]] %s11893_s0 }
   0x2   :  { %12098 = sst [smem:[#allocation94_spill]] %s11894_s1 }
   0x3   :  { %12099 = sst [smem:[#allocation95_spill]] %s11895_s2 }
   0x4   :  { %12100 = sst [smem:[#allocation96_spill]] %s11896_s3 }
   0x5   :  { %12101 = sst [smem:[#allocation97_spill]] %s11897_s4 }
   0x6   :  { %12102 = sst [smem:[#allocation98_spill]] %s11898_s5 }
   0x7   :  { %12103 = sst [smem:[#allocation99_spill]] %s11902_s9 }
   0x8   :  { %12104 = sst [smem:[#allocation100_spill]] %s11911_s18 }
   0x9   :  { %12105 = sst [smem:[#allocation101_spill]] %s11912_s19 }
   0xa   :  { %12106 = sst [smem:[#allocation102_spill]] %s11913_s20 }
   0xb   :  { %12107 = sst [smem:[#allocation103_spill]] %s11914_s21 }
   0xc   :  { %26 = vsyncpa [#allocation5], 0 }
   0xd   :  { %27 = vsyncpa [#allocation7], 0 }
   0xe   :  { %28 = vsyncpa [#allocation10], 0 }
   0xf   :  { %29 = vsyncpa [#allocation13], 0  ;;  %s8130_s2 = smov 0  }
  0x10 LB: > { %s8002_s25 = smov [#allocation6]   ;;  %s11917_s27 = sadd.s32 4294967295, %s8000_s2   ;;  %s8000_s2 = sphi %s8130_s2, %s35_s2  }
  0x11   : > { %s558_s26 = sshll.u32 %s8002_s25, 4  ;;  %p6606_p0 = scmp.ge.s32.totalorder %s8000_s2, 1  ;;  %s8144_s26 = int_to_ptr.vmem [resolvable:$true] %s558_s26 }
  0x12   : > { %p512_p1 = scmp.lt.s32.totalorder %s8000_s2, 3  ;;  %p8140_p2 = scmp.eq.s32.totalorder %s11917_s27, 0 }
  0x13   : > { %s8003_s0 = smov [#allocation9]   ;;  %s8004_s30 = smov [#allocation12]  }
  0x14   : > { %s12108_s3 = scalar_select %p8140_p2, 1, 0 }
  0x15   : > { %p8146_p3 = pnand %p6606_p0, %p512_p1  ;;  %s587_s4 = sshll.u32 %s8003_s0, 4  ;;  %s8158_s4 = int_to_ptr.vmem [resolvable:$true] %s587_s4 }
  0x16   : > { %s616_s5 = sshll.u32 %s8004_s30, 4  ;;  %s12111_s9 = sld [smem:[#allocation99_spill]]  ;;  %s8160_s5 = int_to_ptr.vmem [resolvable:$true] %s616_s5 }
  0x17   : > { %s12109_s28 = scalar_select %p8146_p3, 1, 0 }
  0x18   : > { %p7319_p4 = pneg %p8146_p3 }
  0x1a   : > { %p8154_p5 = pnand %p8140_p2, %p7319_p4 }
  0x1c   : > { %s7782_s1 = scalar_lea.hbm %s12111_s9, 24576  ;;  %p8170_p7 = pneg %p8154_p5 }
  0x1d   : > { %p7783_p6 = scmp.ne.s32.totalorder %s12111_s9, %s7782_s1  ;;  %p7789_p10 = scmp.lt.u32.totalorder %s7782_s1, %s12111_s9 }
  0x1f   : > { %p7785_p8 = pnand %p8170_p7, %p7783_p6 }
  0x21   : > { %p7786_p9 = pneg %p7785_p8 }
  0x23   : > { %p7791_p11 = pnand %p7789_p10, %p7786_p9 }
  0x25   : > { %7794 = shalt.err (!%p7791_p11)
}
  0x26   : > { %s7795_s22 = scalar_lea.vmem %s8144_s26, 24576  ;;  %p7803_p1 = scmp.lt.s32.totalorder %s8144_s26, %s8144_s26 }
  0x27   : > { %p7796_p12 = scmp.ne.s32.totalorder %s8144_s26, %s7795_s22  ;;  %p7804_p4 = scmp.lt.s32.totalorder %s7795_s22, %s7795_s22 }
  0x29   : > { %p7798_p13 = pnand %p7796_p12, %p8170_p7  ;;  %p7805_p6 = por %p7804_p4, %p7803_p1 }
  0x2b   : > { %p7799_p0 = pneg %p7798_p13 }
  0x2d   : > { %p7806_p8 = pnand %p7805_p6, %p7799_p0 }
  0x2f   : > { %7809 = shalt.err (!%p7806_p8)
}
  0x30   : > { %s8005_s23 = smov 768   ;;  %s8006_s1 = smov 48  }
  0x31   : > { %7325 = dma.hbm_to_vmem [thread:$0]  (!%p8154_p5), %s12111_s9, 24576, %s8144_s26, [#allocation7], %s8005_s23, %s8005_s23, %s8006_s1  }
  0x32   : > { %s7810_s21 = scalar_lea.hbm %s11905_s12, 4096 }
  0x33   : > { %p7811_p9 = scmp.ne.s32.totalorder %s11905_s12, %s7810_s21  ;;  %p7817_p12 = scmp.lt.u32.totalorder %s7810_s21, %s11905_s12 }
  0x35   : > { %p7813_p10 = pnand %p7811_p9, %p8170_p7 }
  0x37   : > { %p7814_p11 = pneg %p7813_p10 }
  0x39   : > { %p7819_p13 = pnand %p7817_p12, %p7814_p11 }
  0x3b   : > { %7822 = shalt.err (!%p7819_p13)
}
  0x3c   : > { %s7823_s26 = scalar_lea.vmem %s8158_s4, 4096  ;;  %p7831_p6 = scmp.lt.s32.totalorder %s8158_s4, %s8158_s4 }
  0x3d   : > { %p7824_p0 = scmp.ne.s32.totalorder %s8158_s4, %s7823_s26  ;;  %p7832_p8 = scmp.lt.s32.totalorder %s7823_s26, %s7823_s26 }
  0x3f   : > { %p7826_p1 = pnand %p7824_p0, %p8170_p7  ;;  %p7833_p9 = por %p7832_p8, %p7831_p6 }
  0x41   : > { %p7827_p4 = pneg %p7826_p1 }
  0x43   : > { %p7834_p10 = pnand %p7833_p9, %p7827_p4 }
  0x45   : > { %7837 = shalt.err (!%p7834_p10)
}
  0x46   : > { %s11922_s18 = smov 256   ;;  %s11923_s19 = smov 16  }
  0x47   : > { %7331 = dma.hbm_to_vmem [thread:$0]  (!%p8154_p5), %s11905_s12, 4096, %s8158_s4, [#allocation10], %s11922_s18, %s11922_s18, %s11923_s19  }
  0x48   : > { %s7838_s24 = scalar_lea.hbm %s11908_s15, 4096 }
  0x49   : > { %p7839_p11 = scmp.ne.s32.totalorder %s11908_s15, %s7838_s24  ;;  %p7845_p0 = scmp.lt.u32.totalorder %s7838_s24, %s11908_s15 }
  0x4b   : > { %p7841_p12 = pnand %p7839_p11, %p8170_p7 }
  0x4d   : > { %p7842_p13 = pneg %p7841_p12 }
  0x4f   : > { %p7847_p1 = pnand %p7845_p0, %p7842_p13 }
  0x51   : > { %7850 = shalt.err (!%p7847_p1)
}
  0x52   : > { %s7851_s4 = scalar_lea.vmem %s8160_s5, 4096  ;;  %p7859_p9 = scmp.lt.s32.totalorder %s8160_s5, %s8160_s5 }
  0x53   : > { %p7852_p4 = scmp.ne.s32.totalorder %s8160_s5, %s7851_s4  ;;  %p7860_p10 = scmp.lt.s32.totalorder %s7851_s4, %s7851_s4 }
  0x55   : > { %p7854_p6 = pnand %p7852_p4, %p8170_p7  ;;  %p7861_p11 = por %p7860_p10, %p7859_p9 }
  0x57   : > { %p7855_p8 = pneg %p7854_p6 }
  0x59   : > { %p7862_p12 = pnand %p7861_p11, %p7855_p8 }
  0x5b   : > { %7865 = shalt.err (!%p7862_p12)
}
  0x5c   : > { %7337 = dma.hbm_to_vmem [thread:$0]  (!%p8154_p5), %s11908_s15, 4096, %s8160_s5, [#allocation13], %s11922_s18, %s11922_s18, %s11923_s19  }
  0x5d   : > { %s8009_s21 = smov [#allocation4]   ;;  %s8010_s1 = smov [#allocation8]  }
  0x5e   : > { %s536_s23 = sshll.u32 %s8009_s21, 4  ;;  %s574_s24 = sshll.u32 %s8010_s1, 4  ;;  %s537_s23 = int_to_ptr.vmem [resolvable:$true] %s536_s23  ;;  %s8243_s24 = int_to_ptr.vmem [resolvable:$true] %s574_s24 }
  0x5f   : > { %s12113_s30 = sld [smem:[#allocation98_spill]] }
  0x65   : > { %s7866_s22 = scalar_lea.hbm %s12113_s30, 4096 }
  0x66   : > { %p7867_p13 = scmp.ne.s32.totalorder %s12113_s30, %s7866_s22  ;;  %p7873_p4 = scmp.lt.u32.totalorder %s7866_s22, %s12113_s30 }
  0x68   : > { %p7869_p0 = pnand %p7867_p13, %p8170_p7 }
  0x6a   : > { %p7870_p1 = pneg %p7869_p0 }
  0x6c   : > { %p7875_p6 = pnand %p7873_p4, %p7870_p1 }
  0x6e   : > { %7878 = shalt.err (!%p7875_p6)
}
  0x6f   : > { %s7879_s20 = scalar_lea.vmem %s537_s23, 4096  ;;  %p7887_p11 = scmp.lt.s32.totalorder %s537_s23, %s537_s23 }
  0x70   : > { %p7880_p8 = scmp.ne.s32.totalorder %s537_s23, %s7879_s20  ;;  %p7888_p12 = scmp.lt.s32.totalorder %s7879_s20, %s7879_s20 }
  0x72   : > { %p7882_p9 = pnand %p7880_p8, %p8170_p7  ;;  %p7889_p2 = por %p7888_p12, %p7887_p11 }
  0x74   : > { %p7883_p10 = pneg %p7882_p9 }
  0x76   : > { %p7890_p3 = pnand %p7889_p2, %p7883_p10 }
  0x78   : > { %7893 = shalt.err (!%p7890_p3)
}
  0x79   : > { %7322 = dma.hbm_to_vmem [thread:$0]  (!%p8154_p5), %s12113_s30, 4096, %s537_s23, [#allocation5], %s11922_s18, %s11922_s18, %s11923_s19  }
  0x7a   : > { %s7894_s0 = scalar_lea.hbm %s11904_s11, 4096 }
  0x7b   : > { %p7895_p13 = scmp.ne.s32.totalorder %s11904_s11, %s7894_s0  ;;  %p7901_p0 = scmp.lt.u32.totalorder %s7894_s0, %s11904_s11 }
  0x7d   : > { %p7897_p2 = pnand %p7895_p13, %p8170_p7 }
  0x7f   : > { %p7898_p3 = pneg %p7897_p2 }
  0x81   : > { %p7903_p1 = pnand %p7901_p0, %p7898_p3 }
  0x83   : > { %7906 = shalt.err (!%p7903_p1)
}
  0x84   : > { %s7907_s23 = scalar_lea.vmem %s8243_s24, 4096  ;;  %p7915_p9 = scmp.lt.s32.totalorder %s8243_s24, %s8243_s24 }
  0x85   : > { %p7908_p4 = scmp.ne.s32.totalorder %s8243_s24, %s7907_s23  ;;  %p7916_p10 = scmp.lt.s32.totalorder %s7907_s23, %s7907_s23 }
  0x87   : > { %p7910_p6 = pnand %p7908_p4, %p8170_p7  ;;  %p7917_p11 = por %p7916_p10, %p7915_p9 }
  0x89   : > { %p7911_p8 = pneg %p7910_p6 }
  0x8b   : > { %p7918_p12 = pnand %p7917_p11, %p7911_p8 }
  0x8d   : > { %7921 = shalt.err (!%p7918_p12)
}
  0x8e   : > { %7328 = dma.hbm_to_vmem [thread:$0]  (!%p8154_p5), %s11904_s11, 4096, %s8243_s24, [#allocation7], %s11922_s18, %s11922_s18, %s11923_s19  }
  0x8f   : > { %s8011_s21 = smov [#allocation11]   ;;  %s7922_s22 = scalar_lea.hbm %s11906_s13, 12288 }
  0x90   : > { %s600_s1 = sshll.u32 %s8011_s21, 4  ;;  %p7923_p13 = scmp.ne.s32.totalorder %s11906_s13, %s7922_s22  ;;  %s601_s1 = int_to_ptr.vmem [resolvable:$true] %s600_s1 }
  0x91   : > { %p7929_p0 = scmp.lt.u32.totalorder %s7922_s22, %s11906_s13 }
  0x92   : > { %p7925_p2 = pnand %p7923_p13, %p8170_p7 }
  0x94   : > { %p7926_p3 = pneg %p7925_p2 }
  0x96   : > { %p7931_p1 = pnand %p7929_p0, %p7926_p3 }
  0x98   : > { %7934 = shalt.err (!%p7931_p1)
}
  0x99   : > { %s7935_s24 = scalar_lea.vmem %s601_s1, 12288  ;;  %p7943_p9 = scmp.lt.s32.totalorder %s601_s1, %s601_s1 }
  0x9a   : > { %p7936_p4 = scmp.ne.s32.totalorder %s601_s1, %s7935_s24  ;;  %p7944_p10 = scmp.lt.s32.totalorder %s7935_s24, %s7935_s24 }
  0x9c   : > { %p7938_p6 = pnand %p7936_p4, %p8170_p7  ;;  %p7945_p11 = por %p7944_p10, %p7943_p9 }
  0x9e   : > { %p7939_p8 = pneg %p7938_p6 }
  0xa0   : > { %p7946_p12 = pnand %p7945_p11, %p7939_p8 }
  0xa2   : > { %7949 = shalt.err (!%p7946_p12)
}
  0xa3   : > { %s8012_s20 = smov 384   ;;  %s8013_s9 = smov 24  }
  0xa4   : > { %7334 = dma.hbm_to_vmem [thread:$0]  (!%p8154_p5), %s11906_s13, 12288, %s601_s1, [#allocation10], %s8012_s20, %s8012_s20, %s8013_s9  }
  0xa5   : > { %s8014_s0 = smov [#allocation14]   ;;  %s7950_s5 = scalar_lea.hbm %s11909_s16, 4096 }
  0xa6   : > { %s629_s22 = sshll.u32 %s8014_s0, 4  ;;  %p7951_p13 = scmp.ne.s32.totalorder %s11909_s16, %s7950_s5  ;;  %s630_s22 = int_to_ptr.vmem [resolvable:$true] %s629_s22 }
  0xa7   : > { %p7957_p0 = scmp.lt.u32.totalorder %s7950_s5, %s11909_s16 }
  0xa8   : > { %p7953_p2 = pnand %p7951_p13, %p8170_p7 }
  0xaa   : > { %p7954_p3 = pneg %p7953_p2 }
  0xac   : > { %p7959_p1 = pnand %p7957_p0, %p7954_p3 }
  0xae   : > { %7962 = shalt.err (!%p7959_p1)
}
  0xaf   : > { %s7963_s1 = scalar_lea.vmem %s630_s22, 4096  ;;  %p7971_p9 = scmp.lt.s32.totalorder %s630_s22, %s630_s22 }
  0xb0   : > { %p7964_p4 = scmp.ne.s32.totalorder %s630_s22, %s7963_s1  ;;  %p7972_p10 = scmp.lt.s32.totalorder %s7963_s1, %s7963_s1 }
  0xb2   : > { %p7966_p6 = pnand %p7964_p4, %p8170_p7  ;;  %p7973_p11 = por %p7972_p10, %p7971_p9 }
  0xb4   : > { %p7967_p8 = pneg %p7966_p6 }
  0xb6   : > { %p7974_p12 = pnand %p7973_p11, %p7967_p8 }
  0xb8   : > { %7977 = shalt.err (!%p7974_p12)
}
  0xb9   : > { %s12114_s20 = smov 16   ;;  %s12115_s9 = smov 256  }
  0xba   : > { %7340 = dma.hbm_to_vmem [thread:$0]  (!%p8154_p5), %s11909_s16, 4096, %s630_s22, [#allocation13], %s12115_s9, %s12115_s9, %s12114_s20  }
  0xbb   : > { %p12116_p13 = scmp.ne.s32.totalorder %s12109_s28, 0 }
  0xbd   : > { %665 = sbr.rel (%p12116_p13) target bundleno = 3446 (0xd76), region = 104 }
  0xc4   : > { %p12117_p7 = scmp.ne.s32.totalorder %s12108_s3, 0 }
  0xc6   : > { %7983 = dma.done.wait (%p12117_p7), [#allocation5], 4096  }
  0xc7   : > { %7985 = vsyncadd (%p12117_p7), [#allocation5], 4294963200 }
  0xc8   : > { %7987 = dma.done.wait (%p12117_p7), [#allocation7], 28672  }
  0xc9   : > { %7989 = vsyncadd (%p12117_p7), [#allocation7], 4294938624 }
  0xca   : > { %7991 = dma.done.wait (%p12117_p7), [#allocation10], 16384  }
  0xcb   : > { %7993 = vsyncadd (%p12117_p7), [#allocation10], 4294950912 }
  0xcc   : > { %7995 = dma.done.wait (%p12117_p7), [#allocation13], 8192  }
  0xcd   : > { %7997 = vsyncadd (%p12117_p7), [#allocation13], 4294959104  ;;  %v8015_v0 = vmov 0.0|0.0   ;;  %s12118_s27 = sadd.s32 4294967295, %s8000_s2   ;;  %v779_v1 = vlaneseq  ;;  %vm8016_vm0 = vmmov 0   ;;  %v8017_v2 = vmov 0.0  }
  0xce   : > { %7031 = vmatprep.subr.bf16.mxu0 %v8015_v0  ;;  %s6623_s28 = sshll.u32 %s12118_s27, 1  ;;  %6948 = vmatprep.mubr.msk.f32.mxu0 %vm8016_vm0, %v8017_v2  ;;  %v8018_v3 = vmov 1966171168   ;;  %vm793_vm1 = vcmask 1040384   ;;  %vm8019_vm2 = vmmov 1   ;;  %s12120_s21 = sld [smem:[#allocation93_spill]] }
  0xcf   : > { %p750_p5 = scmp.lt.s32.totalorder %s6623_s28, 3  ;;  %v777_v4 = vunpack.c.l.s4 %v8018_v3  ;;  %v8352_v5 = vshrl.u32 %v779_v1, 7  ;;  %vm7033_vm3 = vmpackc.low %vm793_vm1, %vm8019_vm2  ;;  %s12121_s4 = sld [smem:[#allocation94_spill]]  ;;  %vm790_vm4 = vcmask 72704   ;;  %vm874_vm5 = vcmask 1041408   ;;  %v904_v26 = vld [vmem:[#allocation4 + $0x8] sm:$0xff] }
  0xd0   : > { %s12122_s1 = sld [smem:[#allocation95_spill]]  ;;  %v906_v27 = vld [vmem:[#allocation4 + $0x18] sm:$0xff]  ;;  %v903_v28 = vld [vmem:[#allocation4] sm:$0xff]  ;;  %v905_v30 = vld [vmem:[#allocation4 + $0x10] sm:$0xff]  ;;  %s12123_s18 = sld [smem:[#allocation96_spill]]  ;;  %vm8601_vm6 = vcmp.lt.s32.totalorder %v779_v1, 256 }
  0xd1   : > { %12119 = vst [vmem:[#allocation19_spill] sm:$0xff] %v8352_v5  ;;  %s12561_s28 = smov (!%p750_p5, %s6623_s28), 3  ;;  %v778_v6 = vunpack.c.0.s8 %v777_v4  ;;  %v7035_v29 = vpack.c.bf16 %v906_v27, %v904_v26  ;;  %v908_v31 = vld [vmem:[#allocation4 + $0x28] sm:$0xff]  ;;  %v910_v32 = vld [vmem:[#allocation4 + $0x38] sm:$0xff]  ;;  %v7037_v33 = vpack.c.bf16 %v905_v30, %v903_v28  ;;  %v907_v35 = vld [vmem:[#allocation4 + $0x20] sm:$0xff]  ;;  %s12124_s3 = sld [smem:[#allocation97_spill]] }
  0xd2   : > { %v7039_v34 = vpack.c.bf16 %v910_v32, %v908_v31  ;;  %v909_v36 = vld [vmem:[#allocation4 + $0x30] sm:$0xff]  ;;  %v912_v37 = vld [vmem:[#allocation4 + $0x48] sm:$0xff]  ;;  %v914_v38 = vld [vmem:[#allocation4 + $0x58] sm:$0xff]  ;;  %v8384_v27 = vsub.s32 0, %v8352_v5  ;;  %s6780_s29 = sshll.u32 %s12561_s28, 7  ;;  %s12558_s0 = sld [smem:[#allocation102_spill]] }
  0xd3   : > { %v8368_v10 = vsub.s32 %v778_v6, %v8352_v5  ;;  %v7041_v39 = vpack.c.bf16 %v909_v36, %v907_v35  ;;  %v7043_v40 = vpack.c.bf16 %v914_v38, %v912_v37  ;;  %v911_v41 = vld [vmem:[#allocation4 + $0x40] sm:$0xff]  ;;  %v913_v42 = vld [vmem:[#allocation4 + $0x50] sm:$0xff]  ;;  %v916_v49 = vld [vmem:[#allocation4 + $0x68] sm:$0xff]  ;;  %s12559_s5 = sld [smem:[#allocation103_spill]]  ;;  %vm6447_vm9 = vcmask 15360  }
  0xd4   : > { %s752_s25 = scalar_lea.vmem %s12120_s21, %s12561_s28  ;;  %v7045_v43 = vpack.c.bf16 %v913_v42, %v911_v41  ;;  %v918_v50 = vld [vmem:[#allocation4 + $0x78] sm:$0xff]  ;;  %v915_v52 = vld [vmem:[#allocation4 + $0x60] sm:$0xff]  ;;  %v917_v53 = vld [vmem:[#allocation4 + $0x70] sm:$0xff]  ;;  %12125 = vst [vmem:[#allocation20_spill] sm:$0xff] %v8384_v27 }
  0xd5   : > { %v764_v7 = vld [vmem:[%s12121_s4] sm:$0xff]  ;;  %v765_v8 = vld [vmem:[%s12121_s4 + $0x8] sm:$0x1]  ;;  %v7047_v51 = vpack.c.bf16 %v918_v50, %v916_v49  ;;  %v7049_v54 = vpack.c.bf16 %v917_v53, %v915_v52  ;;  %v922_v56 = vld [vmem:[#allocation4 + $0x98] sm:$0xff] }
  0xd6   : > { %v762_v9 = vld [vmem:[%s752_s25] sm:$0x1]  ;;  %v7032_v11 = vpack.c.bf16 %v765_v8, %v764_v7  ;;  %v763_v12 = vld [vmem:[%s752_s25 + $0x1] sm:$0x1]  ;;  %v920_v55 = vld [vmem:[#allocation4 + $0x88] sm:$0xff] }
  0xd7   : > { %v775_v13 = vcombine.low %v762_v9, %v763_v12  ;;  %v6627_v16 = vld [vmem:[%s12122_s1] ss:$0 sm:$0xff]  ;;  %v7051_v57 = vpack.c.bf16 %v922_v56, %v920_v55  ;;  %v921_v59 = vld [vmem:[#allocation4 + $0x90] sm:$0xff]  ;;  %v924_v61 = vld [vmem:[#allocation4 + $0xa8] sm:$0xff] }
  0xd8   : > { %7034 = vmatpush3.bf16.msk.msra.mxu0 %vm7033_vm3, %v7032_v11  ;;  %v919_v58 = vld [vmem:[#allocation4 + $0x80] sm:$0xff]  ;;  %v926_v62 = vld [vmem:[#allocation4 + $0xb8] sm:$0xff]  ;;  %v928_v3 = vld [vmem:[#allocation4 + $0xc8] sm:$0xff] }
  0xd9   : > { %v782_v14 = vrot.slane %v775_v13, %v8368_v10  ;;  %7036 = vmatprep.subr.bf16.mxu0 %v7035_v29  ;;  %v7053_v60 = vpack.c.bf16 %v921_v59, %v919_v58  ;;  %v923_v63 = vld [vmem:[#allocation4 + $0xa0] sm:$0xff]  ;;  %v7055_v0 = vpack.c.bf16 %v926_v62, %v924_v61  ;;  %v930_v4 = vld [vmem:[#allocation4 + $0xd8] sm:$0xff]  ;;  %v929_v9 = vld [vmem:[#allocation4 + $0xd0] sm:$0xff]  ;;  %v8390_v29 = vsub.s32 1, %v8352_v5  ;;  %s11792_s23 = scalar_lea.vmem %s12559_s5, %s6780_s29 }
  0xda   : > { %v7059_v7 = vpack.c.bf16 %v930_v4, %v928_v3  ;;  %v927_v8 = vld [vmem:[#allocation4 + $0xc0] sm:$0xff]  ;;  %v932_v11 = vld [vmem:[#allocation4 + $0xe8] sm:$0xff]  ;;  %v934_v12 = vld [vmem:[#allocation4 + $0xf8] sm:$0xff] }
  0xdb   : > { %v789_v15 = vrot.slane %v782_v14, %v8368_v10  ;;  %v7061_v13 = vpack.c.bf16 %v929_v9, %v927_v8  ;;  %v7063_v14 = vpack.c.bf16 %v934_v12, %v932_v11  ;;  %v935_v28 = vld [vmem:[%s11899_s6] sm:$0x3]  ;;  %12126 = vst [vmem:[#allocation21_spill] sm:$0xff] %v8390_v29  ;;  %v1078_v49 = vld [vmem:[#allocation6 + $0x8] sm:$0xff]  ;;  %v1084_v50 = vld [vmem:[#allocation6 + $0x38] sm:$0xff] }
  0xdc   : > { %v940_v30 = vrot.slane %v935_v28, %v8384_v27  ;;  %v944_v31 = vrot.slane %v935_v28, %v8390_v29  ;;  %v7067_v52 = vpack.c.bf16 %v1084_v50, %v1078_v49  ;;  %v1083_v53 = vld [vmem:[#allocation6 + $0x30] sm:$0xff]  ;;  %v1086_v55 = vld [vmem:[#allocation6 + $0x48] sm:$0xff]  ;;  %v1085_v59 = vld [vmem:[#allocation6 + $0x40] sm:$0xff] }
  0xdd   : > { %6949 = vmatmul.mubr.msk.f32.vlgmr.msra.gmra.mrb[0].mxu0 %vm790_vm4, %v789_v15  ;;  %v931_v15 = vld [vmem:[#allocation4 + $0xe0] sm:$0xff]  ;;  %v1079_v58 = vld [vmem:[#allocation6 + $0x10] sm:$0xff]  ;;  %v1096_v62 = vld [vmem:[#allocation6 + $0x98] sm:$0xff] }
  0xde   : > { %1011 = vmatprep.mubr.f32.mxu0 %v8017_v2  ;;  %7038 = vmatpush1.bf16.msra.mxu0 %v7037_v33  ;;  %v925_v2 = vld [vmem:[#allocation4 + $0xb0] sm:$0xff]  ;;  %v7133_v61 = vpack.c.bf16 %v1085_v59, %v1079_v58  ;;  %v1092_v4 = vld [vmem:[#allocation6 + $0x78] sm:$0xff]  ;;  %v1097_v9 = vld [vmem:[#allocation6 + $0xa0] sm:$0xff] }
  0xdf   : > { %7040 = vmatprep.subr.bf16.mxu0 %v7039_v34  ;;  %v7057_v6 = vpack.c.bf16 %v925_v2, %v923_v63  ;;  %v1089_v63 = vld [vmem:[#allocation6 + $0x60] sm:$0xff]  ;;  %v1102_v11 = vld [vmem:[#allocation6 + $0xc8] sm:$0xff]  ;;  %v1108_v12 = vld [vmem:[#allocation6 + $0xf8] sm:$0xff] }
  0xe0   : > { %v1133_v49 = vld [vmem:[#allocation6 + $0x1c0] sm:$0xff]  ;;  %v1138_v50 = vld [vmem:[#allocation6 + $0x1e8] sm:$0xff]  ;;  %v1143_v58 = vld [vmem:[#allocation6 + $0x210] sm:$0xff] }
  0xe1   : > { %v1139_v59 = vld [vmem:[#allocation6 + $0x1f0] sm:$0xff] }
  0xe2   : > { %7042 = vmatpush1.bf16.msra.mxu0 %v7041_v39 }
  0xe3   : > { %7044 = vmatprep.subr.bf16.mxu0 %v7043_v40 }
  0xe6   : > { %7046 = vmatpush1.bf16.msra.mxu0 %v7045_v43 }
  0xe7   : > { %7048 = vmatprep.subr.bf16.mxu0 %v7047_v51  ;;  %v1077_v51 = vld [vmem:[#allocation6] sm:$0xff] }
  0xe8   : > { %v7069_v56 = vpack.c.bf16 %v1083_v53, %v1077_v51  ;;  %v1144_v51 = vld [vmem:[#allocation6 + $0x218] sm:$0xff]  ;;  %v1146_v53 = vld [vmem:[#allocation6 + $0x228] sm:$0xff] }
  0xea   : > { %7050 = vmatpush1.bf16.msra.mxu0 %v7049_v54  ;;  %v1080_v54 = vld [vmem:[#allocation6 + $0x18] sm:$0xff] }
  0xeb   : > { %7052 = vmatprep.subr.bf16.mxu0 %v7051_v57  ;;  %v7131_v57 = vpack.c.bf16 %v1086_v55, %v1080_v54 }
  0xed   : > { %7132 = vmatprep.subr.bf16.mxu1 %v7131_v57  ;;  %v1137_v57 = vld [vmem:[#allocation6 + $0x1e0] sm:$0xff] }
  0xee   : > { %7054 = vmatpush1.bf16.msra.mxu0 %v7053_v60  ;;  %v1090_v60 = vld [vmem:[#allocation6 + $0x68] sm:$0xff]  ;;  %7134 = vmatpush1.bf16.msra.mxu1 %v7133_v61  ;;  %v1145_v61 = vld [vmem:[#allocation6 + $0x220] sm:$0xff] }
  0xef   : > { %7056 = vmatprep.subr.bf16.mxu0 %v7055_v0  ;;  %v1095_v0 = vld [vmem:[#allocation6 + $0x90] sm:$0xff]  ;;  %v7071_v2 = vpack.c.bf16 %v1096_v62, %v1090_v60  ;;  %v1150_v62 = vld [vmem:[#allocation6 + $0x248] sm:$0xff] }
  0xf0   : > { %v7073_v3 = vpack.c.bf16 %v1095_v0, %v1089_v63  ;;  %v1156_v63 = vld [vmem:[#allocation6 + $0x278] sm:$0xff] }
  0xf1   : > { %v1152_v0 = vld [vmem:[#allocation6 + $0x258] sm:$0xff] }
  0xf2   : > { %7058 = vmatpush1.bf16.msra.mxu0 %v7057_v6  ;;  %v1098_v6 = vld [vmem:[#allocation6 + $0xa8] sm:$0xff] }
  0xf3   : > { %7060 = vmatprep.subr.bf16.mxu0 %v7059_v7  ;;  %v1091_v7 = vld [vmem:[#allocation6 + $0x70] sm:$0xff]  ;;  %v7135_v8 = vpack.c.bf16 %v1098_v6, %v1092_v4  ;;  %v7153_v4 = vpack.c.bf16 %v1145_v61, %v1139_v59  ;;  %v7091_v6 = vpack.c.bf16 %v1156_v63, %v1150_v62 }
  0xf4   : > { %v1203_v61 = vld [vmem:[#allocation6 + $0x3f0] sm:$0xff] }
  0xf5   : > { %7136 = vmatprep.subr.bf16.mxu1 %v7135_v8  ;;  %v1155_v8 = vld [vmem:[#allocation6 + $0x270] sm:$0xff] }
  0xf6   : > { %7062 = vmatpush1.bf16.msra.mxu0 %v7061_v13  ;;  %v7137_v13 = vpack.c.bf16 %v1097_v9, %v1091_v7  ;;  %v1149_v7 = vld [vmem:[#allocation6 + $0x240] sm:$0xff]  ;;  %v1151_v9 = vld [vmem:[#allocation6 + $0x250] sm:$0xff] }
  0xf7   : > { %7064 = vmatprep.subr.bf16.mxu0 %v7063_v14  ;;  %v7075_v14 = vpack.c.bf16 %v1108_v12, %v1102_v11  ;;  %v1157_v12 = vld [vmem:[#allocation6 + $0x280] sm:$0xff]  ;;  %v1199_v63 = vld [vmem:[#allocation6 + $0x3d0] sm:$0xff] }
  0xf8   : > { %7138 = vmatpush1.bf16.msra.mxu1 %v7137_v13  ;;  %v1162_v13 = vld [vmem:[#allocation6 + $0x2a8] sm:$0xff] }
 0x1b0   : > { %v863_v17 = vpop.f32.mrb[0].mxu0 }
 0x1b1   : > { %v864_v18 = vadd.f32 %v6627_v16, %v863_v17  ;;  %v6950_v19 = vpop.f32.mrb[1].mxu0  ;;  %v933_v16 = vld [vmem:[#allocation4 + $0xf0] sm:$0xff] }
 0x1b2   : > { %v7065_v17 = vpack.c.bf16 %v933_v16, %v931_v15  ;;  %v1101_v15 = vld [vmem:[#allocation6 + $0xc0] sm:$0xff]  ;;  %v1107_v16 = vld [vmem:[#allocation6 + $0xf0] sm:$0xff] }
 0x1b3   : > { %v868_v20 = vmul.f32 0.70710677, %v864_v18  ;;  %v867_v22 = vmul.f32 0.5, %v864_v18 }
 0x1b4   : > { %7066 = vmatpush1.bf16.msra.mxu0 %v7065_v17  ;;  %v1104_v17 = vld [vmem:[#allocation6 + $0xd8] sm:$0xff] }
 0x1b5   : > { %7562 = verf.f32 %v868_v20  ;;  %7068 = vmatprep.subr.bf16.mxu0 %v7067_v52  ;;  %v1140_v52 = vld [vmem:[#allocation6 + $0x1f8] sm:$0xff] }
 0x1b6   : > { %v7151_v60 = vpack.c.bf16 %v1146_v53, %v1140_v52  ;;  %v1193_v52 = vld [vmem:[#allocation6 + $0x3a0] sm:$0xff]  ;;  %v1198_v53 = vld [vmem:[#allocation6 + $0x3c8] sm:$0xff] }
 0x1bf   : > { %v7563_v21 = vpop.eup %7562 }
 0x1c0   : > { %v870_v23 = vadd.f32 1.0, %v7563_v21 }
 0x1c2   : > { %v871_v24 = vmul.f32 %v870_v23, %v867_v22  ;;  %v6630_v22 = vld [vmem:[%s12123_s18] ss:$0 sm:$0xff]  ;;  %s12525_s18 = sld [smem:[#allocation101_spill]] }
 0x1c4   : > { %v875_v25 = vsel %vm874_vm5, %v871_v24, 0.0 }
 0x1c5   : > { %876 = vadd.xlane.f32.xlu0 %v875_v25 }
 0x252   : > { %v877_v44 = vpop.xlane.xlu0 %876 }
 0x253   : > { %v879_v45 = vmul.f32 0.0078125, %v877_v44 }
 0x255   : > { %v880_v46 = vsub.f32 %v871_v24, %v879_v45  ;;  %v6631_v24 = vld [vmem:[%s12124_s3] ss:$0 sm:$0xff]  ;;  %s12557_s3 = sld [smem:[#allocation100_spill]] }
 0x257   : > { %v881_v47 = vmul.f32 %v880_v46, %v880_v46 }
 0x259   : > { %v882_v48 = vsel %vm874_vm5, %v881_v47, 0.0 }
 0x25a   : > { %883 = vadd.xlane.f32.xlu0 %v882_v48 }
 0x2e7   : > { %v884_v18 = vpop.xlane.xlu0 %883 }
 0x2e8   : > { %v885_v19 = vmul.f32 0.0078125, %v884_v18  ;;  %v1110_v18 = vld [vmem:[#allocation6 + $0x108] sm:$0xff] }
 0x2ea   : > { %v886_v20 = vadd.f32 1e-05, %v885_v19  ;;  %v1103_v19 = vld [vmem:[#allocation6 + $0xd0] sm:$0xff] }
 0x2ec   : > { %7564 = vrsqrt.f32 %v886_v20  ;;  %v1109_v20 = vld [vmem:[#allocation6 + $0x100] sm:$0xff] }
 0x2f6   : > { %v7565_v21 = vpop.eup %7564 }
 0x2f7   : > { %v888_v23 = vmul.f32 %v7565_v21, %v880_v46  ;;  %v7077_v21 = vpack.c.bf16 %v1107_v16, %v1101_v15  ;;  %v1164_v15 = vld [vmem:[#allocation6 + $0x2b8] sm:$0xff]  ;;  %v1170_v16 = vld [vmem:[#allocation6 + $0x2e8] sm:$0xff] }
 0x2f9   : > { %v895_v25 = vmul.f32 %v6630_v22, %v888_v23  ;;  %v7139_v22 = vpack.c.bf16 %v1110_v18, %v1104_v17  ;;  %v1114_v23 = vld [vmem:[#allocation6 + $0x128] sm:$0xff]  ;;  %v7093_v17 = vpack.c.bf16 %v1155_v8, %v1149_v7  ;;  %v7157_v18 = vpack.c.bf16 %v1157_v12, %v1151_v9 }
 0x2fb   : > { %v902_v26 = vadd.f32 %v6631_v24, %v895_v25  ;;  %v1120_v24 = vld [vmem:[#allocation6 + $0x158] sm:$0xff]  ;;  %v1113_v25 = vld [vmem:[#allocation6 + $0x120] sm:$0xff]  ;;  %7140 = vmatprep.subr.bf16.mxu1 %v7139_v22  ;;  %v1163_v22 = vld [vmem:[#allocation6 + $0x2b0] sm:$0xff] }
 0x2fc   : > { %v7079_v28 = vpack.c.bf16 %v1120_v24, %v1114_v23  ;;  %v7159_v23 = vpack.c.bf16 %v1170_v16, %v1164_v15  ;;  %v1169_v24 = vld [vmem:[#allocation6 + $0x2e0] sm:$0xff]  ;;  %v1210_v15 = vld [vmem:[#allocation6 + $0x428] sm:$0xff]  ;;  %v1216_v16 = vld [vmem:[#allocation6 + $0x458] sm:$0xff] }
 0x2fd   : > { %1012 = vmatmul.mubr.f32.vlgmr.msra.gmra.mrb[2].mxu0 %v902_v26  ;;  %v7141_v26 = vpack.c.bf16 %v1109_v20, %v1103_v19  ;;  %v1161_v20 = vld [vmem:[#allocation6 + $0x2a0] sm:$0xff] }
 0x2fe   : > { %7070 = vmatpush1.bf16.msra.mxu0 %v7069_v56  ;;  %v7087_v56 = vpack.c.bf16 %v1144_v51, %v1138_v50  ;;  %v1187_v50 = vld [vmem:[#allocation6 + $0x370] sm:$0xff] }
 0x2ff   : > { %7072 = vmatprep.subr.bf16.mxu0 %v7071_v2  ;;  %7142 = vmatpush1.bf16.msra.mxu1 %v7141_v26  ;;  %v1158_v2 = vld [vmem:[#allocation6 + $0x288] sm:$0xff]  ;;  %v1180_v26 = vld [vmem:[#allocation6 + $0x338] sm:$0xff] }
 0x300   : > { %v7155_v11 = vpack.c.bf16 %v1158_v2, %v1152_v0  ;;  %v1205_v0 = vld [vmem:[#allocation6 + $0x400] sm:$0xff] }
 0x302   : > { %7074 = vmatpush1.bf16.msra.mxu0 %v7073_v3  ;;  %v7089_v3 = vpack.c.bf16 %v1143_v58, %v1137_v57  ;;  %v7169_v58 = vpack.c.bf16 %v1193_v52, %v1187_v50  ;;  %v1235_v50 = vld [vmem:[#allocation6 + $0x4f0] sm:$0xff]  ;;  %v1246_v52 = vld [vmem:[#allocation6 + $0x548] sm:$0xff] }
 0x303   : > { %7076 = vmatprep.subr.bf16.mxu0 %v7075_v14  ;;  %v1168_v14 = vld [vmem:[#allocation6 + $0x2d8] sm:$0xff] }
 0x304   : > { %v7095_v19 = vpack.c.bf16 %v1168_v14, %v1162_v13 }
 0x306   : > { %7078 = vmatpush1.bf16.msra.mxu0 %v7077_v21  ;;  %v1167_v21 = vld [vmem:[#allocation6 + $0x2d0] sm:$0xff] }
 0x307   : > { %7080 = vmatprep.subr.bf16.mxu0 %v7079_v28  ;;  %v1176_v28 = vld [vmem:[#allocation6 + $0x318] sm:$0xff] }
 0x3d0   : > { %v1013_v32 = vpop.f32.mrb[2].mxu0 }
 0x3d1   : > { %v1014_v33 = vadd.f32 %v1013_v32, %v940_v30  ;;  %v1015_v34 = vpop.f32.mrb[3].mxu0  ;;  %v1119_v30 = vld [vmem:[#allocation6 + $0x150] sm:$0xff]  ;;  %v1122_v32 = vld [vmem:[#allocation6 + $0x168] sm:$0xff] }
 0x3d2   : > { %v1016_v35 = vadd.f32 %v1015_v34, %v944_v31  ;;  %v1116_v31 = vld [vmem:[#allocation6 + $0x138] sm:$0xff]  ;;  %v1115_v34 = vld [vmem:[#allocation6 + $0x130] sm:$0xff] }
 0x3d3   : > { %v1020_v36 = vmul.f32 0.70710677, %v1014_v33  ;;  %v1018_v40 = vmul.f32 0.5, %v1014_v33  ;;  %v7143_v33 = vpack.c.bf16 %v1122_v32, %v1116_v31  ;;  %v7097_v31 = vpack.c.bf16 %v1167_v21, %v1161_v20  ;;  %v1218_v20 = vld [vmem:[#allocation6 + $0x468] sm:$0xff]  ;;  %v1211_v21 = vld [vmem:[#allocation6 + $0x430] sm:$0xff] }
 0x3d4   : > { %v1021_v37 = vmul.f32 0.70710677, %v1016_v35  ;;  %v1019_v42 = vmul.f32 0.5, %v1016_v35  ;;  %v1121_v35 = vld [vmem:[#allocation6 + $0x160] sm:$0xff]  ;;  %v7161_v32 = vpack.c.bf16 %v1169_v24, %v1163_v22 }
 0x3d5   : > { %7566 = verf.f32 %v1020_v36  ;;  %v1126_v36 = vld [vmem:[#allocation6 + $0x188] sm:$0xff]  ;;  %7144 = vmatprep.subr.bf16.mxu1 %v7143_v33  ;;  %v1217_v22 = vld [vmem:[#allocation6 + $0x460] sm:$0xff] }
 0x3d6   : > { %7568 = verf.f32 %v1021_v37  ;;  %v1132_v37 = vld [vmem:[#allocation6 + $0x1b8] sm:$0xff]  ;;  %v7177_v24 = vpack.c.bf16 %v1217_v22, %v1211_v21  ;;  %v1028_v22 = vld [vmem:[%s11900_s7] sm:$0x3] }
 0x3df   : > { %v7567_v38 = vpop.eup %7566 }
 0x3e0   : > { %v7569_v39 = vpop.eup %7568  ;;  %v1024_v41 = vadd.f32 1.0, %v7567_v38  ;;  %v7081_v38 = vpack.c.bf16 %v1119_v30, %v1113_v25  ;;  %v1174_v25 = vld [vmem:[#allocation6 + $0x308] sm:$0xff] }
 0x3e1   : > { %v1025_v43 = vadd.f32 1.0, %v7569_v39  ;;  %v1128_v39 = vld [vmem:[#allocation6 + $0x198] sm:$0xff]  ;;  %v1182_v30 = vld [vmem:[#allocation6 + $0x348] sm:$0xff]  ;;  %v7099_v33 = vpack.c.bf16 %v1180_v26, %v1174_v25 }
 0x3e2   : > { %v8394_v44 = vmul.f32 %v1024_v41, %v1018_v40  ;;  %v1134_v40 = vld [vmem:[#allocation6 + $0x1c8] sm:$0xff]  ;;  %v7145_v41 = vpack.c.bf16 %v1121_v35, %v1115_v34  ;;  %7082 = vmatpush1.bf16.msra.mxu0 %v7081_v38  ;;  %v1173_v34 = vld [vmem:[#allocation6 + $0x300] sm:$0xff]  ;;  %v1179_v35 = vld [vmem:[#allocation6 + $0x330] sm:$0xff] }
 0x3e3   : > { %v8396_v45 = vmul.f32 %v1025_v43, %v1019_v42  ;;  %v7083_v42 = vpack.c.bf16 %v1132_v37, %v1126_v36  ;;  %v1125_v43 = vld [vmem:[#allocation6 + $0x180] sm:$0xff]  ;;  %v1175_v36 = vld [vmem:[#allocation6 + $0x310] sm:$0xff]  ;;  %v7163_v37 = vpack.c.bf16 %v1182_v30, %v1176_v28  ;;  %v1222_v25 = vld [vmem:[#allocation6 + $0x488] sm:$0xff] }
 0x3e4   : > { %v1030_v46 = vsel %vm874_vm5, %v8394_v44, 0.0  ;;  %7146 = vmatpush1.bf16.msra.mxu1 %v7145_v41  ;;  %v1181_v38 = vld [vmem:[#allocation6 + $0x340] sm:$0xff]  ;;  %v1188_v41 = vld [vmem:[#allocation6 + $0x378] sm:$0xff] }
 0x3e5   : > { %v1031_v47 = vsel %vm874_vm5, %v8396_v45, 0.0  ;;  %7084 = vmatprep.subr.bf16.mxu0 %v7083_v42  ;;  %v1194_v42 = vld [vmem:[#allocation6 + $0x3a8] sm:$0xff]  ;;  %v1228_v26 = vld [vmem:[#allocation6 + $0x4b8] sm:$0xff]  ;;  %v1221_v30 = vld [vmem:[#allocation6 + $0x480] sm:$0xff] }
 0x3e6   : > { %v1032_v48 = vadd.f32 %v1031_v47, %v1030_v46  ;;  %v1131_v46 = vld [vmem:[#allocation6 + $0x1b0] sm:$0xff]  ;;  %v7167_v51 = vpack.c.bf16 %v1194_v42, %v1188_v41  ;;  %v7115_v28 = vpack.c.bf16 %v1228_v26, %v1222_v25  ;;  %v1233_v41 = vld [vmem:[#allocation6 + $0x4e0] sm:$0xff]  ;;  %v1059_v25 = vrot.slane %v1028_v22, %v8390_v29 }
 0x3e7   : > { %v1127_v47 = vld [vmem:[#allocation6 + $0x190] sm:$0xff]  ;;  %v7085_v54 = vpack.c.bf16 %v1131_v46, %v1125_v43  ;;  %v7101_v43 = vpack.c.bf16 %v1179_v35, %v1173_v34  ;;  %v7165_v46 = vpack.c.bf16 %v1181_v38, %v1175_v36  ;;  %v1230_v34 = vld [vmem:[#allocation6 + $0x4c8] sm:$0xff]  ;;  %v1229_v36 = vld [vmem:[#allocation6 + $0x4c0] sm:$0xff] }
 0x3e8   : > { %1033 = vadd.xlane.f32.xlu1 %v1032_v48  ;;  %v7147_v48 = vpack.c.bf16 %v1134_v40, %v1128_v39  ;;  %v7149_v55 = vpack.c.bf16 %v1133_v49, %v1127_v47  ;;  %v1186_v39 = vld [vmem:[#allocation6 + $0x368] sm:$0xff]  ;;  %v1192_v40 = vld [vmem:[#allocation6 + $0x398] sm:$0xff]  ;;  %v1191_v49 = vld [vmem:[#allocation6 + $0x390] sm:$0xff] }
 0x3e9   : > { %7086 = vmatpush1.bf16.msra.mxu0 %v7085_v54  ;;  %v7103_v47 = vpack.c.bf16 %v1192_v40, %v1186_v39  ;;  %v1204_v54 = vld [vmem:[#allocation6 + $0x3f8] sm:$0xff]  ;;  %v1223_v35 = vld [vmem:[#allocation6 + $0x490] sm:$0xff]  ;;  %v1234_v39 = vld [vmem:[#allocation6 + $0x4e8] sm:$0xff] }
 0x3ea   : > { %7148 = vmatprep.subr.bf16.mxu1 %v7147_v48  ;;  %7088 = vmatprep.subr.bf16.mxu0 %v7087_v56  ;;  %v1185_v48 = vld [vmem:[#allocation6 + $0x360] sm:$0xff]  ;;  %v1206_v56 = vld [vmem:[#allocation6 + $0x408] sm:$0xff]  ;;  %v7107_v59 = vpack.c.bf16 %v1204_v54, %v1198_v53  ;;  %v7181_v38 = vpack.c.bf16 %v1229_v36, %v1223_v35  ;;  %v1240_v40 = vld [vmem:[#allocation6 + $0x518] sm:$0xff] }
 0x3eb   : > { %7150 = vmatpush1.bf16.msra.mxu1 %v7149_v55  ;;  %v1200_v55 = vld [vmem:[#allocation6 + $0x3d8] sm:$0xff]  ;;  %v7105_v57 = vpack.c.bf16 %v1191_v49, %v1185_v48  ;;  %v7119_v42 = vpack.c.bf16 %v1240_v40, %v1234_v39 }
 0x3ec   : > { %7152 = vmatprep.subr.bf16.mxu1 %v7151_v60  ;;  %v1197_v60 = vld [vmem:[#allocation6 + $0x3c0] sm:$0xff]  ;;  %v7171_v62 = vpack.c.bf16 %v1206_v56, %v1200_v55  ;;  %v1252_v54 = vld [vmem:[#allocation6 + $0x578] sm:$0xff]  ;;  %v1251_v56 = vld [vmem:[#allocation6 + $0x570] sm:$0xff] }
 0x3ed   : > { %7090 = vmatpush1.bf16.msra.mxu0 %v7089_v3  ;;  %v7109_v2 = vpack.c.bf16 %v1203_v61, %v1197_v60  ;;  %v7173_v3 = vpack.c.bf16 %v1205_v0, %v1199_v63  ;;  %v1245_v55 = vld [vmem:[#allocation6 + $0x540] sm:$0xff]  ;;  %v1247_v60 = vld [vmem:[#allocation6 + $0x550] sm:$0xff]  ;;  %v1258_v0 = vld [vmem:[#allocation6 + $0x5a8] sm:$0xff] }
 0x3ee   : > { %7092 = vmatprep.subr.bf16.mxu0 %v7091_v6  ;;  %v7125_v61 = vpack.c.bf16 %v1251_v56, %v1245_v55  ;;  %v1253_v63 = vld [vmem:[#allocation6 + $0x580] sm:$0xff]  ;;  %v1123_v56 = vld [vmem:[#allocation6 + $0x170] sm:$0xff] }
 0x3ef   : > { %7154 = vmatpush1.bf16.msra.mxu1 %v7153_v4  ;;  %v1117_v55 = vld [vmem:[#allocation6 + $0x140] sm:$0xff] }
 0x3f0   : > { %7156 = vmatprep.subr.bf16.mxu1 %v7155_v11 }
 0x3f1   : > { %7094 = vmatpush1.bf16.msra.mxu0 %v7093_v17  ;;  %v7111_v17 = vpack.c.bf16 %v1216_v16, %v1210_v15  ;;  %v1265_v15 = vld [vmem:[#allocation6 + $0x5e0] sm:$0xff] }
 0x3f2   : > { %7096 = vmatprep.subr.bf16.mxu0 %v7095_v19  ;;  %v1212_v19 = vld [vmem:[#allocation6 + $0x438] sm:$0xff] }
 0x3f3   : > { %7158 = vmatpush1.bf16.msra.mxu1 %v7157_v18  ;;  %v1215_v18 = vld [vmem:[#allocation6 + $0x450] sm:$0xff] }
 0x3f4   : > { %7160 = vmatprep.subr.bf16.mxu1 %v7159_v23  ;;  %v7175_v23 = vpack.c.bf16 %v1218_v20, %v1212_v19 }
 0x3f5   : > { %7098 = vmatpush1.bf16.msra.mxu0 %v7097_v31  ;;  %v1227_v31 = vld [vmem:[#allocation6 + $0x4b0] sm:$0xff] }
 0x3f6   : > { %7100 = vmatprep.subr.bf16.mxu0 %v7099_v33  ;;  %v7117_v33 = vpack.c.bf16 %v1227_v31, %v1221_v30 }
 0x3f7   : > { %7162 = vmatpush1.bf16.msra.mxu1 %v7161_v32  ;;  %v1224_v32 = vld [vmem:[#allocation6 + $0x498] sm:$0xff] }
 0x3f8   : > { %7164 = vmatprep.subr.bf16.mxu1 %v7163_v37  ;;  %v7179_v37 = vpack.c.bf16 %v1230_v34, %v1224_v32  ;;  %v1087_v34 = vld [vmem:[#allocation6 + $0x50] sm:$0xff] }
 0x3f9   : > { %7102 = vmatpush1.bf16.msra.mxu0 %v7101_v43  ;;  %v1239_v43 = vld [vmem:[#allocation6 + $0x510] sm:$0xff] }
 0x3fa   : > { %7104 = vmatprep.subr.bf16.mxu0 %v7103_v47  ;;  %v1242_v47 = vld [vmem:[#allocation6 + $0x528] sm:$0xff]  ;;  %v7121_v48 = vpack.c.bf16 %v1239_v43, %v1233_v41  ;;  %v1093_v43 = vld [vmem:[#allocation6 + $0x80] sm:$0xff] }
 0x3fb   : > { %7166 = vmatpush1.bf16.msra.mxu1 %v7165_v46  ;;  %v1236_v46 = vld [vmem:[#allocation6 + $0x4f8] sm:$0xff] }
 0x3fc   : > { %7168 = vmatprep.subr.bf16.mxu1 %v7167_v51  ;;  %v7183_v49 = vpack.c.bf16 %v1242_v47, %v1236_v46  ;;  %v1241_v51 = vld [vmem:[#allocation6 + $0x520] sm:$0xff]  ;;  %v1099_v46 = vld [vmem:[#allocation6 + $0xb0] sm:$0xff]  ;;  %v1112_v47 = vld [vmem:[#allocation6 + $0x118] sm:$0xff] }
 0x3fd   : > { %7106 = vmatpush1.bf16.msra.mxu0 %v7105_v57  ;;  %v7185_v53 = vpack.c.bf16 %v1241_v51, %v1235_v50  ;;  %v7123_v57 = vpack.c.bf16 %v1252_v54, %v1246_v52  ;;  %v1111_v50 = vld [vmem:[#allocation6 + $0x110] sm:$0xff]  ;;  %v1118_v51 = vld [vmem:[#allocation6 + $0x148] sm:$0xff]  ;;  %v1124_v52 = vld [vmem:[#allocation6 + $0x178] sm:$0xff] }
 0x3fe   : > { %7108 = vmatprep.subr.bf16.mxu0 %v7107_v59  ;;  %v1254_v59 = vld [vmem:[#allocation6 + $0x588] sm:$0xff]  ;;  %v7207_v54 = vpack.c.bf16 %v1124_v52, %v1118_v51  ;;  %v1225_v51 = vld [vmem:[#allocation6 + $0x4a0] sm:$0xff]  ;;  %v1231_v52 = vld [vmem:[#allocation6 + $0x4d0] sm:$0xff] }
 0x3ff   : > { %7170 = vmatpush1.bf16.msra.mxu1 %v7169_v58  ;;  %v1248_v58 = vld [vmem:[#allocation6 + $0x558] sm:$0xff] }
 0x400   : > { %7172 = vmatprep.subr.bf16.mxu1 %v7171_v62  ;;  %v7187_v62 = vpack.c.bf16 %v1254_v59, %v1248_v58  ;;  %v1136_v58 = vld [vmem:[#allocation6 + $0x1d8] sm:$0xff]  ;;  %v7209_v59 = vpack.c.bf16 %v1123_v56, %v1117_v55  ;;  %v7245_v55 = vpack.c.bf16 %v1231_v52, %v1225_v51 }
 0x401   : > { %7110 = vmatpush1.bf16.msra.mxu0 %v7109_v2  ;;  %v1264_v2 = vld [vmem:[#allocation6 + $0x5d8] sm:$0xff] }
 0x402   : > { %7112 = vmatprep.subr.bf16.mxu0 %v7111_v17 }
 0x403   : > { %7174 = vmatpush1.bf16.msra.mxu1 %v7173_v3  ;;  %v7127_v3 = vpack.c.bf16 %v1264_v2, %v1258_v0  ;;  %v1148_v0 = vld [vmem:[#allocation6 + $0x238] sm:$0xff] }
 0x404   : > { %7176 = vmatprep.subr.bf16.mxu1 %v7175_v23  ;;  %v1029_v23 = vld [vmem:[%s11901_s8] sm:$0x3] }
 0x405   : > { %v1068_v30 = vrot.slane %v1029_v23, %v8384_v27  ;;  %v1072_v31 = vrot.slane %v1029_v23, %v8390_v29 }
 0x407   : > { %7178 = vmatpush1.bf16.msra.mxu1 %v7177_v24  ;;  %v1055_v24 = vrot.slane %v1028_v22, %v8384_v27 }
 0x408   : > { %7180 = vmatprep.subr.bf16.mxu1 %v7179_v37  ;;  %v1094_v37 = vld [vmem:[#allocation6 + $0x88] sm:$0xff] }
 0x40b   : > { %7182 = vmatpush1.bf16.msra.mxu1 %v7181_v38  ;;  %v1100_v38 = vld [vmem:[#allocation6 + $0xb8] sm:$0xff] }
 0x40c   : > { %7184 = vmatprep.subr.bf16.mxu1 %v7183_v49  ;;  %v1105_v49 = vld [vmem:[#allocation6 + $0xe0] sm:$0xff] }
 0x40f   : > { %7186 = vmatpush1.bf16.msra.mxu1 %v7185_v53  ;;  %v7205_v53 = vpack.c.bf16 %v1111_v50, %v1105_v49 }
 0x410   : > { %7188 = vmatprep.subr.bf16.mxu1 %v7187_v62  ;;  %v1135_v62 = vld [vmem:[#allocation6 + $0x1d0] sm:$0xff] }
 0x475   : > { %v1034_v4 = vpop.xlane.xlu1 %1033 }
 0x476   : > { %v1036_v6 = vmul.f32 0.00390625, %v1034_v4  ;;  %v1257_v4 = vld [vmem:[#allocation6 + $0x5a0] sm:$0xff] }
 0x478   : > { %v8403_v7 = vsub.f32 %v8394_v44, %v1036_v6  ;;  %v8406_v8 = vsub.f32 %v8396_v45, %v1036_v6  ;;  %v1209_v44 = vld [vmem:[#allocation6 + $0x420] sm:$0xff]  ;;  %v1263_v6 = vld [vmem:[#allocation6 + $0x5d0] sm:$0xff] }
 0x479   : > { %v7113_v45 = vpack.c.bf16 %v1215_v18, %v1209_v44  ;;  %v7129_v16 = vpack.c.bf16 %v1263_v6, %v1257_v4  ;;  %v1082_v44 = vld [vmem:[#allocation6 + $0x28] sm:$0xff]  ;;  %v1088_v18 = vld [vmem:[#allocation6 + $0x58] sm:$0xff]  ;;  %v1141_v4 = vld [vmem:[#allocation6 + $0x200] sm:$0xff] }
 0x47a   : > { %v1039_v9 = vmul.f32 %v8403_v7, %v8403_v7  ;;  %v1040_v11 = vmul.f32 %v8406_v8, %v8406_v8  ;;  %v7195_v19 = vpack.c.bf16 %v1088_v18, %v1082_v44  ;;  %v1147_v6 = vld [vmem:[#allocation6 + $0x230] sm:$0xff] }
 0x47b   : > { %7114 = vmatpush1.bf16.msra.mxu0 %v7113_v45 }
 0x47c   : > { %v1041_v12 = vsel %vm874_vm5, %v1039_v9, 0.0  ;;  %v1042_v13 = vsel %vm874_vm5, %v1040_v11, 0.0  ;;  %7116 = vmatprep.subr.bf16.mxu0 %v7115_v28  ;;  %v1260_v9 = vld [vmem:[#allocation6 + $0x5b8] sm:$0xff]  ;;  %v7189_v11 = vpack.c.bf16 %v1253_v63, %v1247_v60  ;;  %v1142_v63 = vld [vmem:[#allocation6 + $0x208] sm:$0xff] }
 0x47d   : > { %v1043_v14 = vadd.f32 %v1042_v13, %v1041_v12  ;;  %v1266_v12 = vld [vmem:[#allocation6 + $0x5e8] sm:$0xff] }
 0x47e   : > { %v7191_v13 = vpack.c.bf16 %v1266_v12, %v1260_v9  ;;  %7190 = vmatpush1.bf16.msra.mxu1 %v7189_v11  ;;  %v1154_v9 = vld [vmem:[#allocation6 + $0x268] sm:$0xff]  ;;  %v1160_v11 = vld [vmem:[#allocation6 + $0x298] sm:$0xff]  ;;  %v7217_v12 = vpack.c.bf16 %v1147_v6, %v1141_v4 }
 0x47f   : > { %1044 = vadd.xlane.f32.xlu1 %v1043_v14  ;;  %7118 = vmatpush1.bf16.msra.mxu0 %v7117_v33  ;;  %v1259_v14 = vld [vmem:[#allocation6 + $0x5b0] sm:$0xff]  ;;  %v1081_v33 = vld [vmem:[#allocation6 + $0x20] sm:$0xff] }
 0x480   : > { %7120 = vmatprep.subr.bf16.mxu0 %v7119_v42  ;;  %v7193_v17 = vpack.c.bf16 %v1265_v15, %v1259_v14  ;;  %7192 = vmatprep.subr.bf16.mxu1 %v7191_v13  ;;  %v7197_v41 = vpack.c.bf16 %v1087_v34, %v1081_v33  ;;  %v7199_v42 = vpack.c.bf16 %v1100_v38, %v1094_v37  ;;  %v1153_v14 = vld [vmem:[#allocation6 + $0x260] sm:$0xff]  ;;  %v1159_v15 = vld [vmem:[#allocation6 + $0x290] sm:$0xff]  ;;  %v1202_v34 = vld [vmem:[#allocation6 + $0x3e8] sm:$0xff] }
 0x481   : > { %v7219_v13 = vpack.c.bf16 %v1160_v11, %v1154_v9  ;;  %v7221_v44 = vpack.c.bf16 %v1159_v15, %v1153_v14  ;;  %v1195_v33 = vld [vmem:[#allocation6 + $0x3b0] sm:$0xff]  ;;  %v1201_v38 = vld [vmem:[#allocation6 + $0x3e0] sm:$0xff] }
 0x482   : > { %7194 = vmatpush1.bf16.msra.mxu1 %v7193_v17  ;;  %v1172_v17 = vld [vmem:[#allocation6 + $0x2f8] sm:$0xff]  ;;  %v1261_v9 = vld [vmem:[#allocation6 + $0x5c0] sm:$0xff]  ;;  %v1267_v11 = vld [vmem:[#allocation6 + $0x5f0] sm:$0xff] }
 0x483   : > { %7122 = vmatpush1.bf16.msra.mxu0 %v7121_v48 }
 0x484   : > { %7124 = vmatprep.subr.bf16.mxu0 %v7123_v57  ;;  %v1130_v57 = vld [vmem:[#allocation6 + $0x1a8] sm:$0xff] }
 0x485   : > { %v7211_v60 = vpack.c.bf16 %v1136_v58, %v1130_v57  ;;  %v1237_v57 = vld [vmem:[#allocation6 + $0x500] sm:$0xff]  ;;  %v1243_v58 = vld [vmem:[#allocation6 + $0x530] sm:$0xff] }
 0x487   : > { %7126 = vmatpush1.bf16.msra.mxu0 %v7125_v61  ;;  %v1129_v61 = vld [vmem:[#allocation6 + $0x1a0] sm:$0xff] }
 0x488   : > { %7128 = vmatprep.subr.bf16.mxu0 %v7127_v3  ;;  %v7213_v2 = vpack.c.bf16 %v1135_v62, %v1129_v61  ;;  %v7215_v3 = vpack.c.bf16 %v1148_v0, %v1142_v63  ;;  %v7249_v61 = vpack.c.bf16 %v1243_v58, %v1237_v57  ;;  %v1249_v63 = vld [vmem:[#allocation6 + $0x560] sm:$0xff]  ;;  %v1255_v0 = vld [vmem:[#allocation6 + $0x590] sm:$0xff] }
 0x489   : > { %v7253_v4 = vpack.c.bf16 %v1255_v0, %v1249_v63 }
 0x48b   : > { %7130 = vmatpush1.bf16.msra.mxu0 %v7129_v16  ;;  %v1166_v16 = vld [vmem:[#allocation6 + $0x2c8] sm:$0xff] }
 0x48c   : > { %7196 = vmatprep.subr.bf16.mxu0 %v7195_v19  ;;  %v7223_v18 = vpack.c.bf16 %v1172_v17, %v1166_v16  ;;  %v1165_v19 = vld [vmem:[#allocation6 + $0x2c0] sm:$0xff] }
 0x50c   : > { %v1045_v45 = vpop.xlane.xlu1 %1044 }
 0x50d   : > { %v1046_v20 = vmul.f32 0.00390625, %v1045_v45  ;;  %v1171_v45 = vld [vmem:[#allocation6 + $0x2f0] sm:$0xff] }
 0x50e   : > { %v7225_v22 = vpack.c.bf16 %v1171_v45, %v1165_v19 }
 0x50f   : > { %v1047_v21 = vadd.f32 1e-05, %v1046_v20  ;;  %v1178_v20 = vld [vmem:[#allocation6 + $0x328] sm:$0xff] }
 0x511   : > { %7570 = vrsqrt.f32 %v1047_v21  ;;  %v1184_v21 = vld [vmem:[#allocation6 + $0x358] sm:$0xff] }
 0x512   : > { %v7227_v23 = vpack.c.bf16 %v1184_v21, %v1178_v20 }
 0x51b   : > { %v7571_v26 = vpop.eup %7570 }
 0x51c   : > { %v1050_v28 = vmul.f32 %v7571_v26, %v8406_v8  ;;  %v1049_v32 = vmul.f32 %v7571_v26, %v8403_v7  ;;  %v1106_v8 = vld [vmem:[#allocation6 + $0xe8] sm:$0xff]  ;;  %v7201_v7 = vpack.c.bf16 %v1099_v46, %v1093_v43 }
 0x51d   : > { %v7203_v48 = vpack.c.bf16 %v1112_v47, %v1106_v8  ;;  %v1190_v26 = vld [vmem:[#allocation6 + $0x388] sm:$0xff]  ;;  %v1213_v8 = vld [vmem:[#allocation6 + $0x440] sm:$0xff]  ;;  %v1219_v47 = vld [vmem:[#allocation6 + $0x470] sm:$0xff] }
 0x51e   : > { %v1063_v35 = vmul.f32 %v1059_v25, %v1050_v28  ;;  %v1062_v36 = vmul.f32 %v1055_v24, %v1049_v32  ;;  %v1177_v24 = vld [vmem:[#allocation6 + $0x320] sm:$0xff]  ;;  %v1183_v25 = vld [vmem:[#allocation6 + $0x350] sm:$0xff]  ;;  %v1196_v28 = vld [vmem:[#allocation6 + $0x3b8] sm:$0xff]  ;;  %v7241_v49 = vpack.c.bf16 %v1219_v47, %v1213_v8 }
 0x51f   : > { %v1189_v32 = vld [vmem:[#allocation6 + $0x380] sm:$0xff] }
 0x520   : > { %v1076_v39 = vadd.f32 %v1072_v31, %v1063_v35  ;;  %v8426_v40 = vadd.f32 %v1068_v30, %v1062_v36  ;;  %v7229_v30 = vpack.c.bf16 %v1183_v25, %v1177_v24  ;;  %v7231_v31 = vpack.c.bf16 %v1196_v28, %v1190_v26  ;;  %v1208_v35 = vld [vmem:[#allocation6 + $0x418] sm:$0xff] }
 0x521   : > { %v7233_v36 = vpack.c.bf16 %v1195_v33, %v1189_v32  ;;  %v7235_v37 = vpack.c.bf16 %v1208_v35, %v1202_v34 }
 0x522   : > { %1333 = vmatprep.mubr.f32.mxu0 %v1076_v39  ;;  %1404 = vmatprep.mubr.f32.mxu1 %v1076_v39 }
 0x523   : > { %1334 = vmatmul.mubr.f32.vlgmr.msra.gmra.mrb[4].mxu0 %v8426_v40  ;;  %1405 = vmatmul.mubr.f32.vlgmr.msra.gmra.mrb[0].mxu1 %v8426_v40 }
 0x524   : > { %7198 = vmatpush1.bf16.msra.mxu0 %v7197_v41  ;;  %1475 = vmatprep.mubr.f32.mxu0 %v1076_v39  ;;  %v1207_v39 = vld [vmem:[#allocation6 + $0x410] sm:$0xff]  ;;  %v1214_v41 = vld [vmem:[#allocation6 + $0x448] sm:$0xff] }
 0x525   : > { %7200 = vmatprep.subr.bf16.mxu0 %v7199_v42  ;;  %v1220_v42 = vld [vmem:[#allocation6 + $0x478] sm:$0xff]  ;;  %v7237_v43 = vpack.c.bf16 %v1207_v39, %v1201_v38 }
 0x526   : > { %v7239_v46 = vpack.c.bf16 %v1220_v42, %v1214_v41 }
 0x528   : > { %7202 = vmatpush1.bf16.msra.mxu0 %v7201_v7  ;;  %v1226_v7 = vld [vmem:[#allocation6 + $0x4a8] sm:$0xff] }
 0x529   : > { %7204 = vmatprep.subr.bf16.mxu0 %v7203_v48  ;;  %v1232_v48 = vld [vmem:[#allocation6 + $0x4d8] sm:$0xff] }
 0x52a   : > { %v7243_v50 = vpack.c.bf16 %v1232_v48, %v1226_v7 }
 0x52c   : > { %7206 = vmatpush1.bf16.msra.mxu0 %v7205_v53  ;;  %v1238_v53 = vld [vmem:[#allocation6 + $0x508] sm:$0xff] }
 0x52d   : > { %7208 = vmatprep.subr.bf16.mxu0 %v7207_v54  ;;  %v1244_v54 = vld [vmem:[#allocation6 + $0x538] sm:$0xff] }
 0x52e   : > { %v7247_v56 = vpack.c.bf16 %v1244_v54, %v1238_v53 }
 0x530   : > { %7210 = vmatpush1.bf16.msra.mxu0 %v7209_v59  ;;  %v1250_v59 = vld [vmem:[#allocation6 + $0x568] sm:$0xff] }
 0x531   : > { %7212 = vmatprep.subr.bf16.mxu0 %v7211_v60  ;;  %v1256_v60 = vld [vmem:[#allocation6 + $0x598] sm:$0xff] }
 0x532   : > { %v7251_v62 = vpack.c.bf16 %v1256_v60, %v1250_v59 }
 0x534   : > { %7214 = vmatpush1.bf16.msra.mxu0 %v7213_v2  ;;  %v1262_v2 = vld [vmem:[#allocation6 + $0x5c8] sm:$0xff] }
 0x535   : > { %7216 = vmatprep.subr.bf16.mxu0 %v7215_v3  ;;  %v1268_v3 = vld [vmem:[#allocation6 + $0x5f8] sm:$0xff] }
 0x536   : > { %v7255_v6 = vpack.c.bf16 %v1268_v3, %v1262_v2 }
 0x538   : > { %7218 = vmatpush1.bf16.msra.mxu0 %v7217_v12  ;;  %v7257_v12 = vpack.c.bf16 %v1267_v11, %v1261_v9  ;;  %v7384_v9 = vld [vmem:[#allocation11 + $0x8] ss:$24 sps:$4 sm:$0xff]   ;;  %v7386_v11 = vld [vmem:[#allocation11 + $0xc] ss:$24 sps:$4 sm:$0xff]  }
 0x539   : > { %7220 = vmatprep.subr.bf16.mxu0 %v7219_v13  ;;  %v1482_v13 = vld [vmem:[%s11903_s10] sm:$0x3] }
 0x53a   : > { %v1487_v14 = vrot.slane %v1482_v13, %v8384_v27  ;;  %v1491_v15 = vrot.slane %v1482_v13, %v8390_v29  ;;  %v7392_v13 = vld [vmem:[#allocation11 + $0x3c] ss:$24 sps:$4 sm:$0xff]  }
 0x53c   : > { %7222 = vmatpush1.bf16.msra.mxu0 %v7221_v44 }
 0x53d   : > { %7224 = vmatprep.subr.bf16.mxu0 %v7223_v18 }
 0x540   : > { %7226 = vmatpush1.bf16.msra.mxu0 %v7225_v22 }
 0x541   : > { %7228 = vmatprep.subr.bf16.mxu0 %v7227_v23 }
 0x544   : > { %7230 = vmatpush1.bf16.msra.mxu0 %v7229_v30 }
 0x545   : > { %7232 = vmatprep.subr.bf16.mxu0 %v7231_v31 }
 0x548   : > { %7234 = vmatpush1.bf16.msra.mxu0 %v7233_v36 }
 0x549   : > { %7236 = vmatprep.subr.bf16.mxu0 %v7235_v37 }
 0x54c   : > { %7238 = vmatpush1.bf16.msra.mxu0 %v7237_v43 }
 0x54d   : > { %7240 = vmatprep.subr.bf16.mxu0 %v7239_v46 }
 0x550   : > { %7242 = vmatpush1.bf16.msra.mxu0 %v7241_v49 }
 0x551   : > { %7244 = vmatprep.subr.bf16.mxu0 %v7243_v50 }
 0x554   : > { %7246 = vmatpush1.bf16.msra.mxu0 %v7245_v55 }
 0x555   : > { %7248 = vmatprep.subr.bf16.mxu0 %v7247_v56 }
 0x558   : > { %7250 = vmatpush1.bf16.msra.mxu0 %v7249_v61 }
 0x559   : > { %7252 = vmatprep.subr.bf16.mxu0 %v7251_v62 }
 0x55c   : > { %7254 = vmatpush1.bf16.msra.mxu0 %v7253_v4  ;;  %v8454_v4 = vld [vmem:[#allocation11] ss:$24 sps:$4 sm:$0xff]  }
 0x55d   : > { %7256 = vmatprep.subr.bf16.mxu0 %v7255_v6  ;;  %v8456_v6 = vld [vmem:[#allocation11 + $0x4] ss:$24 sps:$4 sm:$0xff]  }
 0x55e   : > { %2689 = vmatprep.subr.bf16.mxu1 %v8456_v6 }
 0x55f   : > { %2690 = vmatpush1.bf16.msra.mxu1 %v8454_v4 }
 0x560   : > { %7258 = vmatpush1.bf16.msra.mxu0 %v7257_v12  ;;  %v8458_v12 = vld [vmem:[#allocation11 + $0x34] ss:$24 sps:$4 sm:$0xff]  }
 0x561   : > { %2882 = vmatprep.subr.bf16.mxu0 %v7386_v11  ;;  %2691 = vmatprep.subr.bf16.mxu1 %v8458_v12  ;;  %v8536_v11 = vld [vmem:[#allocation11 + $0x184] ss:$24 sps:$4 sm:$0xff]  }
 0x562   : > { %12136 = vst [vmem:[#allocation31_spill] sm:$0xff] %v8536_v11 }
 0x563   : > { %1476 = vmatmul.mubr.f32.vlgmr.msra.gmra.mrb[6].mxu0 %v8426_v40 }
 0x564   : > { %2883 = vmatpush1.bf16.msra.mxu0 %v7384_v9  ;;  %v7426_v9 = vld [vmem:[#allocation11 + $0x158] ss:$24 sps:$4 sm:$0xff]  }
 0x565   : > { %2884 = vmatprep.subr.bf16.mxu0 %v7392_v13  ;;  %v7434_v13 = vld [vmem:[#allocation11 + $0x18c] ss:$24 sps:$4 sm:$0xff]  }
 0x5f6   : > { %v1335_v16 = vpop.f32.mrb[4].mxu0  ;;  %v1406_v17 = vpop.f32.mrb[0].mxu1 }
 0x5f7   : > { %v1494_v44 = vadd.f32 %v1487_v14, %v1335_v16  ;;  %v1506_v18 = vadd.f32 %v1487_v14, %v1406_v17  ;;  %v1337_v19 = vpop.f32.mrb[5].mxu0  ;;  %v1408_v45 = vpop.f32.mrb[1].mxu1  ;;  %v8465_v16 = vld [vmem:[#allocation11 + $0x64] ss:$24 sps:$4 sm:$0xff]  }
 0x5f8   : > { %v1495_v20 = vadd.f32 %v1491_v15, %v1337_v19  ;;  %v1507_v21 = vadd.f32 %v1491_v15, %v1408_v45  ;;  %v7398_v17 = vld [vmem:[#allocation11 + $0x6c] ss:$24 sps:$4 sm:$0xff]   ;;  %v7404_v45 = vld [vmem:[#allocation11 + $0x9c] ss:$24 sps:$4 sm:$0xff]  }
 0x5f9   : > { %v1498_v22 = vmul.f32 0.70710677, %v1494_v44  ;;  %v1510_v23 = vmul.f32 0.70710677, %v1506_v18  ;;  %v1496_v28 = vmul.f32 0.5, %v1494_v44  ;;  %v1508_v32 = vmul.f32 0.5, %v1506_v18 }
 0x5fa   : > { %v1499_v24 = vmul.f32 0.70710677, %v1495_v20  ;;  %v1511_v40 = vmul.f32 0.70710677, %v1507_v21  ;;  %v1497_v35 = vmul.f32 0.5, %v1495_v20  ;;  %v1509_v38 = vmul.f32 0.5, %v1507_v21 }
 0x5fb   : > { %7572 = verf.f32 %v1498_v22  ;;  %v8468_v44 = vld [vmem:[#allocation11 + $0x60] ss:$24 sps:$4 sm:$0xff]   ;;  %v8471_v19 = vld [vmem:[#allocation11 + $0x94] ss:$24 sps:$4 sm:$0xff]   ;;  %v8474_v20 = vld [vmem:[#allocation11 + $0x90] ss:$24 sps:$4 sm:$0xff]  }
 0x5fc   : > { %7574 = verf.f32 %v1510_v23  ;;  %v7396_v18 = vld [vmem:[#allocation11 + $0x68] ss:$24 sps:$4 sm:$0xff]   ;;  %12127 = vst [vmem:[#allocation22_spill] sm:$0xff] %v8474_v20  ;;  %v7402_v21 = vld [vmem:[#allocation11 + $0x98] ss:$24 sps:$4 sm:$0xff]  }
 0x5fd   : > { %7576 = verf.f32 %v1499_v24  ;;  %v8477_v22 = vld [vmem:[#allocation11 + $0xc4] ss:$24 sps:$4 sm:$0xff]   ;;  %v8480_v24 = vld [vmem:[#allocation11 + $0xc0] ss:$24 sps:$4 sm:$0xff]  }
 0x5fe   : > { %7578 = verf.f32 %v1511_v40  ;;  %12128 = vst [vmem:[#allocation23_spill] sm:$0xff] %v8477_v22  ;;  %v7410_v23 = vld [vmem:[#allocation11 + $0xcc] ss:$24 sps:$4 sm:$0xff]   ;;  %12129 = vst [vmem:[#allocation24_spill] sm:$0xff] %v8480_v24  ;;  %v7408_v40 = vld [vmem:[#allocation11 + $0xc8] ss:$24 sps:$4 sm:$0xff]  }
 0x605   : > { %v7573_v25 = vpop.eup %7572 }
 0x606   : > { %v7575_v26 = vpop.eup %7574  ;;  %v1502_v30 = vadd.f32 1.0, %v7573_v25 }
 0x607   : > { %v7577_v31 = vpop.eup %7576  ;;  %v1514_v33 = vadd.f32 1.0, %v7575_v26 }
 0x608   : > { %v7579_v34 = vpop.eup %7578  ;;  %v1503_v36 = vadd.f32 1.0, %v7577_v31  ;;  %v8436_v37 = vmul.f32 %v1502_v30, %v1496_v28 }
 0x609   : > { %v1515_v39 = vadd.f32 1.0, %v7579_v34  ;;  %v8438_v41 = vmul.f32 %v1514_v33, %v1508_v32 }
 0x60a   : > { %v8440_v42 = vmul.f32 %v1503_v36, %v1497_v35  ;;  %v1530_v43 = vsel %vm874_vm5, %v8436_v37, 0.0 }
 0x60b   : > { %v8444_v46 = vmul.f32 %v1515_v39, %v1509_v38  ;;  %v1535_v8 = vsel %vm874_vm5, %v8438_v41, 0.0 }
 0x60c   : > { %v1531_v47 = vsel %vm874_vm5, %v8440_v42, 0.0 }
 0x60d   : > { %v1536_v7 = vsel %vm874_vm5, %v8444_v46, 0.0  ;;  %v1532_v48 = vadd.f32 %v1531_v47, %v1530_v43 }
 0x60e   : > { %v1537_v49 = vadd.f32 %v1536_v7, %v1535_v8 }
 0x60f   : > { %1533 = vadd.xlane.f32.xlu1 %v1532_v48 }
 0x610   : > { %1538 = vadd.xlane.f32.xlu0 %v1537_v49 }
 0x636   : > { %v1477_v50 = vpop.f32.mrb[6].mxu0 }
 0x637   : > { %v1518_v51 = vadd.f32 %v1487_v14, %v1477_v50  ;;  %v1479_v52 = vpop.f32.mrb[7].mxu0  ;;  %v8462_v14 = vld [vmem:[#allocation11 + $0x30] ss:$24 sps:$4 sm:$0xff]  }
 0x638   : > { %v1519_v53 = vadd.f32 %v1491_v15, %v1479_v52  ;;  %v7390_v15 = vld [vmem:[#allocation11 + $0x38] ss:$24 sps:$4 sm:$0xff]   ;;  %2692 = vmatpush1.bf16.msra.mxu1 %v8462_v14 }
 0x639   : > { %v1522_v54 = vmul.f32 0.70710677, %v1518_v51  ;;  %v1520_v58 = vmul.f32 0.5, %v1518_v51  ;;  %2885 = vmatpush1.bf16.msra.mxu0 %v7390_v15  ;;  %2693 = vmatprep.subr.bf16.mxu1 %v8465_v16  ;;  %v8538_v15 = vld [vmem:[#allocation11 + $0x180] ss:$24 sps:$4 sm:$0xff]  }
 0x63a   : > { %v1523_v55 = vmul.f32 0.70710677, %v1519_v53  ;;  %v1521_v60 = vmul.f32 0.5, %v1519_v53  ;;  %2886 = vmatprep.subr.bf16.mxu0 %v7398_v17  ;;  %12137 = vst [vmem:[#allocation32_spill] sm:$0xff] %v8538_v15  ;;  %v7432_v17 = vld [vmem:[#allocation11 + $0x188] ss:$24 sps:$4 sm:$0xff]  }
 0x63b   : > { %7580 = verf.f32 %v1522_v54 }
 0x63c   : > { %7582 = verf.f32 %v1523_v55  ;;  %2694 = vmatpush1.bf16.msra.mxu1 %v8468_v44 }
 0x63d   : > { %2887 = vmatpush1.bf16.msra.mxu0 %v7396_v18  ;;  %2695 = vmatprep.subr.bf16.mxu1 %v8471_v19  ;;  %v7437_v18 = vld [vmem:[#allocation11 + $0x1b4] ss:$24 sps:$4 sm:$0xff]  }
 0x63e   : > { %2888 = vmatprep.subr.bf16.mxu0 %v7404_v45  ;;  %v7440_v45 = vld [vmem:[#allocation11 + $0x1bc] ss:$24 sps:$4 sm:$0xff]  }
 0x640   : > { %2696 = vmatpush1.bf16.msra.mxu1 %v8474_v20  ;;  %v8715_v20 = vld [vmem:[#allocation8 + $0x80] sm:$0xff] }
 0x641   : > { %2889 = vmatpush1.bf16.msra.mxu0 %v7402_v21  ;;  %2697 = vmatprep.subr.bf16.mxu1 %v8477_v22  ;;  %v7435_v21 = vld [vmem:[#allocation11 + $0x1b0] ss:$24 sps:$4 sm:$0xff]   ;;  %v8713_v22 = vld [vmem:[#allocation8 + $0x98] sm:$0xff]  ;;  %12161 = vst [vmem:[#allocation54_spill] sm:$0xff] %v8715_v20 }
 0x642   : > { %2890 = vmatprep.subr.bf16.mxu0 %v7410_v23  ;;  %v7438_v23 = vld [vmem:[#allocation11 + $0x1b8] ss:$24 sps:$4 sm:$0xff]   ;;  %12160 = vst [vmem:[#allocation53_spill] sm:$0xff] %v8713_v22 }
 0x644   : > { %2698 = vmatpush1.bf16.msra.mxu1 %v8480_v24  ;;  %v8711_v24 = vld [vmem:[#allocation8 + $0x88] sm:$0xff] }
 0x645   : > { %v7581_v56 = vpop.eup %7580  ;;  %2891 = vmatpush1.bf16.msra.mxu0 %v7408_v40  ;;  %v7443_v40 = vld [vmem:[#allocation11 + $0x1e4] ss:$24 sps:$4 sm:$0xff]   ;;  %12159 = vst [vmem:[#allocation52_spill] sm:$0xff] %v8711_v24 }
 0x646   : > { %v7583_v57 = vpop.eup %7582  ;;  %v1526_v59 = vadd.f32 1.0, %v7581_v56  ;;  %v8518_v56 = vld [vmem:[#allocation11 + $0xf0] ss:$24 sps:$4 sm:$0xff]  }
 0x647   : > { %v1527_v61 = vadd.f32 1.0, %v7583_v57  ;;  %12130 = vst [vmem:[#allocation25_spill] sm:$0xff] %v8518_v56  ;;  %v8520_v57 = vld [vmem:[#allocation11 + $0xf4] ss:$24 sps:$4 sm:$0xff]  }
 0x648   : > { %v1528_v62 = vmul.f32 %v1526_v59, %v1520_v58  ;;  %12131 = vst [vmem:[#allocation26_spill] sm:$0xff] %v8520_v57  ;;  %v7414_v58 = vld [vmem:[#allocation11 + $0xf8] ss:$24 sps:$4 sm:$0xff]   ;;  %v7416_v59 = vld [vmem:[#allocation11 + $0xfc] ss:$24 sps:$4 sm:$0xff]   ;;  %2699 = vmatprep.subr.bf16.mxu1 %v8520_v57 }
 0x649   : > { %v1529_v63 = vmul.f32 %v1527_v61, %v1521_v60  ;;  %2700 = vmatpush1.bf16.msra.mxu1 %v8518_v56  ;;  %2892 = vmatprep.subr.bf16.mxu0 %v7416_v59  ;;  %v8524_v60 = vld [vmem:[#allocation11 + $0x124] ss:$24 sps:$4 sm:$0xff]   ;;  %v8542_v59 = vld [vmem:[#allocation11 + $0x14] ss:$24 sps:$4 sm:$0xff]  }
 0x64a   : > { %v1542_v0 = vsel %vm874_vm5, %v1528_v62, 0.0  ;;  %2893 = vmatpush1.bf16.msra.mxu0 %v7414_v58  ;;  %12132 = vst [vmem:[#allocation27_spill] sm:$0xff] %v8524_v60  ;;  %v7422_v61 = vld [vmem:[#allocation11 + $0x12c] ss:$24 sps:$4 sm:$0xff]   ;;  %2701 = vmatprep.subr.bf16.mxu1 %v8524_v60  ;;  %v7474_v58 = vld [vmem:[#allocation11 + $0x2d8] ss:$24 sps:$4 sm:$0xff]  }
 0x64b   : > { %v1543_v2 = vsel %vm874_vm5, %v1529_v63, 0.0  ;;  %2894 = vmatprep.subr.bf16.mxu0 %v7422_v61  ;;  %12138 = vst [vmem:[#allocation33_spill] sm:$0xff] %v8542_v59  ;;  %v8699_v60 = vld [vmem:[#allocation8 + $0x70] sm:$0xff]  ;;  %v8701_v56 = vld [vmem:[#allocation9 + $0x60] sm:$0xff] }
 0x64c   : > { %v1544_v3 = vadd.f32 %v1543_v2, %v1542_v0  ;;  %v8530_v0 = vld [vmem:[#allocation11 + $0x154] ss:$24 sps:$4 sm:$0xff]   ;;  %12157 = vst [vmem:[#allocation50_spill] sm:$0xff] %v8699_v60  ;;  %12158 = vst [vmem:[#allocation51_spill] sm:$0xff] %v8701_v56 }
 0x64d   : > { %12134 = vst [vmem:[#allocation29_spill] sm:$0xff] %v8530_v0  ;;  %v7428_v2 = vld [vmem:[#allocation11 + $0x15c] ss:$24 sps:$4 sm:$0xff]  }
 0x64e   : > { %1545 = vadd.xlane.f32.xlu0 %v1544_v3  ;;  %v8532_v3 = vld [vmem:[#allocation11 + $0x150] ss:$24 sps:$4 sm:$0xff]  }
 0x64f   : > { %12135 = vst [vmem:[#allocation30_spill] sm:$0xff] %v8532_v3 }
 0x69c   : > { %v1534_v28 = vpop.xlane.xlu1 %1533 }
 0x69d   : > { %v1539_v25 = vpop.xlane.xlu0 %1538 }
 0x69e   : > { %v1540_v26 = vmul.f32 126.0, %v1539_v25  ;;  %v7446_v25 = vld [vmem:[#allocation11 + $0x1ec] ss:$24 sps:$4 sm:$0xff]  }
 0x6a0   : > { %v1541_v30 = vadd.f32 %v1540_v26, %v1534_v28  ;;  %v7441_v26 = vld [vmem:[#allocation11 + $0x1e0] ss:$24 sps:$4 sm:$0xff]  }
 0x6a1   : > { %v7444_v28 = vld [vmem:[#allocation11 + $0x1e8] ss:$24 sps:$4 sm:$0xff]  }
 0x6db   : > { %v1546_v31 = vpop.xlane.xlu0 %1545 }
 0x6dc   : > { %v1547_v32 = vadd.f32 %v1546_v31, %v1541_v30  ;;  %v7449_v30 = vld [vmem:[#allocation11 + $0x214] ss:$24 sps:$4 sm:$0xff]  }
 0x6dd   : > { %v7452_v31 = vld [vmem:[#allocation11 + $0x21c] ss:$24 sps:$4 sm:$0xff]  }
 0x6de   : > { %v1549_v33 = vmul.f32 3.0517578e-05, %v1547_v32  ;;  %v7447_v32 = vld [vmem:[#allocation11 + $0x210] ss:$24 sps:$4 sm:$0xff]  }
 0x6e0   : > { %v8485_v34 = vsub.f32 %v8438_v41, %v1549_v33  ;;  %v8488_v35 = vsub.f32 %v8444_v46, %v1549_v33  ;;  %v8491_v36 = vsub.f32 %v8436_v37, %v1549_v33  ;;  %v8494_v38 = vsub.f32 %v8440_v42, %v1549_v33 }
 0x6e1   : > { %v8496_v39 = vsub.f32 %v1528_v62, %v1549_v33  ;;  %v8498_v43 = vsub.f32 %v1529_v63, %v1549_v33  ;;  %v8526_v62 = vld [vmem:[#allocation11 + $0x120] ss:$24 sps:$4 sm:$0xff]  }
 0x6e2   : > { %v1563_v8 = vmul.f32 %v8485_v34, %v8485_v34  ;;  %v1564_v41 = vmul.f32 %v8488_v35, %v8488_v35  ;;  %v1556_v46 = vmul.f32 %v8491_v36, %v8491_v36  ;;  %v1557_v37 = vmul.f32 %v8494_v38, %v8494_v38  ;;  %12133 = vst [vmem:[#allocation28_spill] sm:$0xff] %v8526_v62  ;;  %v7420_v63 = vld [vmem:[#allocation11 + $0x128] ss:$24 sps:$4 sm:$0xff]   ;;  %v7450_v33 = vld [vmem:[#allocation11 + $0x218] ss:$24 sps:$4 sm:$0xff]  }
 0x6e3   : > { %v1572_v42 = vmul.f32 %v8496_v39, %v8496_v39  ;;  %v1573_v47 = vmul.f32 %v8498_v43, %v8498_v43  ;;  %2702 = vmatpush1.bf16.msra.mxu1 %v8526_v62  ;;  %2895 = vmatpush1.bf16.msra.mxu0 %v7420_v63  ;;  %v8697_v62 = vld [vmem:[#allocation8 + $0x60] sm:$0xff] }
 0x6e4   : > { %v1565_v7 = vsel %vm874_vm5, %v1563_v8, 0.0  ;;  %v1566_v48 = vsel %vm874_vm5, %v1564_v41, 0.0  ;;  %v1558_v49 = vsel %vm874_vm5, %v1556_v46, 0.0  ;;  %v1559_v50 = vsel %vm874_vm5, %v1557_v37, 0.0  ;;  %2703 = vmatprep.subr.bf16.mxu1 %v8530_v0  ;;  %2896 = vmatprep.subr.bf16.mxu0 %v7428_v2  ;;  %v7455_v8 = vld [vmem:[#allocation11 + $0x244] ss:$24 sps:$4 sm:$0xff]  }
 0x6e5   : > { %v1567_v51 = vadd.f32 %v1566_v48, %v1565_v7  ;;  %v1560_v52 = vadd.f32 %v1559_v50, %v1558_v49  ;;  %v1574_v53 = vsel %vm874_vm5, %v1572_v42, 0.0  ;;  %v1575_v54 = vsel %vm874_vm5, %v1573_v47, 0.0  ;;  %v7458_v41 = vld [vmem:[#allocation11 + $0x24c] ss:$24 sps:$4 sm:$0xff]   ;;  %v7453_v46 = vld [vmem:[#allocation11 + $0x240] ss:$24 sps:$4 sm:$0xff]  }
 0x6e6   : > { %v1576_v55 = vadd.f32 %v1575_v54, %v1574_v53  ;;  %v7456_v37 = vld [vmem:[#allocation11 + $0x248] ss:$24 sps:$4 sm:$0xff]   ;;  %v7461_v42 = vld [vmem:[#allocation11 + $0x274] ss:$24 sps:$4 sm:$0xff]   ;;  %v7462_v48 = vld [vmem:[#allocation11 + $0x278] ss:$24 sps:$4 sm:$0xff]  }
 0x6e7   : > { %1568 = vadd.xlane.f32.xlu1 %v1567_v51  ;;  %1561 = vadd.xlane.f32.xlu0 %v1560_v52  ;;  %v7464_v47 = vld [vmem:[#allocation11 + $0x27c] ss:$24 sps:$4 sm:$0xff]   ;;  %v7459_v7 = vld [vmem:[#allocation11 + $0x270] ss:$24 sps:$4 sm:$0xff]   ;;  %v7470_v50 = vld [vmem:[#allocation11 + $0x2ac] ss:$24 sps:$4 sm:$0xff]  }
 0x6e8   : > { %2704 = vmatpush1.bf16.msra.mxu1 %v8532_v3  ;;  %2897 = vmatpush1.bf16.msra.mxu0 %v7426_v9  ;;  %v7467_v49 = vld [vmem:[#allocation11 + $0x2a4] ss:$24 sps:$4 sm:$0xff]   ;;  %v7465_v51 = vld [vmem:[#allocation11 + $0x2a0] ss:$24 sps:$4 sm:$0xff]   ;;  %v7473_v53 = vld [vmem:[#allocation11 + $0x2d4] ss:$24 sps:$4 sm:$0xff]  }
 0x6e9   : > { %2705 = vmatprep.subr.bf16.mxu1 %v8536_v11  ;;  %2898 = vmatprep.subr.bf16.mxu0 %v7434_v13  ;;  %v7468_v52 = vld [vmem:[#allocation11 + $0x2a8] ss:$24 sps:$4 sm:$0xff]   ;;  %v7476_v54 = vld [vmem:[#allocation11 + $0x2dc] ss:$24 sps:$4 sm:$0xff]   ;;  %12156 = vst [vmem:[#allocation49_spill] sm:$0xff] %v8697_v62 }
 0x6ea   : > { %v8680_v11 = vld [vmem:[#allocation9 + $0x50] sm:$0xff]  ;;  %v8682_v3 = vld [vmem:[#allocation9 + $0x68] sm:$0xff]  ;;  %v8684_v0 = vld [vmem:[#allocation9 + $0x78] sm:$0xff] }
 0x6eb   : > { %1577 = vadd.xlane.f32.xlu1 %v1576_v55  ;;  %v7471_v55 = vld [vmem:[#allocation11 + $0x2d0] ss:$24 sps:$4 sm:$0xff]   ;;  %12153 = vst [vmem:[#allocation46_spill] sm:$0xff] %v8680_v11  ;;  %12154 = vst [vmem:[#allocation47_spill] sm:$0xff] %v8682_v3 }
 0x6ec   : > { %2706 = vmatpush1.bf16.msra.mxu1 %v8538_v15  ;;  %2899 = vmatpush1.bf16.msra.mxu0 %v7432_v17  ;;  %12155 = vst [vmem:[#allocation48_spill] sm:$0xff] %v8684_v0 }
 0x6ed   : > { %2707 = vmatprep.subr.bf16.mxu1 %v7437_v18  ;;  %2900 = vmatprep.subr.bf16.mxu0 %v7440_v45 }
 0x6f0   : > { %2708 = vmatpush1.bf16.msra.mxu1 %v7435_v21  ;;  %2901 = vmatpush1.bf16.msra.mxu0 %v7438_v23  ;;  %v1653_v21 = vld [vmem:[#allocation8] ss:$8 sm:$0x3] }
 0x6f1   : > { %2709 = vmatprep.subr.bf16.mxu1 %v7443_v40  ;;  %2902 = vmatprep.subr.bf16.mxu0 %v7446_v25  ;;  %v1667_v23 = vld [vmem:[#allocation9] ss:$8 sm:$0x3]  ;;  %v1658_v40 = vrot.slane %v1653_v21, %v8384_v27  ;;  %v1662_v25 = vrot.slane %v1653_v21, %v8390_v29  ;;  %v8598_v21 = vld [vmem:[#allocation8 + $0x38] sm:$0xff] }
 0x6f4   : > { %2710 = vmatpush1.bf16.msra.mxu1 %v7441_v26  ;;  %2903 = vmatpush1.bf16.msra.mxu0 %v7444_v28  ;;  %v1682_v26 = vld [vmem:[#allocation8 + $0xf7] ss:$8 sm:$0x3] }
 0x6f5   : > { %2711 = vmatprep.subr.bf16.mxu1 %v7449_v30  ;;  %2904 = vmatprep.subr.bf16.mxu0 %v7452_v31  ;;  %v1676_v30 = vrot.slane %v1667_v23, %v8390_v29 }
 0x6f8   : > { %2712 = vmatpush1.bf16.msra.mxu1 %v7447_v32  ;;  %2905 = vmatpush1.bf16.msra.mxu0 %v7450_v33 }
 0x6f9   : > { %2713 = vmatprep.subr.bf16.mxu1 %v7455_v8  ;;  %2906 = vmatprep.subr.bf16.mxu0 %v7458_v41 }
 0x6fc   : > { %2714 = vmatpush1.bf16.msra.mxu1 %v7453_v46  ;;  %2907 = vmatpush1.bf16.msra.mxu0 %v7456_v37  ;;  %v1687_v46 = vrot.slane %v1682_v26, %v8384_v27  ;;  %v1691_v37 = vrot.slane %v1682_v26, %v8390_v29  ;;  %v8609_v26 = vld [vmem:[#allocation8 + $0x20] sm:$0xff] }
 0x6fd   : > { %2715 = vmatprep.subr.bf16.mxu1 %v7461_v42  ;;  %2908 = vmatprep.subr.bf16.mxu0 %v7464_v47 }
 0x700   : > { %2716 = vmatpush1.bf16.msra.mxu1 %v7459_v7  ;;  %2909 = vmatpush1.bf16.msra.mxu0 %v7462_v48 }
 0x701   : > { %2717 = vmatprep.subr.bf16.mxu1 %v7467_v49  ;;  %2910 = vmatprep.subr.bf16.mxu0 %v7470_v50  ;;  %v1697_v49 = vld [vmem:[#allocation9 + $0xf7] ss:$8 sm:$0x3] }
 0x704   : > { %2718 = vmatpush1.bf16.msra.mxu1 %v7465_v51  ;;  %2911 = vmatpush1.bf16.msra.mxu0 %v7468_v52  ;;  %v8568_v51 = vld [vmem:[#allocation8] sm:$0xff]  ;;  %v8570_v52 = vld [vmem:[#allocation8 + $0x8] sm:$0xff] }
 0x705   : > { %2719 = vmatprep.subr.bf16.mxu1 %v7473_v53  ;;  %2912 = vmatprep.subr.bf16.mxu0 %v7476_v54  ;;  %v8572_v53 = vld [vmem:[#allocation8 + $0x18] sm:$0xff] }
 0x708   : > { %2720 = vmatpush1.bf16.msra.mxu1 %v7471_v55  ;;  %2913 = vmatpush1.bf16.msra.mxu0 %v7474_v58  ;;  %v1706_v55 = vrot.slane %v1697_v49, %v8390_v29  ;;  %v8577_v58 = vld [vmem:[#allocation9] sm:$0xff] }
 0x709   : > { %3926 = vmatprep.subr.bf16.mxu0 %v8456_v6  ;;  %3075 = vmatprep.subr.bf16.mxu1 %v8542_v59  ;;  %v1672_v6 = vrot.slane %v1667_v23, %v8384_v27  ;;  %v12141_v23 = vmov 0  ;;  %v8668_v59 = vld [vmem:[#allocation8 + $0x78] sm:$0xff] }
 0x70a   : > { %v12142_v23 = vsel %vm8601_vm6, 4294967295, %v12141_v23  ;;  %12152 = vst [vmem:[#allocation45_spill] sm:$0xff] %v8668_v59 }
 0x70b   : > { %12143 = vst [vmem:[#allocation36_spill] sm:$0xff] %v12142_v23 }
 0x774   : > { %v1569_v61 = vpop.xlane.xlu1 %1568  ;;  %v1562_v2 = vpop.xlane.xlu0 %1561 }
 0x775   : > { %v1570_v63 = vmul.f32 126.0, %v1569_v61  ;;  %v8579_v61 = vld [vmem:[#allocation9 + $0x8] sm:$0xff] }
 0x777   : > { %v1571_v9 = vadd.f32 %v1570_v63, %v1562_v2  ;;  %v8581_v63 = vld [vmem:[#allocation8 + $0x10] sm:$0xff] }
 0x778   : > { %v1578_v13 = vpop.xlane.xlu1 %1577 }
 0x779   : > { %v1579_v17 = vadd.f32 %v1578_v13, %v1571_v9  ;;  %v8589_v13 = vld [vmem:[#allocation9 + $0x18] sm:$0xff] }
 0x77b   : > { %v1580_v18 = vmul.f32 3.0517578e-05, %v1579_v17 }
 0x77d   : > { %v1581_v45 = vadd.f32 1e-05, %v1580_v18  ;;  %v8594_v18 = vld [vmem:[#allocation9 + $0x10] sm:$0xff] }
 0x77f   : > { %7584 = vrsqrt.f32 %v1581_v45  ;;  %v8596_v45 = vld [vmem:[#allocation8 + $0x28] sm:$0xff] }
 0x789   : > { %v7585_v28 = vpop.eup %7584 }
 0x78a   : > { %v1585_v31 = vmul.f32 %v7585_v28, %v8485_v34  ;;  %v1586_v32 = vmul.f32 %v7585_v28, %v8488_v35  ;;  %v1583_v33 = vmul.f32 %v7585_v28, %v8491_v36  ;;  %v1584_v8 = vmul.f32 %v7585_v28, %v8494_v38 }
 0x78b   : > { %v1587_v41 = vmul.f32 %v7585_v28, %v8496_v39  ;;  %v1588_v48 = vmul.f32 %v7585_v28, %v8498_v43  ;;  %v1702_v39 = vrot.slane %v1697_v49, %v8384_v27 }
 0x78c   : > { %v1713_v42 = vcombine.low %v1585_v31, %v1586_v32  ;;  %v1665_v47 = vmul.f32 %v1658_v40, %v1583_v33  ;;  %v1666_v7 = vmul.f32 %v1662_v25, %v1584_v8  ;;  %v8605_v40 = vld [vmem:[#allocation9 + $0x28] sm:$0xff]  ;;  %v8607_v25 = vld [vmem:[#allocation9 + $0x38] sm:$0xff]  ;;  %v8619_v31 = vld [vmem:[#allocation8 + $0x30] sm:$0xff] }
 0x78d   : > { %v1694_v38 = vmul.f32 %v1687_v46, %v1587_v41  ;;  %v1695_v54 = vmul.f32 %v1691_v37, %v1588_v48  ;;  %v8621_v32 = vld [vmem:[#allocation9 + $0x20] sm:$0xff]  ;;  %v8623_v33 = vld [vmem:[#allocation9 + $0x30] sm:$0xff]  ;;  %v8639_v48 = vld [vmem:[#allocation9 + $0x48] sm:$0xff] }
 0x78e   : > { %v8559_v34 = vrot.slane %v1713_v42, %v8368_v10  ;;  %v8561_v35 = vadd.f32 %v1672_v6, %v1665_v47  ;;  %v8563_v36 = vadd.f32 %v1676_v30, %v1666_v7  ;;  %12145 = vst [vmem:[#allocation38_spill] sm:$0xff] %v8623_v33  ;;  %v8635_v47 = vld [vmem:[#allocation8 + $0x48] sm:$0xff]  ;;  %v8637_v7 = vld [vmem:[#allocation8 + $0x58] sm:$0xff]  ;;  %12147 = vst [vmem:[#allocation40_spill] sm:$0xff] %v8639_v48 }
 0x78f   : > { %v8611_v28 = vadd.f32 %v1702_v39, %v1694_v38  ;;  %v8625_v8 = vadd.f32 %v1706_v55, %v1695_v54  ;;  %v8649_v54 = vld [vmem:[#allocation8 + $0x50] sm:$0xff]  ;;  %v8651_v55 = vld [vmem:[#allocation8 + $0x68] sm:$0xff] }
 0x790   : > { %12139 = vst [vmem:[#allocation34_spill] sm:$0xff] %v8561_v35  ;;  %12140 = vst [vmem:[#allocation35_spill] sm:$0xff] %v8563_v36  ;;  %v1728_v50 = vrot.slane %v8559_v34, %v8368_v10  ;;  %v1950_v43 = vcombine.low %v8561_v35, %v8563_v36  ;;  %v8664_v35 = vld [vmem:[#allocation9 + $0x58] sm:$0xff]  ;;  %v8666_v36 = vld [vmem:[#allocation9 + $0x40] sm:$0xff] }
 0x791   : > { %12144 = vst [vmem:[#allocation37_spill] sm:$0xff] %v8611_v28  ;;  %12146 = vst [vmem:[#allocation39_spill] sm:$0xff] %v8625_v8 }
 0x792   : > { %v8584_v2 = vrot.slane %v1728_v50, %v8384_v27  ;;  %v8587_v9 = vrot.slane %v1728_v50, %v8390_v29  ;;  %v8592_v17 = vrot.slane %v1950_v43, %v8368_v10  ;;  %v8647_v43 = vld [vmem:[#allocation8 + $0x40] sm:$0xff]  ;;  %12148 = vst [vmem:[#allocation41_spill] sm:$0xff] %v8649_v54  ;;  %12149 = vst [vmem:[#allocation42_spill] sm:$0xff] %v8651_v55 }
 0x793   : > { %12150 = vst [vmem:[#allocation43_spill] sm:$0xff] %v8664_v35  ;;  %12151 = vst [vmem:[#allocation44_spill] sm:$0xff] %v8666_v36 }
 0x794   : > { %v1756_v30 = vmul.f32 %v8584_v2, %v8568_v51  ;;  %v1757_v1 = vmul.f32 %v8587_v9, %v8570_v52  ;;  %v1759_v41 = vmul.f32 %v8587_v9, %v8572_v53  ;;  %v1965_v46 = vrot.slane %v8592_v17, %v8368_v10 }
 0x795   : > { %v1758_v37 = vmul.f32 %v8584_v2, %v8581_v63  ;;  %v1761_v42 = vmul.f32 %v8587_v9, %v8596_v45  ;;  %v1763_v39 = vmul.f32 %v8587_v9, %v8598_v21  ;;  %v1760_v50 = vmul.f32 %v8584_v2, %v8609_v26 }
 0x796   : > { %v1820_v49 = vadd.f32 %v1756_v30, %v8577_v58  ;;  %v1821_v38 = vadd.f32 %v1757_v1, %v8579_v61  ;;  %v8654_v6 = vadd.f32 %v1759_v41, %v8589_v13  ;;  %v1762_v1 = vmul.f32 %v8584_v2, %v8619_v31 }
 0x797   : > { %v8657_v5 = vadd.f32 %v1758_v37, %v8594_v18  ;;  %v8660_v30 = vadd.f32 %v1761_v42, %v8605_v40  ;;  %v8671_v41 = vadd.f32 %v1763_v39, %v8607_v25  ;;  %v8674_v37 = vadd.f32 %v1760_v50, %v8621_v32 }
 0x798   : > { %1884 = vst [vmem:[#allocation2] sm:$0xff] %v1820_v49  ;;  %1885 = vst [vmem:[#allocation2 + $0x8] sm:$0xff] %v1821_v38  ;;  %v1765_v42 = vmul.f32 %v8587_v9, %v8635_v47  ;;  %v1767_v15 = vmul.f32 %v8587_v9, %v8637_v7  ;;  %v8689_v49 = vadd.f32 %v1762_v1, %v8623_v33 }
 0x799   : > { %1979 = vst.msk [vmem:[#allocation2] ss:$8 sm:$0x3] %vm8601_vm6, %v1965_v46  ;;  %v1764_v38 = vmul.f32 %v8584_v2, %v8647_v43  ;;  %v1766_v39 = vmul.f32 %v8584_v2, %v8649_v54  ;;  %v1769_v50 = vmul.f32 %v8587_v9, %v8651_v55  ;;  %v1771_v57 = vmul.f32 %v8587_v9, %v8668_v59  ;;  %v8730_v59 = vld [vmem:[#allocation8 + $0x90] sm:$0xff] }
 0x79a   : > { %v8704_v46 = vadd.f32 %v1765_v42, %v8639_v48  ;;  %v8707_v1 = vadd.f32 %v1767_v15, %v8664_v35  ;;  %v8726_v15 = vld [vmem:[#allocation9 + $0x70] sm:$0xff]  ;;  %v8728_v35 = vld [vmem:[#allocation9 + $0x88] sm:$0xff]  ;;  %12167 = vst [vmem:[#allocation60_spill] sm:$0xff] %v8730_v59  ;;  %v1768_v33 = vmul.f32 %v8584_v2, %v8697_v62  ;;  %v1772_v62 = vmul.f32 %v8584_v2, %v8715_v20 }
 0x79b   : > { %v8718_v55 = vadd.f32 %v1764_v38, %v8666_v36  ;;  %v8721_v54 = vadd.f32 %v1766_v39, %v8680_v11  ;;  %v8724_v42 = vadd.f32 %v1769_v50, %v8682_v3  ;;  %12165 = vst [vmem:[#allocation58_spill] sm:$0xff] %v8726_v15  ;;  %12166 = vst [vmem:[#allocation59_spill] sm:$0xff] %v8728_v35  ;;  %v8739_v39 = vld [vmem:[#allocation9 + $0x98] sm:$0xff]  ;;  %v8741_v11 = vld [vmem:[#allocation9 + $0x80] sm:$0xff] }
 0x79c   : > { %v8733_v48 = vadd.f32 %v1771_v57, %v8684_v0  ;;  %v1770_v38 = vmul.f32 %v8584_v2, %v8699_v60  ;;  %12169 = vst [vmem:[#allocation62_spill] sm:$0xff] %v8739_v39  ;;  %12170 = vst [vmem:[#allocation63_spill] sm:$0xff] %v8741_v11  ;;  %v8743_v50 = vld [vmem:[#allocation8 + $0xa8] sm:$0xff]  ;;  %v1986_v3 = vcombine.low %v8611_v28, %v8625_v8 }
 0x79d   : > { %12162 = vst [vmem:[#allocation55_spill] sm:$0xff] %v8718_v55  ;;  %12163 = vst [vmem:[#allocation56_spill] sm:$0xff] %v8721_v54  ;;  %v12172_v57 = vcombine.high %v8559_v34, %v8559_v34  ;;  %v1775_v60 = vmul.f32 %v8587_v9, %v8713_v22  ;;  %v8759_v54 = vld [vmem:[#allocation8 + $0xb8] sm:$0xff]  ;;  %v8761_v55 = vld [vmem:[#allocation8 + $0xa0] sm:$0xff]  ;;  %v8764_v28 = vadd.f32 %v1768_v33, %v8701_v56 }
 0x79e   : > { %12164 = vst [vmem:[#allocation57_spill] sm:$0xff] %v8724_v42  ;;  %12168 = vst [vmem:[#allocation61_spill] sm:$0xff] %v8733_v48  ;;  %v1773_v48 = vmul.f32 %v8587_v9, %v8711_v24  ;;  %v8755_v42 = vld [vmem:[#allocation9 + $0x90] sm:$0xff]  ;;  %v8767_v34 = vadd.f32 %v1770_v38, %v8726_v15  ;;  %v8771_v8 = vld [vmem:[#allocation9 + $0xa8] sm:$0xff]  ;;  %v8784_v33 = vadd.f32 %v1772_v62, %v8741_v11 }
 0x79f   : > { %12171 = vst [vmem:[#allocation64_spill] sm:$0xff] %v8743_v50  ;;  %v1735_v0 = vrot.slane %v12172_v57, %v8368_v10  ;;  %12173 = vst [vmem:[#allocation65_spill] sm:$0xff] %v8755_v42  ;;  %v1774_v57 = vmul.f32 %v8584_v2, %v8730_v59  ;;  %v8773_v22 = vld [vmem:[#allocation9 + $0xb8] sm:$0xff]  ;;  %v8775_v24 = vld [vmem:[#allocation8 + $0xb0] sm:$0xff]  ;;  %v8781_v36 = vadd.f32 %v1775_v60, %v8739_v39 }
 0x7a0   : > { %12174 = vst [vmem:[#allocation66_spill] sm:$0xff] %v8761_v55  ;;  %12175 = vst [vmem:[#allocation67_spill] sm:$0xff] %v8764_v28  ;;  %v8778_v20 = vadd.f32 %v1773_v48, %v8728_v35  ;;  %v1777_v38 = vmul.f32 %v8587_v9, %v8743_v50  ;;  %v8788_v15 = vld [vmem:[#allocation9 + $0xa0] sm:$0xff]  ;;  %v8790_v59 = vld [vmem:[#allocation8 + $0xc8] sm:$0xff]  ;;  %v1779_v60 = vmul.f32 %v8587_v9, %v8759_v54 }
 0x7a1   : > { %12176 = vst [vmem:[#allocation68_spill] sm:$0xff] %v8767_v34  ;;  %12177 = vst [vmem:[#allocation69_spill] sm:$0xff] %v8784_v33  ;;  %v8792_v34 = vld [vmem:[#allocation8 + $0xd8] sm:$0xff]  ;;  %v2018_v28 = vld [vmem:[#allocation2 + $0x8] sm:$0xff]  ;;  %v8795_v48 = vadd.f32 %v1774_v57, %v8755_v42  ;;  %v1776_v62 = vmul.f32 %v8584_v2, %v8761_v55  ;;  %v8804_v11 = vrot.slane %v1986_v3, %v8368_v10 }
 0x7a2   : > { %12178 = vst [vmem:[#allocation70_spill] sm:$0xff] %v8788_v15  ;;  %12179 = vst [vmem:[#allocation71_spill] sm:$0xff] %v8790_v59  ;;  %v2017_v56 = vld [vmem:[#allocation2] sm:$0xff]  ;;  %v8807_v39 = vrot.slane %v1735_v0, %v8384_v27  ;;  %v8810_v50 = vpack.c.bf16 %v8654_v6, %v2018_v28  ;;  %v8812_v35 = vld [vmem:[#allocation11 + $0x10] ss:$24 sps:$4 sm:$0xff]   ;;  %v8826_v3 = vpack.c.bf16 %v8671_v41, %v8660_v30 }
 0x7a3   : > { %12180 = vst [vmem:[#allocation72_spill] sm:$0xff] %v8792_v34  ;;  %12181 = vst [vmem:[#allocation73_spill] sm:$0xff] %v8795_v48  ;;  %v8801_v33 = vld [vmem:[#allocation8 + $0xc0] sm:$0xff]  ;;  %v8815_v57 = vpack.c.bf16 %v8657_v5, %v2017_v56  ;;  %v8818_v48 = vadd.f32 %v1777_v38, %v8771_v8  ;;  %v8820_v42 = vld [vmem:[#allocation9 + $0xb0] sm:$0xff]  ;;  %v8829_v27 = vadd.f32 %v1779_v60, %v8773_v22 }
 0x7a4   : > { %12182 = vst [vmem:[#allocation74_spill] sm:$0xff] %v8801_v33  ;;  %12183 = vst [vmem:[#allocation75_spill] sm:$0xff] %v8810_v50  ;;  %v8822_v55 = vld [vmem:[#allocation8 + $0xd0] sm:$0xff]  ;;  %v1778_v28 = vmul.f32 %v8584_v2, %v8775_v24  ;;  %v8834_v5 = vadd.f32 %v1776_v62, %v8788_v15  ;;  %v8836_v56 = vld [vmem:[#allocation9 + $0xc8] sm:$0xff]  ;;  %2721 = vmatprep.mubr.bf16.mxu1 %v8810_v50  ;;  %2914 = vmatprep.mubr.bf16.mxu0 %v8810_v50 }
 0x7a5   : > { %12184 = vst [vmem:[#allocation76_spill] sm:$0xff] %v8812_v35  ;;  %12185 = vst [vmem:[#allocation77_spill] sm:$0xff] %v8815_v57  ;;  %v8838_v6 = vld [vmem:[#allocation9 + $0xd8] sm:$0xff]  ;;  %v8840_v38 = vld [vmem:[#allocation9 + $0xc0] sm:$0xff]  ;;  %v1781_v41 = vmul.f32 %v8587_v9, %v8790_v59  ;;  %v1783_v60 = vmul.f32 %v8587_v9, %v8792_v34  ;;  %2722 = vmatmul.mubr.bf16.vlgmr.msra.gmra.mrb[4].mxu1 %v8815_v57  ;;  %2915 = vmatmul.mubr.bf16.vlgmr.msra.gmra.mrb[8].mxu0 %v8815_v57 }
 0x7a6   : > { %12186 = vst [vmem:[#allocation78_spill] sm:$0xff] %v8818_v48  ;;  %12187 = vst [vmem:[#allocation79_spill] sm:$0xff] %v8822_v55  ;;  %v8844_v30 = vld [vmem:[#allocation11 + $0x44] ss:$24 sps:$4 sm:$0xff]   ;;  %v8850_v62 = vld [vmem:[#allocation9 + $0xd0] sm:$0xff]  ;;  %v8857_v48 = vrot.slane %v1735_v0, %v8390_v29  ;;  %v8862_v50 = vadd.f32 %v1778_v28, %v8820_v42  ;;  %v1782_v34 = vmul.f32 %v8584_v2, %v8822_v55  ;;  %3076 = vmatpush1.bf16.msra.mxu1 %v8812_v35 }
 0x7a7   : > { %12188 = vst [vmem:[#allocation80_spill] sm:$0xff] %v8826_v3  ;;  %12189 = vst [vmem:[#allocation81_spill] sm:$0xff] %v8829_v27  ;;  %v8854_v27 = vld [vmem:[#allocation8 + $0xe8] sm:$0xff]  ;;  %v8866_v59 = vld [vmem:[#allocation8 + $0xf0] sm:$0xff]  ;;  %2731 = vmatprep.mubr.bf16.mxu1 %v8826_v3  ;;  %v8875_v29 = vadd.f32 %v1781_v41, %v8836_v56  ;;  %v8878_v57 = vadd.f32 %v1783_v60, %v8838_v6  ;;  %2924 = vmatprep.mubr.bf16.mxu0 %v8826_v3 }
 0x7a8   : > { %12190 = vst [vmem:[#allocation82_spill] sm:$0xff] %v8834_v5  ;;  %12191 = vst [vmem:[#allocation83_spill] sm:$0xff] %v8844_v30  ;;  %v1780_v5 = vmul.f32 %v8584_v2, %v8801_v33  ;;  %v8868_v15 = vld [vmem:[#allocation8 + $0xf8] sm:$0xff]  ;;  %v8885_v55 = vld [vmem:[#allocation8 + $0xe0] sm:$0xff]  ;;  %3927 = vmatpush1.bf16.msra.mxu0 %v8454_v4  ;;  %v8892_v33 = vadd.f32 %v1782_v34, %v8850_v62  ;;  %3077 = vmatprep.subr.bf16.mxu1 %v8844_v30 }
 0x7a9   : > { %12192 = vst [vmem:[#allocation84_spill] sm:$0xff] %v8862_v50  ;;  %v8872_v0 = vld [vmem:[#allocation11 + $0x40] ss:$24 sps:$4 sm:$0xff]   ;;  %12193 = vst [vmem:[#allocation85_spill] sm:$0xff] %v8878_v57  ;;  %v8883_v50 = vld [vmem:[#allocation9 + $0xe8] sm:$0xff]  ;;  %3928 = vmatprep.subr.bf16.mxu0 %v8458_v12  ;;  %v1786_v4 = vmul.f32 %v8584_v2, %v8866_v59  ;;  %v1787_v34 = vmul.f32 %v8587_v9, %v8868_v15  ;;  %v1784_v12 = vmul.f32 %v8584_v2, %v8885_v55 }
 0x7aa   : > { %v8881_v28 = vadd.f32 %v1780_v5, %v8840_v38  ;;  %v8889_v35 = vld [vmem:[#allocation11 + $0x74] ss:$24 sps:$4 sm:$0xff]   ;;  %12195 = vst [vmem:[#allocation87_spill] sm:$0xff] %v8892_v33  ;;  %v8896_v60 = vld [vmem:[#allocation9 + $0xf8] sm:$0xff]  ;;  %v1785_v5 = vmul.f32 %v8587_v9, %v8854_v27  ;;  %v8910_v3 = vld [vmem:[#allocation9 + $0xe0] sm:$0xff]  ;;  %v8914_v33 = vpack.c.bf16 %v8707_v1, %v8704_v46  ;;  %3078 = vmatpush1.bf16.msra.mxu1 %v8872_v0 }
 0x7ab   : > { %v8894_v41 = vld [vmem:[#allocation9 + $0xf0] sm:$0xff]  ;;  %v1851_v9 = vadd.f32 %v1787_v34, %v8896_v60  ;;  %v1788_v57 = vmul.f32 %v8807_v39, %v8568_v51  ;;  %v1789_v46 = vmul.f32 %v8857_v48, %v8570_v52  ;;  %3079 = vmatprep.subr.bf16.mxu1 %v8889_v35  ;;  %v8935_v2 = vadd.f32 %v1784_v12, %v8910_v3  ;;  %v8942_v51 = vld [vmem:[#allocation11 + $0xa4] ss:$24 sps:$4 sm:$0xff]  }
 0x7ac   : > { %12194 = vst [vmem:[#allocation86_spill] sm:$0xff] %v8881_v28  ;;  %v8903_v28 = vpack.c.bf16 %v8689_v49, %v8674_v37  ;;  %12196 = vst [vmem:[#allocation88_spill] sm:$0xff] %v8914_v33  ;;  %v8917_v30 = vadd.f32 %v1785_v5, %v8883_v50  ;;  %v2001_v37 = vrot.slane %v8804_v11, %v8368_v10  ;;  %3929 = vmatpush1.bf16.msra.mxu0 %v8462_v14  ;;  %v8931_v1 = vld [vmem:[#allocation11 + $0x70] ss:$24 sps:$4 sm:$0xff]  }
 0x7ad   : > { %v1850_v49 = vadd.f32 %v1786_v4, %v8894_v41  ;;  %12197 = vst [vmem:[#allocation89_spill] sm:$0xff] %v8931_v1  ;;  %v1791_v5 = vmul.f32 %v8857_v48, %v8572_v53  ;;  %v1958_v4 = vcombine.high %v8592_v17, %v8592_v17  ;;  %3930 = vmatprep.subr.bf16.mxu0 %v8465_v16  ;;  %12198 = vst [vmem:[#allocation90_spill] sm:$0xff] %v8942_v51  ;;  %v8972_v17 = vld [vmem:[#allocation11 + $0xa0] ss:$24 sps:$4 sm:$0xff]  }
 0x7ae   : > { %1915 = vst [vmem:[#allocation2 + $0xf8] sm:$0xff] %v1851_v9  ;;  %v1852_v14 = vadd.f32 %v1788_v57, %v8577_v58  ;;  %v1853_v52 = vadd.f32 %v1789_v46, %v8579_v61  ;;  %v1790_v34 = vmul.f32 %v8807_v39, %v8581_v63  ;;  %v1793_v12 = vmul.f32 %v8857_v48, %v8596_v45  ;;  %v12201_v57 = vld [vmem:[#allocation38_spill] sm:$0xff]  ;;  %v12204_v9 = vld [vmem:[#allocation43_spill] sm:$0xff] }
 0x7af   : > { %1914 = vst [vmem:[#allocation2 + $0xf0] sm:$0xff] %v1850_v49  ;;  %2732 = vmatmul.mubr.bf16.gmra.mrb[8].mxu1 %v8903_v28  ;;  %2925 = vmatmul.mubr.bf16.gmra.mrb[12].mxu0 %v8903_v28  ;;  %v8955_v16 = vadd.f32 %v1791_v5, %v8589_v13  ;;  %v1972_v53 = vrot.slane %v1958_v4, %v8368_v10  ;;  %12199 = vst [vmem:[#allocation91_spill] sm:$0xff] %v8972_v17  ;;  %v12203_v49 = vld [vmem:[#allocation41_spill] sm:$0xff]  ;;  %v12206_v4 = vld [vmem:[#allocation42_spill] sm:$0xff] }
 0x7b0   : > { %2012 = vst.msk [vmem:[#allocation2 + $0xf7] ss:$8 sm:$0x3] %vm8601_vm6, %v2001_v37  ;;  %v1795_v58 = vmul.f32 %v8857_v48, %v8598_v21  ;;  %2741 = vmatprep.mubr.bf16.mxu1 %v8914_v33  ;;  %2934 = vmatprep.mubr.bf16.mxu0 %v8914_v33  ;;  %1916 = vst [vmem:[#allocation2 + $0x100] sm:$0xff] %v1852_v14  ;;  %v8963_v61 = vadd.f32 %v1790_v34, %v8594_v18  ;;  %v12202_v37 = vld [vmem:[#allocation40_spill] sm:$0xff]  ;;  %v12207_v14 = vld [vmem:[#allocation45_spill] sm:$0xff] }
 0x7b1   : > { %1917 = vst [vmem:[#allocation2 + $0x108] sm:$0xff] %v1853_v52  ;;  %v8966_v63 = vadd.f32 %v1793_v12, %v8605_v40  ;;  %v1792_v13 = vmul.f32 %v8807_v39, %v8609_v26  ;;  %3080 = vmatpush1.bf16.msra.mxu1 %v8931_v1  ;;  %3931 = vmatpush1.bf16.msra.mxu0 %v8468_v44  ;;  %v8985_v40 = vld [vmem:[#allocation11 + $0xd4] ss:$24 sps:$4 sm:$0xff]   ;;  %v12208_v52 = vld [vmem:[#allocation55_spill] sm:$0xff]  ;;  %v12237_v33 = vld [vmem:[#allocation66_spill] sm:$0xff] }
 0x7b2   : > { %1982 = vst.msk [vmem:[#allocation2 + $0x100] ss:$8 sm:$0x3] %vm8601_vm6, %v1972_v53  ;;  %v8977_v45 = vadd.f32 %v1795_v58, %v8607_v25  ;;  %v1794_v18 = vmul.f32 %v8807_v39, %v8619_v31  ;;  %v1797_v21 = vmul.f32 %v8857_v48, %v8635_v47  ;;  %3081 = vmatprep.subr.bf16.mxu1 %v8942_v51  ;;  %12200 = vst [vmem:[#allocation92_spill] sm:$0xff] %v8985_v40  ;;  %v12209_v34 = vld [vmem:[#allocation56_spill] sm:$0xff]  ;;  %v12211_v53 = vld [vmem:[#allocation22_spill] sm:$0xff] }
 0x7b3   : > { %3932 = vmatprep.subr.bf16.mxu0 %v8471_v19  ;;  %v8988_v44 = vadd.f32 %v1792_v13, %v8621_v32  ;;  %v1799_v26 = vmul.f32 %v8857_v48, %v8637_v7  ;;  %v1796_v25 = vmul.f32 %v8807_v39, %v8647_v43  ;;  %v1798_v19 = vmul.f32 %v8807_v39, %v12203_v49  ;;  %v12205_v32 = vld [vmem:[#allocation44_spill] sm:$0xff]  ;;  %v12213_v13 = vld [vmem:[#allocation46_spill] sm:$0xff]  ;;  %v12218_v49 = vld [vmem:[#allocation23_spill] sm:$0xff] }
 0x7b4   : > { %v8995_v31 = vadd.f32 %v1794_v18, %v12201_v57  ;;  %v8998_v47 = vadd.f32 %v1797_v21, %v12202_v37  ;;  %v1801_v7 = vmul.f32 %v8857_v48, %v12206_v4  ;;  %v1803_v43 = vmul.f32 %v8857_v48, %v12207_v14  ;;  %v9018_v58 = vld [vmem:[#allocation11 + $0xd0] ss:$24 sps:$4 sm:$0xff]   ;;  %v12236_v51 = vld [vmem:[#allocation63_spill] sm:$0xff] }
 0x7b5   : > { %v9003_v46 = vadd.f32 %v1799_v26, %v12204_v9  ;;  %v9006_v5 = vadd.f32 %v1796_v25, %v12205_v32  ;;  %v9014_v12 = vpack.c.bf16 %v12209_v34, %v12208_v52  ;;  %3082 = vmatpush1.bf16.msra.mxu1 %v8972_v17  ;;  %3933 = vmatpush1.bf16.msra.mxu0 %v12211_v53  ;;  %v12214_v21 = vld [vmem:[#allocation49_spill] sm:$0xff]  ;;  %v9031_v9 = vld [vmem:[#allocation11 + $0x104] ss:$24 sps:$4 sm:$0xff]   ;;  %v12221_v14 = vld [vmem:[#allocation48_spill] sm:$0xff] }
 0x7b6   : > { %12212 = vst [vmem:[#allocation40_spill] sm:$0xff] %v9018_v58  ;;  %v9021_v18 = vadd.f32 %v1798_v19, %v12213_v13  ;;  %v1800_v26 = vmul.f32 %v8807_v39, %v12214_v21  ;;  %v12215_v25 = vld [vmem:[#allocation57_spill] sm:$0xff]  ;;  %3083 = vmatprep.subr.bf16.mxu1 %v8985_v40  ;;  %3934 = vmatprep.subr.bf16.mxu0 %v12218_v49  ;;  %12219 = vst [vmem:[#allocation43_spill] sm:$0xff] %v9031_v9  ;;  %v12220_v32 = vld [vmem:[#allocation47_spill] sm:$0xff] }
 0x7b7   : > { %12210 = vst [vmem:[#allocation38_spill] sm:$0xff] %v9014_v12  ;;  %v12216_v57 = vld [vmem:[#allocation61_spill] sm:$0xff]  ;;  %v9034_v4 = vadd.f32 %v1801_v7, %v12220_v32  ;;  %v9037_v52 = vadd.f32 %v1803_v43, %v12221_v14  ;;  %2742 = vmatmul.mubr.bf16.gmra.mrb[12].mxu1 %v9014_v12  ;;  %2935 = vmatmul.mubr.bf16.gmra.mrb[16].mxu0 %v9014_v12  ;;  %v12222_v19 = vld [vmem:[#allocation50_spill] sm:$0xff]  ;;  %v12223_v53 = vld [vmem:[#allocation51_spill] sm:$0xff] }
 0x7b8   : > { %v9027_v37 = vpack.c.bf16 %v12216_v57, %v12215_v25  ;;  %v1802_v34 = vmul.f32 %v8807_v39, %v12222_v19  ;;  %v1864_v13 = vadd.f32 %v1800_v26, %v12223_v53  ;;  %v12224_v21 = vld [vmem:[#allocation67_spill] sm:$0xff]  ;;  %v12225_v25 = vld [vmem:[#allocation68_spill] sm:$0xff]  ;;  %v9052_v43 = vpack.c.bf16 %v8781_v36, %v8778_v20  ;;  %v12228_v26 = vld [vmem:[#allocation26_spill] sm:$0xff] }
 0x7b9   : > { %v9048_v7 = vpack.c.bf16 %v12225_v25, %v12224_v21  ;;  %3084 = vmatpush1.bf16.msra.mxu1 %v9018_v58  ;;  %v12226_v57 = vld [vmem:[#allocation24_spill] sm:$0xff]  ;;  %v9056_v49 = vld [vmem:[#allocation11 + $0x100] ss:$24 sps:$4 sm:$0xff]   ;;  %v12230_v25 = vld [vmem:[#allocation53_spill] sm:$0xff] }
 0x7ba   : > { %12217 = vst [vmem:[#allocation41_spill] sm:$0xff] %v9027_v37  ;;  %2751 = vmatprep.mubr.bf16.mxu1 %v9027_v37  ;;  %2944 = vmatprep.mubr.bf16.mxu0 %v9027_v37  ;;  %v12227_v32 = vld [vmem:[#allocation52_spill] sm:$0xff]  ;;  %v12229_v53 = vld [vmem:[#allocation58_spill] sm:$0xff]  ;;  %v1807_v20 = vmul.f32 %v8857_v48, %v12230_v25 }
 0x7bb   : > { %3935 = vmatpush1.bf16.msra.mxu0 %v12226_v57  ;;  %v1805_v14 = vmul.f32 %v8857_v48, %v12227_v32  ;;  %3085 = vmatprep.subr.bf16.mxu1 %v9031_v9  ;;  %v9062_v19 = vld [vmem:[#allocation11 + $0x134] ss:$24 sps:$4 sm:$0xff]   ;;  %v1866_v21 = vadd.f32 %v1802_v34, %v12229_v53  ;;  %v12231_v36 = vld [vmem:[#allocation54_spill] sm:$0xff]  ;;  %v12232_v57 = vld [vmem:[#allocation59_spill] sm:$0xff] }
 0x7bc   : > { %3936 = vmatprep.subr.bf16.mxu0 %v12228_v26  ;;  %v1804_v37 = vmul.f32 %v8807_v39, %v12231_v36  ;;  %v12233_v12 = vld [vmem:[#allocation60_spill] sm:$0xff]  ;;  %v1811_v26 = vmul.f32 %v8857_v48, %v8759_v54  ;;  %v12235_v34 = vld [vmem:[#allocation62_spill] sm:$0xff]  ;;  %v1808_v36 = vmul.f32 %v8807_v39, %v12237_v33  ;;  %v1810_v33 = vmul.f32 %v8807_v39, %v8775_v24 }
 0x7bd   : > { %v1869_v58 = vadd.f32 %v1805_v14, %v12232_v57  ;;  %v1806_v40 = vmul.f32 %v8807_v39, %v12233_v12  ;;  %v12234_v32 = vld [vmem:[#allocation64_spill] sm:$0xff]  ;;  %v9076_v17 = vpack.c.bf16 %v1866_v21, %v1864_v13  ;;  %v1871_v53 = vadd.f32 %v1807_v20, %v12235_v34  ;;  %3086 = vmatpush1.bf16.msra.mxu1 %v9056_v49  ;;  %v12238_v14 = vld [vmem:[#allocation25_spill] sm:$0xff]  ;;  %v12240_v13 = vld [vmem:[#allocation27_spill] sm:$0xff] }
 0x7be   : > { %v1809_v9 = vmul.f32 %v8857_v48, %v12234_v32  ;;  %v1868_v25 = vadd.f32 %v1804_v37, %v12236_v51  ;;  %v9084_v12 = vld [vmem:[#allocation11 + $0x130] ss:$24 sps:$4 sm:$0xff]   ;;  %v1875_v54 = vadd.f32 %v1811_v26, %v8773_v22  ;;  %3087 = vmatprep.subr.bf16.mxu1 %v9062_v19  ;;  %v9091_v51 = vld [vmem:[#allocation11 + $0x164] ss:$24 sps:$4 sm:$0xff]  }
 0x7bf   : > { %3937 = vmatpush1.bf16.msra.mxu0 %v12238_v14  ;;  %v12239_v57 = vld [vmem:[#allocation65_spill] sm:$0xff]  ;;  %v9093_v37 = vpack.c.bf16 %v1871_v53, %v1869_v58  ;;  %v12241_v21 = vld [vmem:[#allocation70_spill] sm:$0xff]  ;;  %2752 = vmatmul.mubr.bf16.gmra.mrb[16].mxu1 %v9048_v7  ;;  %v1874_v58 = vadd.f32 %v1810_v33, %v8820_v42  ;;  %v12243_v24 = vld [vmem:[#allocation72_spill] sm:$0xff]  ;;  %v1817_v42 = vmul.f32 %v8857_v48, %v8854_v27 }
 0x7c0   : > { %v1870_v32 = vadd.f32 %v1806_v40, %v12239_v57  ;;  %v1873_v1 = vadd.f32 %v1809_v9, %v8771_v8  ;;  %3938 = vmatprep.subr.bf16.mxu0 %v12240_v13  ;;  %v1872_v20 = vadd.f32 %v1808_v36, %v12241_v21  ;;  %2945 = vmatmul.mubr.bf16.gmra.mrb[20].mxu0 %v9048_v7  ;;  %v12242_v40 = vld [vmem:[#allocation71_spill] sm:$0xff]  ;;  %v12244_v34 = vld [vmem:[#allocation74_spill] sm:$0xff] }
 0x7c1   : > { %v1813_v9 = vmul.f32 %v8857_v48, %v12242_v40  ;;  %2761 = vmatprep.mubr.bf16.mxu1 %v9052_v43  ;;  %2954 = vmatprep.mubr.bf16.mxu0 %v9052_v43  ;;  %v1815_v26 = vmul.f32 %v8857_v48, %v12243_v24  ;;  %v1812_v53 = vmul.f32 %v8807_v39, %v12244_v34  ;;  %v12246_v14 = vld [vmem:[#allocation79_spill] sm:$0xff]  ;;  %v12248_v24 = vld [vmem:[#allocation69_spill] sm:$0xff] }
 0x7c2   : > { %v9100_v8 = vpack.c.bf16 %v1870_v32, %v1868_v25  ;;  %v9102_v22 = vpack.c.bf16 %v1875_v54, %v1873_v1  ;;  %3088 = vmatpush1.bf16.msra.mxu1 %v9084_v12  ;;  %v12245_v25 = vld [vmem:[#allocation28_spill] sm:$0xff]  ;;  %v9115_v1 = vld [vmem:[#allocation11 + $0x160] ss:$24 sps:$4 sm:$0xff]   ;;  %v1814_v57 = vmul.f32 %v8807_v39, %v12246_v14  ;;  %v12247_v32 = vld [vmem:[#allocation29_spill] sm:$0xff]  ;;  %v9126_v13 = vpack.c.bf16 %v1874_v58, %v1872_v20 }
 0x7c3   : > { %3939 = vmatpush1.bf16.msra.mxu0 %v12245_v25  ;;  %v1877_v36 = vadd.f32 %v1813_v9, %v8836_v56  ;;  %3089 = vmatprep.subr.bf16.mxu1 %v9091_v51  ;;  %v9124_v54 = vld [vmem:[#allocation11 + $0x194] ss:$24 sps:$4 sm:$0xff]   ;;  %v1879_v33 = vadd.f32 %v1815_v26, %v8838_v6  ;;  %v1876_v21 = vadd.f32 %v1812_v53, %v8840_v38  ;;  %v12251_v58 = vld [vmem:[#allocation78_spill] sm:$0xff] }
 0x7c4   : > { %3940 = vmatprep.subr.bf16.mxu0 %v12247_v32  ;;  %v1878_v56 = vadd.f32 %v1814_v57, %v8850_v62  ;;  %v1818_v40 = vmul.f32 %v8807_v39, %v8866_v59  ;;  %v1819_v27 = vmul.f32 %v8857_v48, %v8868_v15  ;;  %v9136_v9 = vadd.f32 %v1817_v42, %v8883_v50  ;;  %v12249_v34 = vld [vmem:[#allocation73_spill] sm:$0xff]  ;;  %v12250_v59 = vld [vmem:[#allocation30_spill] sm:$0xff] }
 0x7c5   : > { %v9140_v25 = vpack.c.bf16 %v12249_v34, %v12248_v24  ;;  %v9142_v20 = vpack.c.bf16 %v1879_v33, %v1877_v36  ;;  %v1994_v6 = vcombine.high %v8804_v11, %v8804_v11  ;;  %v1816_v38 = vmul.f32 %v8807_v39, %v8885_v55  ;;  %v9150_v15 = vld [vmem:[#allocation11 + $0x190] ss:$24 sps:$4 sm:$0xff]   ;;  %v12253_v11 = vld [vmem:[#allocation31_spill] sm:$0xff]  ;;  %v7509_v39 = vld [vmem:[#allocation11 + $0x1b4] ss:$24 sps:$4 sm:$0xff]  }
 0x7c6   : > { %3090 = vmatpush1.bf16.msra.mxu1 %v9115_v1  ;;  %v9152_v50 = vpack.c.bf16 %v1878_v56, %v1876_v21  ;;  %v1882_v48 = vadd.f32 %v1818_v40, %v8894_v41  ;;  %v1883_v62 = vadd.f32 %v1819_v27, %v8896_v60  ;;  %v12252_v26 = vld [vmem:[#allocation81_spill] sm:$0xff]  ;;  %v9162_v55 = vld [vmem:[#allocation11 + $0x1c4] ss:$24 sps:$4 sm:$0xff]   ;;  %v12254_v41 = vld [vmem:[#allocation32_spill] sm:$0xff] }
 0x7c7   : > { %3941 = vmatpush1.bf16.msra.mxu0 %v12250_v59  ;;  %v9158_v53 = vpack.c.bf16 %v12252_v26, %v12251_v58  ;;  %3091 = vmatprep.subr.bf16.mxu1 %v9124_v54  ;;  %v2008_v36 = vrot.slane %v1994_v6, %v8368_v10  ;;  %v9166_v14 = vadd.f32 %v1816_v38, %v8910_v3  ;;  %v9176_v60 = vld [vmem:[#allocation11 + $0x1c0] ss:$24 sps:$4 sm:$0xff]   ;;  %v7507_v3 = vld [vmem:[#allocation11 + $0x1b0] ss:$24 sps:$4 sm:$0xff]   ;;  %v9179_v57 = vld [vmem:[#allocation11 + $0x1f4] ss:$24 sps:$4 sm:$0xff]  }
 0x7c8   : > { %3942 = vmatprep.subr.bf16.mxu0 %v12253_v11  ;;  %2762 = vmatmul.mubr.bf16.gmra.mrb[20].mxu1 %v9140_v25  ;;  %1946 = vst [vmem:[#allocation2 + $0x1f0] sm:$0xff] %v1882_v48  ;;  %1947 = vst [vmem:[#allocation2 + $0x1f8] sm:$0xff] %v1883_v62  ;;  %v7515_v42 = vld [vmem:[#allocation11 + $0x1e4] ss:$24 sps:$4 sm:$0xff]   ;;  %v12256_v33 = vld [vmem:[#allocation84_spill] sm:$0xff] }
 0x7c9   : > { %2955 = vmatmul.mubr.bf16.gmra.mrb[24].mxu0 %v9140_v25  ;;  %2771 = vmatprep.mubr.bf16.mxu1 %v9158_v53  ;;  %2015 = vst.msk [vmem:[#allocation2 + $0x1f7] ss:$8 sm:$0x3] %vm8601_vm6, %v2008_v36  ;;  %v12255_v32 = vld [vmem:[#allocation82_spill] sm:$0xff]  ;;  %v9186_v56 = vld [vmem:[#allocation11 + $0x1f0] ss:$24 sps:$4 sm:$0xff]  }
 0x7ca   : > { %2964 = vmatprep.mubr.bf16.mxu0 %v9158_v53  ;;  %3092 = vmatpush1.bf16.msra.mxu1 %v9150_v15  ;;  %v9183_v21 = vpack.c.bf16 %v12256_v33, %v12255_v32  ;;  %v7513_v40 = vld [vmem:[#allocation11 + $0x1e0] ss:$24 sps:$4 sm:$0xff]   ;;  %v12257_v27 = vld [vmem:[#allocation85_spill] sm:$0xff]  ;;  %v9193_v34 = vld [vmem:[#allocation11 + $0x224] ss:$24 sps:$4 sm:$0xff]  }
 0x7cb   : > { %3943 = vmatpush1.bf16.msra.mxu0 %v12254_v41  ;;  %3093 = vmatprep.subr.bf16.mxu1 %v9162_v55  ;;  %v9190_v24 = vpack.c.bf16 %v12257_v27, %v8875_v29  ;;  %v7521_v6 = vld [vmem:[#allocation11 + $0x214] ss:$24 sps:$4 sm:$0xff]   ;;  %v9200_v38 = vld [vmem:[#allocation11 + $0x220] ss:$24 sps:$4 sm:$0xff]   ;;  %v7519_v29 = vld [vmem:[#allocation11 + $0x210] ss:$24 sps:$4 sm:$0xff]  }
 0x7cc   : > { %3944 = vmatprep.subr.bf16.mxu0 %v7509_v39  ;;  %v9203_v59 = vld [vmem:[#allocation11 + $0x254] ss:$24 sps:$4 sm:$0xff]   ;;  %v7527_v48 = vld [vmem:[#allocation11 + $0x244] ss:$24 sps:$4 sm:$0xff]   ;;  %v9210_v39 = vld [vmem:[#allocation11 + $0x250] ss:$24 sps:$4 sm:$0xff]  }
 0x7cd   : > { %v2048_v62 = vld [vmem:[#allocation2 + $0xf8] sm:$0xff]  ;;  %v12259_v26 = vld [vmem:[#allocation87_spill] sm:$0xff]  ;;  %v2047_v33 = vld [vmem:[#allocation2 + $0xf0] sm:$0xff] }
 0x7ce   : > { %3094 = vmatpush1.bf16.msra.mxu1 %v9176_v60  ;;  %v12258_v58 = vld [vmem:[#allocation86_spill] sm:$0xff]  ;;  %v9213_v41 = vpack.c.bf16 %v2048_v62, %v8917_v30  ;;  %v7531_v30 = vld [vmem:[#allocation11 + $0x270] ss:$24 sps:$4 sm:$0xff]  }
 0x7cf   : > { %3945 = vmatpush1.bf16.msra.mxu0 %v7507_v3  ;;  %3095 = vmatprep.subr.bf16.mxu1 %v9179_v57  ;;  %v9207_v11 = vpack.c.bf16 %v12259_v26, %v12258_v58  ;;  %v7525_v36 = vld [vmem:[#allocation11 + $0x240] ss:$24 sps:$4 sm:$0xff]   ;;  %v9216_v3 = vld [vmem:[#allocation11 + $0x284] ss:$24 sps:$4 sm:$0xff]  }
 0x7d0   : > { %3946 = vmatprep.subr.bf16.mxu0 %v7515_v42  ;;  %2772 = vmatmul.mubr.bf16.gmra.mrb[24].mxu1 %v9183_v21  ;;  %v7533_v42 = vld [vmem:[#allocation11 + $0x274] ss:$24 sps:$4 sm:$0xff]   ;;  %v9223_v32 = vld [vmem:[#allocation11 + $0x280] ss:$24 sps:$4 sm:$0xff]   ;;  %v7539_v27 = vld [vmem:[#allocation11 + $0x2a4] ss:$24 sps:$4 sm:$0xff]  }
 0x7d1   : > { %2965 = vmatmul.mubr.bf16.gmra.mrb[28].mxu0 %v9183_v21  ;;  %2781 = vmatprep.mubr.bf16.mxu1 %v9190_v24  ;;  %v7537_v62 = vld [vmem:[#allocation11 + $0x2a0] ss:$24 sps:$4 sm:$0xff]   ;;  %v9238_v26 = vld [vmem:[#allocation11 + $0x2e4] ss:$24 sps:$4 sm:$0xff]  }
 0x7d2   : > { %2974 = vmatprep.mubr.bf16.mxu0 %v9190_v24  ;;  %3096 = vmatpush1.bf16.msra.mxu1 %v9186_v56 }
 0x7d3   : > { %3947 = vmatpush1.bf16.msra.mxu0 %v7513_v40  ;;  %3097 = vmatprep.subr.bf16.mxu1 %v9193_v34  ;;  %v9226_v40 = vld [vmem:[#allocation11 + $0x2b4] ss:$24 sps:$4 sm:$0xff]  }
 0x7d4   : > { %3948 = vmatprep.subr.bf16.mxu0 %v7521_v6  ;;  %v2050_v6 = vld [vmem:[#allocation2 + $0x108] sm:$0xff] }
 0x7d5   : > { %v9235_v58 = vpack.c.bf16 %v8955_v16, %v2050_v6  ;;  %v7543_v16 = vld [vmem:[#allocation11 + $0x2d0] ss:$24 sps:$4 sm:$0xff]   ;;  %v9267_v6 = vpack.c.bf16 %v9003_v46, %v8998_v47 }
 0x7d6   : > { %3098 = vmatpush1.bf16.msra.mxu1 %v9200_v38  ;;  %v2079_v47 = vld [vmem:[#allocation2 + $0x1f0] sm:$0xff] }
 0x7d7   : > { %3949 = vmatpush1.bf16.msra.mxu0 %v7519_v29  ;;  %3099 = vmatprep.subr.bf16.mxu1 %v9203_v59  ;;  %v9229_v29 = vpack.c.bf16 %v2047_v33, %v8935_v2  ;;  %v9245_v2 = vld [vmem:[#allocation11 + $0x2e0] ss:$24 sps:$4 sm:$0xff]   ;;  %v9254_v33 = vpack.c.bf16 %v8977_v45, %v8966_v63  ;;  %v9275_v63 = vpack.c.bf16 %v9021_v18, %v9006_v5 }
 0x7d8   : > { %3950 = vmatprep.subr.bf16.mxu0 %v7527_v48  ;;  %2782 = vmatmul.mubr.bf16.gmra.mrb[28].mxu1 %v9207_v11  ;;  %v9232_v48 = vld [vmem:[#allocation11 + $0x2b0] ss:$24 sps:$4 sm:$0xff]   ;;  %v9279_v45 = vpack.c.bf16 %v9037_v52, %v9034_v4  ;;  %v9305_v46 = vpack.c.bf16 %v2079_v47, %v9166_v14  ;;  %v12261_v5 = vld [vmem:[#allocation39_spill] sm:$0xff] }
 0x7d9   : > { %2975 = vmatmul.mubr.bf16.gmra.mrb[32].mxu0 %v9207_v11  ;;  %2791 = vmatprep.mubr.bf16.mxu1 %v9213_v41  ;;  %v3733_v18 = vpack.c.bf16 %v12261_v5, %v12261_v5  ;;  %v12262_v4 = vld [vmem:[#allocation75_spill] sm:$0xff]  ;;  %v12263_v52 = vld [vmem:[#allocation37_spill] sm:$0xff]  ;;  %v12270_v47 = vld [vmem:[#allocation88_spill] sm:$0xff] }
 0x7da   : > { %2984 = vmatprep.mubr.bf16.mxu0 %v9213_v41  ;;  %3100 = vmatpush1.bf16.msra.mxu1 %v9210_v39  ;;  %v12271_v5 = vld [vmem:[#allocation90_spill] sm:$0xff] }
 0x7db   : > { %3951 = vmatpush1.bf16.msra.mxu0 %v7525_v36  ;;  %3101 = vmatprep.subr.bf16.mxu1 %v9216_v3  ;;  %v7545_v36 = vld [vmem:[#allocation11 + $0x2d4] ss:$24 sps:$4 sm:$0xff]  }
 0x7dc   : > { %3952 = vmatprep.subr.bf16.mxu0 %v7533_v42  ;;  %v2049_v42 = vld [vmem:[#allocation2 + $0x100] sm:$0xff] }
 0x7de   : > { %3102 = vmatpush1.bf16.msra.mxu1 %v9223_v32 }
 0x7df   : > { %3953 = vmatpush1.bf16.msra.mxu0 %v7531_v30  ;;  %3103 = vmatprep.subr.bf16.mxu1 %v9226_v40  ;;  %v9249_v30 = vpack.c.bf16 %v8963_v61, %v2049_v42  ;;  %v9263_v61 = vpack.c.bf16 %v8995_v31, %v8988_v44  ;;  %v2080_v44 = vld [vmem:[#allocation2 + $0x1f8] sm:$0xff]  ;;  %v12267_v42 = vld [vmem:[#allocation80_spill] sm:$0xff] }
 0x7e0   : > { %3954 = vmatprep.subr.bf16.mxu0 %v7539_v27  ;;  %2792 = vmatmul.mubr.bf16.gmra.mrb[32].mxu1 %v9229_v29  ;;  %v12260_v27 = vld [vmem:[#allocation33_spill] sm:$0xff]  ;;  %v9298_v31 = vpack.c.bf16 %v2080_v44, %v9136_v9  ;;  %v3732_v9 = vpack.c.bf16 %v12263_v52, %v12263_v52  ;;  %v12274_v52 = vld [vmem:[#allocation38_spill] sm:$0xff] }
 0x7e1   : > { %2985 = vmatmul.mubr.bf16.gmra.mrb[36].mxu0 %v9229_v29  ;;  %2801 = vmatprep.mubr.bf16.mxu1 %v9235_v58  ;;  %v12269_v44 = vld [vmem:[#allocation89_spill] sm:$0xff] }
 0x7e2   : > { %2994 = vmatprep.mubr.bf16.mxu0 %v9235_v58  ;;  %3104 = vmatpush1.bf16.msra.mxu1 %v9232_v48 }
 0x7e3   : > { %3955 = vmatpush1.bf16.msra.mxu0 %v7537_v62  ;;  %3105 = vmatprep.subr.bf16.mxu1 %v9238_v26  ;;  %v12264_v62 = vld [vmem:[#allocation77_spill] sm:$0xff] }
 0x7e4   : > { %3956 = vmatprep.subr.bf16.mxu0 %v7545_v36  ;;  %v12265_v36 = vld [vmem:[#allocation35_spill] sm:$0xff] }
 0x7e5   : > { %v3968_v14 = vpack.c.bf16 %v12265_v36, %v12265_v36 }
 0x7e6   : > { %3106 = vmatpush1.bf16.msra.mxu1 %v9245_v2 }
 0x7e7   : > { %3957 = vmatpush1.bf16.msra.mxu0 %v7543_v16  ;;  %v12266_v16 = vld [vmem:[#allocation76_spill] sm:$0xff] }
 0x7e8   : > { %3969 = vmatprep.subr.bf16.mxu0 %v12260_v27  ;;  %2802 = vmatmul.mubr.bf16.gmra.mrb[36].mxu1 %v9249_v30  ;;  %v12268_v27 = vld [vmem:[#allocation83_spill] sm:$0xff] }
 0x7e9   : > { %2995 = vmatmul.mubr.bf16.gmra.mrb[40].mxu0 %v9249_v30  ;;  %2811 = vmatprep.mubr.bf16.mxu1 %v9254_v33 }
 0x7ea   : > { %3004 = vmatprep.mubr.bf16.mxu0 %v9254_v33 }
 0x7f0   : > { %2812 = vmatmul.mubr.bf16.gmra.mrb[40].mxu1 %v9263_v61 }
 0x7f1   : > { %3005 = vmatmul.mubr.bf16.gmra.mrb[44].mxu0 %v9263_v61  ;;  %2821 = vmatprep.mubr.bf16.mxu1 %v9267_v6 }
 0x7f2   : > { %3014 = vmatprep.mubr.bf16.mxu0 %v9267_v6 }
 0x7f8   : > { %2822 = vmatmul.mubr.bf16.gmra.mrb[44].mxu1 %v9275_v63 }
 0x7f9   : > { %3015 = vmatmul.mubr.bf16.gmra.mrb[48].mxu0 %v9275_v63  ;;  %2831 = vmatprep.mubr.bf16.mxu1 %v9279_v45 }
 0x7fa   : > { %3024 = vmatprep.mubr.bf16.mxu0 %v9279_v45 }
 0x800   : > { %2832 = vmatmul.mubr.bf16.gmra.mrb[48].mxu1 %v9076_v17 }
 0x801   : > { %3025 = vmatmul.mubr.bf16.gmra.mrb[52].mxu0 %v9076_v17  ;;  %2841 = vmatprep.mubr.bf16.mxu1 %v9093_v37 }
 0x802   : > { %3034 = vmatprep.mubr.bf16.mxu0 %v9093_v37 }
 0x808   : > { %2842 = vmatmul.mubr.bf16.gmra.mrb[52].mxu1 %v9100_v8 }
 0x809   : > { %3035 = vmatmul.mubr.bf16.gmra.mrb[56].mxu0 %v9100_v8  ;;  %2851 = vmatprep.mubr.bf16.mxu1 %v9102_v22 }
 0x80a   : > { %3044 = vmatprep.mubr.bf16.mxu0 %v9102_v22 }
 0x810   : > { %2852 = vmatmul.mubr.bf16.gmra.mrb[56].mxu1 %v9126_v13 }
 0x811   : > { %3045 = vmatmul.mubr.bf16.gmra.mrb[60].mxu0 %v9126_v13  ;;  %2861 = vmatprep.mubr.bf16.mxu1 %v9142_v20 }
 0x812   : > { %3054 = vmatprep.mubr.bf16.mxu0 %v9142_v20 }
 0x818   : > { %2862 = vmatmul.mubr.bf16.gmra.mrb[60].mxu1 %v9152_v50 }
 0x819   : > { %3055 = vmatmul.mubr.bf16.gmra.mrb[64].mxu0 %v9152_v50  ;;  %2871 = vmatprep.mubr.bf16.mxu1 %v9298_v31 }
 0x81a   : > { %3064 = vmatprep.mubr.bf16.mxu0 %v9298_v31 }
 0x820   : > { %2872 = vmatmul.mubr.bf16.gmra.mrb[64].mxu1 %v9305_v46 }
 0x821   : > { %3065 = vmatmul.mubr.bf16.gmra.mrb[68].mxu0 %v9305_v46  ;;  %3107 = vmatprep.mubr.bf16.mxu1 %v12262_v4  ;;  %v12273_v4 = vld [vmem:[#allocation92_spill] sm:$0xff] }
 0x822   : > { %3958 = vmatprep.mubr.bf16.mxu0 %v3733_v18  ;;  %v12272_v18 = vld [vmem:[#allocation91_spill] sm:$0xff] }
 0x828   : > { %3108 = vmatmul.mubr.bf16.vlgmr.msra.gmra.mrb[68].mxu1 %v12264_v62  ;;  %v12276_v62 = vld [vmem:[#allocation41_spill] sm:$0xff] }
 0x829   : > { %3959 = vmatmul.mubr.bf16.vlgmr.msra.gmra.mrb[72].mxu0 %v3732_v9  ;;  %3117 = vmatprep.mubr.bf16.mxu1 %v12267_v42  ;;  %v12275_v9 = vld [vmem:[#allocation40_spill] sm:$0xff] }
 0x82a   : > { %3970 = vmatpush1.bf16.msra.mxu0 %v12266_v16  ;;  %4001 = vmatprep.mubr.bf16.mxu0 %v3968_v14 }
 0x82b   : > { %3971 = vmatprep.subr.bf16.mxu0 %v12268_v27 }
 0x82e   : > { %3972 = vmatpush1.bf16.msra.mxu0 %v8872_v0  ;;  %v12277_v0 = vld [vmem:[#allocation43_spill] sm:$0xff] }
 0x82f   : > { %3973 = vmatprep.subr.bf16.mxu0 %v8889_v35  ;;  %v12278_v35 = vld [vmem:[#allocation34_spill] sm:$0xff] }
 0x830   : > { %3118 = vmatmul.mubr.bf16.gmra.mrb[72].mxu1 %v8903_v28  ;;  %v3967_v28 = vpack.c.bf16 %v12278_v35, %v12278_v35 }
 0x831   : > { %3127 = vmatprep.mubr.bf16.mxu1 %v12270_v47 }
 0x832   : > { %3974 = vmatpush1.bf16.msra.mxu0 %v12269_v44 }
 0x833   : > { %3975 = vmatprep.subr.bf16.mxu0 %v12271_v5 }
 0x836   : > { %3976 = vmatpush1.bf16.msra.mxu0 %v12272_v18 }
 0x837   : > { %3977 = vmatprep.subr.bf16.mxu0 %v12273_v4 }
 0x838   : > { %3128 = vmatmul.mubr.bf16.gmra.mrb[76].mxu1 %v12274_v52 }
 0x839   : > { %3137 = vmatprep.mubr.bf16.mxu1 %v12276_v62 }
 0x83a   : > { %3978 = vmatpush1.bf16.msra.mxu0 %v12275_v9 }
 0x83b   : > { %3979 = vmatprep.subr.bf16.mxu0 %v12277_v0 }
 0x83e   : > { %3980 = vmatpush1.bf16.msra.mxu0 %v9056_v49 }
 0x83f   : > { %3981 = vmatprep.subr.bf16.mxu0 %v9062_v19 }
 0x840   : > { %3138 = vmatmul.mubr.bf16.gmra.mrb[80].mxu1 %v9048_v7 }
 0x841   : > { %3147 = vmatprep.mubr.bf16.mxu1 %v9052_v43 }
 0x842   : > { %3982 = vmatpush1.bf16.msra.mxu0 %v9084_v12  ;;  %v12279_v12 = vld [vmem:[#allocation19_spill] sm:$0xff] }
 0x843   : > { %3983 = vmatprep.subr.bf16.mxu0 %v9091_v51  ;;  %vm3334_vm7 = vcmp.lt.s32.totalorder %v12279_v12, 1  ;;  %vm3527_vm8 = vcmp.lt.s32.totalorder %v12279_v12, 7 }
 0x846   : > { %3984 = vmatpush1.bf16.msra.mxu0 %v9115_v1 }
 0x847   : > { %3985 = vmatprep.subr.bf16.mxu0 %v9124_v54 }
 0x848   : > { %3148 = vmatmul.mubr.bf16.gmra.mrb[84].mxu1 %v9140_v25 }
 0x849   : > { %3157 = vmatprep.mubr.bf16.mxu1 %v9158_v53 }
 0x84a   : > { %3986 = vmatpush1.bf16.msra.mxu0 %v9150_v15 }
 0x84b   : > { %3987 = vmatprep.subr.bf16.mxu0 %v9162_v55 }
 0x84e   : > { %3988 = vmatpush1.bf16.msra.mxu0 %v9176_v60 }
 0x84f   : > { %3989 = vmatprep.subr.bf16.mxu0 %v9179_v57 }
 0x850   : > { %3158 = vmatmul.mubr.bf16.gmra.mrb[88].mxu1 %v9183_v21 }
 0x851   : > { %3167 = vmatprep.mubr.bf16.mxu1 %v9190_v24 }
 0x852   : > { %3990 = vmatpush1.bf16.msra.mxu0 %v9186_v56 }
 0x853   : > { %3991 = vmatprep.subr.bf16.mxu0 %v9193_v34 }
 0x856   : > { %3992 = vmatpush1.bf16.msra.mxu0 %v9200_v38 }
 0x857   : > { %3993 = vmatprep.subr.bf16.mxu0 %v9203_v59 }
 0x858   : > { %3168 = vmatmul.mubr.bf16.gmra.mrb[92].mxu1 %v9207_v11 }
 0x859   : > { %3177 = vmatprep.mubr.bf16.mxu1 %v9213_v41 }
 0x85a   : > { %3994 = vmatpush1.bf16.msra.mxu0 %v9210_v39 }
 0x85b   : > { %3995 = vmatprep.subr.bf16.mxu0 %v9216_v3 }
 0x85e   : > { %3996 = vmatpush1.bf16.msra.mxu0 %v9223_v32 }
 0x85f   : > { %3997 = vmatprep.subr.bf16.mxu0 %v9226_v40 }
 0x860   : > { %3178 = vmatmul.mubr.bf16.gmra.mrb[96].mxu1 %v9229_v29 }
 0x861   : > { %3187 = vmatprep.mubr.bf16.mxu1 %v9235_v58 }
 0x862   : > { %3998 = vmatpush1.bf16.msra.mxu0 %v9232_v48 }
 0x863   : > { %3999 = vmatprep.subr.bf16.mxu0 %v9238_v26 }
 0x866   : > { %4000 = vmatpush1.bf16.msra.mxu0 %v9245_v2 }
 0x868   : > { %3188 = vmatmul.mubr.bf16.gmra.mrb[100].mxu1 %v9249_v30 }
 0x869   : > { %4002 = vmatmul.mubr.bf16.vlgmr.msra.gmra.mrb[76].mxu0 %v3967_v28  ;;  %3197 = vmatprep.mubr.bf16.mxu1 %v9254_v33 }
 0x870   : > { %3198 = vmatmul.mubr.bf16.gmra.mrb[104].mxu1 %v9263_v61 }
 0x871   : > { %3207 = vmatprep.mubr.bf16.mxu1 %v9267_v6 }
 0x878   : > { %3208 = vmatmul.mubr.bf16.gmra.mrb[108].mxu1 %v9275_v63  ;;  %v9371_v7 = vpop.f32.mrb[4].mxu1  ;;  %v9373_v43 = vpop.f32.mrb[8].mxu0 }
 0x879   : > { %3217 = vmatprep.mubr.bf16.mxu1 %v9279_v45  ;;  %v9375_v49 = vpop.f32.mrb[5].mxu1  ;;  %v9377_v19 = vpop.f32.mrb[9].mxu0  ;;  %v11988_v54 = vrot.slane %v9371_v7, 7 }
 0x87a   : > { %v2727_v51 = vpop.f32.mrb[6].mxu1  ;;  %v2920_v1 = vpop.f32.mrb[10].mxu0  ;;  %v11987_v55 = vrot.slane %v9375_v49, 7 }
 0x87b   : > { %v3270_v25 = vrot.slane %v2727_v51, 7  ;;  %v2729_v15 = vpop.f32.mrb[7].mxu1  ;;  %v2922_v53 = vpop.f32.mrb[11].mxu0 }
 0x87c   : > { %v3271_v60 = vrot.slane %v2729_v15, 7 }
 0x87d   : > { %v3395_v57 = vsel %vm3334_vm7, %v11988_v54, %v3270_v25 }
 0x87e   : > { %v9387_v21 = vadd.f32 %v3395_v57, %v2920_v1  ;;  %v3396_v56 = vsel %vm3334_vm7, %v11987_v55, %v3271_v60 }
 0x87f   : > { %v9394_v24 = vadd.f32 %v3396_v56, %v2922_v53 }
 0x880   : > { %3218 = vmatmul.mubr.bf16.gmra.mrb[112].mxu1 %v9076_v17 }
 0x881   : > { %3227 = vmatprep.mubr.bf16.mxu1 %v9093_v37 }
 0x882   : > { %v2733_v34 = vpop.f32.mrb[8].mxu1  ;;  %v2926_v38 = vpop.f32.mrb[12].mxu0 }
 0x883   : > { %v3272_v59 = vrot.slane %v2733_v34, 7  ;;  %v2735_v11 = vpop.f32.mrb[9].mxu1  ;;  %v2928_v39 = vpop.f32.mrb[13].mxu0 }
 0x884   : > { %v3273_v41 = vrot.slane %v2735_v11, 7  ;;  %v2737_v3 = vpop.f32.mrb[10].mxu1  ;;  %v2930_v32 = vpop.f32.mrb[14].mxu0 }
 0x885   : > { %v3393_v17 = vsel %vm3334_vm7, %v3270_v25, %v3272_v59  ;;  %v3274_v40 = vrot.slane %v2737_v3, 7  ;;  %v2739_v29 = vpop.f32.mrb[11].mxu1  ;;  %v2932_v48 = vpop.f32.mrb[15].mxu0 }
 0x886   : > { %v9398_v58 = vadd.f32 %v3393_v17, %v2926_v38  ;;  %v3394_v37 = vsel %vm3334_vm7, %v3271_v60, %v3273_v41  ;;  %v3275_v26 = vrot.slane %v2739_v29, 7 }
 0x887   : > { %v9402_v2 = vadd.f32 %v3394_v37, %v2928_v39  ;;  %v3391_v30 = vsel %vm3334_vm7, %v3272_v59, %v3274_v40 }
 0x888   : > { %3228 = vmatmul.mubr.bf16.gmra.mrb[116].mxu1 %v9100_v8  ;;  %v9407_v33 = vadd.f32 %v3391_v30, %v2930_v32  ;;  %v3392_v61 = vsel %vm3334_vm7, %v3273_v41, %v3275_v26 }
 0x889   : > { %3237 = vmatprep.mubr.bf16.mxu1 %v9102_v22  ;;  %v9412_v6 = vadd.f32 %v3392_v61, %v2932_v48 }
 0x88a   : > { %v2743_v63 = vpop.f32.mrb[12].mxu1  ;;  %v2936_v45 = vpop.f32.mrb[16].mxu0 }
 0x88b   : > { %v3276_v36 = vrot.slane %v2743_v63, 7  ;;  %v2745_v14 = vpop.f32.mrb[13].mxu1  ;;  %v2938_v16 = vpop.f32.mrb[17].mxu0 }
 0x88c   : > { %v3277_v42 = vrot.slane %v2745_v14, 7  ;;  %v2747_v27 = vpop.f32.mrb[14].mxu1  ;;  %v2940_v44 = vpop.f32.mrb[18].mxu0 }
 0x88d   : > { %v3389_v8 = vsel %vm3334_vm7, %v3274_v40, %v3276_v36  ;;  %v3278_v47 = vrot.slane %v2747_v27, 7  ;;  %v2749_v5 = vpop.f32.mrb[15].mxu1  ;;  %v2942_v18 = vpop.f32.mrb[19].mxu0 }
 0x88e   : > { %v9416_v4 = vadd.f32 %v3389_v8, %v2936_v45  ;;  %v3390_v22 = vsel %vm3334_vm7, %v3275_v26, %v3277_v42  ;;  %v3279_v52 = vrot.slane %v2749_v5, 7 }
 0x88f   : > { %v9420_v9 = vadd.f32 %v3390_v22, %v2938_v16  ;;  %v3387_v62 = vsel %vm3334_vm7, %v3276_v36, %v3278_v47 }
 0x890   : > { %3238 = vmatmul.mubr.bf16.gmra.mrb[120].mxu1 %v9126_v13  ;;  %v9425_v0 = vadd.f32 %v3387_v62, %v2940_v44  ;;  %v3388_v35 = vsel %vm3334_vm7, %v3277_v42, %v3279_v52 }
 0x891   : > { %3247 = vmatprep.mubr.bf16.mxu1 %v9142_v20  ;;  %v9430_v28 = vadd.f32 %v3388_v35, %v2942_v18 }
 0x892   : > { %v2753_v51 = vpop.f32.mrb[16].mxu1 }
 0x893   : > { %v2946_v1 = vpop.f32.mrb[20].mxu0  ;;  %v3280_v25 = vrot.slane %v2753_v51, 7  ;;  %v2755_v15 = vpop.f32.mrb[17].mxu1 }
 0x894   : > { %v2948_v53 = vpop.f32.mrb[21].mxu0  ;;  %v3281_v60 = vrot.slane %v2755_v15, 7  ;;  %v2757_v57 = vpop.f32.mrb[18].mxu1 }
 0x895   : > { %v2950_v56 = vpop.f32.mrb[22].mxu0  ;;  %v3385_v13 = vsel %vm3334_vm7, %v3278_v47, %v3280_v25  ;;  %v3282_v34 = vrot.slane %v2757_v57, 7  ;;  %v2759_v38 = vpop.f32.mrb[19].mxu1 }
 0x896   : > { %v2952_v59 = vpop.f32.mrb[23].mxu0  ;;  %v9434_v11 = vadd.f32 %v3385_v13, %v2946_v1  ;;  %v3386_v20 = vsel %vm3334_vm7, %v3279_v52, %v3281_v60  ;;  %v3283_v39 = vrot.slane %v2759_v38, 7 }
 0x897   : > { %v9438_v41 = vadd.f32 %v3386_v20, %v2948_v53  ;;  %v3383_v3 = vsel %vm3334_vm7, %v3280_v25, %v3282_v34 }
 0x898   : > { %3248 = vmatmul.mubr.bf16.gmra.mrb[124].mxu1 %v9152_v50  ;;  %v9443_v32 = vadd.f32 %v3383_v3, %v2950_v56  ;;  %v3384_v17 = vsel %vm3334_vm7, %v3281_v60, %v3283_v39 }
 0x899   : > { %3257 = vmatprep.mubr.bf16.mxu1 %v9298_v31  ;;  %v9448_v40 = vadd.f32 %v3384_v17, %v2952_v59 }
 0x89b   : > { %v2763_v29 = vpop.f32.mrb[20].mxu1 }
 0x89c   : > { %v2956_v48 = vpop.f32.mrb[24].mxu0  ;;  %v3284_v37 = vrot.slane %v2763_v29, 7  ;;  %v2765_v26 = vpop.f32.mrb[21].mxu1 }
 0x89d   : > { %v2958_v30 = vpop.f32.mrb[25].mxu0  ;;  %v3285_v61 = vrot.slane %v2765_v26, 7  ;;  %v2767_v63 = vpop.f32.mrb[22].mxu1 }
 0x89e   : > { %v2960_v45 = vpop.f32.mrb[26].mxu0  ;;  %v3381_v50 = vsel %vm3334_vm7, %v3282_v34, %v3284_v37  ;;  %v3286_v36 = vrot.slane %v2767_v63, 7  ;;  %v2769_v14 = vpop.f32.mrb[23].mxu1 }
 0x89f   : > { %v2962_v16 = vpop.f32.mrb[27].mxu0  ;;  %v9452_v42 = vadd.f32 %v3381_v50, %v2956_v48  ;;  %v3382_v31 = vsel %vm3334_vm7, %v3283_v39, %v3285_v61  ;;  %v3287_v27 = vrot.slane %v2769_v14, 7 }
 0x8a0   : > { %v9456_v44 = vadd.f32 %v3382_v31, %v2958_v30  ;;  %v3379_v8 = vsel %vm3334_vm7, %v3284_v37, %v3286_v36  ;;  %3258 = vmatmul.mubr.bf16.gmra.mrb[128].mxu1 %v9305_v46 }
 0x8a1   : > { %v9461_v47 = vadd.f32 %v3379_v8, %v2960_v45  ;;  %v3380_v5 = vsel %vm3334_vm7, %v3285_v61, %v3287_v27 }
 0x8a2   : > { %v9465_v18 = vadd.f32 %v3380_v5, %v2962_v16 }
 0x8a3   : > { %v2773_v22 = vpop.f32.mrb[24].mxu1 }
 0x8a4   : > { %v2966_v52 = vpop.f32.mrb[28].mxu0  ;;  %v3288_v62 = vrot.slane %v2773_v22, 7  ;;  %v2775_v35 = vpop.f32.mrb[25].mxu1 }
 0x8a5   : > { %v2968_v51 = vpop.f32.mrb[29].mxu0  ;;  %v3289_v1 = vrot.slane %v2775_v35, 7  ;;  %v2777_v25 = vpop.f32.mrb[26].mxu1 }
 0x8a6   : > { %v2970_v15 = vpop.f32.mrb[30].mxu0  ;;  %v3377_v53 = vsel %vm3334_vm7, %v3286_v36, %v3288_v62  ;;  %v3290_v60 = vrot.slane %v2777_v25, 7  ;;  %v2779_v46 = vpop.f32.mrb[27].mxu1 }
 0x8a7   : > { %v2972_v57 = vpop.f32.mrb[31].mxu0  ;;  %v9469_v56 = vadd.f32 %v3377_v53, %v2966_v52  ;;  %v3378_v13 = vsel %vm3334_vm7, %v3287_v27, %v3289_v1  ;;  %v3291_v34 = vrot.slane %v2779_v46, 7 }
 0x8a8   : > { %v9473_v38 = vadd.f32 %v3378_v13, %v2968_v51  ;;  %v3375_v59 = vsel %vm3334_vm7, %v3288_v62, %v3290_v60 }
 0x8a9   : > { %v9477_v20 = vadd.f32 %v3375_v59, %v2970_v15  ;;  %v3376_v39 = vsel %vm3334_vm7, %v3289_v1, %v3291_v34 }
 0x8aa   : > { %v9481_v3 = vadd.f32 %v3376_v39, %v2972_v57 }
 0x8ab   : > { %v2783_v17 = vpop.f32.mrb[28].mxu1 }
 0x8ac   : > { %v2976_v29 = vpop.f32.mrb[32].mxu0  ;;  %v3292_v48 = vrot.slane %v2783_v17, 7  ;;  %v2785_v37 = vpop.f32.mrb[29].mxu1 }
 0x8ad   : > { %v2978_v26 = vpop.f32.mrb[33].mxu0  ;;  %v3293_v30 = vrot.slane %v2785_v37, 7  ;;  %v2787_v61 = vpop.f32.mrb[30].mxu1 }
 0x8ae   : > { %v2980_v63 = vpop.f32.mrb[34].mxu0  ;;  %v3373_v45 = vsel %vm3334_vm7, %v3290_v60, %v3292_v48  ;;  %v3294_v50 = vrot.slane %v2787_v61, 7  ;;  %v2789_v36 = vpop.f32.mrb[31].mxu1 }
 0x8af   : > { %v2982_v14 = vpop.f32.mrb[35].mxu0  ;;  %v9485_v16 = vadd.f32 %v3373_v45, %v2976_v29  ;;  %v3374_v31 = vsel %vm3334_vm7, %v3291_v34, %v3293_v30  ;;  %v3295_v27 = vrot.slane %v2789_v36, 7 }
 0x8b0   : > { %v9489_v8 = vadd.f32 %v3374_v31, %v2978_v26  ;;  %v3371_v5 = vsel %vm3334_vm7, %v3292_v48, %v3294_v50 }
 0x8b1   : > { %v9493_v22 = vadd.f32 %v3371_v5, %v2980_v63  ;;  %v3372_v52 = vsel %vm3334_vm7, %v3293_v30, %v3295_v27 }
 0x8b2   : > { %v9497_v62 = vadd.f32 %v3372_v52, %v2982_v14 }
 0x8b3   : > { %v2793_v35 = vpop.f32.mrb[32].mxu1 }
 0x8b4   : > { %v2986_v51 = vpop.f32.mrb[36].mxu0  ;;  %v3296_v1 = vrot.slane %v2793_v35, 7  ;;  %v2795_v25 = vpop.f32.mrb[33].mxu1 }
 0x8b5   : > { %v2988_v15 = vpop.f32.mrb[37].mxu0  ;;  %v3297_v53 = vrot.slane %v2795_v25, 7  ;;  %v2797_v60 = vpop.f32.mrb[34].mxu1 }
 0x8b6   : > { %v2990_v46 = vpop.f32.mrb[38].mxu0  ;;  %v3369_v57 = vsel %vm3334_vm7, %v3294_v50, %v3296_v1  ;;  %v3298_v13 = vrot.slane %v2797_v60, 7  ;;  %v2799_v34 = vpop.f32.mrb[35].mxu1 }
 0x8b7   : > { %v2992_v59 = vpop.f32.mrb[39].mxu0  ;;  %v9501_v39 = vadd.f32 %v3369_v57, %v2986_v51  ;;  %v3370_v17 = vsel %vm3334_vm7, %v3295_v27, %v3297_v53  ;;  %v3299_v29 = vrot.slane %v2799_v34, 7 }
 0x8b8   : > { %v9505_v48 = vadd.f32 %v3370_v17, %v2988_v15  ;;  %v3367_v37 = vsel %vm3334_vm7, %v3296_v1, %v3298_v13 }
 0x8b9   : > { %v9509_v26 = vadd.f32 %v3367_v37, %v2990_v46  ;;  %v3368_v30 = vsel %vm3334_vm7, %v3297_v53, %v3299_v29 }
 0x8ba   : > { %v9513_v61 = vadd.f32 %v3368_v30, %v2992_v59 }
 0x8bb   : > { %v2803_v63 = vpop.f32.mrb[36].mxu1 }
 0x8bc   : > { %v2996_v45 = vpop.f32.mrb[40].mxu0  ;;  %v3300_v50 = vrot.slane %v2803_v63, 7  ;;  %v2805_v36 = vpop.f32.mrb[37].mxu1 }
 0x8bd   : > { %v2998_v14 = vpop.f32.mrb[41].mxu0  ;;  %v3301_v31 = vrot.slane %v2805_v36, 7  ;;  %v2807_v27 = vpop.f32.mrb[38].mxu1 }
 0x8be   : > { %v3000_v5 = vpop.f32.mrb[42].mxu0  ;;  %v3365_v52 = vsel %vm3334_vm7, %v3298_v13, %v3300_v50  ;;  %v3302_v35 = vrot.slane %v2807_v27, 7  ;;  %v2809_v51 = vpop.f32.mrb[39].mxu1 }
 0x8bf   : > { %v3002_v1 = vpop.f32.mrb[43].mxu0  ;;  %v9517_v25 = vadd.f32 %v3365_v52, %v2996_v45  ;;  %v3366_v15 = vsel %vm3334_vm7, %v3299_v29, %v3301_v31  ;;  %v3303_v53 = vrot.slane %v2809_v51, 7 }
 0x8c0   : > { %v9521_v60 = vadd.f32 %v3366_v15, %v2998_v14  ;;  %v3363_v46 = vsel %vm3334_vm7, %v3300_v50, %v3302_v35 }
 0x8c1   : > { %v9525_v57 = vadd.f32 %v3363_v46, %v3000_v5  ;;  %v3364_v34 = vsel %vm3334_vm7, %v3301_v31, %v3303_v53 }
 0x8c2   : > { %v9529_v13 = vadd.f32 %v3364_v34, %v3002_v1 }
 0x8c3   : > { %v2813_v59 = vpop.f32.mrb[40].mxu1 }
 0x8c4   : > { %v3006_v17 = vpop.f32.mrb[44].mxu0  ;;  %v3304_v37 = vrot.slane %v2813_v59, 7  ;;  %v2815_v30 = vpop.f32.mrb[41].mxu1 }
 0x8c5   : > { %v3008_v63 = vpop.f32.mrb[45].mxu0  ;;  %v3305_v45 = vrot.slane %v2815_v30, 7  ;;  %v2817_v29 = vpop.f32.mrb[42].mxu1 }
 0x8c6   : > { %v3010_v36 = vpop.f32.mrb[46].mxu0  ;;  %v3361_v14 = vsel %vm3334_vm7, %v3302_v35, %v3304_v37  ;;  %v3306_v27 = vrot.slane %v2817_v29, 7  ;;  %v2819_v50 = vpop.f32.mrb[43].mxu1 }
 0x8c7   : > { %v3012_v5 = vpop.f32.mrb[47].mxu0  ;;  %v9533_v52 = vadd.f32 %v3361_v14, %v3006_v17  ;;  %v3362_v31 = vsel %vm3334_vm7, %v3303_v53, %v3305_v45  ;;  %v3307_v51 = vrot.slane %v2819_v50, 7 }
 0x8c8   : > { %v9537_v1 = vadd.f32 %v3362_v31, %v3008_v63  ;;  %v3359_v15 = vsel %vm3334_vm7, %v3304_v37, %v3306_v27 }
 0x8c9   : > { %v9541_v46 = vadd.f32 %v3359_v15, %v3010_v36  ;;  %v3360_v34 = vsel %vm3334_vm7, %v3305_v45, %v3307_v51 }
 0x8ca   : > { %12280 = vst [vmem:[#allocation44_spill] sm:$0xff] %v9537_v1  ;;  %v9545_v35 = vadd.f32 %v3360_v34, %v3012_v5 }
 0x8cb   : > { %12281 = vst [vmem:[#allocation42_spill] sm:$0xff] %v9541_v46  ;;  %v2823_v59 = vpop.f32.mrb[44].mxu1 }
 0x8cc   : > { %12282 = vst [vmem:[#allocation45_spill] sm:$0xff] %v9545_v35  ;;  %v3016_v30 = vpop.f32.mrb[48].mxu0  ;;  %v3308_v17 = vrot.slane %v2823_v59, 7  ;;  %v2825_v29 = vpop.f32.mrb[45].mxu1 }
 0x8cd   : > { %v3018_v14 = vpop.f32.mrb[49].mxu0  ;;  %v3309_v55 = vrot.slane %v2825_v29, 7  ;;  %v2827_v53 = vpop.f32.mrb[46].mxu1 }
 0x8ce   : > { %v3020_v50 = vpop.f32.mrb[50].mxu0  ;;  %v3357_v63 = vsel %vm3334_vm7, %v3306_v27, %v3308_v17  ;;  %v3310_v31 = vrot.slane %v2827_v53, 7  ;;  %v2829_v37 = vpop.f32.mrb[47].mxu1 }
 0x8cf   : > { %v3022_v36 = vpop.f32.mrb[51].mxu0  ;;  %v9549_v15 = vadd.f32 %v3357_v63, %v3016_v30  ;;  %v3358_v45 = vsel %vm3334_vm7, %v3307_v51, %v3309_v55  ;;  %v3311_v5 = vrot.slane %v2829_v37, 7 }
 0x8d0   : > { %v9553_v34 = vadd.f32 %v3358_v45, %v3018_v14  ;;  %v3355_v59 = vsel %vm3334_vm7, %v3308_v17, %v3310_v31 }
 0x8d1   : > { %12283 = vst [vmem:[#allocation55_spill] sm:$0xff] %v9549_v15  ;;  %v9557_v29 = vadd.f32 %v3355_v59, %v3020_v50  ;;  %v3356_v54 = vsel %vm3334_vm7, %v3309_v55, %v3311_v5 }
 0x8d2   : > { %12284 = vst [vmem:[#allocation56_spill] sm:$0xff] %v9553_v34  ;;  %v9561_v27 = vadd.f32 %v3356_v54, %v3022_v36 }
 0x8d3   : > { %12285 = vst [vmem:[#allocation22_spill] sm:$0xff] %v9557_v29  ;;  %v2833_v53 = vpop.f32.mrb[48].mxu1 }
 0x8d4   : > { %12286 = vst [vmem:[#allocation46_spill] sm:$0xff] %v9561_v27  ;;  %v3026_v35 = vpop.f32.mrb[52].mxu0  ;;  %v3312_v30 = vrot.slane %v2833_v53, 7  ;;  %v2835_v63 = vpop.f32.mrb[49].mxu1 }
 0x8d5   : > { %v3028_v15 = vpop.f32.mrb[53].mxu0  ;;  %v3313_v46 = vrot.slane %v2835_v63, 7  ;;  %v2837_v51 = vpop.f32.mrb[50].mxu1 }
 0x8d6   : > { %v3030_v37 = vpop.f32.mrb[54].mxu0  ;;  %v3353_v14 = vsel %vm3334_vm7, %v3310_v31, %v3312_v30  ;;  %v3314_v45 = vrot.slane %v2837_v51, 7  ;;  %v2839_v17 = vpop.f32.mrb[51].mxu1 }
 0x8d7   : > { %v3032_v50 = vpop.f32.mrb[55].mxu0  ;;  %v9565_v59 = vadd.f32 %v3353_v14, %v3026_v35  ;;  %v3354_v54 = vsel %vm3334_vm7, %v3311_v5, %v3313_v46  ;;  %v3315_v55 = vrot.slane %v2839_v17, 7 }
 0x8d8   : > { %v9569_v36 = vadd.f32 %v3354_v54, %v3028_v15  ;;  %v3351_v53 = vsel %vm3334_vm7, %v3312_v30, %v3314_v45 }
 0x8d9   : > { %12287 = vst [vmem:[#allocation49_spill] sm:$0xff] %v9565_v59  ;;  %v9573_v63 = vadd.f32 %v3351_v53, %v3030_v37  ;;  %v3352_v27 = vsel %vm3334_vm7, %v3313_v46, %v3315_v55 }
 0x8da   : > { %12288 = vst [vmem:[#allocation57_spill] sm:$0xff] %v9569_v36  ;;  %v9577_v31 = vadd.f32 %v3352_v27, %v3032_v50 }
 0x8db   : > { %12289 = vst [vmem:[#allocation61_spill] sm:$0xff] %v9573_v63  ;;  %v2843_v51 = vpop.f32.mrb[52].mxu1 }
 0x8dc   : > { %12290 = vst [vmem:[#allocation23_spill] sm:$0xff] %v9577_v31  ;;  %v3036_v29 = vpop.f32.mrb[56].mxu0  ;;  %v3316_v35 = vrot.slane %v2843_v51, 7  ;;  %v2845_v14 = vpop.f32.mrb[53].mxu1 }
 0x8dd   : > { %v3038_v59 = vpop.f32.mrb[57].mxu0  ;;  %v3317_v34 = vrot.slane %v2845_v14, 7  ;;  %v2847_v5 = vpop.f32.mrb[54].mxu1 }
 0x8de   : > { %v3040_v17 = vpop.f32.mrb[58].mxu0  ;;  %v3349_v15 = vsel %vm3334_vm7, %v3314_v45, %v3316_v35  ;;  %v3318_v54 = vrot.slane %v2847_v5, 7  ;;  %v2849_v30 = vpop.f32.mrb[55].mxu1 }
 0x8df   : > { %v3042_v37 = vpop.f32.mrb[59].mxu0  ;;  %v9581_v53 = vadd.f32 %v3349_v15, %v3036_v29  ;;  %v3350_v46 = vsel %vm3334_vm7, %v3315_v55, %v3317_v34  ;;  %v3319_v27 = vrot.slane %v2849_v30, 7 }
 0x8e0   : > { %v9585_v50 = vadd.f32 %v3350_v46, %v3038_v59  ;;  %v3347_v51 = vsel %vm3334_vm7, %v3316_v35, %v3318_v54 }
 0x8e1   : > { %12291 = vst [vmem:[#allocation47_spill] sm:$0xff] %v9581_v53  ;;  %v9589_v14 = vadd.f32 %v3347_v51, %v3040_v17  ;;  %v3348_v31 = vsel %vm3334_vm7, %v3317_v34, %v3319_v27 }
 0x8e2   : > { %12292 = vst [vmem:[#allocation48_spill] sm:$0xff] %v9585_v50  ;;  %v9593_v45 = vadd.f32 %v3348_v31, %v3042_v37 }
 0x8e3   : > { %12293 = vst [vmem:[#allocation50_spill] sm:$0xff] %v9589_v14  ;;  %v2853_v5 = vpop.f32.mrb[56].mxu1 }
 0x8e4   : > { %12294 = vst [vmem:[#allocation51_spill] sm:$0xff] %v9593_v45  ;;  %v3046_v63 = vpop.f32.mrb[60].mxu0  ;;  %v3320_v29 = vrot.slane %v2853_v5, 7  ;;  %v2855_v15 = vpop.f32.mrb[57].mxu1 }
 0x8e5   : > { %v3048_v53 = vpop.f32.mrb[61].mxu0  ;;  %v3321_v36 = vrot.slane %v2855_v15, 7  ;;  %v2857_v55 = vpop.f32.mrb[58].mxu1 }
 0x8e6   : > { %v3050_v30 = vpop.f32.mrb[62].mxu0  ;;  %v3345_v59 = vsel %vm3334_vm7, %v3318_v54, %v3320_v29  ;;  %v3322_v46 = vrot.slane %v2857_v55, 7  ;;  %v2859_v35 = vpop.f32.mrb[59].mxu1 }
 0x8e7   : > { %v3052_v17 = vpop.f32.mrb[63].mxu0  ;;  %v9597_v51 = vadd.f32 %v3345_v59, %v3046_v63  ;;  %v3346_v34 = vsel %vm3334_vm7, %v3319_v27, %v3321_v36  ;;  %v3323_v31 = vrot.slane %v2859_v35, 7 }
 0x8e8   : > { %v9601_v37 = vadd.f32 %v3346_v34, %v3048_v53  ;;  %v3343_v5 = vsel %vm3334_vm7, %v3320_v29, %v3322_v46 }
 0x8e9   : > { %12295 = vst [vmem:[#allocation67_spill] sm:$0xff] %v9597_v51  ;;  %v9605_v15 = vadd.f32 %v3343_v5, %v3050_v30  ;;  %v3344_v45 = vsel %vm3334_vm7, %v3321_v36, %v3323_v31 }
 0x8ea   : > { %12296 = vst [vmem:[#allocation68_spill] sm:$0xff] %v9601_v37  ;;  %v9609_v54 = vadd.f32 %v3344_v45, %v3052_v17 }
 0x8eb   : > { %12297 = vst [vmem:[#allocation24_spill] sm:$0xff] %v9605_v15  ;;  %v2863_v55 = vpop.f32.mrb[60].mxu1 }
 0x8ec   : > { %12298 = vst [vmem:[#allocation52_spill] sm:$0xff] %v9609_v54  ;;  %v3056_v14 = vpop.f32.mrb[64].mxu0  ;;  %v3324_v63 = vrot.slane %v2863_v55, 7  ;;  %v2865_v59 = vpop.f32.mrb[61].mxu1 }
 0x8ed   : > { %v3058_v51 = vpop.f32.mrb[65].mxu0  ;;  %v3325_v50 = vrot.slane %v2865_v59, 7  ;;  %v2867_v27 = vpop.f32.mrb[62].mxu1 }
 0x8ee   : > { %v3060_v35 = vpop.f32.mrb[66].mxu0  ;;  %v3341_v53 = vsel %vm3334_vm7, %v3322_v46, %v3324_v63  ;;  %v3326_v34 = vrot.slane %v2867_v27, 7  ;;  %v2869_v29 = vpop.f32.mrb[63].mxu1 }
 0x8ef   : > { %v3062_v30 = vpop.f32.mrb[67].mxu0  ;;  %v9613_v5 = vadd.f32 %v3341_v53, %v3056_v14  ;;  %v3342_v36 = vsel %vm3334_vm7, %v3323_v31, %v3325_v50  ;;  %v3327_v45 = vrot.slane %v2869_v29, 7 }
 0x8f0   : > { %v9617_v17 = vadd.f32 %v3342_v36, %v3058_v51  ;;  %v3339_v55 = vsel %vm3334_vm7, %v3324_v63, %v3326_v34 }
 0x8f1   : > { %12299 = vst [vmem:[#allocation26_spill] sm:$0xff] %v9613_v5  ;;  %v9621_v59 = vadd.f32 %v3339_v55, %v3060_v35  ;;  %v3340_v54 = vsel %vm3334_vm7, %v3325_v50, %v3327_v45 }
 0x8f2   : > { %12300 = vst [vmem:[#allocation58_spill] sm:$0xff] %v9617_v17  ;;  %v9625_v46 = vadd.f32 %v3340_v54, %v3062_v30 }
 0x8f3   : > { %12301 = vst [vmem:[#allocation53_spill] sm:$0xff] %v9621_v59  ;;  %v2873_v27 = vpop.f32.mrb[64].mxu1 }
 0x8f4   : > { %12302 = vst [vmem:[#allocation54_spill] sm:$0xff] %v9625_v46  ;;  %v3066_v15 = vpop.f32.mrb[68].mxu0  ;;  %v3328_v14 = vrot.slane %v2873_v27, 7  ;;  %v2875_v53 = vpop.f32.mrb[65].mxu1  ;;  %v12305_v27 = vrot.slane %v9371_v7, 7 }
 0x8f5   : > { %v3068_v5 = vpop.f32.mrb[69].mxu0  ;;  %v3329_v37 = vrot.slane %v2875_v53, 7  ;;  %v2877_v31 = vpop.f32.mrb[66].mxu1 }
 0x8f6   : > { %v3070_v29 = vpop.f32.mrb[70].mxu0  ;;  %v3337_v51 = vsel %vm3334_vm7, %v3326_v34, %v3328_v14  ;;  %v3330_v36 = vrot.slane %v2877_v31, 7  ;;  %v2879_v63 = vpop.f32.mrb[67].mxu1 }
 0x8f7   : > { %v3072_v35 = vpop.f32.mrb[71].mxu0  ;;  %v9629_v55 = vadd.f32 %v3337_v51, %v3066_v15  ;;  %v3338_v50 = vsel %vm3334_vm7, %v3327_v45, %v3329_v37  ;;  %v3331_v54 = vrot.slane %v2879_v63, 7  ;;  %v12307_v15 = vrot.slane %v9375_v49, 7 }
 0x8f8   : > { %v9633_v30 = vadd.f32 %v3338_v50, %v3068_v5  ;;  %v3397_v53 = vsel %vm3334_vm7, %v3330_v36, %v12305_v27  ;;  %v3335_v46 = vsel %vm3334_vm7, %v3328_v14, %v3330_v36 }
 0x8f9   : > { %12303 = vst [vmem:[#allocation59_spill] sm:$0xff] %v9629_v55  ;;  %v3399_v34 = vadd.f32 %v3397_v53, %v9373_v43  ;;  %v9642_v31 = vadd.f32 %v3335_v46, %v3070_v29  ;;  %v3398_v45 = vsel %vm3334_vm7, %v3331_v54, %v12307_v15  ;;  %v3336_v5 = vsel %vm3334_vm7, %v3329_v37, %v3331_v54  ;;  %v3656_v43 = vld [vmem:[%s11907_s14] sm:$0x3]  ;;  %v12311_v54 = vld [vmem:[#allocation20_spill] sm:$0xff] }
 0x8fa   : > { %12304 = vst [vmem:[#allocation60_spill] sm:$0xff] %v9633_v30  ;;  %v3400_v7 = vadd.f32 %v3398_v45, %v9377_v19  ;;  %v9651_v51 = vadd.f32 %v3336_v5, %v3072_v35  ;;  %v9663_v27 = vrot.slane %v3656_v43, %v12311_v54  ;;  %v12312_v45 = vld [vmem:[#allocation21_spill] sm:$0xff] }
 0x8fb   : > { %12306 = vst [vmem:[#allocation64_spill] sm:$0xff] %v9642_v31  ;;  %v9653_v63 = vpop.f32.mrb[68].mxu1  ;;  %v9667_v5 = vrot.slane %v3656_v43, %v12312_v45 }
 0x8fc   : > { %12308 = vst [vmem:[#allocation62_spill] sm:$0xff] %v9651_v51  ;;  %12309 = vst [vmem:[#allocation63_spill] sm:$0xff] %v9653_v63  ;;  %v3960_v50 = vpop.f32.mrb[72].mxu0  ;;  %v9658_v46 = vpop.f32.mrb[69].mxu1  ;;  %v11990_v37 = vrot.slane %v9653_v63, 1 }
 0x8fd   : > { %12310 = vst [vmem:[#allocation66_spill] sm:$0xff] %v9658_v46  ;;  %v3962_v49 = vpop.f32.mrb[73].mxu0  ;;  %v3113_v14 = vpop.f32.mrb[70].mxu1  ;;  %v11991_v53 = vrot.slane %v9658_v46, 1  ;;  %v4076_v51 = vrot.slane %v3960_v50, 1  ;;  %v4080_v30 = vrot.slane %v3960_v50, 7 }
 0x8fe   : > { %v3964_v29 = vpop.f32.mrb[74].mxu0  ;;  %v3465_v36 = vrot.slane %v3113_v14, 1  ;;  %v3115_v19 = vpop.f32.mrb[71].mxu1  ;;  %v4077_v31 = vrot.slane %v3962_v49, 1  ;;  %v4081_v14 = vrot.slane %v3962_v49, 7 }
 0x8ff   : > { %v3965_v35 = vpop.f32.mrb[75].mxu0  ;;  %v3466_v15 = vrot.slane %v3115_v19, 1  ;;  %v9679_v45 = vsel %vm793_vm1, %v4076_v51, %v4080_v30 }
 0x900   : > { %v3588_v29 = vsel %vm3527_vm8, %v11990_v37, %v3465_v36  ;;  %v9683_v37 = vsel %vm793_vm1, %v4077_v31, %v4081_v14 }
 0x901   : > { %v3592_v55 = vadd.f32 %v3588_v29, %v3399_v34  ;;  %v3589_v35 = vsel %vm3527_vm8, %v11991_v53, %v3466_v15 }
 0x902   : > { %v3593_v54 = vadd.f32 %v3589_v35, %v3400_v7 }
 0x903   : > { %v3668_v19 = vadd.f32 %v9663_v27, %v3592_v55  ;;  %v3119_v43 = vpop.f32.mrb[72].mxu1 }
 0x904   : > { %v3669_v50 = vadd.f32 %v9667_v5, %v3593_v54  ;;  %v3467_v63 = vrot.slane %v3119_v43, 1  ;;  %v3121_v59 = vpop.f32.mrb[73].mxu1 }
 0x905   : > { %4010 = vst [vmem:[#allocation3] sm:$0xff] %v3668_v19  ;;  %v4094_v34 = vsub.f32 %v3668_v19, %v9679_v45  ;;  %v3468_v49 = vrot.slane %v3121_v59, 1  ;;  %v3123_v29 = vpop.f32.mrb[74].mxu1 }
 0x906   : > { %4011 = vst [vmem:[#allocation3 + $0x8] sm:$0xff] %v3669_v50  ;;  %v4095_v7 = vsub.f32 %v3669_v50, %v9683_v37  ;;  %v3586_v55 = vsel %vm3527_vm8, %v3465_v36, %v3467_v63  ;;  %v3469_v30 = vrot.slane %v3123_v29, 1  ;;  %v3125_v51 = vpop.f32.mrb[75].mxu1 }
 0x907   : > { %v3594_v35 = vadd.f32 %v3586_v55, %v9387_v21  ;;  %v3587_v54 = vsel %vm3527_vm8, %v3466_v15, %v3468_v49  ;;  %v3470_v31 = vrot.slane %v3125_v51, 1 }
 0x908   : > { %v4102_v14 = vcombine.low %v4094_v34, %v4095_v7  ;;  %v3595_v43 = vadd.f32 %v3587_v54, %v9394_v24  ;;  %v3584_v59 = vsel %vm3527_vm8, %v3467_v63, %v3469_v30 }
 0x909   : > { %v3670_v19 = vadd.f32 %v9663_v27, %v3594_v35  ;;  %v3596_v50 = vadd.f32 %v3584_v59, %v9398_v58  ;;  %v3585_v36 = vsel %vm3527_vm8, %v3468_v49, %v3470_v31 }
 0x90a   : > { %v4109_v29 = vrot.slane %v4102_v14, %v8368_v10  ;;  %v3671_v21 = vadd.f32 %v9667_v5, %v3595_v43  ;;  %v3597_v15 = vadd.f32 %v3585_v36, %v9402_v2 }
 0x90b   : > { %v9703_v34 = vadd.f32 %v9663_v27, %v3596_v50  ;;  %v3129_v24 = vpop.f32.mrb[76].mxu1  ;;  %v4341_v7 = vmul.f32 0.044715, %v3670_v19 }
 0x90c   : > { %v4116_v63 = vrot.slane %v4109_v29, %v8368_v10  ;;  %v9707_v55 = vadd.f32 %v9667_v5, %v3597_v15  ;;  %v3471_v58 = vrot.slane %v3129_v24, 1  ;;  %v3131_v51 = vpop.f32.mrb[77].mxu1  ;;  %v4342_v54 = vmul.f32 0.044715, %v3671_v21 }
 0x90d   : > { %v3472_v35 = vrot.slane %v3131_v51, 1  ;;  %v3133_v49 = vpop.f32.mrb[78].mxu1  ;;  %v4405_v14 = vmul.f32 %v4341_v7, %v3670_v19  ;;  %v4343_v50 = vmul.f32 0.044715, %v9703_v34 }
 0x90e   : > { %4134 = vst.msk [vmem:[#allocation3] ss:$8 sm:$0x3] %vm8601_vm6, %v4116_v63  ;;  %v3582_v2 = vsel %vm3527_vm8, %v3469_v30, %v3471_v58  ;;  %v3473_v43 = vrot.slane %v3133_v49, 1  ;;  %v3135_v59 = vpop.f32.mrb[79].mxu1  ;;  %v4406_v24 = vmul.f32 %v4342_v54, %v3671_v21 }
 0x90f   : > { %v3598_v36 = vadd.f32 %v3582_v2, %v9407_v33  ;;  %v3583_v29 = vsel %vm3527_vm8, %v3470_v31, %v3472_v35  ;;  %v3474_v15 = vrot.slane %v3135_v59, 1  ;;  %v4469_v63 = vmul.f32 %v4405_v14, %v3670_v19 }
 0x910   : > { %v3599_v51 = vadd.f32 %v3583_v29, %v9412_v6  ;;  %v3580_v7 = vsel %vm3527_vm8, %v3471_v58, %v3473_v43  ;;  %v4344_v53 = vmul.f32 0.044715, %v9707_v55  ;;  %v4470_v2 = vmul.f32 %v4406_v24, %v3671_v21 }
 0x911   : > { %v9722_v30 = vadd.f32 %v9663_v27, %v3598_v36  ;;  %v3600_v49 = vadd.f32 %v3580_v7, %v9416_v4  ;;  %v3581_v33 = vsel %vm3527_vm8, %v3472_v35, %v3474_v15  ;;  %v4533_v54 = vadd.f32 %v4469_v63, %v3670_v19 }
 0x912   : > { %v9728_v31 = vadd.f32 %v9667_v5, %v3599_v51  ;;  %v3601_v6 = vadd.f32 %v3581_v33, %v9420_v9  ;;  %v4407_v58 = vmul.f32 %v4343_v50, %v9703_v34  ;;  %v4534_v36 = vadd.f32 %v4470_v2, %v3671_v21 }
 0x913   : > { %v9733_v14 = vadd.f32 %v9663_v27, %v3600_v49  ;;  %v3139_v59 = vpop.f32.mrb[80].mxu1  ;;  %v4408_v29 = vmul.f32 %v4344_v53, %v9707_v55  ;;  %v4597_v7 = vmul.f32 0.7978846, %v4533_v54  ;;  %v9740_v63 = vmul.f32 0.5, %v3670_v19 }
 0x914   : > { %v9738_v35 = vadd.f32 %v9667_v5, %v3601_v6  ;;  %v3475_v24 = vrot.slane %v3139_v59, 1  ;;  %v3141_v51 = vpop.f32.mrb[81].mxu1  ;;  %v4598_v50 = vmul.f32 0.7978846, %v4534_v36  ;;  %v4471_v49 = vmul.f32 %v4407_v58, %v9703_v34 }
 0x915   : > { %v3476_v46 = vrot.slane %v3141_v51, 1  ;;  %v3143_v9 = vpop.f32.mrb[82].mxu1  ;;  %v9742_v33 = vld [vmem:[#allocation3] sm:$0xff]  ;;  %7586 = vtanh.f32 %v4597_v7  ;;  %v9747_v6 = vld [vmem:[#allocation3 + $0x8] sm:$0xff]  ;;  %v4472_v59 = vmul.f32 %v4408_v29, %v9707_v55 }
 0x916   : > { %v3578_v53 = vsel %vm3527_vm8, %v3473_v43, %v3475_v24  ;;  %v3477_v2 = vrot.slane %v3143_v9, 1  ;;  %v3145_v4 = vpop.f32.mrb[83].mxu1  ;;  %7588 = vtanh.f32 %v4598_v50  ;;  %v4278_v43 = vmul.f32 0.5, %v3671_v21 }
 0x917   : > { %v3602_v54 = vadd.f32 %v3578_v53, %v9425_v0  ;;  %v3579_v19 = vsel %vm3527_vm8, %v3474_v15, %v3476_v46  ;;  %v3478_v36 = vrot.slane %v3145_v4, 1  ;;  %v4339_v9 = vmul.f32 0.044715, %v9742_v33 }
 0x918   : > { %v3603_v51 = vadd.f32 %v3579_v19, %v9430_v28  ;;  %v3576_v58 = vsel %vm3527_vm8, %v3475_v24, %v3477_v2  ;;  %v4340_v15 = vmul.f32 0.044715, %v9747_v6  ;;  %v4535_v21 = vadd.f32 %v4471_v49, %v9703_v34 }
 0x919   : > { %v9758_v7 = vadd.f32 %v9663_v27, %v3602_v54  ;;  %v3604_v29 = vadd.f32 %v3576_v58, %v9434_v11  ;;  %v3577_v0 = vsel %vm3527_vm8, %v3476_v46, %v3478_v36  ;;  %v4403_v24 = vmul.f32 %v4339_v9, %v9742_v33 }
 0x91a   : > { %v9765_v4 = vadd.f32 %v9667_v5, %v3603_v51  ;;  %v3605_v28 = vadd.f32 %v3577_v0, %v9438_v41  ;;  %v4404_v11 = vmul.f32 %v4340_v15, %v9747_v6  ;;  %v9775_v54 = vmul.f32 0.5, %v9703_v34 }
 0x91b   : > { %v9771_v50 = vadd.f32 %v9663_v27, %v3604_v29  ;;  %v3149_v53 = vpop.f32.mrb[84].mxu1  ;;  %v4536_v46 = vadd.f32 %v4472_v59, %v9707_v55  ;;  %v4467_v58 = vmul.f32 %v4403_v24, %v9742_v33  ;;  %v4599_v9 = vmul.f32 0.7978846, %v4535_v21 }
 0x91c   : > { %v9779_v19 = vadd.f32 %v9667_v5, %v3605_v28  ;;  %v3479_v51 = vrot.slane %v3149_v53, 1  ;;  %v3151_v41 = vpop.f32.mrb[85].mxu1  ;;  %v4468_v29 = vmul.f32 %v4404_v11, %v9747_v6  ;;  %v4345_v15 = vmul.f32 0.044715, %v9722_v30 }
 0x91d   : > { %v3480_v49 = vrot.slane %v3151_v41, 1  ;;  %v3153_v0 = vpop.f32.mrb[86].mxu1  ;;  %v4600_v17 = vmul.f32 0.7978846, %v4536_v46  ;;  %v4531_v28 = vadd.f32 %v4467_v58, %v9742_v33  ;;  %7590 = vtanh.f32 %v4599_v9 }
 0x91e   : > { %v3574_v34 = vsel %vm3527_vm8, %v3477_v2, %v3479_v51  ;;  %v3481_v1 = vrot.slane %v3153_v0, 1  ;;  %v3155_v59 = vpop.f32.mrb[87].mxu1  ;;  %v4532_v41 = vadd.f32 %v4468_v29, %v9747_v6 }
 0x91f   : > { %v3606_v53 = vadd.f32 %v3574_v34, %v9443_v32  ;;  %v3575_v24 = vsel %vm3527_vm8, %v3478_v36, %v3480_v49  ;;  %v3482_v21 = vrot.slane %v3155_v59, 1  ;;  %v7587_v11 = vpop.eup %7586  ;;  %v4595_v2 = vmul.f32 0.7978846, %v4531_v28 }
 0x920   : > { %v3607_v46 = vadd.f32 %v3575_v24, %v9448_v40  ;;  %v3572_v23 = vsel %vm3527_vm8, %v3479_v51, %v3481_v1  ;;  %7592 = vtanh.f32 %v4600_v17  ;;  %v7589_v0 = vpop.eup %7588  ;;  %v4725_v9 = vadd.f32 1.0, %v7587_v11 }
 0x921   : > { %v9795_v58 = vadd.f32 %v9663_v27, %v3606_v53  ;;  %v3608_v32 = vadd.f32 %v3572_v23, %v9452_v42  ;;  %v3573_v36 = vsel %vm3527_vm8, %v3480_v49, %v3482_v21  ;;  %v4726_v34 = vadd.f32 1.0, %v7589_v0 }
 0x922   : > { %v9801_v29 = vadd.f32 %v9667_v5, %v3607_v46  ;;  %v3609_v40 = vadd.f32 %v3573_v36, %v9456_v44  ;;  %v4596_v59 = vmul.f32 0.7978846, %v4532_v41  ;;  %v9808_v28 = vmul.f32 %v4725_v9, %v9740_v63 }
 0x923   : > { %v9805_v51 = vadd.f32 %v9663_v27, %v3608_v32  ;;  %v3159_v17 = vpop.f32.mrb[88].mxu1  ;;  %7594 = vtanh.f32 %v4595_v2  ;;  %v4346_v23 = vmul.f32 0.044715, %v9728_v31  ;;  %v9814_v24 = vmul.f32 %v4726_v34, %v4278_v43 }
 0x924   : > { %12313 = vst [vmem:[#allocation25_spill] sm:$0xff] %v9808_v28  ;;  %v9812_v42 = vadd.f32 %v9667_v5, %v3609_v40  ;;  %v3483_v49 = vrot.slane %v3159_v17, 1  ;;  %v3161_v53 = vpop.f32.mrb[89].mxu1  ;;  %7596 = vtanh.f32 %v4596_v59  ;;  %v4280_v11 = vmul.f32 0.5, %v9707_v55 }
 0x925   : > { %12314 = vst [vmem:[#allocation65_spill] sm:$0xff] %v9814_v24  ;;  %v3484_v44 = vrot.slane %v3161_v53, 1  ;;  %v3163_v41 = vpop.f32.mrb[90].mxu1  ;;  %v4409_v46 = vmul.f32 %v4345_v15, %v9722_v30  ;;  %v4410_v63 = vmul.f32 %v4346_v23, %v9728_v31  ;;  %v4854_v36 = vadd.f32 %v9814_v24, %v9808_v28 }
 0x926   : > { %v3570_v2 = vsel %vm3527_vm8, %v3481_v1, %v3483_v49  ;;  %v3485_v0 = vrot.slane %v3163_v41, 1  ;;  %v3165_v32 = vpop.f32.mrb[91].mxu1  ;;  %v4275_v43 = vmul.f32 0.5, %v9742_v33  ;;  %v4347_v23 = vmul.f32 0.044715, %v9733_v14 }
 0x927   : > { %v3610_v9 = vadd.f32 %v3570_v2, %v9461_v47  ;;  %v3571_v40 = vsel %vm3527_vm8, %v3482_v21, %v3484_v44  ;;  %v3486_v55 = vrot.slane %v3165_v32, 1  ;;  %v4473_v15 = vmul.f32 %v4409_v46, %v9722_v30  ;;  %v7591_v34 = vpop.eup %7590  ;;  %4855 = vadd.xlane.f32.xlu1 %v4854_v36 }
 0x928   : > { %v3611_v59 = vadd.f32 %v3571_v40, %v9465_v18  ;;  %v3568_v1 = vsel %vm3527_vm8, %v3483_v49, %v3485_v0  ;;  %v4474_v17 = vmul.f32 %v4410_v63, %v9728_v31  ;;  %v4727_v53 = vadd.f32 1.0, %v7591_v34 }
 0x929   : > { %v9834_v33 = vadd.f32 %v9663_v27, %v3610_v9  ;;  %v3612_v47 = vadd.f32 %v3568_v1, %v9469_v56  ;;  %v3569_v21 = vsel %vm3527_vm8, %v3484_v44, %v3486_v55  ;;  %v4537_v46 = vadd.f32 %v4473_v15, %v9722_v30 }
 0x92a   : > { %v7593_v41 = vpop.eup %7592  ;;  %v9840_v18 = vadd.f32 %v9667_v5, %v3611_v59  ;;  %v3613_v49 = vadd.f32 %v3569_v21, %v9473_v38  ;;  %v4538_v63 = vadd.f32 %v4474_v17, %v9728_v31  ;;  %v4276_v56 = vmul.f32 0.5, %v9747_v6 }
 0x92b   : > { %v9846_v2 = vadd.f32 %v9663_v27, %v3612_v47  ;;  %v3169_v32 = vpop.f32.mrb[92].mxu1  ;;  %v4728_v36 = vadd.f32 1.0, %v7593_v41  ;;  %v4348_v44 = vmul.f32 0.044715, %v9738_v35  ;;  %v9854_v38 = vmul.f32 %v4727_v53, %v9775_v54 }
 0x92c   : > { %v9851_v9 = vadd.f32 %v9667_v5, %v3613_v49  ;;  %v3487_v40 = vrot.slane %v3169_v32, 1  ;;  %v3171_v34 = vpop.f32.mrb[93].mxu1  ;;  %v4601_v15 = vmul.f32 0.7978846, %v4537_v46  ;;  %v4602_v47 = vmul.f32 0.7978846, %v4538_v63 }
 0x92d   : > { %12316 = vst [vmem:[#allocation70_spill] sm:$0xff] %v9854_v38  ;;  %v7595_v59 = vpop.eup %7594  ;;  %v3488_v1 = vrot.slane %v3171_v34, 1  ;;  %v3173_v17 = vpop.f32.mrb[94].mxu1  ;;  %v4411_v21 = vmul.f32 %v4347_v23, %v9733_v14  ;;  %v4412_v6 = vmul.f32 %v4348_v44, %v9738_v35 }
 0x92e   : > { %12315 = vst [vmem:[#allocation27_spill] sm:$0xff] %v9851_v9  ;;  %v7597_v41 = vpop.eup %7596  ;;  %v3566_v24 = vsel %vm3527_vm8, %v3485_v0, %v3487_v40  ;;  %v3489_v49 = vrot.slane %v3173_v17, 1  ;;  %v3175_v28 = vpop.f32.mrb[95].mxu1  ;;  %v4723_v32 = vadd.f32 1.0, %v7595_v59  ;;  %7598 = vtanh.f32 %v4601_v15 }
 0x92f   : > { %v3614_v54 = vadd.f32 %v3566_v24, %v9477_v20  ;;  %v3567_v53 = vsel %vm3527_vm8, %v3486_v55, %v3488_v1  ;;  %v3490_v46 = vrot.slane %v3175_v28, 1  ;;  %v4724_v34 = vadd.f32 1.0, %v7597_v41 }
 0x930   : > { %v3615_v63 = vadd.f32 %v3567_v53, %v9481_v3  ;;  %v3564_v23 = vsel %vm3527_vm8, %v3487_v40, %v3489_v49  ;;  %v9866_v44 = vmul.f32 %v4723_v32, %v4275_v43  ;;  %v9868_v9 = vmul.f32 %v4728_v36, %v4280_v11 }
 0x931   : > { %v9871_v0 = vadd.f32 %v9663_v27, %v3614_v54  ;;  %v3616_v15 = vadd.f32 %v3564_v23, %v9485_v16  ;;  %v3565_v20 = vsel %vm3527_vm8, %v3488_v1, %v3490_v46  ;;  %v9876_v24 = vmul.f32 %v4724_v34, %v4276_v56 }
 0x932   : > { %12317 = vst [vmem:[#allocation71_spill] sm:$0xff] %v9866_v44  ;;  %12318 = vst [vmem:[#allocation72_spill] sm:$0xff] %v9868_v9  ;;  %v9879_v28 = vadd.f32 %v9667_v5, %v3615_v63  ;;  %v3617_v3 = vadd.f32 %v3565_v20, %v9489_v8  ;;  %7600 = vtanh.f32 %v4602_v47  ;;  %v4475_v43 = vmul.f32 %v4411_v21, %v9733_v14 }
 0x933   : > { %12319 = vst [vmem:[#allocation74_spill] sm:$0xff] %v9876_v24  ;;  %v9885_v55 = vadd.f32 %v9663_v27, %v3616_v15  ;;  %v4851_v16 = vadd.f32 %v9876_v24, %v9866_v44  ;;  %v3179_v36 = vpop.f32.mrb[96].mxu1  ;;  %v4476_v56 = vmul.f32 %v4412_v6, %v9738_v35  ;;  %v4281_v8 = vmul.f32 0.5, %v9722_v30  ;;  %v12343_v44 = vld [vmem:[#allocation49_spill] sm:$0xff] }
 0x934   : > { %v9891_v40 = vadd.f32 %v9667_v5, %v3617_v3  ;;  %v3491_v59 = vrot.slane %v3179_v36, 1  ;;  %v3181_v1 = vpop.f32.mrb[97].mxu1  ;;  %v4539_v17 = vadd.f32 %v4475_v43, %v9733_v14  ;;  %v4857_v21 = vadd.f32 %v9868_v9, %v9854_v38 }
 0x935   : > { %4852 = vadd.xlane.f32.xlu0 %v4851_v16  ;;  %v3492_v47 = vrot.slane %v3181_v1, 1  ;;  %v3183_v41 = vpop.f32.mrb[98].mxu1  ;;  %v4540_v32 = vadd.f32 %v4476_v56, %v9738_v35  ;;  %v4349_v54 = vmul.f32 0.044715, %v9758_v7  ;;  %v4350_v30 = vmul.f32 0.044715, %v9765_v4 }
 0x936   : > { %v3562_v6 = vsel %vm3527_vm8, %v3489_v49, %v3491_v59  ;;  %v3493_v53 = vrot.slane %v3183_v41, 1  ;;  %v3185_v34 = vpop.f32.mrb[99].mxu1  ;;  %v4603_v63 = vmul.f32 0.7978846, %v4539_v17  ;;  %v4282_v49 = vmul.f32 0.5, %v9728_v31 }
 0x937   : > { %v3618_v23 = vadd.f32 %v3562_v6, %v9493_v22  ;;  %v3563_v15 = vsel %vm3527_vm8, %v3490_v46, %v3492_v47  ;;  %v3494_v20 = vrot.slane %v3185_v34, 1  ;;  %v4604_v3 = vmul.f32 0.7978846, %v4540_v32 }
 0x938   : > { %v7599_v43 = vpop.eup %7598  ;;  %v3619_v16 = vadd.f32 %v3563_v15, %v9497_v62  ;;  %v3560_v36 = vsel %vm3527_vm8, %v3491_v59, %v3493_v53  ;;  %7602 = vtanh.f32 %v4603_v63  ;;  %v4413_v59 = vmul.f32 %v4349_v54, %v9758_v7 }
 0x939   : > { %v9910_v56 = vadd.f32 %v9663_v27, %v3618_v23  ;;  %4858 = vadd.xlane.f32.xlu0 %v4857_v21  ;;  %v3620_v22 = vadd.f32 %v3560_v36, %v9501_v39  ;;  %v3561_v46 = vsel %vm3527_vm8, %v3492_v47, %v3494_v20  ;;  %v4729_v1 = vadd.f32 1.0, %v7599_v43 }
 0x93a   : > { %v9916_v17 = vadd.f32 %v9667_v5, %v3619_v16  ;;  %v3621_v62 = vadd.f32 %v3561_v46, %v9505_v48  ;;  %7604 = vtanh.f32 %v4604_v3  ;;  %v4283_v21 = vmul.f32 0.5, %v9733_v14 }
 0x93b   : > { %v9921_v31 = vadd.f32 %v9663_v27, %v3620_v22  ;;  %v9923_v41 = vmul.f32 %v4729_v1, %v4281_v8  ;;  %v3189_v32 = vpop.f32.mrb[100].mxu1  ;;  %v4414_v47 = vmul.f32 %v4350_v30, %v9765_v4 }
 0x93c   : > { %v4003_v39 = vpop.f32.mrb[76].mxu0  ;;  %v7601_v6 = vpop.eup %7600  ;;  %v9928_v34 = vadd.f32 %v9667_v5, %v3621_v62  ;;  %v3495_v23 = vrot.slane %v3189_v32, 1 }
 0x93d   : > { %12320 = vst [vmem:[#allocation28_spill] sm:$0xff] %v9923_v41  ;;  %v4141_v63 = vrot.slane %v4003_v39, 1  ;;  %v4145_v48 = vrot.slane %v4003_v39, 7  ;;  %v4005_v15 = vpop.f32.mrb[77].mxu0  ;;  %v3191_v54 = vpop.f32.mrb[101].mxu1  ;;  %v4730_v3 = vadd.f32 1.0, %v7601_v6  ;;  %v4477_v39 = vmul.f32 %v4413_v59, %v9758_v7 }
 0x93e   : > { %v4142_v43 = vrot.slane %v4005_v15, 1  ;;  %v4146_v16 = vrot.slane %v4005_v15, 7  ;;  %v3496_v8 = vrot.slane %v3191_v54, 1  ;;  %v4007_v36 = vpop.f32.mrb[78].mxu0  ;;  %v9930_v22 = vpop.f32.mrb[102].mxu1  ;;  %v3558_v30 = vsel %vm3527_vm8, %v3493_v53, %v3495_v23 }
 0x93f   : > { %v9933_v14 = vsel %vm793_vm1, %v4141_v63, %v4145_v48  ;;  %v3497_v46 = vrot.slane %v9930_v22, 1  ;;  %v4008_v1 = vpop.f32.mrb[79].mxu0  ;;  %v3195_v62 = vpop.f32.mrb[103].mxu1  ;;  %v9939_v32 = vmul.f32 %v4730_v3, %v4282_v49  ;;  %v4284_v6 = vmul.f32 0.5, %v9738_v35 }
 0x940   : > { %v3622_v15 = vadd.f32 %v3558_v30, %v9509_v26  ;;  %v4478_v54 = vmul.f32 %v4414_v47, %v9765_v4  ;;  %v9945_v63 = vsel %vm793_vm1, %v4142_v43, %v4146_v16  ;;  %v3559_v53 = vsel %vm3527_vm8, %v3494_v20, %v3496_v8 }
 0x941   : > { %12321 = vst [vmem:[#allocation79_spill] sm:$0xff] %v9939_v32  ;;  %v3556_v48 = vsel %vm3527_vm8, %v3495_v23, %v3497_v46  ;;  %v3498_v36 = vrot.slane %v3195_v62, 1  ;;  %v4860_v49 = vadd.f32 %v9939_v32, %v9923_v41  ;;  %v4153_v59 = vrot.slane %v9933_v14, 1 }
 0x942   : > { %v3698_v35 = vadd.f32 %v9663_v27, %v3622_v15  ;;  %v4154_v26 = vrot.slane %v9945_v63, 1  ;;  %v7603_v47 = vpop.eup %7602  ;;  %v3623_v3 = vadd.f32 %v3559_v53, %v9513_v61  ;;  %v3624_v43 = vadd.f32 %v3556_v48, %v9517_v25 }
 0x943   : > { %v3557_v20 = vsel %vm3527_vm8, %v3496_v8, %v3498_v36  ;;  %v4541_v23 = vadd.f32 %v4477_v39, %v9758_v7  ;;  %4861 = vadd.xlane.f32.xlu1 %v4860_v49  ;;  %v4731_v16 = vadd.f32 1.0, %v7603_v47  ;;  %v4542_v1 = vadd.f32 %v4478_v54, %v9765_v4  ;;  %v3199_v62 = vpop.f32.mrb[104].mxu1 }
 0x944   : > { %4040 = vst [vmem:[#allocation3 + $0xf0] sm:$0xff] %v3698_v35  ;;  %v4161_v22 = vsub.f32 %v3698_v35, %v4153_v59  ;;  %v3625_v30 = vadd.f32 %v3557_v20, %v9521_v60  ;;  %v7605_v15 = vpop.eup %7604  ;;  %v3699_v11 = vadd.f32 %v9667_v5, %v3623_v3  ;;  %v3700_v61 = vadd.f32 %v9663_v27, %v3624_v43  ;;  %v3201_v8 = vpop.f32.mrb[105].mxu1 }
 0x945   : > { %v4605_v25 = vmul.f32 0.7978846, %v4541_v23  ;;  %v4351_v53 = vmul.f32 0.044715, %v9771_v50  ;;  %v4732_v48 = vadd.f32 1.0, %v7605_v15  ;;  %v9966_v39 = vmul.f32 %v4731_v16, %v4283_v21  ;;  %v9969_v35 = vpop.f32.mrb[106].mxu1 }
 0x946   : > { %v3701_v49 = vadd.f32 %v9667_v5, %v3625_v30  ;;  %v4606_v59 = vmul.f32 0.7978846, %v4542_v1  ;;  %4041 = vst [vmem:[#allocation3 + $0xf8] sm:$0xff] %v3699_v11  ;;  %v4162_v60 = vsub.f32 %v3699_v11, %v4154_v26  ;;  %4042 = vst [vmem:[#allocation3 + $0x100] sm:$0xff] %v3700_v61  ;;  %v12323_v54 = vrot.slane %v9679_v45, 1  ;;  %v9974_v43 = vpop.f32.mrb[107].mxu1 }
 0x947   : > { %12322 = vst [vmem:[#allocation29_spill] sm:$0xff] %v9966_v39  ;;  %7606 = vtanh.f32 %v4605_v25  ;;  %v4352_v3 = vmul.f32 0.044715, %v9779_v19  ;;  %v9976_v20 = vmul.f32 %v4732_v48, %v4284_v6  ;;  %v12325_v21 = vrot.slane %v9683_v37, 1 }
 0x948   : > { %v4096_v47 = vsub.f32 %v3700_v61, %v12323_v54  ;;  %4043 = vst [vmem:[#allocation3 + $0x108] sm:$0xff] %v3701_v49  ;;  %7608 = vtanh.f32 %v4606_v59  ;;  %v4415_v16 = vmul.f32 %v4351_v53, %v9771_v50  ;;  %v4169_v30 = vcombine.high %v4161_v22, %v4162_v60 }
 0x949   : > { %12324 = vst [vmem:[#allocation69_spill] sm:$0xff] %v9976_v20  ;;  %v4097_v23 = vsub.f32 %v3701_v49, %v12325_v21  ;;  %v4416_v11 = vmul.f32 %v4352_v3, %v9779_v19  ;;  %v3499_v26 = vrot.slane %v3199_v62, 1  ;;  %v3500_v45 = vrot.slane %v3201_v8, 1 }
 0x94a   : > { %v4863_v1 = vadd.f32 %v9976_v20, %v9966_v39  ;;  %v4479_v61 = vmul.f32 %v4415_v16, %v9771_v50  ;;  %v3501_v6 = vrot.slane %v9969_v35, 1  ;;  %v4176_v25 = vrot.slane %v4169_v30, %v8368_v10 }
 0x94b   : > { %v4117_v15 = vcombine.low %v4096_v47, %v4097_v23  ;;  %v4480_v37 = vmul.f32 %v4416_v11, %v9779_v19  ;;  %v3554_v53 = vsel %vm3527_vm8, %v3497_v46, %v3499_v26  ;;  %v3555_v22 = vsel %vm3527_vm8, %v3498_v36, %v3500_v45  ;;  %v3209_v59 = vpop.f32.mrb[108].mxu1 }
 0x94c   : > { %4864 = vadd.xlane.f32.xlu0 %v4863_v1  ;;  %v4543_v8 = vadd.f32 %v4479_v61, %v9771_v50  ;;  %v3626_v48 = vadd.f32 %v3554_v53, %v9525_v57  ;;  %v3627_v49 = vadd.f32 %v3555_v22, %v9529_v13  ;;  %v4177_v35 = vcombine.high %v4176_v25, %v4176_v25  ;;  %v10000_v47 = vpop.f32.mrb[109].mxu1  ;;  %v12327_v61 = vld [vmem:[#allocation44_spill] sm:$0xff] }
 0x94d   : > { %v4124_v62 = vrot.slane %v4117_v15, %v8368_v10  ;;  %v4544_v60 = vadd.f32 %v4480_v37, %v9779_v19  ;;  %v3552_v54 = vsel %vm3527_vm8, %v3499_v26, %v3501_v6  ;;  %v3502_v46 = vrot.slane %v9974_v43, 1  ;;  %v10009_v13 = vpop.f32.mrb[110].mxu1 }
 0x94e   : > { %v4607_v3 = vmul.f32 0.7978846, %v4543_v8  ;;  %v10004_v21 = vadd.f32 %v9663_v27, %v3626_v48  ;;  %v10007_v57 = vadd.f32 %v9667_v5, %v3627_v49  ;;  %v4184_v23 = vrot.slane %v4177_v35, %v8368_v10  ;;  %v10015_v11 = vpop.f32.mrb[111].mxu1 }
 0x94f   : > { %v4131_v36 = vrot.slane %v4124_v62, %v8368_v10  ;;  %v4608_v16 = vmul.f32 0.7978846, %v4544_v60  ;;  %v3628_v30 = vadd.f32 %v3552_v54, %v9533_v52  ;;  %v3553_v43 = vsel %vm3527_vm8, %v3500_v45, %v3502_v46 }
 0x950   : > { %v4285_v1 = vmul.f32 0.5, %v9758_v7  ;;  %v4286_v15 = vmul.f32 0.5, %v9765_v4  ;;  %7610 = vtanh.f32 %v4607_v3  ;;  %v3629_v25 = vadd.f32 %v3553_v43, %v12327_v61 }
 0x951   : > { %4137 = vst.msk [vmem:[#allocation3 + $0x100] ss:$8 sm:$0x3] %vm8601_vm6, %v4131_v36  ;;  %v7607_v37 = vpop.eup %7606  ;;  %v4185_v53 = vcombine.high %v4184_v23, %v4184_v23  ;;  %7612 = vtanh.f32 %v4608_v16  ;;  %v10023_v52 = vadd.f32 %v9663_v27, %v3628_v30  ;;  %v4353_v45 = vmul.f32 0.044715, %v9795_v58 }
 0x952   : > { %v7609_v22 = vpop.eup %7608  ;;  %v4733_v62 = vadd.f32 1.0, %v7607_v37  ;;  %v4287_v8 = vmul.f32 0.5, %v9771_v50  ;;  %v10028_v48 = vadd.f32 %v9667_v5, %v3629_v25  ;;  %v4354_v7 = vmul.f32 0.044715, %v9801_v29 }
 0x953   : > { %4206 = vst.msk [vmem:[#allocation3 + $0xf7] ss:$8 sm:$0x3] %vm8601_vm6, %v4185_v53  ;;  %v4734_v4 = vadd.f32 1.0, %v7609_v22  ;;  %v4288_v49 = vmul.f32 0.5, %v9779_v19  ;;  %v4417_v35 = vmul.f32 %v4353_v45, %v9795_v58  ;;  %v3503_v3 = vrot.slane %v3209_v59, 1 }
 0x954   : > { %v4355_v60 = vmul.f32 0.044715, %v9805_v51  ;;  %v10036_v54 = vmul.f32 %v4733_v62, %v4285_v1  ;;  %v4418_v36 = vmul.f32 %v4354_v7, %v9801_v29  ;;  %v4356_v50 = vmul.f32 0.044715, %v9812_v42  ;;  %v10040_v23 = vpop.f32.mrb[112].mxu1  ;;  %v12330_v22 = vld [vmem:[#allocation42_spill] sm:$0xff] }
 0x955   : > { %v10042_v16 = vmul.f32 %v4734_v4, %v4286_v15  ;;  %v4481_v30 = vmul.f32 %v4417_v35, %v9795_v58  ;;  %v3504_v19 = vrot.slane %v10000_v47, 1  ;;  %v10047_v61 = vpop.f32.mrb[113].mxu1  ;;  %v3550_v37 = vsel %vm3527_vm8, %v3501_v6, %v3503_v3 }
 0x956   : > { %12328 = vst [vmem:[#allocation73_spill] sm:$0xff] %v10036_v54  ;;  %v4419_v43 = vmul.f32 %v4355_v60, %v9805_v51  ;;  %v4482_v1 = vmul.f32 %v4418_v36, %v9801_v29  ;;  %v4420_v25 = vmul.f32 %v4356_v50, %v9812_v42  ;;  %v3505_v59 = vrot.slane %v10009_v13, 1  ;;  %v10054_v53 = vpop.f32.mrb[114].mxu1 }
 0x957   : > { %12329 = vst [vmem:[#allocation30_spill] sm:$0xff] %v10042_v16  ;;  %v4866_v15 = vadd.f32 %v10042_v16, %v10036_v54  ;;  %v4545_v45 = vadd.f32 %v4481_v30, %v9795_v58  ;;  %v3630_v62 = vadd.f32 %v3550_v37, %v12330_v22  ;;  %v10061_v7 = vpop.f32.mrb[115].mxu1  ;;  %v3551_v6 = vsel %vm3527_vm8, %v3502_v46, %v3504_v19  ;;  %v12331_v30 = vld [vmem:[#allocation45_spill] sm:$0xff] }
 0x958   : > { %v4483_v47 = vmul.f32 %v4419_v43, %v9805_v51  ;;  %v4546_v4 = vadd.f32 %v4482_v1, %v9801_v29  ;;  %v4484_v35 = vmul.f32 %v4420_v25, %v9812_v42  ;;  %v3548_v13 = vsel %vm3527_vm8, %v3503_v3, %v3505_v59  ;;  %v12332_v25 = vld [vmem:[#allocation55_spill] sm:$0xff] }
 0x959   : > { %4867 = vadd.xlane.f32.xlu1 %v4866_v15  ;;  %v4609_v60 = vmul.f32 0.7978846, %v4545_v45  ;;  %v10071_v50 = vadd.f32 %v9663_v27, %v3630_v62  ;;  %v3631_v43 = vadd.f32 %v3551_v6, %v12331_v30  ;;  %v3632_v20 = vadd.f32 %v3548_v13, %v12332_v25 }
 0x95a   : > { %v4547_v36 = vadd.f32 %v4483_v47, %v9805_v51  ;;  %v7611_v37 = vpop.eup %7610  ;;  %v4610_v22 = vmul.f32 0.7978846, %v4546_v4  ;;  %v4548_v1 = vadd.f32 %v4484_v35, %v9812_v42  ;;  %v3506_v46 = vrot.slane %v10015_v11, 1 }
 0x95b   : > { %v7613_v39 = vpop.eup %7612  ;;  %v4735_v16 = vadd.f32 1.0, %v7611_v37  ;;  %7614 = vtanh.f32 %v4609_v60  ;;  %v10078_v15 = vadd.f32 %v9667_v5, %v3631_v43  ;;  %v10081_v62 = vadd.f32 %v9663_v27, %v3632_v20  ;;  %v10083_v4 = vpop.f32.mrb[116].mxu1  ;;  %v12336_v37 = vld [vmem:[#allocation27_spill] sm:$0xff] }
 0x95c   : > { %v4611_v3 = vmul.f32 0.7978846, %v4547_v36  ;;  %v4736_v45 = vadd.f32 1.0, %v7613_v39  ;;  %7616 = vtanh.f32 %v4610_v22  ;;  %v4612_v47 = vmul.f32 0.7978846, %v4548_v1  ;;  %v10090_v13 = vpop.f32.mrb[117].mxu1 }
 0x95d   : > { %v10085_v35 = vmul.f32 %v4735_v16, %v4287_v8  ;;  %v4289_v6 = vmul.f32 0.5, %v9795_v58  ;;  %v3549_v11 = vsel %vm3527_vm8, %v3504_v19, %v3506_v46  ;;  %v4290_v39 = vmul.f32 0.5, %v9801_v29  ;;  %v12335_v36 = vld [vmem:[#allocation56_spill] sm:$0xff]  ;;  %v10096_v30 = vpop.f32.mrb[118].mxu1 }
 0x95e   : > { %7618 = vtanh.f32 %v4611_v3  ;;  %v10092_v60 = vmul.f32 %v4736_v45, %v4288_v49  ;;  %v3633_v20 = vadd.f32 %v3549_v11, %v12335_v36  ;;  %v4291_v8 = vmul.f32 0.5, %v9805_v51  ;;  %v10109_v1 = vpop.f32.mrb[119].mxu1 }
 0x95f   : > { %12333 = vst [vmem:[#allocation78_spill] sm:$0xff] %v10085_v35  ;;  %7620 = vtanh.f32 %v4612_v47  ;;  %v4292_v16 = vmul.f32 0.5, %v9812_v42  ;;  %v4357_v58 = vmul.f32 0.044715, %v9834_v33  ;;  %v4358_v43 = vmul.f32 0.044715, %v9840_v18 }
 0x960   : > { %12334 = vst [vmem:[#allocation81_spill] sm:$0xff] %v10092_v60  ;;  %v4869_v19 = vadd.f32 %v10092_v60, %v10085_v35  ;;  %v10105_v49 = vadd.f32 %v9667_v5, %v3633_v20  ;;  %v4359_v29 = vmul.f32 0.044715, %v9846_v2  ;;  %v4360_v22 = vmul.f32 0.044715, %v12336_v37 }
 0x961   : > { %v4421_v51 = vmul.f32 %v4357_v58, %v9834_v33  ;;  %v4422_v42 = vmul.f32 %v4358_v43, %v9840_v18  ;;  %v3507_v25 = vrot.slane %v10040_v23, 1  ;;  %v3508_v3 = vrot.slane %v10047_v61, 1 }
 0x962   : > { %4870 = vadd.xlane.f32.xlu0 %v4869_v19  ;;  %v4423_v45 = vmul.f32 %v4359_v29, %v9846_v2  ;;  %v4424_v47 = vmul.f32 %v4360_v22, %v12336_v37  ;;  %v12337_v19 = vld [vmem:[#allocation22_spill] sm:$0xff] }
 0x963   : > { %v4485_v20 = vmul.f32 %v4421_v51, %v9834_v33  ;;  %v4486_v60 = vmul.f32 %v4422_v42, %v9840_v18  ;;  %v3546_v58 = vsel %vm3527_vm8, %v3505_v59, %v3507_v25  ;;  %v3547_v23 = vsel %vm3527_vm8, %v3506_v46, %v3508_v3  ;;  %v12338_v22 = vld [vmem:[#allocation46_spill] sm:$0xff]  ;;  %v10129_v35 = vpop.f32.mrb[120].mxu1 }
 0x964   : > { %v4487_v61 = vmul.f32 %v4423_v45, %v9846_v2  ;;  %v4488_v43 = vmul.f32 %v4424_v47, %v12336_v37  ;;  %v3634_v29 = vadd.f32 %v3546_v58, %v12337_v19  ;;  %v3635_v11 = vadd.f32 %v3547_v23, %v12338_v22  ;;  %v10141_v58 = vpop.f32.mrb[121].mxu1 }
 0x965   : > { %v7615_v36 = vpop.eup %7614  ;;  %v4549_v51 = vadd.f32 %v4485_v20, %v9834_v33  ;;  %v4550_v42 = vadd.f32 %v4486_v60, %v9840_v18  ;;  %v12339_v59 = vrot.slane %v10054_v53, 1  ;;  %v12340_v45 = vrot.slane %v10061_v7, 1  ;;  %v10148_v54 = vpop.f32.mrb[122].mxu1 }
 0x966   : > { %v7617_v23 = vpop.eup %7616  ;;  %v4737_v19 = vadd.f32 1.0, %v7615_v36  ;;  %v4551_v22 = vadd.f32 %v4487_v61, %v9846_v2  ;;  %v4552_v20 = vadd.f32 %v4488_v43, %v12336_v37  ;;  %v10146_v60 = vadd.f32 %v9663_v27, %v3634_v29 }
 0x967   : > { %v3544_v46 = vsel %vm3527_vm8, %v3507_v25, %v12339_v59  ;;  %v3545_v47 = vsel %vm3527_vm8, %v3508_v3, %v12340_v45  ;;  %v4738_v25 = vadd.f32 1.0, %v7617_v23  ;;  %v4613_v59 = vmul.f32 0.7978846, %v4549_v51  ;;  %v10153_v3 = vpop.f32.mrb[123].mxu1 }
 0x968   : > { %v7619_v9 = vpop.eup %7618  ;;  %v4614_v38 = vmul.f32 0.7978846, %v4550_v42  ;;  %v10151_v32 = vadd.f32 %v9667_v5, %v3635_v11  ;;  %v10155_v36 = vmul.f32 %v4737_v19, %v4289_v6  ;;  %v4615_v41 = vmul.f32 0.7978846, %v4551_v22  ;;  %v12345_v11 = vld [vmem:[#allocation57_spill] sm:$0xff] }
 0x969   : > { %v7621_v45 = vpop.eup %7620  ;;  %v4739_v61 = vadd.f32 1.0, %v7619_v9  ;;  %v4616_v43 = vmul.f32 0.7978846, %v4552_v20  ;;  %v10157_v24 = vmul.f32 %v4738_v25, %v4290_v39  ;;  %7622 = vtanh.f32 %v4613_v59 }
 0x96a   : > { %12341 = vst [vmem:[#allocation31_spill] sm:$0xff] %v10155_v36  ;;  %v4740_v29 = vadd.f32 1.0, %v7621_v45  ;;  %v3636_v26 = vadd.f32 %v3544_v46, %v12343_v44  ;;  %v4293_v51 = vmul.f32 0.5, %v9834_v33  ;;  %7624 = vtanh.f32 %v4614_v38 }
 0x96b   : > { %12342 = vst [vmem:[#allocation32_spill] sm:$0xff] %v10157_v24  ;;  %v10160_v23 = vmul.f32 %v4739_v61, %v4291_v8  ;;  %v3637_v42 = vadd.f32 %v3545_v47, %v12345_v11  ;;  %v4872_v6 = vadd.f32 %v10157_v24, %v10155_v36  ;;  %7626 = vtanh.f32 %v4615_v41  ;;  %v10176_v38 = vpop.f32.mrb[124].mxu1 }
 0x96c   : > { %v10166_v19 = vmul.f32 %v4740_v29, %v4292_v16  ;;  %v10169_v9 = vadd.f32 %v9663_v27, %v3636_v26  ;;  %v4294_v39 = vmul.f32 0.5, %v9840_v18  ;;  %7628 = vtanh.f32 %v4616_v43  ;;  %v10183_v46 = vpop.f32.mrb[125].mxu1 }
 0x96d   : > { %12344 = vst [vmem:[#allocation82_spill] sm:$0xff] %v10160_v23  ;;  %v10173_v44 = vadd.f32 %v9667_v5, %v3637_v42  ;;  %v4361_v33 = vmul.f32 0.044715, %v9871_v0  ;;  %4873 = vadd.xlane.f32.xlu1 %v4872_v6  ;;  %v4295_v16 = vmul.f32 0.5, %v9846_v2  ;;  %v4296_v41 = vmul.f32 0.5, %v12336_v37  ;;  %v10189_v25 = vpop.f32.mrb[126].mxu1 }
 0x96e   : > { %12346 = vst [vmem:[#allocation84_spill] sm:$0xff] %v10166_v19  ;;  %v4875_v8 = vadd.f32 %v10166_v19, %v10160_v23  ;;  %v4362_v26 = vmul.f32 0.044715, %v9879_v28  ;;  %v4363_v47 = vmul.f32 0.044715, %v9885_v55  ;;  %v3511_v20 = vrot.slane %v10083_v4, 1 }
 0x96f   : > { %v4425_v18 = vmul.f32 %v4361_v33, %v9871_v0  ;;  %v4364_v22 = vmul.f32 0.044715, %v9891_v40  ;;  %v3512_v2 = vrot.slane %v10090_v13, 1  ;;  %v12012_v37 = vrot.slane %v10096_v30, 1  ;;  %v10195_v61 = vpop.f32.mrb[127].mxu1  ;;  %v12348_v13 = vld [vmem:[#allocation61_spill] sm:$0xff] }
 0x970   : > { %4876 = vadd.xlane.f32.xlu0 %v4875_v8  ;;  %v4426_v59 = vmul.f32 %v4362_v26, %v9879_v28  ;;  %v4427_v29 = vmul.f32 %v4363_v47, %v9885_v55  ;;  %v12347_v4 = vrot.slane %v10054_v53, 1  ;;  %v12349_v8 = vrot.slane %v10061_v7, 1 }
 0x971   : > { %v4489_v43 = vmul.f32 %v4425_v18, %v9871_v0  ;;  %v4428_v11 = vmul.f32 %v4364_v22, %v9891_v40  ;;  %v3540_v18 = vsel %vm3527_vm8, %v3511_v20, %v12012_v37  ;;  %v12352_v19 = vrot.slane %v10109_v1, 1 }
 0x972   : > { %v3542_v42 = vsel %vm3527_vm8, %v12347_v4, %v3511_v20  ;;  %v4490_v6 = vmul.f32 %v4426_v59, %v9879_v28  ;;  %v3543_v26 = vsel %vm3527_vm8, %v12349_v8, %v3512_v2  ;;  %v4491_v53 = vmul.f32 %v4427_v29, %v9885_v55  ;;  %v12350_v4 = vld [vmem:[#allocation23_spill] sm:$0xff] }
 0x973   : > { %v3638_v33 = vadd.f32 %v3542_v42, %v12348_v13  ;;  %v4553_v47 = vadd.f32 %v4489_v43, %v9871_v0  ;;  %v4492_v22 = vmul.f32 %v4428_v11, %v9891_v40  ;;  %v3639_v59 = vadd.f32 %v3543_v26, %v12350_v4  ;;  %v7623_v45 = vpop.eup %7622  ;;  %v12351_v13 = vld [vmem:[#allocation47_spill] sm:$0xff]  ;;  %v10229_v4 = vpop.f32.mrb[128].mxu1 }
 0x974   : > { %v4554_v42 = vadd.f32 %v4490_v6, %v9879_v28  ;;  %v3640_v8 = vadd.f32 %v3540_v18, %v12351_v13  ;;  %v3541_v20 = vsel %vm3527_vm8, %v3512_v2, %v12352_v19  ;;  %v7625_v43 = vpop.eup %7624  ;;  %v4741_v37 = vadd.f32 1.0, %v7623_v45  ;;  %v10237_v13 = vpop.f32.mrb[129].mxu1 }
 0x975   : > { %v10220_v7 = vadd.f32 %v9663_v27, %v3638_v33  ;;  %v4617_v29 = vmul.f32 0.7978846, %v4553_v47  ;;  %v4555_v11 = vadd.f32 %v4491_v53, %v9885_v55  ;;  %v4556_v26 = vadd.f32 %v4492_v22, %v9891_v40  ;;  %v7627_v6 = vpop.eup %7626  ;;  %v10241_v53 = vpop.f32.mrb[130].mxu1 }
 0x976   : > { %v4742_v23 = vadd.f32 1.0, %v7625_v43  ;;  %v4618_v33 = vmul.f32 0.7978846, %v4554_v42  ;;  %v10232_v24 = vadd.f32 %v9667_v5, %v3639_v59  ;;  %v10235_v18 = vadd.f32 %v9663_v27, %v3640_v8  ;;  %v7629_v19 = vpop.eup %7628  ;;  %v10245_v59 = vpop.f32.mrb[131].mxu1 }
 0x977   : > { %v10239_v2 = vmul.f32 %v4741_v37, %v4293_v51  ;;  %v4743_v45 = vadd.f32 1.0, %v7627_v6  ;;  %7630 = vtanh.f32 %v4617_v29  ;;  %v4619_v47 = vmul.f32 0.7978846, %v4555_v11 }
 0x978   : > { %12353 = vst [vmem:[#allocation85_spill] sm:$0xff] %v10235_v18  ;;  %v10243_v22 = vmul.f32 %v4742_v23, %v4294_v39  ;;  %v4744_v43 = vadd.f32 1.0, %v7629_v19  ;;  %7632 = vtanh.f32 %v4618_v33  ;;  %v4620_v42 = vmul.f32 0.7978846, %v4556_v26  ;;  %v12357_v18 = vld [vmem:[#allocation48_spill] sm:$0xff] }
 0x979   : > { %12354 = vst [vmem:[#allocation86_spill] sm:$0xff] %v10239_v2  ;;  %v10247_v36 = vmul.f32 %v4743_v45, %v4295_v16  ;;  %v4297_v8 = vmul.f32 0.5, %v9871_v0  ;;  %7634 = vtanh.f32 %v4619_v47  ;;  %v3641_v51 = vadd.f32 %v3541_v20, %v12357_v18 }
 0x97a   : > { %12355 = vst [vmem:[#allocation87_spill] sm:$0xff] %v10243_v22  ;;  %v4878_v37 = vadd.f32 %v10243_v22, %v10239_v2  ;;  %v10253_v29 = vmul.f32 %v4744_v43, %v4296_v41  ;;  %v4298_v23 = vmul.f32 0.5, %v9879_v28  ;;  %7636 = vtanh.f32 %v4620_v42 }
 0x97b   : > { %12356 = vst [vmem:[#allocation33_spill] sm:$0xff] %v10247_v36  ;;  %v4299_v39 = vmul.f32 0.5, %v9885_v55  ;;  %v10258_v11 = vadd.f32 %v9667_v5, %v3641_v51  ;;  %v4365_v16 = vmul.f32 0.044715, %v9910_v56  ;;  %v4366_v0 = vmul.f32 0.044715, %v9916_v17 }
 0x97c   : > { %12358 = vst [vmem:[#allocation39_spill] sm:$0xff] %v10253_v29  ;;  %4879 = vadd.xlane.f32.xlu1 %v4878_v37  ;;  %v4881_v20 = vadd.f32 %v10253_v29, %v10247_v36  ;;  %v4300_v26 = vmul.f32 0.5, %v9891_v40  ;;  %v4367_v41 = vmul.f32 0.044715, %v9921_v31  ;;  %v4368_v28 = vmul.f32 0.044715, %v9928_v34 }
 0x97d   : > { %v4429_v6 = vmul.f32 %v4365_v16, %v9910_v56  ;;  %v4430_v55 = vmul.f32 %v4366_v0, %v9916_v17  ;;  %v3515_v33 = vrot.slane %v10129_v35, 1  ;;  %v3516_v18 = vrot.slane %v10141_v58, 1  ;;  %v12361_v0 = vld [vmem:[#allocation50_spill] sm:$0xff] }
 0x97e   : > { %4882 = vadd.xlane.f32.xlu0 %v4881_v20  ;;  %v4431_v19 = vmul.f32 %v4367_v41, %v9921_v31  ;;  %v4432_v45 = vmul.f32 %v4368_v28, %v9928_v34  ;;  %v3517_v47 = vrot.slane %v10148_v54, 1  ;;  %v3518_v40 = vrot.slane %v10153_v3, 1  ;;  %v12362_v20 = vld [vmem:[#allocation51_spill] sm:$0xff] }
 0x97f   : > { %v4493_v43 = vmul.f32 %v4429_v6, %v9910_v56  ;;  %v4494_v42 = vmul.f32 %v4430_v55, %v9916_v17  ;;  %v12359_v51 = vrot.slane %v10096_v30, 1  ;;  %v12360_v58 = vrot.slane %v10109_v1, 1 }
 0x980   : > { %v4495_v16 = vmul.f32 %v4431_v19, %v9921_v31  ;;  %v4496_v54 = vmul.f32 %v4432_v45, %v9928_v34  ;;  %v3536_v55 = vsel %vm3527_vm8, %v3515_v33, %v3517_v47  ;;  %v3537_v1 = vsel %vm3527_vm8, %v3516_v18, %v3518_v40 }
 0x981   : > { %v3538_v35 = vsel %vm3527_vm8, %v12359_v51, %v3515_v33  ;;  %v3539_v37 = vsel %vm3527_vm8, %v12360_v58, %v3516_v18  ;;  %v7631_v28 = vpop.eup %7630  ;;  %v4557_v6 = vadd.f32 %v4493_v43, %v9910_v56  ;;  %v4558_v30 = vadd.f32 %v4494_v42, %v9916_v17 }
 0x982   : > { %v3642_v3 = vadd.f32 %v3538_v35, %v12361_v0  ;;  %v3643_v41 = vadd.f32 %v3539_v37, %v12362_v20  ;;  %v7633_v51 = vpop.eup %7632  ;;  %v4745_v58 = vadd.f32 1.0, %v7631_v28  ;;  %v4559_v19 = vadd.f32 %v4495_v16, %v9921_v31 }
 0x983   : > { %v4560_v45 = vadd.f32 %v4496_v54, %v9928_v34  ;;  %v7635_v37 = vpop.eup %7634  ;;  %v4746_v0 = vadd.f32 1.0, %v7633_v51  ;;  %v4621_v43 = vmul.f32 0.7978846, %v4557_v6  ;;  %v4622_v20 = vmul.f32 0.7978846, %v4558_v30  ;;  %v12364_v54 = vld [vmem:[#allocation67_spill] sm:$0xff] }
 0x984   : > { %v10298_v35 = vadd.f32 %v9663_v27, %v3642_v3  ;;  %v10301_v42 = vadd.f32 %v9667_v5, %v3643_v41  ;;  %v7637_v33 = vpop.eup %7636  ;;  %v10303_v29 = vmul.f32 %v4745_v58, %v4297_v8  ;;  %v4747_v18 = vadd.f32 1.0, %v7635_v37  ;;  %v12366_v6 = vld [vmem:[#allocation68_spill] sm:$0xff]  ;;  %v10319_v58 = vld [vmem:[#allocation3 + $0x100] sm:$0xff] }
 0x985   : > { %v4623_v36 = vmul.f32 0.7978846, %v4559_v19  ;;  %v4624_v28 = vmul.f32 0.7978846, %v4560_v45  ;;  %v10305_v22 = vmul.f32 %v4746_v0, %v4298_v23  ;;  %v4748_v16 = vadd.f32 1.0, %v7637_v33  ;;  %v10332_v37 = vld [vmem:[#allocation3 + $0x108] sm:$0xff] }
 0x986   : > { %7638 = vtanh.f32 %v4621_v43  ;;  %v3644_v3 = vadd.f32 %v3536_v55, %v12364_v54  ;;  %v10308_v2 = vmul.f32 %v4747_v18, %v4299_v39  ;;  %v3645_v30 = vadd.f32 %v3537_v1, %v12366_v6  ;;  %v12368_v1 = vld [vmem:[#allocation24_spill] sm:$0xff]  ;;  %v12371_v54 = vld [vmem:[#allocation58_spill] sm:$0xff] }
 0x987   : > { %12363 = vst [vmem:[#allocation75_spill] sm:$0xff] %v10305_v22  ;;  %7640 = vtanh.f32 %v4622_v20  ;;  %v3519_v41 = vrot.slane %v10176_v38, 1  ;;  %v4884_v8 = vadd.f32 %v10305_v22, %v10303_v29  ;;  %v10314_v51 = vmul.f32 %v4748_v16, %v4300_v26  ;;  %v10339_v20 = vld [vmem:[#allocation3 + $0xf0] sm:$0xff] }
 0x988   : > { %12365 = vst [vmem:[#allocation37_spill] sm:$0xff] %v10308_v2  ;;  %7642 = vtanh.f32 %v4623_v36  ;;  %v10317_v23 = vadd.f32 %v9663_v27, %v3644_v3  ;;  %v10322_v39 = vadd.f32 %v9667_v5, %v3645_v30  ;;  %v3520_v38 = vrot.slane %v10183_v46, 1  ;;  %v10353_v30 = vld [vmem:[#allocation3 + $0xf8] sm:$0xff]  ;;  %v12372_v22 = vld [vmem:[#allocation53_spill] sm:$0xff] }
 0x989   : > { %12367 = vst [vmem:[#allocation77_spill] sm:$0xff] %v10314_v51  ;;  %7644 = vtanh.f32 %v4624_v28  ;;  %v3534_v55 = vsel %vm3527_vm8, %v3517_v47, %v3519_v41  ;;  %4885 = vadd.xlane.f32.xlu1 %v4884_v8  ;;  %v4887_v26 = vadd.f32 %v10314_v51, %v10308_v2  ;;  %v3521_v19 = vrot.slane %v10189_v25, 1  ;;  %v12369_v25 = vld [vmem:[#allocation52_spill] sm:$0xff] }
 0x98a   : > { %v3646_v36 = vadd.f32 %v3534_v55, %v12368_v1  ;;  %v3522_v45 = vrot.slane %v10195_v61, 1  ;;  %v4301_v43 = vmul.f32 0.5, %v9910_v56  ;;  %v3535_v47 = vsel %vm3527_vm8, %v3518_v40, %v3520_v38  ;;  %v12370_v56 = vld [vmem:[#allocation26_spill] sm:$0xff] }
 0x98b   : > { %v4371_v46 = vmul.f32 0.044715, %v10319_v58  ;;  %4888 = vadd.xlane.f32.xlu0 %v4887_v26  ;;  %v3647_v18 = vadd.f32 %v3535_v47, %v12369_v25  ;;  %v3532_v61 = vsel %vm3527_vm8, %v3519_v41, %v3521_v19  ;;  %v4372_v3 = vmul.f32 0.044715, %v10332_v37 }
 0x98c   : > { %v10342_v33 = vadd.f32 %v9663_v27, %v3646_v36  ;;  %v3533_v28 = vsel %vm3527_vm8, %v3520_v38, %v3522_v45  ;;  %v3648_v16 = vadd.f32 %v3532_v61, %v12370_v56  ;;  %v4302_v8 = vmul.f32 0.5, %v9916_v17 }
 0x98d   : > { %v3649_v40 = vadd.f32 %v3533_v28, %v12371_v54  ;;  %v4435_v6 = vmul.f32 %v4371_v46, %v10319_v58  ;;  %v4303_v55 = vmul.f32 0.5, %v9921_v31  ;;  %v10358_v26 = vadd.f32 %v9667_v5, %v3647_v18 }
 0x98e   : > { %v4369_v41 = vmul.f32 0.044715, %v10339_v20  ;;  %v10362_v38 = vadd.f32 %v9663_v27, %v3648_v16  ;;  %v4436_v36 = vmul.f32 %v4372_v3, %v10332_v37  ;;  %v4304_v17 = vmul.f32 0.5, %v9928_v34 }
 0x98f   : > { %v10365_v1 = vadd.f32 %v9667_v5, %v3649_v40  ;;  %v4499_v47 = vmul.f32 %v4435_v6, %v10319_v58  ;;  %v4370_v31 = vmul.f32 0.044715, %v10353_v30  ;;  %v3523_v18 = vrot.slane %v10229_v4, 1 }
 0x990   : > { %v7639_v46 = vpop.eup %7638  ;;  %v4433_v25 = vmul.f32 %v4369_v41, %v10339_v20  ;;  %v4500_v56 = vmul.f32 %v4436_v36, %v10332_v37  ;;  %v3524_v54 = vrot.slane %v10237_v13, 1 }
 0x991   : > { %v7641_v61 = vpop.eup %7640  ;;  %v4749_v28 = vadd.f32 1.0, %v7639_v46  ;;  %v4563_v16 = vadd.f32 %v4499_v47, %v10319_v58  ;;  %v4434_v6 = vmul.f32 %v4370_v31, %v10353_v30  ;;  %v3530_v0 = vsel %vm3527_vm8, %v3521_v19, %v3523_v18 }
 0x992   : > { %v7643_v40 = vpop.eup %7642  ;;  %v4750_v3 = vadd.f32 1.0, %v7641_v61  ;;  %v4497_v34 = vmul.f32 %v4433_v25, %v10339_v20  ;;  %v4564_v46 = vadd.f32 %v4500_v56, %v10332_v37  ;;  %v3650_v19 = vadd.f32 %v3530_v0, %v12372_v22 }
 0x993   : > { %v7645_v41 = vpop.eup %7644  ;;  %v10380_v51 = vmul.f32 %v4749_v28, %v4301_v43  ;;  %v4751_v4 = vadd.f32 1.0, %v7643_v40  ;;  %v4627_v36 = vmul.f32 0.7978846, %v4563_v16  ;;  %v4498_v13 = vmul.f32 %v4434_v6, %v10353_v30 }
 0x994   : > { %v10383_v2 = vmul.f32 %v4750_v3, %v4302_v8  ;;  %v4752_v47 = vadd.f32 1.0, %v7645_v41  ;;  %v4561_v61 = vadd.f32 %v4497_v34, %v10339_v20  ;;  %v4628_v25 = vmul.f32 0.7978846, %v4564_v46 }
 0x995   : > { %v10387_v31 = vmul.f32 %v4751_v4, %v4303_v55  ;;  %7646 = vtanh.f32 %v4627_v36  ;;  %v4562_v56 = vadd.f32 %v4498_v13, %v10353_v30  ;;  %v4156_v16 = vrot.slane %v9945_v63, 2 }
 0x996   : > { %v4890_v43 = vadd.f32 %v10383_v2, %v10380_v51  ;;  %v10392_v28 = vmul.f32 %v4752_v47, %v4304_v17  ;;  %v4625_v8 = vmul.f32 0.7978846, %v4561_v61  ;;  %7648 = vtanh.f32 %v4628_v25  ;;  %v12373_v17 = vld [vmem:[#allocation54_spill] sm:$0xff]  ;;  %v12374_v61 = vld [vmem:[#allocation63_spill] sm:$0xff] }
 0x997   : > { %v10397_v40 = vadd.f32 %v9663_v27, %v3650_v19  ;;  %v3531_v55 = vsel %vm3527_vm8, %v3522_v45, %v3524_v54  ;;  %v4626_v0 = vmul.f32 0.7978846, %v4562_v56  ;;  %v4375_v6 = vmul.f32 0.044715, %v10023_v52  ;;  %v12376_v25 = vld [vmem:[#allocation59_spill] sm:$0xff]  ;;  %v12377_v19 = vld [vmem:[#allocation64_spill] sm:$0xff] }
 0x998   : > { %4891 = vadd.xlane.f32.xlu1 %v4890_v43  ;;  %v4893_v22 = vadd.f32 %v10392_v28, %v10387_v31  ;;  %7650 = vtanh.f32 %v4625_v8  ;;  %v3651_v3 = vadd.f32 %v3531_v55, %v12373_v17  ;;  %v4376_v34 = vmul.f32 0.044715, %v10028_v48  ;;  %v12378_v56 = vld [vmem:[#allocation66_spill] sm:$0xff] }
 0x999   : > { %v3525_v63 = vrot.slane %v10241_v53, 1  ;;  %v3526_v41 = vrot.slane %v10245_v59, 1  ;;  %v4307_v4 = vmul.f32 0.5, %v10319_v58  ;;  %v4308_v45 = vmul.f32 0.5, %v10332_v37 }
 0x99a   : > { %4894 = vadd.xlane.f32.xlu0 %v4893_v22  ;;  %7652 = vtanh.f32 %v4626_v0  ;;  %v10411_v46 = vadd.f32 %v9667_v5, %v3651_v3  ;;  %v4439_v36 = vmul.f32 %v4375_v6, %v10023_v52  ;;  %v4440_v47 = vmul.f32 %v4376_v34, %v10028_v48  ;;  %v12380_v0 = vld [vmem:[#allocation60_spill] sm:$0xff]  ;;  %v12381_v3 = vld [vmem:[#allocation62_spill] sm:$0xff] }
 0x99b   : > { %v3528_v13 = vsel %vm3527_vm8, %v3523_v18, %v3525_v63  ;;  %v12375_v53 = vrot.slane %v12374_v61, 1  ;;  %v3529_v43 = vsel %vm3527_vm8, %v3524_v54, %v3526_v41  ;;  %v12379_v8 = vrot.slane %v12378_v56, 1 }
 0x99c   : > { %v3652_v58 = vadd.f32 %v3528_v13, %v12376_v25  ;;  %v4503_v22 = vmul.f32 %v4439_v36, %v10023_v52  ;;  %v4504_v18 = vmul.f32 %v4440_v47, %v10028_v48  ;;  %v3653_v17 = vadd.f32 %v3529_v43, %v12380_v0 }
 0x99d   : > { %v3590_v59 = vsel %vm3527_vm8, %v3525_v63, %v12375_v53  ;;  %v3591_v55 = vsel %vm3527_vm8, %v3526_v41, %v12379_v8  ;;  %v4373_v54 = vmul.f32 0.044715, %v10004_v21  ;;  %v4374_v13 = vmul.f32 0.044715, %v10007_v57 }
 0x99e   : > { %v3654_v37 = vadd.f32 %v3590_v59, %v12377_v19  ;;  %v3655_v6 = vadd.f32 %v3591_v55, %v12381_v3  ;;  %v10434_v34 = vadd.f32 %v9663_v27, %v3652_v58  ;;  %v4567_v12 = vadd.f32 %v4503_v22, %v10023_v52 }
 0x99f   : > { %v7647_v61 = vpop.eup %7646  ;;  %v4568_v41 = vadd.f32 %v4504_v18, %v10028_v48  ;;  %v10442_v36 = vadd.f32 %v9667_v5, %v3653_v17  ;;  %v12382_v59 = vrot.slane %v9933_v14, 2  ;;  %v4438_v58 = vmul.f32 %v4374_v13, %v10007_v57 }
 0x9a0   : > { %v3730_v63 = vadd.f32 %v9663_v27, %v3654_v37  ;;  %v3731_v47 = vadd.f32 %v9667_v5, %v3655_v6  ;;  %v4755_v53 = vadd.f32 1.0, %v7647_v61  ;;  %v4437_v27 = vmul.f32 %v4373_v54, %v10004_v21  ;;  %v7649_v19 = vpop.eup %7648 }
 0x9a1   : > { %v4305_v37 = vmul.f32 0.5, %v10339_v20  ;;  %v4631_v43 = vmul.f32 0.7978846, %v4567_v12  ;;  %v4632_v56 = vmul.f32 0.7978846, %v4568_v41  ;;  %v4756_v22 = vadd.f32 1.0, %v7649_v19 }
 0x9a2   : > { %4072 = vst [vmem:[#allocation3 + $0x1f0] sm:$0xff] %v3730_v63  ;;  %v4163_v25 = vsub.f32 %v3730_v63, %v12382_v59  ;;  %4073 = vst [vmem:[#allocation3 + $0x1f8] sm:$0xff] %v3731_v47  ;;  %v4164_v8 = vsub.f32 %v3731_v47, %v4156_v16  ;;  %v7651_v55 = vpop.eup %7650  ;;  %v10450_v18 = vmul.f32 %v4755_v53, %v4307_v4  ;;  %v4306_v0 = vmul.f32 0.5, %v10353_v30 }
 0x9a3   : > { %v4501_v5 = vmul.f32 %v4437_v27, %v10004_v21  ;;  %v4502_v14 = vmul.f32 %v4438_v58, %v10007_v57  ;;  %v4753_v17 = vadd.f32 1.0, %v7651_v55  ;;  %7654 = vtanh.f32 %v4631_v43 }
 0x9a4   : > { %v4186_v3 = vcombine.high %v4163_v25, %v4164_v8  ;;  %v7653_v6 = vpop.eup %7652  ;;  %v10455_v63 = vmul.f32 %v4756_v22, %v4308_v45  ;;  %7656 = vtanh.f32 %v4632_v56  ;;  %v4379_v61 = vmul.f32 0.044715, %v10081_v62 }
 0x9a5   : > { %v4565_v20 = vadd.f32 %v4501_v5, %v10004_v21  ;;  %v4566_v16 = vadd.f32 %v4502_v14, %v10007_v57  ;;  %v4754_v54 = vadd.f32 1.0, %v7653_v6  ;;  %v10459_v4 = vmul.f32 %v4753_v17, %v4305_v37 }
 0x9a6   : > { %v4193_v13 = vrot.slane %v4186_v3, %v8368_v10  ;;  %v4899_v30 = vadd.f32 %v10455_v63, %v10450_v18  ;;  %v4380_v45 = vmul.f32 0.044715, %v10105_v49  ;;  %v4443_v59 = vmul.f32 %v4379_v61, %v10081_v62 }
 0x9a7   : > { %v4629_v12 = vmul.f32 0.7978846, %v4565_v20  ;;  %v4630_v41 = vmul.f32 0.7978846, %v4566_v16  ;;  %v10466_v47 = vmul.f32 %v4754_v54, %v4306_v0  ;;  %v4377_v27 = vmul.f32 0.044715, %v10071_v50 }
 0x9a8   : > { %v4194_v53 = vcombine.high %v4193_v13, %v4193_v13  ;;  %4900 = vadd.xlane.f32.xlu0 %v4899_v30  ;;  %v4444_v25 = vmul.f32 %v4380_v45, %v10105_v49  ;;  %v4507_v37 = vmul.f32 %v4443_v59, %v10081_v62  ;;  %v4311_v43 = vmul.f32 0.5, %v10023_v52 }
 0x9a9   : > { %7658 = vtanh.f32 %v4629_v12  ;;  %v4896_v58 = vadd.f32 %v10466_v47, %v10459_v4  ;;  %v4378_v8 = vmul.f32 0.044715, %v10078_v15  ;;  %v4441_v55 = vmul.f32 %v4377_v27, %v10071_v50 }
 0x9aa   : > { %v4201_v19 = vrot.slane %v4194_v53, %v8368_v10  ;;  %7660 = vtanh.f32 %v4630_v41  ;;  %v4508_v56 = vmul.f32 %v4444_v25, %v10105_v49  ;;  %v4312_v22 = vmul.f32 0.5, %v10028_v48 }
 0x9ab   : > { %4897 = vadd.xlane.f32.xlu1 %v4896_v58  ;;  %v4571_v14 = vadd.f32 %v4507_v37, %v10081_v62  ;;  %v4381_v0 = vmul.f32 0.044715, %v10146_v60  ;;  %v4442_v17 = vmul.f32 %v4378_v8, %v10078_v15  ;;  %v4505_v52 = vmul.f32 %v4441_v55, %v10071_v50 }
 0x9ac   : > { %v4202_v5 = vcombine.high %v4201_v19, %v4201_v19  ;;  %v4572_v10 = vadd.f32 %v4508_v56, %v10105_v49  ;;  %v4382_v3 = vmul.f32 0.044715, %v10151_v32  ;;  %v4309_v16 = vmul.f32 0.5, %v10004_v21 }
 0x9ad   : > { %v7655_v6 = vpop.eup %7654  ;;  %v4310_v48 = vmul.f32 0.5, %v10007_v57  ;;  %v4635_v54 = vmul.f32 0.7978846, %v4571_v14  ;;  %v4445_v13 = vmul.f32 %v4381_v0, %v10146_v60  ;;  %v4506_v41 = vmul.f32 %v4442_v17, %v10078_v15 }
 0x9ae   : > { %4209 = vst.msk [vmem:[#allocation3 + $0x1f7] ss:$8 sm:$0x3] %vm8601_vm6, %v4202_v5  ;;  %v7657_v61 = vpop.eup %7656  ;;  %v4759_v30 = vadd.f32 1.0, %v7655_v6  ;;  %v4636_v12 = vmul.f32 0.7978846, %v4572_v10  ;;  %v4569_v45 = vadd.f32 %v4505_v52, %v10071_v50  ;;  %v4446_v59 = vmul.f32 %v4382_v3, %v10151_v32 }
 0x9af   : > { %v4760_v53 = vadd.f32 1.0, %v7657_v61  ;;  %7662 = vtanh.f32 %v4635_v54  ;;  %v4509_v25 = vmul.f32 %v4445_v13, %v10146_v60  ;;  %v4570_v21 = vadd.f32 %v4506_v41, %v10078_v15 }
 0x9b0   : > { %v10495_v27 = vmul.f32 %v4759_v30, %v4311_v43  ;;  %7664 = vtanh.f32 %v4636_v12  ;;  %v4633_v57 = vmul.f32 0.7978846, %v4569_v45  ;;  %v4510_v19 = vmul.f32 %v4446_v59, %v10151_v32 }
 0x9b1   : > { %v10498_v58 = vmul.f32 %v4760_v53, %v4312_v22  ;;  %v4573_v37 = vadd.f32 %v4509_v25, %v10146_v60  ;;  %v4383_v56 = vmul.f32 0.044715, %v10169_v9  ;;  %v4315_v55 = vmul.f32 0.5, %v10081_v62 }
 0x9b2   : > { %v4634_v5 = vmul.f32 0.7978846, %v4570_v21  ;;  %7666 = vtanh.f32 %v4633_v57  ;;  %v4384_v43 = vmul.f32 0.044715, %v10173_v44  ;;  %v4574_v22 = vadd.f32 %v4510_v19, %v10151_v32 }
 0x9b3   : > { %v7659_v8 = vpop.eup %7658  ;;  %v4905_v0 = vadd.f32 %v10498_v58, %v10495_v27  ;;  %v4637_v17 = vmul.f32 0.7978846, %v4573_v37  ;;  %v4447_v3 = vmul.f32 %v4383_v56, %v10169_v9  ;;  %v4316_v20 = vmul.f32 0.5, %v10105_v49 }
 0x9b4   : > { %v7661_v14 = vpop.eup %7660  ;;  %v4757_v10 = vadd.f32 1.0, %v7659_v8  ;;  %7668 = vtanh.f32 %v4634_v5  ;;  %v4448_v6 = vmul.f32 %v4384_v43, %v10173_v44  ;;  %v4638_v54 = vmul.f32 0.7978846, %v4574_v22 }
 0x9b5   : > { %v4758_v52 = vadd.f32 1.0, %v7661_v14  ;;  %4906 = vadd.xlane.f32.xlu0 %v4905_v0  ;;  %7670 = vtanh.f32 %v4637_v17  ;;  %v4511_v61 = vmul.f32 %v4447_v3, %v10169_v9  ;;  %v4385_v12 = vmul.f32 0.044715, %v10220_v7 }
 0x9b6   : > { %v10510_v62 = vmul.f32 %v4757_v10, %v4309_v16  ;;  %v4512_v30 = vmul.f32 %v4448_v6, %v10173_v44  ;;  %v4313_v41 = vmul.f32 0.5, %v10071_v50  ;;  %v4314_v45 = vmul.f32 0.5, %v10078_v15  ;;  %v12384_v50 = vld [vmem:[#allocation85_spill] sm:$0xff] }
 0x9b7   : > { %v10513_v13 = vmul.f32 %v4758_v52, %v4310_v48  ;;  %7672 = vtanh.f32 %v4638_v54  ;;  %v4386_v16 = vmul.f32 0.044715, %v10232_v24  ;;  %v4575_v53 = vadd.f32 %v4511_v61, %v10169_v9 }
 0x9b8   : > { %v4576_v48 = vadd.f32 %v4512_v30, %v10173_v44  ;;  %v4449_v59 = vmul.f32 %v4385_v12, %v10220_v7  ;;  %v4317_v21 = vmul.f32 0.5, %v10146_v60  ;;  %v4387_v19 = vmul.f32 0.044715, %v12384_v50 }
 0x9b9   : > { %v4902_v49 = vadd.f32 %v10513_v13, %v10510_v62  ;;  %v7663_v25 = vpop.eup %7662  ;;  %v4450_v57 = vmul.f32 %v4386_v16, %v10232_v24  ;;  %v4388_v15 = vmul.f32 0.044715, %v10258_v11  ;;  %v4639_v8 = vmul.f32 0.7978846, %v4575_v53 }
 0x9ba   : > { %v7665_v37 = vpop.eup %7664  ;;  %v4763_v56 = vadd.f32 1.0, %v7663_v25  ;;  %v4640_v5 = vmul.f32 0.7978846, %v4576_v48  ;;  %v4513_v43 = vmul.f32 %v4449_v59, %v10220_v7  ;;  %v4451_v10 = vmul.f32 %v4387_v19, %v12384_v50 }
 0x9bb   : > { %4903 = vadd.xlane.f32.xlu1 %v4902_v49  ;;  %v4764_v14 = vadd.f32 1.0, %v7665_v37  ;;  %v4514_v0 = vmul.f32 %v4450_v57, %v10232_v24  ;;  %v4452_v60 = vmul.f32 %v4388_v15, %v10258_v11  ;;  %v4318_v52 = vmul.f32 0.5, %v10151_v32 }
 0x9bc   : > { %v7667_v22 = vpop.eup %7666  ;;  %v10534_v17 = vmul.f32 %v4763_v56, %v4315_v55  ;;  %7674 = vtanh.f32 %v4639_v8  ;;  %v4577_v3 = vadd.f32 %v4513_v43, %v10220_v7  ;;  %v4515_v16 = vmul.f32 %v4451_v10, %v12384_v50 }
 0x9bd   : > { %v10538_v6 = vmul.f32 %v4764_v14, %v4316_v20  ;;  %v4761_v54 = vadd.f32 1.0, %v7667_v22  ;;  %7676 = vtanh.f32 %v4640_v5  ;;  %v4578_v61 = vadd.f32 %v4514_v0, %v10232_v24 }
 0x9be   : > { %v7669_v30 = vpop.eup %7668  ;;  %v4641_v12 = vmul.f32 0.7978846, %v4577_v3  ;;  %v4516_v49 = vmul.f32 %v4452_v60, %v10258_v11  ;;  %v4389_v55 = vmul.f32 0.044715, %v10298_v35  ;;  %v4579_v57 = vadd.f32 %v4515_v16, %v12384_v50 }
 0x9bf   : > { %v7671_v53 = vpop.eup %7670  ;;  %v4911_v32 = vadd.f32 %v10538_v6, %v10534_v17  ;;  %v4762_v48 = vadd.f32 1.0, %v7669_v30  ;;  %v10546_v59 = vmul.f32 %v4761_v54, %v4313_v41  ;;  %v4642_v20 = vmul.f32 0.7978846, %v4578_v61 }
 0x9c0   : > { %v4765_v25 = vadd.f32 1.0, %v7671_v53  ;;  %7678 = vtanh.f32 %v4641_v12  ;;  %v4580_v19 = vadd.f32 %v4516_v49, %v10258_v11  ;;  %v4390_v56 = vmul.f32 0.044715, %v10301_v42 }
 0x9c1   : > { %v7673_v15 = vpop.eup %7672  ;;  %4912 = vadd.xlane.f32.xlu0 %v4911_v32  ;;  %v10550_v37 = vmul.f32 %v4762_v48, %v4314_v45  ;;  %7680 = vtanh.f32 %v4642_v20  ;;  %v4453_v8 = vmul.f32 %v4389_v55, %v10298_v35  ;;  %v4643_v41 = vmul.f32 0.7978846, %v4579_v57 }
 0x9c2   : > { %v4766_v5 = vadd.f32 1.0, %v7673_v15  ;;  %v10554_v43 = vmul.f32 %v4765_v25, %v4317_v21  ;;  %v4644_v14 = vmul.f32 0.7978846, %v4580_v19  ;;  %v4319_v10 = vmul.f32 0.5, %v10169_v9 }
 0x9c3   : > { %v4908_v0 = vadd.f32 %v10550_v37, %v10546_v59  ;;  %v4454_v60 = vmul.f32 %v4390_v56, %v10301_v42  ;;  %v4517_v45 = vmul.f32 %v4453_v8, %v10298_v35  ;;  %v4320_v3 = vmul.f32 0.5, %v10173_v44 }
 0x9c4   : > { %v10561_v22 = vmul.f32 %v4766_v5, %v4318_v52  ;;  %7682 = vtanh.f32 %v4643_v41  ;;  %v4391_v54 = vmul.f32 0.044715, %v10317_v23  ;;  %v4392_v30 = vmul.f32 0.044715, %v10322_v39 }
 0x9c5   : > { %4909 = vadd.xlane.f32.xlu1 %v4908_v0  ;;  %7684 = vtanh.f32 %v4644_v14  ;;  %v4518_v21 = vmul.f32 %v4454_v60, %v10301_v42  ;;  %v4581_v61 = vadd.f32 %v4517_v45, %v10298_v35  ;;  %v4321_v52 = vmul.f32 0.5, %v10220_v7 }
 0x9c6   : > { %v7675_v9 = vpop.eup %7674  ;;  %v4914_v12 = vadd.f32 %v10561_v22, %v10554_v43  ;;  %v4322_v16 = vmul.f32 0.5, %v10232_v24  ;;  %v4455_v44 = vmul.f32 %v4391_v54, %v10317_v23  ;;  %v4456_v48 = vmul.f32 %v4392_v30, %v10322_v39 }
 0x9c7   : > { %v7677_v49 = vpop.eup %7676  ;;  %v4767_v55 = vadd.f32 1.0, %v7675_v9  ;;  %v4582_v53 = vadd.f32 %v4518_v21, %v10301_v42  ;;  %v4645_v32 = vmul.f32 0.7978846, %v4581_v61  ;;  %v4393_v57 = vmul.f32 0.044715, %v10342_v33 }
 0x9c8   : > { %v4768_v20 = vadd.f32 1.0, %v7677_v49  ;;  %v4519_v25 = vmul.f32 %v4455_v44, %v10317_v23  ;;  %v4394_v19 = vmul.f32 0.044715, %v10358_v26  ;;  %v4520_v15 = vmul.f32 %v4456_v48, %v10322_v39 }
 0x9c9   : > { %4915 = vadd.xlane.f32.xlu1 %v4914_v12  ;;  %v10578_v7 = vmul.f32 %v4767_v55, %v4319_v10  ;;  %v4646_v24 = vmul.f32 0.7978846, %v4582_v53  ;;  %7686 = vtanh.f32 %v4645_v32  ;;  %v4457_v41 = vmul.f32 %v4393_v57, %v10342_v33 }
 0x9ca   : > { %v7679_v56 = vpop.eup %7678  ;;  %v10581_v8 = vmul.f32 %v4768_v20, %v4320_v3  ;;  %v4583_v5 = vadd.f32 %v4519_v25, %v10317_v23  ;;  %v4458_v14 = vmul.f32 %v4394_v19, %v10358_v26  ;;  %v4323_v45 = vmul.f32 0.5, %v12384_v50 }
 0x9cb   : > { %v7681_v0 = vpop.eup %7680  ;;  %v4769_v60 = vadd.f32 1.0, %v7679_v56  ;;  %7688 = vtanh.f32 %v4646_v24  ;;  %v4584_v10 = vadd.f32 %v4520_v15, %v10322_v39  ;;  %v4521_v3 = vmul.f32 %v4457_v41, %v10342_v33 }
 0x9cc   : > { %v4917_v54 = vadd.f32 %v10581_v8, %v10578_v7  ;;  %v4770_v21 = vadd.f32 1.0, %v7681_v0  ;;  %v4647_v61 = vmul.f32 0.7978846, %v4583_v5  ;;  %v4324_v9 = vmul.f32 0.5, %v10258_v11 }
 0x9cd   : > { %v10591_v30 = vmul.f32 %v4769_v60, %v4321_v52  ;;  %v4648_v12 = vmul.f32 0.7978846, %v4584_v10  ;;  %v4522_v44 = vmul.f32 %v4458_v14, %v10358_v26  ;;  %v4585_v55 = vadd.f32 %v4521_v3, %v10342_v33 }
 0x9ce   : > { %v7683_v49 = vpop.eup %7682  ;;  %4918 = vadd.xlane.f32.xlu0 %v4917_v54  ;;  %v10595_v50 = vmul.f32 %v4770_v21, %v4322_v16  ;;  %7690 = vtanh.f32 %v4647_v61  ;;  %v4395_v53 = vmul.f32 0.044715, %v10362_v38  ;;  %v4396_v20 = vmul.f32 0.044715, %v10365_v1 }
 0x9cf   : > { %v7685_v32 = vpop.eup %7684  ;;  %v4771_v48 = vadd.f32 1.0, %v7683_v49  ;;  %7692 = vtanh.f32 %v4648_v12  ;;  %v4586_v52 = vadd.f32 %v4522_v44, %v10358_v26  ;;  %v4649_v57 = vmul.f32 0.7978846, %v4585_v55 }
 0x9d0   : > { %v4920_v11 = vadd.f32 %v10595_v50, %v10591_v30  ;;  %v4772_v25 = vadd.f32 1.0, %v7685_v32  ;;  %v4459_v16 = vmul.f32 %v4395_v53, %v10362_v38  ;;  %v4460_v15 = vmul.f32 %v4396_v20, %v10365_v1 }
 0x9d1   : > { %v10604_v19 = vmul.f32 %v4771_v48, %v4323_v45  ;;  %v4650_v24 = vmul.f32 0.7978846, %v4586_v52  ;;  %v4325_v5 = vmul.f32 0.5, %v10298_v35  ;;  %7694 = vtanh.f32 %v4649_v57 }
 0x9d2   : > { %4921 = vadd.xlane.f32.xlu1 %v4920_v11  ;;  %v10607_v56 = vmul.f32 %v4772_v25, %v4324_v9  ;;  %v4523_v41 = vmul.f32 %v4459_v16, %v10362_v38  ;;  %v4524_v0 = vmul.f32 %v4460_v15, %v10365_v1  ;;  %v4397_v60 = vmul.f32 0.044715, %v10397_v40 }
 0x9d3   : > { %v7687_v14 = vpop.eup %7686  ;;  %7696 = vtanh.f32 %v4650_v24  ;;  %v4398_v45 = vmul.f32 0.044715, %v10411_v46  ;;  %v4326_v54 = vmul.f32 0.5, %v10301_v42  ;;  %v4327_v3 = vmul.f32 0.5, %v10317_v23 }
 0x9d4   : > { %v4923_v10 = vadd.f32 %v10607_v56, %v10604_v19  ;;  %v4773_v21 = vadd.f32 1.0, %v7687_v14  ;;  %v4587_v61 = vadd.f32 %v4523_v41, %v10362_v38  ;;  %v4588_v9 = vadd.f32 %v4524_v0, %v10365_v1  ;;  %v10634_v41 = vld [vmem:[#allocation3 + $0x1f0] sm:$0xff] }
 0x9d5   : > { %v7689_v35 = vpop.eup %7688  ;;  %v4461_v12 = vmul.f32 %v4397_v60, %v10397_v40  ;;  %v4462_v44 = vmul.f32 %v4398_v45, %v10411_v46  ;;  %v4399_v32 = vmul.f32 0.044715, %v10434_v34  ;;  %v4400_v23 = vmul.f32 0.044715, %v10442_v36  ;;  %v10640_v45 = vld [vmem:[#allocation3 + $0x1f8] sm:$0xff] }
 0x9d6   : > { %4924 = vadd.xlane.f32.xlu0 %v4923_v10  ;;  %v4774_v49 = vadd.f32 1.0, %v7689_v35  ;;  %v10622_v55 = vmul.f32 %v4773_v21, %v4325_v5  ;;  %v4651_v53 = vmul.f32 0.7978846, %v4587_v61  ;;  %v4652_v42 = vmul.f32 0.7978846, %v4588_v9 }
 0x9d7   : > { %v4525_v48 = vmul.f32 %v4461_v12, %v10397_v40  ;;  %v4526_v52 = vmul.f32 %v4462_v44, %v10411_v46  ;;  %v4328_v25 = vmul.f32 0.5, %v10322_v39  ;;  %v4463_v57 = vmul.f32 %v4399_v32, %v10434_v34 }
 0x9d8   : > { %v7691_v20 = vpop.eup %7690  ;;  %v10628_v11 = vmul.f32 %v4774_v49, %v4326_v54  ;;  %7698 = vtanh.f32 %v4651_v53  ;;  %v4464_v60 = vmul.f32 %v4400_v23, %v10442_v36  ;;  %v4329_v54 = vmul.f32 0.5, %v10342_v33 }
 0x9d9   : > { %v7693_v16 = vpop.eup %7692  ;;  %v4775_v24 = vadd.f32 1.0, %v7691_v20  ;;  %7700 = vtanh.f32 %v4652_v42  ;;  %v4589_v15 = vadd.f32 %v4525_v48, %v10397_v40  ;;  %v4590_v5 = vadd.f32 %v4526_v52, %v10411_v46 }
 0x9da   : > { %v4926_v14 = vadd.f32 %v10628_v11, %v10622_v55  ;;  %v4776_v0 = vadd.f32 1.0, %v7693_v16  ;;  %v4527_v39 = vmul.f32 %v4463_v57, %v10434_v34  ;;  %v4528_v12 = vmul.f32 %v4464_v60, %v10442_v36 }
 0x9db   : > { %v10642_v10 = vmul.f32 %v4775_v24, %v4327_v3  ;;  %v4653_v21 = vmul.f32 0.7978846, %v4589_v15  ;;  %v4654_v61 = vmul.f32 0.7978846, %v4590_v5  ;;  %v7695_v35 = vpop.eup %7694  ;;  %v4401_v49 = vmul.f32 0.044715, %v10634_v41 }
 0x9dc   : > { %4927 = vadd.xlane.f32.xlu1 %v4926_v14  ;;  %v10645_v9 = vmul.f32 %v4776_v0, %v4328_v25  ;;  %v4591_v44 = vadd.f32 %v4527_v39, %v10434_v34  ;;  %v4330_v32 = vmul.f32 0.5, %v10358_v26  ;;  %v4777_v42 = vadd.f32 1.0, %v7695_v35 }
 0x9dd   : > { %v7697_v53 = vpop.eup %7696  ;;  %7702 = vtanh.f32 %v4653_v21  ;;  %v4402_v3 = vmul.f32 0.044715, %v10640_v45  ;;  %v4592_v52 = vadd.f32 %v4528_v12, %v10442_v36  ;;  %v4465_v25 = vmul.f32 %v4401_v49, %v10634_v41 }
 0x9de   : > { %v4929_v33 = vadd.f32 %v10645_v9, %v10642_v10  ;;  %v4778_v48 = vadd.f32 1.0, %v7697_v53  ;;  %7704 = vtanh.f32 %v4654_v61  ;;  %v10655_v23 = vmul.f32 %v4777_v42, %v4329_v54 }
 0x9df   : > { %v4655_v20 = vmul.f32 0.7978846, %v4591_v44  ;;  %v4466_v57 = vmul.f32 %v4402_v3, %v10640_v45  ;;  %v4656_v16 = vmul.f32 0.7978846, %v4592_v52  ;;  %v4529_v24 = vmul.f32 %v4465_v25, %v10634_v41 }
 0x9e0   : > { %4930 = vadd.xlane.f32.xlu0 %v4929_v33  ;;  %v10659_v26 = vmul.f32 %v4778_v48, %v4330_v32  ;;  %v4331_v60 = vmul.f32 0.5, %v10362_v38  ;;  %v4332_v61 = vmul.f32 0.5, %v10365_v1  ;;  %v4333_v3 = vmul.f32 0.5, %v10397_v40 }
 0x9e1   : > { %7706 = vtanh.f32 %v4655_v20  ;;  %v4530_v15 = vmul.f32 %v4466_v57, %v10640_v45  ;;  %v4593_v54 = vadd.f32 %v4529_v24, %v10634_v41  ;;  %v4334_v48 = vmul.f32 0.5, %v10411_v46 }
 0x9e2   : > { %v7699_v5 = vpop.eup %7698  ;;  %v4932_v14 = vadd.f32 %v10659_v26, %v10655_v23  ;;  %7708 = vtanh.f32 %v4656_v16  ;;  %v4335_v16 = vmul.f32 0.5, %v10434_v34  ;;  %v4336_v40 = vmul.f32 0.5, %v10442_v36 }
 0x9e3   : > { %v7701_v0 = vpop.eup %7700  ;;  %v4779_v39 = vadd.f32 1.0, %v7699_v5  ;;  %v4594_v21 = vadd.f32 %v4530_v15, %v10640_v45  ;;  %v4657_v44 = vmul.f32 0.7978846, %v4593_v54  ;;  %v4337_v54 = vmul.f32 0.5, %v10634_v41 }
 0x9e4   : > { %4933 = vadd.xlane.f32.xlu1 %v4932_v14  ;;  %v4780_v35 = vadd.f32 1.0, %v7701_v0 }
 0x9e5   : > { %v10669_v12 = vmul.f32 %v4779_v39, %v4331_v60  ;;  %v4658_v49 = vmul.f32 0.7978846, %v4594_v21  ;;  %7710 = vtanh.f32 %v4657_v44  ;;  %v4338_v21 = vmul.f32 0.5, %v10640_v45 }
 0x9e6   : > { %v10671_v53 = vmul.f32 %v4780_v35, %v4332_v61 }
 0x9e7   : > { %v7703_v32 = vpop.eup %7702  ;;  %7712 = vtanh.f32 %v4658_v49  ;;  %v4853_v49 = vpop.xlane.xlu0 %4852 }
 0x9e8   : > { %v7705_v42 = vpop.eup %7704  ;;  %v4935_v38 = vadd.f32 %v10671_v53, %v10669_v12  ;;  %v4781_v33 = vadd.f32 1.0, %v7703_v32  ;;  %v4856_v32 = vpop.xlane.xlu1 %4855 }
 0x9e9   : > { %v4782_v1 = vadd.f32 1.0, %v7705_v42 }
 0x9ea   : > { %4936 = vadd.xlane.f32.xlu0 %v4935_v38  ;;  %v10677_v52 = vmul.f32 %v4781_v33, %v4333_v3  ;;  %v4947_v38 = vmul.f32 0.00390625, %v4853_v49  ;;  %v4948_v3 = vmul.f32 0.00390625, %v4856_v32 }
 0x9eb   : > { %v7707_v20 = vpop.eup %7706  ;;  %v10679_v25 = vmul.f32 %v4782_v1, %v4334_v48  ;;  %v4859_v42 = vpop.xlane.xlu0 %4858 }
 0x9ec   : > { %v7709_v57 = vpop.eup %7708  ;;  %v4783_v24 = vadd.f32 1.0, %v7707_v20  ;;  %v4949_v33 = vmul.f32 0.00390625, %v4859_v42  ;;  %v4979_v41 = vadd.f32 %v4948_v3, %v4947_v38  ;;  %v4862_v48 = vpop.xlane.xlu1 %4861 }
 0x9ed   : > { %v4938_v15 = vadd.f32 %v10679_v25, %v10677_v52  ;;  %v4784_v5 = vadd.f32 1.0, %v7709_v57  ;;  %v4950_v45 = vmul.f32 0.00390625, %v4862_v48 }
 0x9ee   : > { %v10685_v14 = vmul.f32 %v4783_v24, %v4335_v16  ;;  %v4980_v1 = vadd.f32 %v4979_v41, %v4949_v33 }
 0x9ef   : > { %4939 = vadd.xlane.f32.xlu1 %v4938_v15  ;;  %v10687_v46 = vmul.f32 %v4784_v5, %v4336_v40  ;;  %v7711_v0 = vpop.eup %7710  ;;  %v4865_v20 = vpop.xlane.xlu0 %4864 }
 0x9f0   : > { %v4785_v34 = vadd.f32 1.0, %v7711_v0  ;;  %v4981_v57 = vadd.f32 %v4980_v1, %v4950_v45  ;;  %v4951_v16 = vmul.f32 0.00390625, %v4865_v20  ;;  %v4868_v24 = vpop.xlane.xlu1 %4867 }
 0x9f1   : > { %v4941_v60 = vadd.f32 %v10687_v46, %v10685_v14  ;;  %v7713_v39 = vpop.eup %7712  ;;  %v4952_v5 = vmul.f32 0.00390625, %v4868_v24 }
 0x9f2   : > { %v4786_v61 = vadd.f32 1.0, %v7713_v39  ;;  %v10693_v35 = vmul.f32 %v4785_v34, %v4337_v54  ;;  %v4982_v15 = vadd.f32 %v4981_v57, %v4951_v16 }
 0x9f3   : > { %4942 = vadd.xlane.f32.xlu0 %v4941_v60  ;;  %v4871_v40 = vpop.xlane.xlu0 %4870 }
 0x9f4   : > { %v10695_v36 = vmul.f32 %v4786_v61, %v4338_v21  ;;  %v4983_v0 = vadd.f32 %v4982_v15, %v4952_v5  ;;  %v4953_v60 = vmul.f32 0.00390625, %v4871_v40 }
 0x9f6   : > { %v4944_v44 = vadd.f32 %v10695_v36, %v10693_v35  ;;  %v4984_v54 = vadd.f32 %v4983_v0, %v4953_v60  ;;  %v7546_v60 = vld [vmem:[%s11910_s17 + $0x40] sm:$0xff]  }
 0x9f7   : > { %6784 = vmatprep.subr.bf16.mxu1 %v7546_v60  ;;  %v12390_v60 = vld [vmem:[#allocation74_spill] sm:$0xff] }
 0x9f8   : > { %4945 = vadd.xlane.f32.xlu1 %v4944_v44 }
 0x9fa   : > { %v4874_v39 = vpop.xlane.xlu1 %4873 }
 0x9fb   : > { %v4954_v34 = vmul.f32 0.00390625, %v4874_v39  ;;  %v7547_v39 = vld [vmem:[%s11910_s17] sm:$0xff]  }
 0x9fc   : > { %6785 = vmatpush3.bf16.msra.mxu1 %v7547_v39 }
 0x9fd   : > { %v4877_v21 = vpop.xlane.xlu0 %4876  ;;  %v4985_v44 = vadd.f32 %v4984_v54, %v4954_v34 }
 0x9fe   : > { %v4955_v49 = vmul.f32 0.00390625, %v4877_v21 }
 0xa00   : > { %v4986_v38 = vadd.f32 %v4985_v44, %v4955_v49  ;;  %v7548_v44 = vld [vmem:[%s11910_s17 + $0x48] sm:$0xff]  }
 0xa01   : > { %v7549_v49 = vld [vmem:[%s11910_s17 + $0x8] sm:$0xff]   ;;  %6786 = vmatprep.subr.bf16.mxu1 %v7548_v44 }
 0xa02   : > { %6787 = vmatpush3.bf16.msra.mxu1 %v7549_v49  ;;  %v12396_v49 = vld [vmem:[#allocation70_spill] sm:$0xff] }
 0xa09   : > { %v4880_v61 = vpop.xlane.xlu1 %4879 }
 0xa0a   : > { %v4956_v32 = vmul.f32 0.00390625, %v4880_v61 }
 0xa0b   : > { %v4883_v42 = vpop.xlane.xlu0 %4882 }
 0xa0c   : > { %v4987_v33 = vadd.f32 %v4986_v38, %v4956_v32  ;;  %v4957_v41 = vmul.f32 0.00390625, %v4883_v42  ;;  %v7550_v32 = vld [vmem:[%s11910_s17 + $0x50] sm:$0xff]  }
 0xa0d   : > { %v7551_v38 = vld [vmem:[%s11910_s17 + $0x10] sm:$0xff]   ;;  %6788 = vmatprep.subr.bf16.mxu1 %v7550_v32 }
 0xa0e   : > { %v4988_v20 = vadd.f32 %v4987_v33, %v4957_v41  ;;  %v7552_v33 = vld [vmem:[%s11910_s17 + $0x58] sm:$0xff]   ;;  %6789 = vmatpush3.bf16.msra.mxu1 %v7551_v38 }
 0xa0f   : > { %6790 = vmatprep.subr.bf16.mxu1 %v7552_v33 }
 0xa16   : > { %v4886_v3 = vpop.xlane.xlu1 %4885 }
 0xa17   : > { %v4958_v48 = vmul.f32 0.00390625, %v4886_v3 }
 0xa18   : > { %v4889_v1 = vpop.xlane.xlu0 %4888 }
 0xa19   : > { %v4989_v57 = vadd.f32 %v4988_v20, %v4958_v48  ;;  %v4959_v16 = vmul.f32 0.00390625, %v4889_v1  ;;  %v7553_v48 = vld [vmem:[%s11910_s17 + $0x18] sm:$0xff]  }
 0xa1a   : > { %6791 = vmatpush3.bf16.msra.mxu1 %v7553_v48 }
 0xa1b   : > { %v4990_v40 = vadd.f32 %v4989_v57, %v4959_v16  ;;  %v12385_v16 = vld [vmem:[#allocation25_spill] sm:$0xff] }
 0xa25   : > { %v4892_v45 = vpop.xlane.xlu1 %4891 }
 0xa26   : > { %v4960_v24 = vmul.f32 0.00390625, %v4892_v45 }
 0xa27   : > { %v4895_v15 = vpop.xlane.xlu0 %4894 }
 0xa28   : > { %v4991_v5 = vadd.f32 %v4990_v40, %v4960_v24  ;;  %v4961_v0 = vmul.f32 0.00390625, %v4895_v15  ;;  %v12387_v15 = vld [vmem:[#allocation65_spill] sm:$0xff] }
 0xa2a   : > { %v4992_v34 = vadd.f32 %v4991_v5, %v4961_v0  ;;  %v12389_v5 = vld [vmem:[#allocation71_spill] sm:$0xff] }
 0xa38   : > { %v4898_v54 = vpop.xlane.xlu1 %4897 }
 0xa39   : > { %v4962_v21 = vmul.f32 0.00390625, %v4898_v54  ;;  %v4901_v54 = vpop.xlane.xlu0 %4900 }
 0xa3b   : > { %v4993_v61 = vadd.f32 %v4992_v34, %v4962_v21  ;;  %v12392_v34 = vld [vmem:[#allocation28_spill] sm:$0xff] }
 0xa3d   : > { %v4994_v42 = vrot.slane %v4993_v61, 4 }
 0xa3f   : > { %v4995_v3 = vadd.f32 %v4994_v42, %v4993_v61  ;;  %v12394_v61 = vld [vmem:[#allocation79_spill] sm:$0xff] }
 0xa41   : > { %v4996_v41 = vrot.slane %v4995_v3, 2 }
 0xa43   : > { %v4997_v1 = vadd.f32 %v4996_v41, %v4995_v3 }
 0xa45   : > { %v4998_v20 = vrot.slane %v4997_v1, 1 }
 0xa47   : > { %v4999_v45 = vadd.f32 %v4998_v20, %v4997_v1  ;;  %v12398_v20 = vld [vmem:[#allocation72_spill] sm:$0xff] }
 0xa48   : > { %v4904_v42 = vpop.xlane.xlu1 %4903 }
 0xa49   : > { %v10723_v57 = vmul.f32 0.0078125, %v4999_v45 }
 0xa4b   : > { %v10727_v24 = vsub.f32 %v12385_v16, %v10723_v57  ;;  %v10731_v40 = vsub.f32 %v12387_v15, %v10723_v57  ;;  %v10735_v0 = vsub.f32 %v12389_v5, %v10723_v57  ;;  %v10739_v39 = vsub.f32 %v12390_v60, %v10723_v57  ;;  %v12400_v60 = vld [vmem:[#allocation73_spill] sm:$0xff] }
 0xa4c   : > { %v10743_v21 = vsub.f32 %v12392_v34, %v10723_v57  ;;  %v10747_v44 = vsub.f32 %v12394_v61, %v10723_v57  ;;  %v10751_v32 = vsub.f32 %v12396_v49, %v10723_v57  ;;  %v10767_v45 = vsub.f32 %v12398_v20, %v10723_v57  ;;  %v12404_v20 = vld [vmem:[#allocation29_spill] sm:$0xff] }
 0xa4d   : > { %12386 = vst [vmem:[#allocation35_spill] sm:$0xff] %v10727_v24  ;;  %12388 = vst [vmem:[#allocation76_spill] sm:$0xff] %v10731_v40  ;;  %v5089_v38 = vmul.f32 %v10727_v24, %v10727_v24  ;;  %v5090_v3 = vmul.f32 %v10731_v40, %v10731_v40  ;;  %v5087_v33 = vmul.f32 %v10735_v0, %v10735_v0  ;;  %v4964_v61 = vmul.f32 0.00390625, %v4904_v42  ;;  %v12408_v42 = vld [vmem:[#allocation31_spill] sm:$0xff] }
 0xa4e   : > { %12391 = vst [vmem:[#allocation80_spill] sm:$0xff] %v10739_v39  ;;  %12393 = vst [vmem:[#allocation83_spill] sm:$0xff] %v10743_v21  ;;  %v5088_v41 = vmul.f32 %v10739_v39, %v10739_v39  ;;  %v5093_v48 = vmul.f32 %v10743_v21, %v10743_v21  ;;  %v5094_v1 = vmul.f32 %v10747_v44, %v10747_v44  ;;  %v12402_v21 = vld [vmem:[#allocation30_spill] sm:$0xff] }
 0xa4f   : > { %12395 = vst [vmem:[#allocation89_spill] sm:$0xff] %v10747_v44  ;;  %12397 = vst [vmem:[#allocation88_spill] sm:$0xff] %v10751_v32  ;;  %v5154_v16 = vadd.f32 %v5090_v3, %v5089_v38  ;;  %v5091_v5 = vmul.f32 %v10751_v32, %v10751_v32  ;;  %v10773_v34 = vsub.f32 %v12400_v60, %v10723_v57  ;;  %v12406_v3 = vld [vmem:[#allocation69_spill] sm:$0xff]  ;;  %v4963_v60 = vmul.f32 0.00390625, %v4901_v54 }
 0xa50   : > { %12399 = vst [vmem:[#allocation90_spill] sm:$0xff] %v10767_v45  ;;  %v5151_v15 = vadd.f32 %v5088_v41, %v5087_v33  ;;  %v5092_v49 = vmul.f32 %v10767_v45, %v10767_v45  ;;  %v10779_v44 = vsub.f32 %v12402_v21, %v10723_v57  ;;  %v10783_v40 = vsub.f32 %v12404_v20, %v10723_v57  ;;  %v4907_v21 = vpop.xlane.xlu0 %4906 }
 0xa51   : > { %12401 = vst [vmem:[#allocation91_spill] sm:$0xff] %v10773_v34  ;;  %5155 = vadd.xlane.f32.xlu1 %v5154_v16  ;;  %v5097_v38 = vmul.f32 %v10773_v34, %v10773_v34  ;;  %v10789_v33 = vsub.f32 %v12406_v3, %v10723_v57  ;;  %v10793_v41 = vsub.f32 %v12408_v42, %v10723_v57  ;;  %v12410_v16 = vld [vmem:[#allocation32_spill] sm:$0xff]  ;;  %v12412_v42 = vld [vmem:[#allocation78_spill] sm:$0xff] }
 0xa52   : > { %12403 = vst [vmem:[#allocation92_spill] sm:$0xff] %v10779_v44  ;;  %12405 = vst [vmem:[#allocation38_spill] sm:$0xff] %v10783_v40  ;;  %5152 = vadd.xlane.f32.xlu0 %v5151_v15  ;;  %v5160_v32 = vadd.f32 %v5094_v1, %v5093_v48  ;;  %v5098_v20 = vmul.f32 %v10779_v44, %v10779_v44  ;;  %v10799_v15 = vsub.f32 %v12410_v16, %v10723_v57  ;;  %v12414_v48 = vld [vmem:[#allocation81_spill] sm:$0xff]  ;;  %v4910_v39 = vpop.xlane.xlu1 %4909 }
 0xa53   : > { %12407 = vst [vmem:[#allocation40_spill] sm:$0xff] %v10789_v33  ;;  %12409 = vst [vmem:[#allocation41_spill] sm:$0xff] %v10793_v41  ;;  %v5157_v45 = vadd.f32 %v5092_v49, %v5091_v5  ;;  %v5095_v34 = vmul.f32 %v10783_v40, %v10783_v40  ;;  %v5096_v3 = vmul.f32 %v10789_v33, %v10789_v33  ;;  %v4965_v44 = vmul.f32 0.00390625, %v4907_v21 }
 0xa54   : > { %12411 = vst [vmem:[#allocation43_spill] sm:$0xff] %v10799_v15  ;;  %v10807_v24 = vsub.f32 %v12412_v42, %v10723_v57  ;;  %v5000_v54 = vadd.f32 %v4964_v61, %v4963_v60  ;;  %v10811_v1 = vsub.f32 %v12414_v48, %v10723_v57  ;;  %v5166_v5 = vadd.f32 %v5098_v20, %v5097_v38  ;;  %v12416_v60 = vld [vmem:[#allocation86_spill] sm:$0xff] }
 0xa55   : > { %5161 = vadd.xlane.f32.xlu1 %v5160_v32  ;;  %v5101_v49 = vmul.f32 %v10793_v41, %v10793_v41  ;;  %v5102_v16 = vmul.f32 %v10799_v15, %v10799_v15  ;;  %v10823_v48 = vsub.f32 %v12416_v60, %v10723_v57  ;;  %v5163_v21 = vadd.f32 %v5096_v3, %v5095_v34  ;;  %v12418_v32 = vld [vmem:[#allocation87_spill] sm:$0xff]  ;;  %v12420_v38 = vld [vmem:[#allocation82_spill] sm:$0xff]  ;;  %v12422_v41 = vld [vmem:[#allocation84_spill] sm:$0xff] }
 0xa56   : > { %12413 = vst [vmem:[#allocation34_spill] sm:$0xff] %v10807_v24  ;;  %12415 = vst [vmem:[#allocation19_spill] sm:$0xff] %v10811_v1  ;;  %5158 = vadd.xlane.f32.xlu0 %v5157_v45  ;;  %v5099_v42 = vmul.f32 %v10807_v24, %v10807_v24  ;;  %v5100_v61 = vmul.f32 %v10811_v1, %v10811_v1  ;;  %v10827_v45 = vsub.f32 %v12418_v32, %v10723_v57  ;;  %v12424_v34 = vld [vmem:[#allocation75_spill] sm:$0xff] }
 0xa57   : > { %12417 = vst [vmem:[#allocation20_spill] sm:$0xff] %v10823_v48  ;;  %v10831_v20 = vsub.f32 %v12420_v38, %v10723_v57  ;;  %v10835_v15 = vsub.f32 %v12422_v41, %v10723_v57  ;;  %v5001_v24 = vadd.f32 %v5000_v54, %v4965_v44  ;;  %v4966_v40 = vmul.f32 0.00390625, %v4910_v39  ;;  %v12426_v41 = vld [vmem:[#allocation33_spill] sm:$0xff]  ;;  %v12428_v54 = vld [vmem:[#allocation39_spill] sm:$0xff] }
 0xa58   : > { %12419 = vst [vmem:[#allocation21_spill] sm:$0xff] %v10827_v45  ;;  %v10839_v60 = vsub.f32 %v10303_v29, %v10723_v57  ;;  %v10843_v3 = vsub.f32 %v12424_v34, %v10723_v57  ;;  %v5172_v32 = vadd.f32 %v5102_v16, %v5101_v49  ;;  %v5169_v1 = vadd.f32 %v5100_v61, %v5099_v42  ;;  %v4913_v49 = vpop.xlane.xlu0 %4912  ;;  %v4916_v34 = vpop.xlane.xlu1 %4915 }
 0xa59   : > { %12421 = vst [vmem:[#allocation44_spill] sm:$0xff] %v10831_v20  ;;  %5167 = vadd.xlane.f32.xlu1 %v5166_v5  ;;  %v5105_v38 = vmul.f32 %v10823_v48, %v10823_v48  ;;  %v10849_v33 = vsub.f32 %v12426_v41, %v10723_v57  ;;  %v5106_v39 = vmul.f32 %v10827_v45, %v10827_v45 }
 0xa5a   : > { %5164 = vadd.xlane.f32.xlu0 %v5163_v21  ;;  %12423 = vst [vmem:[#allocation42_spill] sm:$0xff] %v10839_v60  ;;  %12425 = vst [vmem:[#allocation45_spill] sm:$0xff] %v10843_v3  ;;  %v5103_v29 = vmul.f32 %v10831_v20, %v10831_v20  ;;  %v5104_v44 = vmul.f32 %v10835_v15, %v10835_v15  ;;  %v10859_v5 = vsub.f32 %v12428_v54, %v10723_v57 }
 0xa5b   : > { %12427 = vst [vmem:[#allocation55_spill] sm:$0xff] %v10849_v33  ;;  %v5002_v16 = vadd.f32 %v5001_v24, %v4966_v40  ;;  %v5109_v42 = vmul.f32 %v10839_v60, %v10839_v60  ;;  %v5110_v61 = vmul.f32 %v10843_v3, %v10843_v3  ;;  %v10867_v21 = vsub.f32 %v10380_v51, %v10723_v57  ;;  %v12430_v40 = vld [vmem:[#allocation37_spill] sm:$0xff] }
 0xa5c   : > { %12429 = vst [vmem:[#allocation56_spill] sm:$0xff] %v10859_v5  ;;  %v5107_v41 = vmul.f32 %v10849_v33, %v10849_v33  ;;  %v5108_v54 = vmul.f32 %v10859_v5, %v10859_v5  ;;  %v10875_v24 = vsub.f32 %v10383_v2, %v10723_v57  ;;  %v5178_v60 = vadd.f32 %v5106_v39, %v5105_v38  ;;  %v12431_v51 = vld [vmem:[#allocation77_spill] sm:$0xff] }
 0xa5d   : > { %5173 = vadd.xlane.f32.xlu1 %v5172_v32  ;;  %v4967_v32 = vmul.f32 0.00390625, %v4913_v49  ;;  %v5175_v3 = vadd.f32 %v5104_v44, %v5103_v29  ;;  %v10883_v48 = vsub.f32 %v12431_v51, %v10723_v57  ;;  %v4968_v33 = vmul.f32 0.00390625, %v4916_v34  ;;  %v7555_v49 = vld [vmem:[%s11910_s17 + $0x20] sm:$0xff]  }
 0xa5e   : > { %5170 = vadd.xlane.f32.xlu0 %v5169_v1  ;;  %v10879_v1 = vsub.f32 %v12430_v40, %v10723_v57  ;;  %v5184_v5 = vadd.f32 %v5110_v61, %v5109_v42  ;;  %v5113_v2 = vmul.f32 %v10867_v21, %v10867_v21  ;;  %v5181_v45 = vadd.f32 %v5108_v54, %v5107_v41 }
 0xa5f   : > { %v5003_v20 = vadd.f32 %v5002_v16, %v4967_v32  ;;  %v5114_v40 = vmul.f32 %v10875_v24, %v10875_v24  ;;  %v10893_v39 = vsub.f32 %v10459_v4, %v10723_v57  ;;  %v5112_v29 = vmul.f32 %v10883_v48, %v10883_v48  ;;  %v7554_v4 = vld [vmem:[%s11910_s17 + $0x60] sm:$0xff]   ;;  %v4919_v16 = vpop.xlane.xlu0 %4918 }
 0xa60   : > { %v5111_v38 = vmul.f32 %v10879_v1, %v10879_v1  ;;  %v10907_v44 = vsub.f32 %v10392_v28, %v10723_v57  ;;  %6792 = vmatprep.subr.bf16.mxu1 %v7554_v4  ;;  %v4969_v34 = vmul.f32 0.00390625, %v4919_v16  ;;  %v7556_v4 = vld [vmem:[%s11910_s17 + $0x68] sm:$0xff]  }
 0xa61   : > { %5179 = vadd.xlane.f32.xlu1 %v5178_v60  ;;  %12432 = vst [vmem:[#allocation27_spill] sm:$0xff] %v10893_v39  ;;  %v10899_v60 = vsub.f32 %v10466_v47, %v10723_v57  ;;  %v5004_v47 = vadd.f32 %v5003_v20, %v4968_v33  ;;  %v5190_v42 = vadd.f32 %v5114_v40, %v5113_v2 }
 0xa62   : > { %5176 = vadd.xlane.f32.xlu0 %v5175_v3  ;;  %v10903_v3 = vsub.f32 %v10387_v31, %v10723_v57  ;;  %v5117_v31 = vmul.f32 %v10893_v39, %v10893_v39  ;;  %v5187_v61 = vadd.f32 %v5112_v29, %v5111_v38  ;;  %6793 = vmatpush3.bf16.msra.mxu1 %v7555_v49  ;;  %v7557_v49 = vld [vmem:[%s11910_s17 + $0x28] sm:$0xff]  }
 0xa63   : > { %v5118_v28 = vmul.f32 %v10899_v60, %v10899_v60  ;;  %v5005_v33 = vadd.f32 %v5004_v47, %v4969_v34  ;;  %v4925_v32 = vpop.xlane.xlu0 %4924  ;;  %6794 = vmatprep.subr.bf16.mxu1 %v7556_v4 }
 0xa64   : > { %12433 = vst [vmem:[#allocation22_spill] sm:$0xff] %v10903_v3  ;;  %v5115_v57 = vmul.f32 %v10903_v3, %v10903_v3  ;;  %v4971_v40 = vmul.f32 0.00390625, %v4925_v32 }
 0xa65   : > { %5185 = vadd.xlane.f32.xlu1 %v5184_v5  ;;  %v4922_v5 = vpop.xlane.xlu1 %4921  ;;  %v5196_v41 = vadd.f32 %v5118_v28, %v5117_v31 }
 0xa66   : > { %5182 = vadd.xlane.f32.xlu0 %v5181_v45  ;;  %v5116_v45 = vmul.f32 %v10907_v44, %v10907_v44  ;;  %v4970_v20 = vmul.f32 0.00390625, %v4922_v5  ;;  %6795 = vmatpush3.bf16.msra.mxu1 %v7557_v49 }
 0xa68   : > { %v5193_v54 = vadd.f32 %v5116_v45, %v5115_v57  ;;  %v5006_v51 = vadd.f32 %v5005_v33, %v4970_v20 }
 0xa69   : > { %5191 = vadd.xlane.f32.xlu1 %v5190_v42  ;;  %v4928_v2 = vpop.xlane.xlu1 %4927 }
 0xa6a   : > { %5188 = vadd.xlane.f32.xlu0 %v5187_v61  ;;  %v5007_v38 = vadd.f32 %v5006_v51, %v4971_v40  ;;  %v4972_v29 = vmul.f32 0.00390625, %v4928_v2 }
 0xa6c   : > { %v5008_v16 = vadd.f32 %v5007_v38, %v4972_v29 }
 0xa6d   : > { %5197 = vadd.xlane.f32.xlu1 %v5196_v41  ;;  %v4931_v39 = vpop.xlane.xlu0 %4930 }
 0xa6e   : > { %5194 = vadd.xlane.f32.xlu0 %v5193_v54  ;;  %v4973_v42 = vmul.f32 0.00390625, %v4931_v39 }
 0xa70   : > { %v5009_v28 = vadd.f32 %v5008_v16, %v4973_v42 }
 0xa71   : > { %v4934_v47 = vpop.xlane.xlu1 %4933 }
 0xa72   : > { %v4974_v31 = vmul.f32 0.00390625, %v4934_v47 }
 0xa74   : > { %v5010_v45 = vadd.f32 %v5009_v28, %v4974_v31 }
 0xa77   : > { %v4937_v61 = vpop.xlane.xlu0 %4936 }
 0xa78   : > { %v4975_v5 = vmul.f32 0.00390625, %v4937_v61 }
 0xa7a   : > { %v5011_v20 = vadd.f32 %v5010_v45, %v4975_v5 }
 0xa7c   : > { %v4940_v57 = vpop.xlane.xlu1 %4939 }
 0xa7d   : > { %v4976_v34 = vmul.f32 0.00390625, %v4940_v57 }
 0xa7f   : > { %v5012_v41 = vadd.f32 %v5011_v20, %v4976_v34 }
 0xa80   : > { %v4943_v33 = vpop.xlane.xlu0 %4942 }
 0xa81   : > { %v4977_v54 = vmul.f32 0.00390625, %v4943_v33 }
 0xa83   : > { %v5013_v51 = vadd.f32 %v5012_v41, %v4977_v54 }
 0xa85   : > { %v4946_v32 = vpop.xlane.xlu1 %4945 }
 0xa86   : > { %v4978_v2 = vmul.f32 0.00390625, %v4946_v32 }
 0xa88   : > { %v5014_v40 = vadd.f32 %v5013_v51, %v4978_v2 }
 0xa8a   : > { %v5015_v3 = vrot.slane %v5014_v40, 4 }
 0xa8c   : > { %v5016_v38 = vadd.f32 %v5015_v3, %v5014_v40 }
 0xa8e   : > { %v5017_v39 = vrot.slane %v5016_v38, 2 }
 0xa90   : > { %v5018_v29 = vadd.f32 %v5017_v39, %v5016_v38 }
 0xa92   : > { %v5019_v4 = vrot.slane %v5018_v29, 1 }
 0xa94   : > { %v5020_v49 = vadd.f32 %v5019_v4, %v5018_v29 }
 0xa96   : > { %v10929_v47 = vmul.f32 0.0078125, %v5020_v49 }
 0xa98   : > { %v10933_v16 = vsub.f32 %v10510_v62, %v10929_v47  ;;  %v10937_v42 = vsub.f32 %v10513_v13, %v10929_v47  ;;  %v10941_v31 = vsub.f32 %v10450_v18, %v10929_v47  ;;  %v10945_v3 = vsub.f32 %v10455_v63, %v10929_v47 }
 0xa99   : > { %v10949_v61 = vsub.f32 %v10546_v59, %v10929_v47  ;;  %v10953_v62 = vsub.f32 %v10550_v37, %v10929_v47  ;;  %v10957_v13 = vsub.f32 %v10495_v27, %v10929_v47  ;;  %v10961_v18 = vsub.f32 %v10498_v58, %v10929_v47 }
 0xa9a   : > { %v5121_v63 = vmul.f32 %v10933_v16, %v10933_v16  ;;  %v5122_v28 = vmul.f32 %v10937_v42, %v10937_v42  ;;  %v5119_v59 = vmul.f32 %v10941_v31, %v10941_v31  ;;  %v5120_v37 = vmul.f32 %v10945_v3, %v10945_v3 }
 0xa9b   : > { %v5125_v27 = vmul.f32 %v10949_v61, %v10949_v61  ;;  %v5126_v57 = vmul.f32 %v10953_v62, %v10953_v62  ;;  %v5123_v58 = vmul.f32 %v10957_v13, %v10957_v13  ;;  %v5124_v45 = vmul.f32 %v10961_v18, %v10961_v18 }
 0xa9c   : > { %v5202_v5 = vadd.f32 %v5122_v28, %v5121_v63  ;;  %v5199_v34 = vadd.f32 %v5120_v37, %v5119_v59  ;;  %v10981_v33 = vsub.f32 %v10554_v43, %v10929_v47  ;;  %v10985_v20 = vsub.f32 %v10561_v22, %v10929_v47  ;;  %v7559_v37 = vld [vmem:[%s11910_s17 + $0x30] sm:$0xff]  }
 0xa9d   : > { %v10989_v41 = vsub.f32 %v10534_v17, %v10929_v47  ;;  %v10993_v54 = vsub.f32 %v10538_v6, %v10929_v47  ;;  %v11001_v22 = vsub.f32 %v10591_v30, %v10929_v47  ;;  %v11009_v6 = vsub.f32 %v10595_v50, %v10929_v47 }
 0xa9e   : > { %12434 = vst [vmem:[#allocation46_spill] sm:$0xff] %v10981_v33  ;;  %5203 = vadd.xlane.f32.xlu1 %v5202_v5  ;;  %5200 = vadd.xlane.f32.xlu0 %v5199_v34  ;;  %v5129_v32 = vmul.f32 %v10981_v33, %v10981_v33  ;;  %v5130_v43 = vmul.f32 %v10985_v20, %v10985_v20  ;;  %v11241_v33 = vld [vmem:[#allocation14 + $0x68] sm:$0xff] }
 0xa9f   : > { %12435 = vst [vmem:[#allocation49_spill] sm:$0xff] %v11001_v22  ;;  %v5127_v17 = vmul.f32 %v10989_v41, %v10989_v41  ;;  %v5128_v51 = vmul.f32 %v10993_v54, %v10993_v54  ;;  %12436 = vst [vmem:[#allocation57_spill] sm:$0xff] %v11009_v6  ;;  %v11013_v2 = vsub.f32 %v10578_v7, %v10929_v47 }
 0xaa0   : > { %v5208_v40 = vadd.f32 %v5126_v57, %v5125_v27  ;;  %v5205_v38 = vadd.f32 %v5124_v45, %v5123_v58  ;;  %v11017_v30 = vsub.f32 %v10581_v8, %v10929_v47  ;;  %v5214_v39 = vadd.f32 %v5130_v43, %v5129_v32  ;;  %12477 = vst [vmem:[#allocation79_spill] sm:$0xff] %v11241_v33 }
 0xaa1   : > { %12437 = vst [vmem:[#allocation61_spill] sm:$0xff] %v11013_v2  ;;  %v5133_v29 = vmul.f32 %v11001_v22, %v11001_v22  ;;  %v5211_v4 = vadd.f32 %v5128_v51, %v5127_v17  ;;  %v5134_v50 = vmul.f32 %v11009_v6, %v11009_v6  ;;  %v5131_v7 = vmul.f32 %v11013_v2, %v11013_v2  ;;  %v11231_v22 = vld [vmem:[#allocation12 + $0x78] sm:$0xff] }
 0xaa2   : > { %12438 = vst [vmem:[#allocation23_spill] sm:$0xff] %v11017_v30  ;;  %5209 = vadd.xlane.f32.xlu1 %v5208_v40  ;;  %5206 = vadd.xlane.f32.xlu0 %v5205_v38  ;;  %v11027_v49 = vsub.f32 %v10622_v55, %v10929_v47  ;;  %v5132_v8 = vmul.f32 %v11017_v30, %v11017_v30  ;;  %v7558_v55 = vld [vmem:[%s11910_s17 + $0x70] sm:$0xff]   ;;  %12474 = vst [vmem:[#allocation71_spill] sm:$0xff] %v11231_v22 }
 0xaa3   : > { %v11033_v63 = vsub.f32 %v10628_v11, %v10929_v47  ;;  %v11037_v28 = vsub.f32 %v10604_v19, %v10929_v47  ;;  %v11041_v59 = vsub.f32 %v10607_v56, %v10929_v47  ;;  %v7560_v11 = vld [vmem:[%s11910_s17 + $0x78] sm:$0xff]   ;;  %v11054_v19 = vsub.f32 %v10655_v23, %v10929_v47  ;;  %6796 = vmatprep.subr.bf16.mxu1 %v7558_v55 }
 0xaa4   : > { %12439 = vst [vmem:[#allocation47_spill] sm:$0xff] %v11027_v49  ;;  %v11058_v56 = vsub.f32 %v10659_v26, %v10929_v47  ;;  %v5220_v27 = vadd.f32 %v5134_v50, %v5133_v29  ;;  %v5137_v57 = vmul.f32 %v11027_v49, %v11027_v49  ;;  %v11064_v58 = vsub.f32 %v10642_v10, %v10929_v47  ;;  %v7561_v10 = vld [vmem:[%s11910_s17 + $0x38] sm:$0xff]  }
 0xaa5   : > { %12440 = vst [vmem:[#allocation48_spill] sm:$0xff] %v11033_v63  ;;  %12441 = vst [vmem:[#allocation50_spill] sm:$0xff] %v11037_v28  ;;  %v11068_v45 = vsub.f32 %v10645_v9, %v10929_v47  ;;  %v5217_v5 = vadd.f32 %v5132_v8, %v5131_v7  ;;  %v5138_v23 = vmul.f32 %v11033_v63, %v11033_v63  ;;  %6797 = vmatpush3.bf16.msra.mxu1 %v7559_v37  ;;  %v11211_v49 = vld [vmem:[#allocation14 + $0x58] sm:$0xff] }
 0xaa6   : > { %12442 = vst [vmem:[#allocation51_spill] sm:$0xff] %v11041_v59  ;;  %5215 = vadd.xlane.f32.xlu1 %v5214_v39  ;;  %5212 = vadd.xlane.f32.xlu0 %v5211_v4  ;;  %12443 = vst [vmem:[#allocation67_spill] sm:$0xff] %v11054_v19  ;;  %v5135_v26 = vmul.f32 %v11037_v28, %v11037_v28  ;;  %v5136_v34 = vmul.f32 %v11041_v59, %v11041_v59  ;;  %v12471_v28 = vld [vmem:[#allocation43_spill] sm:$0xff] }
 0xaa7   : > { %12444 = vst [vmem:[#allocation68_spill] sm:$0xff] %v11058_v56  ;;  %12445 = vst [vmem:[#allocation24_spill] sm:$0xff] %v11064_v58  ;;  %6798 = vmatprep.subr.bf16.mxu1 %v7560_v11  ;;  %v5141_v9 = vmul.f32 %v11054_v19, %v11054_v19  ;;  %v5142_v32 = vmul.f32 %v11058_v56, %v11058_v56  ;;  %v11085_v43 = vsub.f32 %v10677_v52, %v10929_v47  ;;  %v11197_v19 = vld [vmem:[#allocation12 + $0x48] sm:$0xff]  ;;  %v11225_v59 = vld [vmem:[#allocation12 + $0x40] sm:$0xff] }
 0xaa8   : > { %12446 = vst [vmem:[#allocation52_spill] sm:$0xff] %v11068_v45  ;;  %v5139_v17 = vmul.f32 %v11064_v58, %v11064_v58  ;;  %v5140_v51 = vmul.f32 %v11068_v45, %v11068_v45  ;;  %v11093_v40 = vsub.f32 %v10679_v25, %v10929_v47  ;;  %v11097_v38 = vsub.f32 %v10669_v12, %v10929_v47  ;;  %v11203_v45 = vld [vmem:[#allocation14 + $0x20] sm:$0xff] }
 0xaa9   : > { %12447 = vst [vmem:[#allocation26_spill] sm:$0xff] %v11085_v43  ;;  %v5226_v39 = vadd.f32 %v5138_v23, %v5137_v57  ;;  %v5223_v29 = vadd.f32 %v5136_v34, %v5135_v26  ;;  %v11101_v52 = vsub.f32 %v10671_v53, %v10929_v47  ;;  %6799 = vmatpush3.bf16.msra.mxu1 %v7561_v10  ;;  %12464 = vst [vmem:[#allocation60_spill] sm:$0xff] %v11203_v45 }
 0xaaa   : > { %5221 = vadd.xlane.f32.xlu1 %v5220_v27  ;;  %5218 = vadd.xlane.f32.xlu0 %v5217_v5  ;;  %12448 = vst [vmem:[#allocation58_spill] sm:$0xff] %v11093_v40  ;;  %12449 = vst [vmem:[#allocation53_spill] sm:$0xff] %v11097_v38  ;;  %v5232_v4 = vadd.f32 %v5142_v32, %v5141_v9  ;;  %v5145_v50 = vmul.f32 %v11085_v43, %v11085_v43 }
 0xaab   : > { %12450 = vst [vmem:[#allocation54_spill] sm:$0xff] %v11101_v52  ;;  %v5229_v7 = vadd.f32 %v5140_v51, %v5139_v17  ;;  %v5146_v25 = vmul.f32 %v11093_v40, %v11093_v40  ;;  %v5143_v12 = vmul.f32 %v11097_v38, %v11097_v38  ;;  %v11111_v8 = vsub.f32 %v10693_v35, %v10929_v47  ;;  %v11187_v38 = vld [vmem:[#allocation12 + $0x20] sm:$0xff] }
 0xaac   : > { %v5144_v53 = vmul.f32 %v11101_v52, %v11101_v52  ;;  %v11117_v55 = vsub.f32 %v10695_v36, %v10929_v47  ;;  %v11121_v37 = vsub.f32 %v10685_v14, %v10929_v47  ;;  %v11125_v11 = vsub.f32 %v10687_v46, %v10929_v47  ;;  %12467 = vst [vmem:[#allocation85_spill] sm:$0xff] %v11211_v49 }
 0xaad   : > { %12451 = vst [vmem:[#allocation63_spill] sm:$0xff] %v11111_v8  ;;  %v5238_v27 = vadd.f32 %v5146_v25, %v5145_v50  ;;  %v5149_v35 = vmul.f32 %v11111_v8, %v11111_v8  ;;  %v11177_v8 = vld [vmem:[#allocation14 + $0x28] sm:$0xff] }
 0xaae   : > { %5227 = vadd.xlane.f32.xlu1 %v5226_v39  ;;  %5224 = vadd.xlane.f32.xlu0 %v5223_v29  ;;  %12452 = vst [vmem:[#allocation59_spill] sm:$0xff] %v11117_v55  ;;  %12453 = vst [vmem:[#allocation64_spill] sm:$0xff] %v11121_v37  ;;  %v5235_v57 = vadd.f32 %v5144_v53, %v5143_v12  ;;  %v5150_v5 = vmul.f32 %v11117_v55, %v11117_v55 }
 0xaaf   : > { %12454 = vst [vmem:[#allocation66_spill] sm:$0xff] %v11125_v11  ;;  %v5147_v36 = vmul.f32 %v11121_v37, %v11121_v37  ;;  %v5148_v14 = vmul.f32 %v11125_v11, %v11125_v11  ;;  %v11179_v37 = vld [vmem:[#allocation14 + $0x38] sm:$0xff] }
 0xab0   : > { %v5244_v46 = vadd.f32 %v5150_v5, %v5149_v35 }
 0xab1   : > { %v5241_v47 = vadd.f32 %v5148_v14, %v5147_v36 }
 0xab2   : > { %5233 = vadd.xlane.f32.xlu1 %v5232_v4  ;;  %5230 = vadd.xlane.f32.xlu0 %v5229_v7 }
 0xab6   : > { %5239 = vadd.xlane.f32.xlu1 %v5238_v27  ;;  %5236 = vadd.xlane.f32.xlu0 %v5235_v57 }
 0xaba   : > { %5245 = vadd.xlane.f32.xlu1 %v5244_v46  ;;  %5242 = vadd.xlane.f32.xlu0 %v5241_v47 }
 0xade   : > { %v5156_v23 = vpop.xlane.xlu1 %5155 }
 0xadf   : > { %v5153_v26 = vpop.xlane.xlu0 %5152  ;;  %v5248_v34 = vmul.f32 0.00390625, %v5156_v23 }
 0xae0   : > { %v5247_v10 = vmul.f32 0.00390625, %v5153_v26 }
 0xae2   : > { %v5162_v9 = vpop.xlane.xlu1 %5161  ;;  %v5279_v17 = vadd.f32 %v5248_v34, %v5247_v10 }
 0xae3   : > { %v5159_v32 = vpop.xlane.xlu0 %5158  ;;  %v5250_v39 = vmul.f32 0.00390625, %v5162_v9 }
 0xae4   : > { %v5249_v51 = vmul.f32 0.00390625, %v5159_v32 }
 0xae6   : > { %v5280_v29 = vadd.f32 %v5279_v17, %v5249_v51  ;;  %v5168_v4 = vpop.xlane.xlu1 %5167 }
 0xae7   : > { %v5165_v50 = vpop.xlane.xlu0 %5164  ;;  %v5252_v12 = vmul.f32 0.00390625, %v5168_v4 }
 0xae8   : > { %v5281_v7 = vadd.f32 %v5280_v29, %v5250_v39  ;;  %v5251_v25 = vmul.f32 0.00390625, %v5165_v50 }
 0xaea   : > { %v5282_v53 = vadd.f32 %v5281_v7, %v5251_v25  ;;  %v5174_v27 = vpop.xlane.xlu1 %5173 }
 0xaeb   : > { %v5171_v35 = vpop.xlane.xlu0 %5170  ;;  %v5254_v36 = vmul.f32 0.00390625, %v5174_v27 }
 0xaec   : > { %v5283_v57 = vadd.f32 %v5282_v53, %v5252_v12  ;;  %v5253_v5 = vmul.f32 0.00390625, %v5171_v35 }
 0xaee   : > { %v5284_v14 = vadd.f32 %v5283_v57, %v5253_v5  ;;  %v5180_v46 = vpop.xlane.xlu1 %5179 }
 0xaef   : > { %v5177_v47 = vpop.xlane.xlu0 %5176  ;;  %v5256_v34 = vmul.f32 0.00390625, %v5180_v46 }
 0xaf0   : > { %v5285_v23 = vadd.f32 %v5284_v14, %v5254_v36  ;;  %v5255_v26 = vmul.f32 0.00390625, %v5177_v47 }
 0xaf2   : > { %v5286_v10 = vadd.f32 %v5285_v23, %v5255_v26  ;;  %v5186_v9 = vpop.xlane.xlu1 %5185 }
 0xaf3   : > { %v5183_v32 = vpop.xlane.xlu0 %5182  ;;  %v5258_v39 = vmul.f32 0.00390625, %v5186_v9 }
 0xaf4   : > { %v5287_v17 = vadd.f32 %v5286_v10, %v5256_v34  ;;  %v5257_v51 = vmul.f32 0.00390625, %v5183_v32 }
 0xaf6   : > { %v5288_v29 = vadd.f32 %v5287_v17, %v5257_v51  ;;  %v5192_v4 = vpop.xlane.xlu1 %5191 }
 0xaf7   : > { %v5189_v50 = vpop.xlane.xlu0 %5188  ;;  %v5260_v12 = vmul.f32 0.00390625, %v5192_v4  ;;  %v12455_v4 = vld [vmem:[#allocation80_spill] sm:$0xff] }
 0xaf8   : > { %v5289_v7 = vadd.f32 %v5288_v29, %v5258_v39  ;;  %v5259_v25 = vmul.f32 0.00390625, %v5189_v50  ;;  %v11137_v39 = vld [vmem:[#allocation12 + $0x10] sm:$0xff] }
 0xafa   : > { %v5290_v53 = vadd.f32 %v5289_v7, %v5259_v25  ;;  %v5198_v27 = vpop.xlane.xlu1 %5197  ;;  %v12456_v7 = vld [vmem:[#allocation35_spill] sm:$0xff] }
 0xafb   : > { %v5195_v35 = vpop.xlane.xlu0 %5194  ;;  %v5262_v36 = vmul.f32 0.00390625, %v5198_v27  ;;  %v11147_v27 = vld [vmem:[#allocation12] sm:$0xff] }
 0xafc   : > { %v5291_v57 = vadd.f32 %v5290_v53, %v5260_v12  ;;  %v5261_v5 = vmul.f32 0.00390625, %v5195_v35  ;;  %v12457_v12 = vld [vmem:[#allocation76_spill] sm:$0xff]  ;;  %v12458_v35 = vld [vmem:[#allocation90_spill] sm:$0xff] }
 0xafe   : > { %v5292_v14 = vadd.f32 %v5291_v57, %v5261_v5  ;;  %v12459_v5 = vld [vmem:[#allocation89_spill] sm:$0xff] }
 0xb00   : > { %v5293_v46 = vadd.f32 %v5292_v14, %v5262_v36  ;;  %v11153_v14 = vld [vmem:[#allocation12 + $0x8] sm:$0xff] }
 0xb02   : > { %v5294_v47 = vrot.slane %v5293_v46, 4 }
 0xb04   : > { %v5295_v23 = vadd.f32 %v5294_v47, %v5293_v46  ;;  %v11157_v46 = vld [vmem:[#allocation14 + $0x10] sm:$0xff]  ;;  %v11159_v47 = vld [vmem:[#allocation12 + $0x28] sm:$0xff] }
 0xb06   : > { %v5296_v26 = vrot.slane %v5295_v23, 2 }
 0xb08   : > { %v5297_v34 = vadd.f32 %v5296_v26, %v5295_v23  ;;  %v11161_v23 = vld [vmem:[#allocation12 + $0x38] sm:$0xff]  ;;  %v11163_v26 = vld [vmem:[#allocation14] sm:$0xff] }
 0xb0a   : > { %v5298_v10 = vrot.slane %v5297_v34, 1 }
 0xb0c   : > { %v5299_v9 = vadd.f32 %v5298_v10, %v5297_v34  ;;  %v12460_v34 = vld [vmem:[#allocation88_spill] sm:$0xff] }
 0xb0e   : > { %v5321_v32 = vmul.f32 0.0078125, %v5299_v9  ;;  %v12461_v9 = vld [vmem:[#allocation83_spill] sm:$0xff] }
 0xb10   : > { %v5323_v17 = vadd.f32 1e-05, %v5321_v32 }
 0xb12   : > { %7714 = vrsqrt.f32 %v5323_v17  ;;  %v11169_v17 = vld [vmem:[#allocation14 + $0x8] sm:$0xff] }
 0xb1c   : > { %v11135_v51 = vpop.eup %7714 }
 0xb1d   : > { %v5327_v29 = vmul.f32 %v11135_v51, %v10735_v0  ;;  %v5328_v50 = vmul.f32 %v11135_v51, %v12455_v4  ;;  %v5329_v25 = vmul.f32 %v11135_v51, %v12456_v7  ;;  %v5330_v53 = vmul.f32 %v11135_v51, %v12457_v12  ;;  %v11155_v0 = vld [vmem:[#allocation12 + $0x18] sm:$0xff] }
 0xb1e   : > { %v5332_v57 = vmul.f32 %v11135_v51, %v12458_v35  ;;  %v5334_v36 = vmul.f32 %v11135_v51, %v12459_v5  ;;  %v5331_v10 = vmul.f32 %v11135_v51, %v12460_v34  ;;  %v5333_v32 = vmul.f32 %v11135_v51, %v12461_v9  ;;  %v11171_v4 = vld [vmem:[#allocation14 + $0x18] sm:$0xff]  ;;  %v12462_v34 = vld [vmem:[#allocation40_spill] sm:$0xff] }
 0xb1f   : > { %v5423_v7 = vmul.f32 %v11147_v27, %v5327_v29  ;;  %v5425_v12 = vmul.f32 %v11137_v39, %v5329_v25  ;;  %v5424_v35 = vmul.f32 %v11153_v14, %v5328_v50  ;;  %v5426_v5 = vmul.f32 %v11155_v0, %v5330_v53  ;;  %v12463_v9 = vld [vmem:[#allocation92_spill] sm:$0xff]  ;;  %v11189_v25 = vld [vmem:[#allocation12 + $0x30] sm:$0xff] }
 0xb20   : > { %v5336_v55 = vmul.f32 %v11135_v51, %v12462_v34  ;;  %v5338_v11 = vmul.f32 %v11135_v51, %v12463_v9  ;;  %v5428_v43 = vmul.f32 %v11159_v47, %v5332_v57  ;;  %v5430_v29 = vmul.f32 %v11161_v23, %v5334_v36  ;;  %v11199_v57 = vld [vmem:[#allocation12 + $0x58] sm:$0xff] }
 0xb21   : > { %v5519_v50 = vadd.f32 %v11163_v26, %v5423_v7  ;;  %v5521_v53 = vadd.f32 %v11157_v46, %v5425_v12  ;;  %v5520_v40 = vadd.f32 %v11169_v17, %v5424_v35  ;;  %v5522_v52 = vadd.f32 %v11171_v4, %v5426_v5  ;;  %v11205_v12 = vld [vmem:[#allocation14 + $0x30] sm:$0xff] }
 0xb22   : > { %v5524_v34 = vadd.f32 %v11177_v8, %v5428_v43  ;;  %v5526_v9 = vadd.f32 %v11179_v37, %v5430_v29  ;;  %v5427_v56 = vmul.f32 %v11187_v38, %v5331_v10  ;;  %v5429_v7 = vmul.f32 %v11189_v25, %v5333_v32  ;;  %12465 = vst [vmem:[#allocation62_spill] sm:$0xff] %v11205_v12  ;;  %v11209_v29 = vld [vmem:[#allocation14 + $0x48] sm:$0xff] }
 0xb23   : > { %v5584_v36 = vpack.c.bf16 %v5522_v52, %v5520_v40  ;;  %v5583_v58 = vpack.c.bf16 %v5521_v53, %v5519_v50  ;;  %v5432_v43 = vmul.f32 %v11197_v19, %v5336_v55  ;;  %v5434_v5 = vmul.f32 %v11199_v57, %v5338_v11  ;;  %12466 = vst [vmem:[#allocation36_spill] sm:$0xff] %v11209_v29  ;;  %v12468_v50 = vld [vmem:[#allocation38_spill] sm:$0xff] }
 0xb24   : > { %v5586_v35 = vpack.c.bf16 %v5526_v9, %v5524_v34  ;;  %v5523_v10 = vadd.f32 %v11203_v45, %v5427_v56  ;;  %v5525_v32 = vadd.f32 %v11205_v12, %v5429_v7  ;;  %v5335_v53 = vmul.f32 %v11135_v51, %v12468_v50  ;;  %v12469_v34 = vld [vmem:[#allocation91_spill] sm:$0xff]  ;;  %v11227_v7 = vld [vmem:[#allocation12 + $0x50] sm:$0xff]  ;;  %v11229_v50 = vld [vmem:[#allocation12 + $0x68] sm:$0xff] }
 0xb25   : > { %5782 = vmatprep.mubr.bf16.mxu1 %v5584_v36  ;;  %v5337_v55 = vmul.f32 %v11135_v51, %v12469_v34  ;;  %v5342_v63 = vmul.f32 %v11135_v51, %v12471_v28  ;;  %v5530_v56 = vadd.f32 %v11211_v49, %v5434_v5  ;;  %12472 = vst [vmem:[#allocation25_spill] sm:$0xff] %v11227_v7  ;;  %12473 = vst [vmem:[#allocation65_spill] sm:$0xff] %v11229_v50  ;;  %v11237_v5 = vld [vmem:[#allocation14 + $0x50] sm:$0xff] }
 0xb26   : > { %5783 = vmatmul.mubr.bf16.vlgmr.msra.gmra.mrb[132].mxu1 %v5583_v58  ;;  %v12470_v58 = vld [vmem:[#allocation19_spill] sm:$0xff]  ;;  %v5585_v34 = vpack.c.bf16 %v5525_v32, %v5523_v10  ;;  %v5431_v6 = vmul.f32 %v11225_v59, %v5335_v53  ;;  %12476 = vst [vmem:[#allocation28_spill] sm:$0xff] %v11237_v5  ;;  %v11243_v10 = vld [vmem:[#allocation14 + $0x78] sm:$0xff] }
 0xb27   : > { %5790 = vmatprep.mubr.bf16.mxu1 %v5586_v35  ;;  %v5340_v36 = vmul.f32 %v11135_v51, %v12470_v58  ;;  %v5528_v35 = vadd.f32 %v11209_v29, %v5432_v43  ;;  %v5433_v28 = vmul.f32 %v11227_v7, %v5337_v55  ;;  %v11235_v29 = vld [vmem:[#allocation14 + $0x40] sm:$0xff]  ;;  %v5438_v30 = vmul.f32 %v11231_v22, %v5342_v63  ;;  %v12479_v32 = vld [vmem:[#allocation34_spill] sm:$0xff]  ;;  %v12480_v55 = vld [vmem:[#allocation41_spill] sm:$0xff] }
 0xb28   : > { %12475 = vst [vmem:[#allocation74_spill] sm:$0xff] %v11235_v29  ;;  %12478 = vst [vmem:[#allocation70_spill] sm:$0xff] %v11243_v10  ;;  %v5339_v53 = vmul.f32 %v11135_v51, %v12479_v32  ;;  %v5527_v63 = vadd.f32 %v11235_v29, %v5431_v6  ;;  %v11259_v22 = vld [vmem:[#allocation12 + $0x70] sm:$0xff]  ;;  %v11263_v6 = vld [vmem:[#allocation12 + $0x98] sm:$0xff] }
 0xb29   : > { %v5588_v43 = vpack.c.bf16 %v5530_v56, %v5528_v35  ;;  %v5436_v49 = vmul.f32 %v11229_v50, %v5340_v36  ;;  %12483 = vst [vmem:[#allocation73_spill] sm:$0xff] %v11259_v22  ;;  %12485 = vst [vmem:[#allocation29_spill] sm:$0xff] %v11263_v6  ;;  %v11273_v7 = vld [vmem:[#allocation14 + $0x88] sm:$0xff] }
 0xb2a   : > { %12488 = vst [vmem:[#allocation32_spill] sm:$0xff] %v11273_v7 }
 0xb2b   : > { %v5204_v40 = vpop.xlane.xlu1 %5203  ;;  %v5201_v52 = vpop.xlane.xlu0 %5200  ;;  %v5532_v32 = vadd.f32 %v11241_v33, %v5436_v49  ;;  %v11267_v33 = vld [vmem:[#allocation14 + $0x60] sm:$0xff] }
 0xb2c   : > { %v5264_v9 = vmul.f32 0.00390625, %v5204_v40  ;;  %v5263_v11 = vmul.f32 0.00390625, %v5201_v52  ;;  %12486 = vst [vmem:[#allocation69_spill] sm:$0xff] %v11267_v33 }
 0xb2e   : > { %v5300_v2 = vadd.f32 %v5264_v9, %v5263_v11  ;;  %5791 = vmatmul.mubr.bf16.gmra.mrb[136].mxu1 %v5585_v34  ;;  %v5341_v9 = vmul.f32 %v11135_v51, %v12480_v55  ;;  %v12482_v34 = vld [vmem:[#allocation21_spill] sm:$0xff]  ;;  %v5534_v55 = vadd.f32 %v11243_v10, %v5438_v30 }
 0xb2f   : > { %v5210_v40 = vpop.xlane.xlu1 %5209  ;;  %v5207_v52 = vpop.xlane.xlu0 %5206  ;;  %5798 = vmatprep.mubr.bf16.mxu1 %v5588_v43  ;;  %v11261_v43 = vld [vmem:[#allocation12 + $0x88] sm:$0xff]  ;;  %v11269_v30 = vld [vmem:[#allocation14 + $0x70] sm:$0xff] }
 0xb30   : > { %v5265_v58 = vmul.f32 0.00390625, %v5207_v52  ;;  %v5266_v12 = vmul.f32 0.00390625, %v5210_v40  ;;  %v11251_v40 = vld [vmem:[#allocation12 + $0x60] sm:$0xff]  ;;  %v5344_v52 = vmul.f32 %v11135_v51, %v10835_v15  ;;  %12484 = vst [vmem:[#allocation30_spill] sm:$0xff] %v11261_v43  ;;  %v5590_v49 = vpack.c.bf16 %v5534_v55, %v5532_v32  ;;  %12487 = vst [vmem:[#allocation31_spill] sm:$0xff] %v11269_v30 }
 0xb31   : > { %12481 = vst [vmem:[#allocation72_spill] sm:$0xff] %v11251_v40 }
 0xb32   : > { %v5301_v45 = vadd.f32 %v5300_v2, %v5265_v58  ;;  %v5529_v2 = vadd.f32 %v11237_v5, %v5433_v28  ;;  %v5346_v58 = vmul.f32 %v11135_v51, %v12482_v34  ;;  %v5435_v5 = vmul.f32 %v11251_v40, %v5339_v53  ;;  %v11275_v53 = vld [vmem:[#allocation14 + $0x98] sm:$0xff]  ;;  %v11305_v40 = vld [vmem:[#allocation14 + $0xa8] sm:$0xff] }
 0xb33   : > { %v5216_v11 = vpop.xlane.xlu1 %5215  ;;  %v5213_v35 = vpop.xlane.xlu0 %5212  ;;  %v5437_v34 = vmul.f32 %v11259_v22, %v5341_v9  ;;  %12489 = vst [vmem:[#allocation78_spill] sm:$0xff] %v11275_v53  ;;  %v12491_v9 = vld [vmem:[#allocation20_spill] sm:$0xff]  ;;  %12498 = vst [vmem:[#allocation84_spill] sm:$0xff] %v11305_v40 }
 0xb34   : > { %v5302_v56 = vadd.f32 %v5301_v45, %v5266_v12  ;;  %v5267_v36 = vmul.f32 0.00390625, %v5213_v35  ;;  %v5268_v45 = vmul.f32 0.00390625, %v5216_v11  ;;  %v5587_v50 = vpack.c.bf16 %v5529_v2, %v5527_v63 }
 0xb35   : > { %v5440_v11 = vmul.f32 %v11261_v43, %v5344_v52  ;;  %v5345_v2 = vmul.f32 %v11135_v51, %v12491_v9  ;;  %v11291_v43 = vld [vmem:[#allocation12 + $0x90] sm:$0xff] }
 0xb36   : > { %v5303_v12 = vadd.f32 %v5302_v56, %v5267_v36  ;;  %v5442_v56 = vmul.f32 %v11263_v6, %v5346_v58  ;;  %5799 = vmatmul.mubr.bf16.gmra.mrb[140].mxu1 %v5587_v50  ;;  %v5531_v58 = vadd.f32 %v11267_v33, %v5435_v5  ;;  %v11283_v50 = vld [vmem:[#allocation12 + $0x80] sm:$0xff]  ;;  %v11295_v5 = vld [vmem:[#allocation12 + $0xb8] sm:$0xff] }
 0xb37   : > { %v5222_v28 = vpop.xlane.xlu1 %5221  ;;  %v5219_v35 = vpop.xlane.xlu0 %5218  ;;  %5806 = vmatprep.mubr.bf16.mxu1 %v5590_v49  ;;  %v5536_v6 = vadd.f32 %v11273_v7, %v5440_v11  ;;  %12495 = vst [vmem:[#allocation86_spill] sm:$0xff] %v11295_v5  ;;  %v11299_v7 = vld [vmem:[#allocation14 + $0x80] sm:$0xff] }
 0xb38   : > { %v5304_v15 = vadd.f32 %v5303_v12, %v5268_v45  ;;  %v5269_v29 = vmul.f32 0.00390625, %v5219_v35  ;;  %v5270_v36 = vmul.f32 0.00390625, %v5222_v28  ;;  %v12490_v45 = vld [vmem:[#allocation44_spill] sm:$0xff]  ;;  %v5538_v9 = vadd.f32 %v11275_v53, %v5442_v56  ;;  %12496 = vst [vmem:[#allocation87_spill] sm:$0xff] %v11299_v7  ;;  %v11301_v56 = vld [vmem:[#allocation14 + $0x90] sm:$0xff] }
 0xb39   : > { %v5343_v63 = vmul.f32 %v11135_v51, %v12490_v45  ;;  %v12492_v28 = vld [vmem:[#allocation56_spill] sm:$0xff]  ;;  %12497 = vst [vmem:[#allocation82_spill] sm:$0xff] %v11301_v56 }
 0xb3a   : > { %v5305_v10 = vadd.f32 %v5304_v15, %v5269_v29  ;;  %v5533_v29 = vadd.f32 %v11269_v30, %v5437_v34  ;;  %v5348_v35 = vmul.f32 %v11135_v51, %v12492_v28  ;;  %v12493_v15 = vld [vmem:[#allocation45_spill] sm:$0xff]  ;;  %v5592_v11 = vpack.c.bf16 %v5538_v9, %v5536_v6 }
 0xb3b   : > { %v5228_v32 = vpop.xlane.xlu1 %5227  ;;  %v5225_v55 = vpop.xlane.xlu0 %5224  ;;  %v5350_v45 = vmul.f32 %v11135_v51, %v12493_v15  ;;  %v5439_v30 = vmul.f32 %v11283_v50, %v5343_v63  ;;  %v5441_v15 = vmul.f32 %v11291_v43, %v5345_v2  ;;  %v11307_v63 = vld [vmem:[#allocation14 + $0xb8] sm:$0xff] }
 0xb3c   : > { %v5306_v12 = vadd.f32 %v5305_v10, %v5270_v36  ;;  %v5271_v52 = vmul.f32 0.00390625, %v5225_v55  ;;  %v5272_v10 = vmul.f32 0.00390625, %v5228_v32  ;;  %v11293_v36 = vld [vmem:[#allocation12 + $0xa8] sm:$0xff]  ;;  %v5589_v22 = vpack.c.bf16 %v5533_v29, %v5531_v58  ;;  %12499 = vst [vmem:[#allocation75_spill] sm:$0xff] %v11307_v63  ;;  %v12501_v2 = vld [vmem:[#allocation42_spill] sm:$0xff] }
 0xb3d   : > { %12494 = vst [vmem:[#allocation81_spill] sm:$0xff] %v11293_v36  ;;  %v5444_v32 = vmul.f32 %v11293_v36, %v5348_v35  ;;  %v5349_v6 = vmul.f32 %v11135_v51, %v12501_v2  ;;  %v11323_v2 = vld [vmem:[#allocation12 + $0xb0] sm:$0xff]  ;;  %v11337_v36 = vld [vmem:[#allocation14 + $0xc8] sm:$0xff] }
 0xb3e   : > { %v5307_v49 = vadd.f32 %v5306_v12, %v5271_v52  ;;  %v5446_v12 = vmul.f32 %v11295_v5, %v5350_v45  ;;  %5807 = vmatmul.mubr.bf16.gmra.mrb[144].mxu1 %v5589_v22  ;;  %v5535_v45 = vadd.f32 %v11299_v7, %v5439_v30  ;;  %v11315_v22 = vld [vmem:[#allocation12 + $0xa0] sm:$0xff]  ;;  %v11327_v30 = vld [vmem:[#allocation12 + $0xd8] sm:$0xff] }
 0xb3f   : > { %v5234_v34 = vpop.xlane.xlu1 %5233  ;;  %v5231_v55 = vpop.xlane.xlu0 %5230  ;;  %5814 = vmatprep.mubr.bf16.mxu1 %v5592_v11 }
 0xb40   : > { %v5308_v28 = vadd.f32 %v5307_v49, %v5272_v10  ;;  %v5273_v33 = vmul.f32 0.00390625, %v5231_v55  ;;  %v5274_v52 = vmul.f32 0.00390625, %v5234_v34  ;;  %v12500_v10 = vld [vmem:[#allocation55_spill] sm:$0xff]  ;;  %v5352_v34 = vmul.f32 %v11135_v51, %v10883_v48 }
 0xb41   : > { %v5347_v58 = vmul.f32 %v11135_v51, %v12500_v10  ;;  %v5354_v55 = vmul.f32 %v11135_v51, %v10875_v24  ;;  %v5542_v10 = vadd.f32 %v11307_v63, %v5446_v12  ;;  %v5445_v24 = vmul.f32 %v11323_v2, %v5349_v6  ;;  %v11333_v12 = vld [vmem:[#allocation14 + $0xb0] sm:$0xff] }
 0xb42   : > { %v5309_v53 = vadd.f32 %v5308_v28, %v5273_v33  ;;  %v5537_v33 = vadd.f32 %v11301_v56, %v5441_v15  ;;  %v5540_v28 = vadd.f32 %v11305_v40, %v5444_v32  ;;  %v11331_v40 = vld [vmem:[#allocation14 + $0xa0] sm:$0xff]  ;;  %v5353_v6 = vmul.f32 %v11135_v51, %v10867_v21 }
 0xb43   : > { %v5240_v29 = vpop.xlane.xlu1 %5239  ;;  %v5237_v9 = vpop.xlane.xlu0 %5236  ;;  %v5443_v56 = vmul.f32 %v11315_v22, %v5347_v58  ;;  %v11339_v58 = vld [vmem:[#allocation14 + $0xd8] sm:$0xff] }
 0xb44   : > { %v5310_v49 = vadd.f32 %v5309_v53, %v5274_v52  ;;  %v5275_v35 = vmul.f32 0.00390625, %v5237_v9  ;;  %v5276_v53 = vmul.f32 0.00390625, %v5240_v29  ;;  %v11325_v52 = vld [vmem:[#allocation12 + $0xc8] sm:$0xff]  ;;  %v5591_v5 = vpack.c.bf16 %v5537_v33, %v5535_v45  ;;  %12502 = vst [vmem:[#allocation33_spill] sm:$0xff] %v11339_v58 }
 0xb45   : > { %v5594_v32 = vpack.c.bf16 %v5542_v10, %v5540_v28  ;;  %v5448_v29 = vmul.f32 %v11325_v52, %v5352_v34  ;;  %v5351_v45 = vmul.f32 %v11135_v51, %v10879_v1  ;;  %v5539_v28 = vadd.f32 %v11331_v40, %v5443_v56  ;;  %v11353_v1 = vld [vmem:[#allocation12 + $0xc0] sm:$0xff]  ;;  %v11359_v56 = vld [vmem:[#allocation12 + $0xf8] sm:$0xff] }
 0xb46   : > { %v5311_v11 = vadd.f32 %v5310_v49, %v5275_v35  ;;  %v5450_v49 = vmul.f32 %v11327_v30, %v5354_v55  ;;  %5815 = vmatmul.mubr.bf16.gmra.mrb[148].mxu1 %v5591_v5  ;;  %v5541_v34 = vadd.f32 %v11333_v12, %v5445_v24  ;;  %v5358_v5 = vmul.f32 %v11135_v51, %v10899_v60  ;;  %v11365_v24 = vld [vmem:[#allocation14 + $0xd0] sm:$0xff] }
 0xb47   : > { %v5246_v15 = vpop.xlane.xlu1 %5245  ;;  %v5243_v9 = vpop.xlane.xlu0 %5242  ;;  %5822 = vmatprep.mubr.bf16.mxu1 %v5594_v32  ;;  %v5544_v55 = vadd.f32 %v11337_v36, %v5448_v29  ;;  %12504 = vst [vmem:[#allocation37_spill] sm:$0xff] %v11359_v56 }
 0xb48   : > { %v5312_v48 = vadd.f32 %v5311_v11, %v5276_v53  ;;  %v5277_v7 = vmul.f32 0.00390625, %v5243_v9  ;;  %v5278_v35 = vmul.f32 0.00390625, %v5246_v15  ;;  %v5546_v10 = vadd.f32 %v11339_v58, %v5450_v49  ;;  %v11355_v53 = vld [vmem:[#allocation12 + $0xd0] sm:$0xff]  ;;  %v11371_v58 = vld [vmem:[#allocation14 + $0xf8] sm:$0xff] }
 0xb49   : > { %v5593_v15 = vpack.c.bf16 %v5541_v34, %v5539_v28  ;;  %v5449_v9 = vmul.f32 %v11355_v53, %v5353_v6  ;;  %v5454_v29 = vmul.f32 %v11359_v56, %v5358_v5  ;;  %v12506_v6 = vld [vmem:[#allocation27_spill] sm:$0xff] }
 0xb4a   : > { %v5313_v63 = vadd.f32 %v5312_v48, %v5277_v7  ;;  %v5356_v7 = vmul.f32 %v11135_v51, %v10907_v44  ;;  %v5447_v44 = vmul.f32 %v11353_v1, %v5351_v45  ;;  %v5596_v60 = vpack.c.bf16 %v5546_v10, %v5544_v55  ;;  %v11363_v48 = vld [vmem:[#allocation14 + $0xc0] sm:$0xff] }
 0xb4b   : > { %v5357_v28 = vmul.f32 %v11135_v51, %v12506_v6  ;;  %v5550_v10 = vadd.f32 %v11371_v58, %v5454_v29 }
 0xb4c   : > { %v5314_v33 = vadd.f32 %v5313_v63, %v5278_v35  ;;  %v11357_v63 = vld [vmem:[#allocation12 + $0xe8] sm:$0xff]  ;;  %v5543_v55 = vadd.f32 %v11363_v48, %v5447_v44  ;;  %v11389_v44 = vld [vmem:[#allocation14 + $0xf0] sm:$0xff] }
 0xb4d   : > { %12503 = vst [vmem:[#allocation39_spill] sm:$0xff] %v11357_v63  ;;  %v5452_v32 = vmul.f32 %v11357_v63, %v5356_v7  ;;  %v11369_v35 = vld [vmem:[#allocation14 + $0xe8] sm:$0xff]  ;;  %v5545_v7 = vadd.f32 %v11365_v24, %v5449_v9 }
 0xb4e   : > { %v5315_v21 = vrot.slane %v5314_v33, 4  ;;  %5823 = vmatmul.mubr.bf16.gmra.mrb[152].mxu1 %v5593_v15  ;;  %v11383_v15 = vld [vmem:[#allocation12 + $0xf0] sm:$0xff] }
 0xb4f   : > { %5830 = vmatprep.mubr.bf16.mxu1 %v5596_v60  ;;  %v5548_v5 = vadd.f32 %v11369_v35, %v5452_v32 }
 0xb50   : > { %v5316_v11 = vadd.f32 %v5315_v21, %v5314_v33  ;;  %v12505_v33 = vld [vmem:[#allocation22_spill] sm:$0xff]  ;;  %v11381_v21 = vld [vmem:[#allocation12 + $0xe0] sm:$0xff] }
 0xb51   : > { %v5355_v45 = vmul.f32 %v11135_v51, %v12505_v33  ;;  %v5595_v33 = vpack.c.bf16 %v5545_v7, %v5543_v55  ;;  %v5453_v51 = vmul.f32 %v11383_v15, %v5357_v28 }
 0xb52   : > { %v5317_v49 = vrot.slane %v5316_v11, 2 }
 0xb53   : > { %v5451_v60 = vmul.f32 %v11381_v21, %v5355_v45  ;;  %v5549_v6 = vadd.f32 %v11389_v44, %v5453_v51 }
 0xb54   : > { %v5318_v34 = vadd.f32 %v5317_v49, %v5316_v11  ;;  %v5598_v11 = vpack.c.bf16 %v5550_v10, %v5548_v5  ;;  %v11387_v49 = vld [vmem:[#allocation14 + $0xe0] sm:$0xff] }
 0xb55   : > { %v5547_v29 = vadd.f32 %v11387_v49, %v5451_v60 }
 0xb56   : > { %v5319_v56 = vrot.slane %v5318_v34, 1  ;;  %5831 = vmatmul.mubr.bf16.gmra.mrb[156].mxu1 %v5595_v33 }
 0xb57   : > { %5838 = vmatprep.mubr.bf16.mxu1 %v5598_v11 }
 0xb58   : > { %v5320_v63 = vadd.f32 %v5319_v56, %v5318_v34  ;;  %v5597_v56 = vpack.c.bf16 %v5549_v6, %v5547_v29  ;;  %v12510_v29 = vld [vmem:[#allocation23_spill] sm:$0xff]  ;;  %v12511_v6 = vld [vmem:[#allocation57_spill] sm:$0xff] }
 0xb5a   : > { %v5322_v9 = vmul.f32 0.0078125, %v5320_v63 }
 0xb5c   : > { %v5324_v32 = vadd.f32 1e-05, %v5322_v9 }
 0xb5e   : > { %7716 = vrsqrt.f32 %v5324_v32  ;;  %5839 = vmatmul.mubr.bf16.gmra.mrb[160].mxu1 %v5597_v56  ;;  %v12509_v32 = vld [vmem:[#allocation62_spill] sm:$0xff]  ;;  %v12512_v56 = vld [vmem:[#allocation36_spill] sm:$0xff] }
 0xb68   : > { %v11393_v34 = vpop.eup %7716 }
 0xb69   : > { %v5359_v45 = vmul.f32 %v11393_v34, %v10941_v31  ;;  %v5360_v28 = vmul.f32 %v11393_v34, %v10945_v3  ;;  %v5361_v63 = vmul.f32 %v11393_v34, %v10933_v16  ;;  %v5362_v55 = vmul.f32 %v11393_v34, %v10937_v42 }
 0xb6a   : > { %v5364_v7 = vmul.f32 %v11393_v34, %v10961_v18  ;;  %v5366_v5 = vmul.f32 %v11393_v34, %v10953_v62  ;;  %v5363_v10 = vmul.f32 %v11393_v34, %v10957_v13  ;;  %v5365_v31 = vmul.f32 %v11393_v34, %v10949_v61 }
 0xb6b   : > { %v5456_v3 = vmul.f32 %v11153_v14, %v5360_v28  ;;  %v5458_v33 = vmul.f32 %v11155_v0, %v5362_v55  ;;  %v5455_v16 = vmul.f32 %v11147_v27, %v5359_v45  ;;  %v5457_v42 = vmul.f32 %v11137_v39, %v5361_v63  ;;  %v12513_v45 = vld [vmem:[#allocation85_spill] sm:$0xff] }
 0xb6c   : > { %v5368_v18 = vmul.f32 %v11393_v34, %v10993_v54  ;;  %v5370_v62 = vmul.f32 %v11393_v34, %v10985_v20  ;;  %v5460_v60 = vmul.f32 %v11159_v47, %v5364_v7  ;;  %v5462_v13 = vmul.f32 %v11161_v23, %v5366_v5  ;;  %v12514_v55 = vld [vmem:[#allocation25_spill] sm:$0xff] }
 0xb6d   : > { %v5552_v61 = vadd.f32 %v11169_v17, %v5456_v3  ;;  %v5554_v14 = vadd.f32 %v11171_v4, %v5458_v33  ;;  %v5551_v0 = vadd.f32 %v11163_v26, %v5455_v16  ;;  %v5553_v27 = vadd.f32 %v11157_v46, %v5457_v42  ;;  %v12508_v26 = vld [vmem:[#allocation60_spill] sm:$0xff]  ;;  %v12516_v3 = vld [vmem:[#allocation71_spill] sm:$0xff]  ;;  %v12517_v16 = vld [vmem:[#allocation61_spill] sm:$0xff] }
 0xb6e   : > { %v5556_v39 = vadd.f32 %v11177_v8, %v5460_v60  ;;  %v5558_v51 = vadd.f32 %v11179_v37, %v5462_v13  ;;  %v5459_v20 = vmul.f32 %v11187_v38, %v5363_v10  ;;  %v5461_v47 = vmul.f32 %v11189_v25, %v5365_v31  ;;  %v12507_v8 = vld [vmem:[#allocation46_spill] sm:$0xff]  ;;  %v12515_v10 = vld [vmem:[#allocation65_spill] sm:$0xff] }
 0xb6f   : > { %v5600_v54 = vpack.c.bf16 %v5554_v14, %v5552_v61  ;;  %v5599_v11 = vpack.c.bf16 %v5553_v27, %v5551_v0  ;;  %v5464_v17 = vmul.f32 %v11197_v19, %v5368_v18  ;;  %v5466_v4 = vmul.f32 %v11199_v57, %v5370_v62  ;;  %v12518_v18 = vld [vmem:[#allocation49_spill] sm:$0xff]  ;;  %v12519_v60 = vld [vmem:[#allocation74_spill] sm:$0xff]  ;;  %v12520_v61 = vld [vmem:[#allocation28_spill] sm:$0xff] }
 0xb70   : > { %v5602_v23 = vpack.c.bf16 %v5558_v51, %v5556_v39  ;;  %v5367_v46 = vmul.f32 %v11393_v34, %v10989_v41  ;;  %v5369_v37 = vmul.f32 %v11393_v34, %v12507_v8  ;;  %v5555_v9 = vadd.f32 %v12508_v26, %v5459_v20  ;;  %v12522_v27 = vld [vmem:[#allocation48_spill] sm:$0xff]  ;;  %v12523_v51 = vld [vmem:[#allocation79_spill] sm:$0xff] }
 0xb71   : > { %5846 = vmatprep.mubr.bf16.mxu1 %v5600_v54  ;;  %v5557_v38 = vadd.f32 %v12509_v32, %v5461_v47  ;;  %v5372_v25 = vmul.f32 %v11393_v34, %v12510_v29  ;;  %v5374_v19 = vmul.f32 %v11393_v34, %v12511_v6  ;;  %v5560_v57 = vadd.f32 %v12512_v56, %v5464_v17  ;;  %v6199_v47 = vld [vmem:[%s12525_s18] sm:$0xff]  ;;  %v12528_v32 = vld [vmem:[#allocation30_spill] sm:$0xff]  ;;  %v12529_v29 = vld [vmem:[#allocation29_spill] sm:$0xff] }
 0xb72   : > { %5847 = vmatmul.mubr.bf16.gmra.mrb[164].mxu1 %v5599_v11  ;;  %v5562_v28 = vadd.f32 %v12513_v45, %v5466_v4  ;;  %v5463_v41 = vmul.f32 %v11225_v59, %v5367_v46  ;;  %v5465_v7 = vmul.f32 %v12514_v55, %v5369_v37  ;;  %v5371_v42 = vmul.f32 %v11393_v34, %v12517_v16  ;;  %v12521_v59 = vld [vmem:[#allocation51_spill] sm:$0xff]  ;;  %v12524_v11 = vld [vmem:[#allocation70_spill] sm:$0xff]  ;;  %v12526_v46 = vld [vmem:[#allocation72_spill] sm:$0xff] }
 0xb73   : > { %5854 = vmatprep.mubr.bf16.mxu1 %v5602_v23  ;;  %v5601_v63 = vpack.c.bf16 %v5557_v38, %v5555_v9  ;;  %v5468_v31 = vmul.f32 %v12515_v10, %v5372_v25  ;;  %v5470_v33 = vmul.f32 %v12516_v3, %v5374_v19  ;;  %v5373_v62 = vmul.f32 %v11393_v34, %v12518_v18  ;;  %v6200_v23 = vld [vmem:[%s12525_s18 + $0x8] sm:$0xff]  ;;  %v12527_v37 = vld [vmem:[#allocation73_spill] sm:$0xff]  ;;  %v12530_v6 = vld [vmem:[#allocation50_spill] sm:$0xff] }
 0xb74   : > { %v5604_v5 = vpack.c.bf16 %v5562_v28, %v5560_v57  ;;  %v5559_v13 = vadd.f32 %v12519_v60, %v5463_v41  ;;  %v5561_v14 = vadd.f32 %v12520_v61, %v5465_v7  ;;  %v5376_v0 = vmul.f32 %v11393_v34, %v12521_v59  ;;  %v6201_v56 = vld [vmem:[%s12525_s18 + $0x10] sm:$0xff]  ;;  %v6202_v57 = vld [vmem:[%s12525_s18 + $0x18] sm:$0xff]  ;;  %v12531_v45 = vld [vmem:[#allocation47_spill] sm:$0xff] }
 0xb75   : > { %v5378_v39 = vmul.f32 %v11393_v34, %v12522_v27  ;;  %v5564_v54 = vadd.f32 %v12523_v51, %v5468_v31  ;;  %v5566_v20 = vadd.f32 %v12524_v11, %v5470_v33  ;;  %v7259_v17 = vpack.c.bf16 %v6200_v23, %v6199_v47  ;;  %v12533_v55 = vld [vmem:[#allocation31_spill] sm:$0xff]  ;;  %v12534_v10 = vld [vmem:[#allocation52_spill] sm:$0xff]  ;;  %v12537_v18 = vld [vmem:[#allocation78_spill] sm:$0xff] }
 0xb76   : > { %v5603_v4 = vpack.c.bf16 %v5561_v14, %v5559_v13  ;;  %v5467_v8 = vmul.f32 %v12526_v46, %v5371_v42  ;;  %v5469_v26 = vmul.f32 %v12527_v37, %v5373_v62  ;;  %v5472_v38 = vmul.f32 %v12528_v32, %v5376_v0  ;;  %v12535_v3 = vld [vmem:[#allocation68_spill] sm:$0xff]  ;;  %v6203_v60 = vld [vmem:[%s12525_s18 + $0x20] sm:$0xff]  ;;  %v6205_v14 = vld [vmem:[%s12525_s18 + $0x30] sm:$0xff] }
 0xb77   : > { %7260 = vmatprep.subr.bf16.mxu0 %v7259_v17  ;;  %v5606_v9 = vpack.c.bf16 %v5566_v20, %v5564_v54  ;;  %v5474_v25 = vmul.f32 %v12529_v29, %v5378_v39  ;;  %v5375_v19 = vmul.f32 %v11393_v34, %v12530_v6  ;;  %v5377_v28 = vmul.f32 %v11393_v34, %v12531_v45  ;;  %v12536_v16 = vld [vmem:[#allocation32_spill] sm:$0xff]  ;;  %v6206_v59 = vld [vmem:[%s12525_s18 + $0x38] sm:$0xff]  ;;  %v12538_v11 = vld [vmem:[#allocation81_spill] sm:$0xff] }
 0xb78   : > { %7262 = vmatpush3.bf16.msra.mxu0 %v7259_v17  ;;  %v5565_v7 = vadd.f32 %v12533_v55, %v5469_v26  ;;  %v5380_v31 = vmul.f32 %v11393_v34, %v12534_v10  ;;  %v5382_v33 = vmul.f32 %v11393_v34, %v12535_v3  ;;  %v5568_v42 = vadd.f32 %v12536_v16, %v5472_v38  ;;  %v6204_v13 = vld [vmem:[%s12525_s18 + $0x28] sm:$0xff]  ;;  %v12539_v47 = vld [vmem:[#allocation86_spill] sm:$0xff]  ;;  %v12541_v46 = vld [vmem:[#allocation67_spill] sm:$0xff] }
 0xb79   : > { %v5570_v62 = vadd.f32 %v12537_v18, %v5474_v25  ;;  %v7267_v61 = vpack.c.bf16 %v6204_v13, %v6203_v60  ;;  %v5471_v27 = vmul.f32 %v11283_v50, %v5375_v19  ;;  %v5473_v39 = vmul.f32 %v11291_v43, %v5377_v28  ;;  %v12540_v17 = vld [vmem:[#allocation24_spill] sm:$0xff]  ;;  %v12542_v37 = vld [vmem:[#allocation87_spill] sm:$0xff]  ;;  %v12543_v26 = vld [vmem:[#allocation82_spill] sm:$0xff] }
 0xb7a   : > { %5855 = vmatmul.mubr.bf16.gmra.mrb[168].mxu1 %v5601_v63  ;;  %v12532_v63 = vld [vmem:[#allocation69_spill] sm:$0xff]  ;;  %v7271_v51 = vpack.c.bf16 %v6206_v59, %v6205_v14  ;;  %v5476_v20 = vmul.f32 %v12538_v11, %v5380_v31  ;;  %v5478_v23 = vmul.f32 %v12539_v47, %v5382_v33  ;;  %v12545_v38 = vld [vmem:[#allocation58_spill] sm:$0xff]  ;;  %v12546_v25 = vld [vmem:[#allocation84_spill] sm:$0xff] }
 0xb7b   : > { %5862 = vmatprep.mubr.bf16.mxu1 %v5604_v5  ;;  %v5563_v41 = vadd.f32 %v12532_v63, %v5467_v8  ;;  %v7263_v5 = vpack.c.bf16 %v6202_v57, %v6201_v56  ;;  %v5608_v54 = vpack.c.bf16 %v5570_v62, %v5568_v42  ;;  %v5381_v8 = vmul.f32 %v11393_v34, %v12541_v46  ;;  %v12547_v19 = vld [vmem:[#allocation75_spill] sm:$0xff]  ;;  %v6208_v45 = vld [vmem:[%s12525_s18 + $0x48] sm:$0xff]  ;;  %v6209_v63 = vld [vmem:[%s12525_s18 + $0x50] sm:$0xff] }
 0xb7c   : > { %v5567_v50 = vadd.f32 %v12542_v37, %v5471_v27  ;;  %v5569_v43 = vadd.f32 %v12543_v26, %v5473_v39  ;;  %v5386_v29 = vmul.f32 %v11393_v34, %v12545_v38  ;;  %v5572_v6 = vadd.f32 %v12546_v25, %v5476_v20  ;;  %v6207_v57 = vld [vmem:[%s12525_s18 + $0x40] sm:$0xff]  ;;  %v12548_v16 = vld [vmem:[#allocation53_spill] sm:$0xff]  ;;  %v12549_v18 = vld [vmem:[#allocation26_spill] sm:$0xff] }
 0xb7d   : > { %7264 = vmatprep.subr.bf16.mxu0 %v7263_v5  ;;  %v5605_v0 = vpack.c.bf16 %v5565_v7, %v5563_v41  ;;  %v5574_v56 = vadd.f32 %v12547_v19, %v5478_v23  ;;  %v7275_v28 = vpack.c.bf16 %v6208_v45, %v6207_v57  ;;  %v6210_v41 = vld [vmem:[%s12525_s18 + $0x58] sm:$0xff]  ;;  %v5383_v42 = vmul.f32 %v11393_v34, %v12548_v16  ;;  %v12552_v14 = vld [vmem:[#allocation33_spill] sm:$0xff]  ;;  %v12553_v47 = vld [vmem:[#allocation39_spill] sm:$0xff] }
 0xb7e   : > { %7266 = vmatpush3.bf16.msra.mxu0 %v7263_v5  ;;  %v5607_v55 = vpack.c.bf16 %v5569_v43, %v5567_v50  ;;  %v5477_v5 = vmul.f32 %v11323_v2, %v5381_v8  ;;  %v7279_v10 = vpack.c.bf16 %v6210_v41, %v6209_v63  ;;  %v5482_v33 = vmul.f32 %v11327_v30, %v5386_v29  ;;  %v12550_v60 = vld [vmem:[#allocation66_spill] sm:$0xff]  ;;  %v6213_v27 = vld [vmem:[%s12525_s18 + $0x70] sm:$0xff]  ;;  %v12555_v46 = vld [vmem:[#allocation64_spill] sm:$0xff] }
 0xb7f   : > { %7268 = vmatprep.subr.bf16.mxu0 %v7267_v61  ;;  %v5610_v31 = vpack.c.bf16 %v5574_v56, %v5572_v6  ;;  %v5385_v62 = vmul.f32 %v11393_v34, %v12549_v18  ;;  %v5388_v13 = vmul.f32 %v11393_v34, %v12550_v60  ;;  %v5387_v8 = vmul.f32 %v11393_v34, %v12555_v46  ;;  %v12556_v37 = vld [vmem:[#allocation63_spill] sm:$0xff] }
 0xb80   : > { %v5573_v2 = vadd.f32 %v11333_v12, %v5477_v5  ;;  %v5578_v59 = vadd.f32 %v12552_v14, %v5482_v33  ;;  %v5389_v50 = vmul.f32 %v11393_v34, %v12556_v37 }
 0xb81   : > { %v5484_v23 = vmul.f32 %v12553_v47, %v5388_v13 }
 0xb82   : > { %5863 = vmatmul.mubr.bf16.gmra.mrb[172].mxu1 %v5603_v4  ;;  %7270 = vmatpush3.bf16.msra.mxu0 %v7267_v61  ;;  %v5379_v4 = vmul.f32 %v11393_v34, %v12540_v17  ;;  %v12554_v17 = vld [vmem:[#allocation37_spill] sm:$0xff]  ;;  %v5485_v38 = vmul.f32 %v11383_v15, %v5389_v50 }
 0xb83   : > { %5870 = vmatprep.mubr.bf16.mxu1 %v5606_v9  ;;  %7272 = vmatprep.subr.bf16.mxu0 %v7271_v51  ;;  %v12544_v9 = vld [vmem:[#allocation54_spill] sm:$0xff]  ;;  %v5580_v26 = vadd.f32 %v11369_v35, %v5484_v23 }
 0xb84   : > { %v5384_v32 = vmul.f32 %v11393_v34, %v12544_v9  ;;  %v5475_v7 = vmul.f32 %v11315_v22, %v5379_v4 }
 0xb86   : > { %7274 = vmatpush3.bf16.msra.mxu0 %v7271_v51  ;;  %v5480_v3 = vmul.f32 %v11325_v52, %v5384_v32  ;;  %v5571_v22 = vadd.f32 %v11331_v40, %v5475_v7  ;;  %v12551_v52 = vld [vmem:[#allocation59_spill] sm:$0xff]  ;;  %v6212_v40 = vld [vmem:[%s12525_s18 + $0x68] sm:$0xff]  ;;  %v5479_v51 = vmul.f32 %v11353_v1, %v5383_v42  ;;  %v5483_v32 = vmul.f32 %v11381_v21, %v5387_v8 }
 0xb87   : > { %7276 = vmatprep.subr.bf16.mxu0 %v7275_v28  ;;  %v5390_v30 = vmul.f32 %v11393_v34, %v12551_v52 }
 0xb88   : > { %v5576_v61 = vadd.f32 %v11337_v36, %v5480_v3  ;;  %v6214_v36 = vld [vmem:[%s12525_s18 + $0x78] sm:$0xff]  ;;  %v5609_v39 = vpack.c.bf16 %v5573_v2, %v5571_v22  ;;  %v5575_v1 = vadd.f32 %v11363_v48, %v5479_v51  ;;  %v5579_v34 = vadd.f32 %v11387_v49, %v5483_v32 }
 0xb89   : > { %v7287_v11 = vpack.c.bf16 %v6214_v36, %v6213_v27  ;;  %v5486_v4 = vmul.f32 %v12554_v17, %v5390_v30  ;;  %v5581_v48 = vadd.f32 %v11389_v44, %v5485_v38 }
 0xb8a   : > { %5871 = vmatmul.mubr.bf16.gmra.mrb[176].mxu1 %v5605_v0  ;;  %7278 = vmatpush3.bf16.msra.mxu0 %v7275_v28  ;;  %v6211_v0 = vld [vmem:[%s12525_s18 + $0x60] sm:$0xff]  ;;  %v5612_v20 = vpack.c.bf16 %v5578_v59, %v5576_v61 }
 0xb8b   : > { %5878 = vmatprep.mubr.bf16.mxu1 %v5608_v54  ;;  %7280 = vmatprep.subr.bf16.mxu0 %v7279_v10  ;;  %v7283_v12 = vpack.c.bf16 %v6212_v40, %v6211_v0  ;;  %v5481_v54 = vmul.f32 %v11355_v53, %v5385_v62  ;;  %v5582_v43 = vadd.f32 %v11371_v58, %v5486_v4  ;;  %v11574_v58 = vld [vmem:[%s12557_s3] ss:$0 sm:$0xff] }
 0xb8c   : > { %v5613_v25 = vpack.c.bf16 %v5581_v48, %v5579_v34 }
 0xb8d   : > { %v5577_v53 = vadd.f32 %v11365_v24, %v5481_v54  ;;  %v5614_v29 = vpack.c.bf16 %v5582_v43, %v5580_v26 }
 0xb8e   : > { %7282 = vmatpush3.bf16.msra.mxu0 %v7279_v10 }
 0xb8f   : > { %7284 = vmatprep.subr.bf16.mxu0 %v7283_v12  ;;  %v5611_v9 = vpack.c.bf16 %v5577_v53, %v5575_v1 }
 0xb92   : > { %5879 = vmatmul.mubr.bf16.gmra.mrb[180].mxu1 %v5607_v55  ;;  %7286 = vmatpush3.bf16.msra.mxu0 %v7283_v12 }
 0xb93   : > { %5886 = vmatprep.mubr.bf16.mxu1 %v5610_v31  ;;  %7288 = vmatprep.subr.bf16.mxu0 %v7287_v11 }
 0xb96   : > { %7290 = vmatpush3.bf16.msra.mxu0 %v7287_v11 }
 0xb9a   : > { %5887 = vmatmul.mubr.bf16.gmra.mrb[184].mxu1 %v5609_v39 }
 0xb9b   : > { %5894 = vmatprep.mubr.bf16.mxu1 %v5612_v20 }
 0xba2   : > { %5895 = vmatmul.mubr.bf16.gmra.mrb[188].mxu1 %v5611_v9 }
 0xba3   : > { %5902 = vmatprep.mubr.bf16.mxu1 %v5614_v29 }
 0xbaa   : > { %5903 = vmatmul.mubr.bf16.gmra.mrb[192].mxu1 %v5613_v25 }
 0xbf9   : > { %v6800_v24 = vpop.f32.mrb[132].mxu1 }
 0xbfa   : > { %v6801_v35 = vpop.f32.mrb[133].mxu1 }
 0xbfb   : > { %v6802_v6 = vadd.f32 %v6801_v35, %v6800_v24  ;;  %v6803_v21 = vpop.f32.mrb[134].mxu1 }
 0xbfc   : > { %v6804_v19 = vpop.f32.mrb[135].mxu1 }
 0xbfd   : > { %v5785_v15 = vadd.f32 %v6802_v6, %v11574_v58  ;;  %v6805_v56 = vadd.f32 %v6804_v19, %v6803_v21 }
 0xbff   : > { %v5943_v57 = vmul.f32 0.044715, %v5785_v15  ;;  %v5788_v49 = vadd.f32 %v6805_v56, %v11574_v58  ;;  %v5911_v43 = vmul.f32 0.5, %v5785_v15 }
 0xc01   : > { %v5944_v45 = vmul.f32 0.044715, %v5788_v49  ;;  %v6806_v44 = vpop.f32.mrb[136].mxu1  ;;  %v5975_v28 = vmul.f32 %v5943_v57, %v5785_v15  ;;  %v5912_v24 = vmul.f32 0.5, %v5788_v49 }
 0xc02   : > { %v6807_v63 = vpop.f32.mrb[137].mxu1 }
 0xc03   : > { %v5976_v41 = vmul.f32 %v5944_v45, %v5788_v49  ;;  %v6808_v55 = vadd.f32 %v6807_v63, %v6806_v44  ;;  %v6809_v7 = vpop.f32.mrb[138].mxu1  ;;  %v6007_v5 = vmul.f32 %v5975_v28, %v5785_v15 }
 0xc04   : > { %v6810_v10 = vpop.f32.mrb[139].mxu1 }
 0xc05   : > { %v6008_v31 = vmul.f32 %v5976_v41, %v5788_v49  ;;  %v11579_v3 = vadd.f32 %v6808_v55, %v11574_v58  ;;  %v6811_v33 = vadd.f32 %v6810_v10, %v6809_v7  ;;  %v6039_v16 = vadd.f32 %v6007_v5, %v5785_v15 }
 0xc07   : > { %v5945_v42 = vmul.f32 0.044715, %v11579_v3  ;;  %v11583_v18 = vadd.f32 %v6811_v33, %v11574_v58  ;;  %v6071_v62 = vmul.f32 0.7978846, %v6039_v16  ;;  %v6040_v22 = vadd.f32 %v6008_v31, %v5788_v49 }
 0xc08   : > { %v5913_v31 = vmul.f32 0.5, %v11579_v3 }
 0xc09   : > { %v5946_v2 = vmul.f32 0.044715, %v11583_v18  ;;  %v6812_v60 = vpop.f32.mrb[140].mxu1  ;;  %7718 = vtanh.f32 %v6071_v62  ;;  %v6072_v13 = vmul.f32 0.7978846, %v6040_v22  ;;  %v5977_v52 = vmul.f32 %v5945_v42, %v11579_v3 }
 0xc0a   : > { %v6813_v30 = vpop.f32.mrb[141].mxu1 }
 0xc0b   : > { %v6814_v61 = vadd.f32 %v6813_v30, %v6812_v60  ;;  %v6815_v14 = vpop.f32.mrb[142].mxu1  ;;  %7720 = vtanh.f32 %v6072_v13  ;;  %v6009_v59 = vmul.f32 %v5977_v52, %v11579_v3  ;;  %v5978_v0 = vmul.f32 %v5946_v2, %v11583_v18 }
 0xc0c   : > { %v6816_v40 = vpop.f32.mrb[143].mxu1  ;;  %v5914_v13 = vmul.f32 0.5, %v11583_v18 }
 0xc0d   : > { %v11590_v12 = vadd.f32 %v6814_v61, %v11574_v58  ;;  %v6817_v27 = vadd.f32 %v6816_v40, %v6815_v14  ;;  %v6041_v36 = vadd.f32 %v6009_v59, %v11579_v3  ;;  %v6010_v39 = vmul.f32 %v5978_v0, %v11583_v18 }
 0xc0f   : > { %v5947_v51 = vmul.f32 0.044715, %v11590_v12  ;;  %v11596_v54 = vadd.f32 %v6817_v27, %v11574_v58  ;;  %v6073_v11 = vmul.f32 0.7978846, %v6041_v36  ;;  %v6042_v20 = vadd.f32 %v6010_v39, %v11583_v18 }
 0xc11   : > { %v5948_v47 = vmul.f32 0.044715, %v11596_v54  ;;  %v6818_v23 = vpop.f32.mrb[144].mxu1  ;;  %7722 = vtanh.f32 %v6073_v11  ;;  %v6074_v17 = vmul.f32 0.7978846, %v6042_v20  ;;  %v5979_v4 = vmul.f32 %v5947_v51, %v11590_v12 }
 0xc12   : > { %v6819_v46 = vpop.f32.mrb[145].mxu1 }
 0xc13   : > { %v7719_v8 = vpop.eup %7718  ;;  %v6820_v37 = vadd.f32 %v6819_v46, %v6818_v23  ;;  %v6821_v50 = vpop.f32.mrb[146].mxu1  ;;  %7724 = vtanh.f32 %v6074_v17  ;;  %v6011_v1 = vmul.f32 %v5979_v4, %v11590_v12  ;;  %v5980_v53 = vmul.f32 %v5948_v47, %v11596_v54 }
 0xc14   : > { %v6822_v26 = vpop.f32.mrb[147].mxu1  ;;  %v6135_v9 = vadd.f32 1.0, %v7719_v8  ;;  %v5915_v17 = vmul.f32 0.5, %v11590_v12 }
 0xc15   : > { %v7721_v32 = vpop.eup %7720  ;;  %v11604_v38 = vadd.f32 %v6820_v37, %v11574_v58  ;;  %v6823_v29 = vadd.f32 %v6822_v26, %v6821_v50  ;;  %v6043_v34 = vadd.f32 %v6011_v1, %v11590_v12  ;;  %v6012_v48 = vmul.f32 %v5980_v53, %v11596_v54 }
 0xc16   : > { %v6167_v25 = vmul.f32 %v6135_v9, %v5911_v43  ;;  %v6136_v35 = vadd.f32 1.0, %v7721_v32  ;;  %v5916_v26 = vmul.f32 0.5, %v11596_v54 }
 0xc17   : > { %v5949_v6 = vmul.f32 0.044715, %v11604_v38  ;;  %v11610_v21 = vadd.f32 %v6823_v29, %v11574_v58  ;;  %v6075_v19 = vmul.f32 0.7978846, %v6043_v34  ;;  %v6044_v15 = vadd.f32 %v6012_v48, %v11596_v54 }
 0xc18   : > { %6983 = vmatprep.mubr.f32.mxu0 %v6167_v25  ;;  %v6168_v56 = vmul.f32 %v6136_v35, %v5912_v24 }
 0xc19   : > { %v5950_v57 = vmul.f32 0.044715, %v11610_v21  ;;  %v6824_v45 = vpop.f32.mrb[148].mxu1  ;;  %7726 = vtanh.f32 %v6075_v19  ;;  %v6076_v44 = vmul.f32 0.7978846, %v6044_v15  ;;  %v5981_v28 = vmul.f32 %v5949_v6, %v11604_v38 }
 0xc1a   : > { %v6825_v63 = vpop.f32.mrb[149].mxu1  ;;  %6984 = vmatmul.mubr.f32.vlgmr.msra.gmra.mrb[80].mxu0 %v6168_v56 }
 0xc1b   : > { %v7723_v49 = vpop.eup %7722  ;;  %v6826_v41 = vadd.f32 %v6825_v63, %v6824_v45  ;;  %v6827_v55 = vpop.f32.mrb[150].mxu1  ;;  %7728 = vtanh.f32 %v6076_v44  ;;  %v6013_v7 = vmul.f32 %v5981_v28, %v11604_v38  ;;  %v5982_v5 = vmul.f32 %v5950_v57, %v11610_v21 }
 0xc1c   : > { %v6828_v10 = vpop.f32.mrb[151].mxu1  ;;  %v6137_v33 = vadd.f32 1.0, %v7723_v49  ;;  %v5917_v44 = vmul.f32 0.5, %v11604_v38 }
 0xc1d   : > { %v7725_v16 = vpop.eup %7724  ;;  %v11619_v42 = vadd.f32 %v6826_v41, %v11574_v58  ;;  %v6829_v62 = vadd.f32 %v6828_v10, %v6827_v55  ;;  %v6045_v22 = vadd.f32 %v6013_v7, %v11604_v38  ;;  %v6014_v2 = vmul.f32 %v5982_v5, %v11610_v21 }
 0xc1e   : > { %v6169_v60 = vmul.f32 %v6137_v33, %v5913_v31  ;;  %v6138_v52 = vadd.f32 1.0, %v7725_v16  ;;  %v5918_v10 = vmul.f32 0.5, %v11610_v21 }
 0xc1f   : > { %v5951_v30 = vmul.f32 0.044715, %v11619_v42  ;;  %v11626_v61 = vadd.f32 %v6829_v62, %v11574_v58  ;;  %v6077_v3 = vmul.f32 0.7978846, %v6045_v22  ;;  %v6046_v14 = vadd.f32 %v6014_v2, %v11610_v21 }
 0xc20   : > { %6986 = vmatprep.mubr.f32.mxu0 %v6169_v60  ;;  %v6170_v59 = vmul.f32 %v6138_v52, %v5914_v13 }
 0xc21   : > { %v5952_v0 = vmul.f32 0.044715, %v11626_v61  ;;  %v6830_v40 = vpop.f32.mrb[152].mxu1  ;;  %7730 = vtanh.f32 %v6077_v3  ;;  %v6078_v27 = vmul.f32 0.7978846, %v6046_v14  ;;  %v5983_v36 = vmul.f32 %v5951_v30, %v11619_v42 }
 0xc22   : > { %v6831_v39 = vpop.f32.mrb[153].mxu1  ;;  %6987 = vmatmul.mubr.f32.gmra.mrb[82].mxu0 %v6170_v59 }
 0xc23   : > { %v7727_v18 = vpop.eup %7726  ;;  %v6832_v51 = vadd.f32 %v6831_v39, %v6830_v40  ;;  %v6833_v11 = vpop.f32.mrb[154].mxu1  ;;  %7732 = vtanh.f32 %v6078_v27  ;;  %v6015_v20 = vmul.f32 %v5983_v36, %v11619_v42  ;;  %v5984_v47 = vmul.f32 %v5952_v0, %v11626_v61 }
 0xc24   : > { %v6834_v23 = vpop.f32.mrb[155].mxu1  ;;  %v6139_v4 = vadd.f32 1.0, %v7727_v18  ;;  %v5919_v27 = vmul.f32 0.5, %v11619_v42 }
 0xc25   : > { %v7729_v46 = vpop.eup %7728  ;;  %v11635_v8 = vadd.f32 %v6832_v51, %v11574_v58  ;;  %v6835_v37 = vadd.f32 %v6834_v23, %v6833_v11  ;;  %v6047_v50 = vadd.f32 %v6015_v20, %v11619_v42  ;;  %v6016_v1 = vmul.f32 %v5984_v47, %v11626_v61 }
 0xc26   : > { %v6171_v53 = vmul.f32 %v6139_v4, %v5915_v17  ;;  %v6140_v43 = vadd.f32 1.0, %v7729_v46  ;;  %v5920_v23 = vmul.f32 0.5, %v11626_v61 }
 0xc27   : > { %v5953_v9 = vmul.f32 0.044715, %v11635_v8  ;;  %v11642_v32 = vadd.f32 %v6835_v37, %v11574_v58  ;;  %v6079_v12 = vmul.f32 0.7978846, %v6047_v50  ;;  %v6048_v29 = vadd.f32 %v6016_v1, %v11626_v61 }
 0xc28   : > { %6989 = vmatprep.mubr.f32.mxu0 %v6171_v53  ;;  %v6172_v34 = vmul.f32 %v6140_v43, %v5916_v26  ;;  %v5921_v61 = vmul.f32 0.5, %v11635_v8 }
 0xc29   : > { %v5954_v48 = vmul.f32 0.044715, %v11642_v32  ;;  %v6836_v25 = vpop.f32.mrb[156].mxu1  ;;  %7734 = vtanh.f32 %v6079_v12  ;;  %v6080_v24 = vmul.f32 0.7978846, %v6048_v29  ;;  %v5985_v35 = vmul.f32 %v5953_v9, %v11635_v8 }
 0xc2a   : > { %v6837_v6 = vpop.f32.mrb[157].mxu1  ;;  %6990 = vmatmul.mubr.f32.gmra.mrb[84].mxu0 %v6172_v34 }
 0xc2b   : > { %v7731_v54 = vpop.eup %7730  ;;  %v6838_v19 = vadd.f32 %v6837_v6, %v6836_v25  ;;  %v6839_v15 = vpop.f32.mrb[158].mxu1  ;;  %7736 = vtanh.f32 %v6080_v24  ;;  %v6017_v56 = vmul.f32 %v5985_v35, %v11635_v8  ;;  %v5986_v57 = vmul.f32 %v5954_v48, %v11642_v32 }
 0xc2c   : > { %v6840_v45 = vpop.f32.mrb[159].mxu1  ;;  %v6141_v28 = vadd.f32 1.0, %v7731_v54  ;;  %v5922_v35 = vmul.f32 0.5, %v11642_v32 }
 0xc2d   : > { %v7733_v63 = vpop.eup %7732  ;;  %v11651_v49 = vadd.f32 %v6838_v19, %v11574_v58  ;;  %v6841_v41 = vadd.f32 %v6840_v45, %v6839_v15  ;;  %v6049_v55 = vadd.f32 %v6017_v56, %v11635_v8  ;;  %v6018_v7 = vmul.f32 %v5986_v57, %v11642_v32 }
 0xc2e   : > { %v6173_v5 = vmul.f32 %v6141_v28, %v5917_v44  ;;  %v6142_v31 = vadd.f32 1.0, %v7733_v63 }
 0xc2f   : > { %v5955_v33 = vmul.f32 0.044715, %v11651_v49  ;;  %v11658_v16 = vadd.f32 %v6841_v41, %v11574_v58  ;;  %v6081_v38 = vmul.f32 0.7978846, %v6049_v55  ;;  %v6050_v62 = vadd.f32 %v6018_v7, %v11642_v32 }
 0xc30   : > { %6992 = vmatprep.mubr.f32.mxu0 %v6173_v5  ;;  %v6174_v22 = vmul.f32 %v6142_v31, %v5918_v10  ;;  %v5923_v45 = vmul.f32 0.5, %v11651_v49 }
 0xc31   : > { %v5956_v2 = vmul.f32 0.044715, %v11658_v16  ;;  %v6842_v60 = vpop.f32.mrb[160].mxu1  ;;  %7738 = vtanh.f32 %v6081_v38  ;;  %v6082_v13 = vmul.f32 0.7978846, %v6050_v62  ;;  %v5987_v52 = vmul.f32 %v5955_v33, %v11651_v49 }
 0xc32   : > { %v6843_v30 = vpop.f32.mrb[161].mxu1  ;;  %6993 = vmatmul.mubr.f32.gmra.mrb[86].mxu0 %v6174_v22  ;;  %v5924_v63 = vmul.f32 0.5, %v11658_v16 }
 0xc33   : > { %v7735_v21 = vpop.eup %7734  ;;  %v6844_v3 = vadd.f32 %v6843_v30, %v6842_v60  ;;  %v6845_v14 = vpop.f32.mrb[162].mxu1  ;;  %7740 = vtanh.f32 %v6082_v13  ;;  %v6019_v59 = vmul.f32 %v5987_v52, %v11651_v49  ;;  %v5988_v0 = vmul.f32 %v5956_v2, %v11658_v16 }
 0xc34   : > { %v6846_v40 = vpop.f32.mrb[163].mxu1  ;;  %v6143_v36 = vadd.f32 1.0, %v7735_v21 }
 0xc35   : > { %v7737_v39 = vpop.eup %7736  ;;  %v5841_v18 = vadd.f32 %v6844_v3, %v11574_v58  ;;  %v6847_v51 = vadd.f32 %v6846_v40, %v6845_v14  ;;  %v6051_v11 = vadd.f32 %v6019_v59, %v11651_v49  ;;  %v6020_v20 = vmul.f32 %v5988_v0, %v11658_v16 }
 0xc36   : > { %v6175_v47 = vmul.f32 %v6143_v36, %v5919_v27  ;;  %v6144_v17 = vadd.f32 1.0, %v7737_v39 }
 0xc37   : > { %v5957_v4 = vmul.f32 0.044715, %v5841_v18  ;;  %v5844_v46 = vadd.f32 %v6847_v51, %v11574_v58  ;;  %v6083_v37 = vmul.f32 0.7978846, %v6051_v11  ;;  %v6052_v50 = vadd.f32 %v6020_v20, %v11658_v16 }
 0xc38   : > { %6995 = vmatprep.mubr.f32.mxu0 %v6175_v47  ;;  %v6176_v42 = vmul.f32 %v6144_v17, %v5920_v23  ;;  %v5925_v22 = vmul.f32 0.5, %v5841_v18 }
 0xc39   : > { %v5958_v1 = vmul.f32 0.044715, %v5844_v46  ;;  %7742 = vtanh.f32 %v6083_v37  ;;  %v6084_v53 = vmul.f32 0.7978846, %v6052_v50  ;;  %v5989_v26 = vmul.f32 %v5957_v4, %v5841_v18 }
 0xc3a   : > { %6996 = vmatmul.mubr.f32.gmra.mrb[88].mxu0 %v6176_v42  ;;  %v5926_v52 = vmul.f32 0.5, %v5844_v46 }
 0xc3b   : > { %v7739_v43 = vpop.eup %7738  ;;  %7744 = vtanh.f32 %v6084_v53  ;;  %v6021_v9 = vmul.f32 %v5989_v26, %v5841_v18  ;;  %v5990_v12 = vmul.f32 %v5958_v1, %v5844_v46 }
 0xc3c   : > { %v6145_v29 = vadd.f32 1.0, %v7739_v43 }
 0xc3d   : > { %v7741_v34 = vpop.eup %7740  ;;  %v6053_v48 = vadd.f32 %v6021_v9, %v5841_v18  ;;  %v6022_v25 = vmul.f32 %v5990_v12, %v5844_v46 }
 0xc3e   : > { %v6177_v24 = vmul.f32 %v6145_v29, %v5921_v61  ;;  %v6146_v6 = vadd.f32 1.0, %v7741_v34 }
 0xc3f   : > { %v6085_v54 = vmul.f32 0.7978846, %v6053_v48  ;;  %v6054_v19 = vadd.f32 %v6022_v25, %v5844_v46 }
 0xc40   : > { %6998 = vmatprep.mubr.f32.mxu0 %v6177_v24  ;;  %v6178_v15 = vmul.f32 %v6146_v6, %v5922_v35 }
 0xc41   : > { %7746 = vtanh.f32 %v6085_v54  ;;  %v6086_v56 = vmul.f32 0.7978846, %v6054_v19 }
 0xc42   : > { %6999 = vmatmul.mubr.f32.gmra.mrb[90].mxu0 %v6178_v15 }
 0xc43   : > { %v7743_v57 = vpop.eup %7742  ;;  %7748 = vtanh.f32 %v6086_v56 }
 0xc44   : > { %v6147_v8 = vadd.f32 1.0, %v7743_v57 }
 0xc45   : > { %v7745_v44 = vpop.eup %7744  ;;  %v6848_v55 = vpop.f32.mrb[164].mxu1 }
 0xc46   : > { %v6179_v28 = vmul.f32 %v6147_v8, %v5923_v45  ;;  %v6148_v41 = vadd.f32 1.0, %v7745_v44  ;;  %v6849_v32 = vpop.f32.mrb[165].mxu1 }
 0xc47   : > { %v6850_v5 = vadd.f32 %v6849_v32, %v6848_v55  ;;  %v6851_v10 = vpop.f32.mrb[166].mxu1 }
 0xc48   : > { %7001 = vmatprep.mubr.f32.mxu0 %v6179_v28  ;;  %v6180_v7 = vmul.f32 %v6148_v41, %v5924_v63  ;;  %v6852_v31 = vpop.f32.mrb[167].mxu1 }
 0xc49   : > { %v5849_v38 = vadd.f32 %v6850_v5, %v11574_v58  ;;  %v6853_v62 = vadd.f32 %v6852_v31, %v6851_v10 }
 0xc4a   : > { %7002 = vmatmul.mubr.f32.gmra.mrb[92].mxu0 %v6180_v7 }
 0xc4b   : > { %v7747_v33 = vpop.eup %7746  ;;  %v5959_v60 = vmul.f32 0.044715, %v5849_v38  ;;  %v11678_v13 = vadd.f32 %v6853_v62, %v11574_v58  ;;  %v5927_v32 = vmul.f32 0.5, %v5849_v38 }
 0xc4c   : > { %v6149_v49 = vadd.f32 1.0, %v7747_v33 }
 0xc4d   : > { %v7749_v2 = vpop.eup %7748  ;;  %v5960_v21 = vmul.f32 0.044715, %v11678_v13  ;;  %v6854_v3 = vpop.f32.mrb[168].mxu1  ;;  %v5991_v14 = vmul.f32 %v5959_v60, %v5849_v38 }
 0xc4e   : > { %v6181_v16 = vmul.f32 %v6149_v49, %v5925_v22  ;;  %v6150_v30 = vadd.f32 1.0, %v7749_v2  ;;  %v6855_v59 = vpop.f32.mrb[169].mxu1  ;;  %v5928_v49 = vmul.f32 0.5, %v11678_v13 }
 0xc4f   : > { %v6856_v40 = vadd.f32 %v6855_v59, %v6854_v3  ;;  %v6857_v27 = vpop.f32.mrb[170].mxu1  ;;  %v6023_v36 = vmul.f32 %v5991_v14, %v5849_v38  ;;  %v5992_v39 = vmul.f32 %v5960_v21, %v11678_v13 }
 0xc50   : > { %7004 = vmatprep.mubr.f32.mxu0 %v6181_v16  ;;  %v6182_v0 = vmul.f32 %v6150_v30, %v5926_v52  ;;  %v6858_v18 = vpop.f32.mrb[171].mxu1 }
 0xc51   : > { %v11683_v51 = vadd.f32 %v6856_v40, %v11574_v58  ;;  %v6859_v11 = vadd.f32 %v6858_v18, %v6857_v27  ;;  %v6055_v20 = vadd.f32 %v6023_v36, %v5849_v38  ;;  %v6024_v47 = vmul.f32 %v5992_v39, %v11678_v13 }
 0xc52   : > { %7005 = vmatmul.mubr.f32.gmra.mrb[94].mxu0 %v6182_v0 }
 0xc53   : > { %v5961_v23 = vmul.f32 0.044715, %v11683_v51  ;;  %v11688_v17 = vadd.f32 %v6859_v11, %v11574_v58  ;;  %v6087_v4 = vmul.f32 0.7978846, %v6055_v20  ;;  %v6056_v46 = vadd.f32 %v6024_v47, %v11678_v13 }
 0xc54   : > { %v5929_v11 = vmul.f32 0.5, %v11683_v51 }
 0xc55   : > { %v5962_v37 = vmul.f32 0.044715, %v11688_v17  ;;  %v6860_v50 = vpop.f32.mrb[172].mxu1  ;;  %7750 = vtanh.f32 %v6087_v4  ;;  %v6088_v42 = vmul.f32 0.7978846, %v6056_v46  ;;  %v5993_v1 = vmul.f32 %v5961_v23, %v11683_v51 }
 0xc56   : > { %v6861_v53 = vpop.f32.mrb[173].mxu1 }
 0xc57   : > { %v6862_v26 = vadd.f32 %v6861_v53, %v6860_v50  ;;  %v6863_v43 = vpop.f32.mrb[174].mxu1  ;;  %7752 = vtanh.f32 %v6088_v42  ;;  %v6025_v9 = vmul.f32 %v5993_v1, %v11683_v51  ;;  %v5994_v12 = vmul.f32 %v5962_v37, %v11688_v17 }
 0xc58   : > { %v6864_v61 = vpop.f32.mrb[175].mxu1  ;;  %v5930_v42 = vmul.f32 0.5, %v11688_v17 }
 0xc59   : > { %v11696_v29 = vadd.f32 %v6862_v26, %v11574_v58  ;;  %v6865_v34 = vadd.f32 %v6864_v61, %v6863_v43  ;;  %v6057_v48 = vadd.f32 %v6025_v9, %v11683_v51  ;;  %v6026_v25 = vmul.f32 %v5994_v12, %v11688_v17 }
 0xc5b   : > { %v5963_v24 = vmul.f32 0.044715, %v11696_v29  ;;  %v11702_v35 = vadd.f32 %v6865_v34, %v11574_v58  ;;  %v6089_v6 = vmul.f32 0.7978846, %v6057_v48  ;;  %v6058_v54 = vadd.f32 %v6026_v25, %v11688_v17 }
 0xc5d   : > { %v5964_v19 = vmul.f32 0.044715, %v11702_v35  ;;  %v6866_v15 = vpop.f32.mrb[176].mxu1  ;;  %7754 = vtanh.f32 %v6089_v6  ;;  %v6090_v56 = vmul.f32 0.7978846, %v6058_v54  ;;  %v5995_v57 = vmul.f32 %v5963_v24, %v11696_v29 }
 0xc5e   : > { %v6867_v45 = vpop.f32.mrb[177].mxu1 }
 0xc5f   : > { %v7751_v8 = vpop.eup %7750  ;;  %v6868_v44 = vadd.f32 %v6867_v45, %v6866_v15  ;;  %v6869_v28 = vpop.f32.mrb[178].mxu1  ;;  %7756 = vtanh.f32 %v6090_v56  ;;  %v6027_v63 = vmul.f32 %v5995_v57, %v11696_v29  ;;  %v5996_v41 = vmul.f32 %v5964_v19, %v11702_v35 }
 0xc60   : > { %v6870_v55 = vpop.f32.mrb[179].mxu1  ;;  %v6151_v7 = vadd.f32 1.0, %v7751_v8  ;;  %v5931_v56 = vmul.f32 0.5, %v11696_v29 }
 0xc61   : > { %v7753_v5 = vpop.eup %7752  ;;  %v11710_v10 = vadd.f32 %v6868_v44, %v11574_v58  ;;  %v6871_v31 = vadd.f32 %v6870_v55, %v6869_v28  ;;  %v6059_v33 = vadd.f32 %v6027_v63, %v11696_v29  ;;  %v6028_v62 = vmul.f32 %v5996_v41, %v11702_v35 }
 0xc62   : > { %v6183_v22 = vmul.f32 %v6151_v7, %v5927_v32  ;;  %v6152_v2 = vadd.f32 1.0, %v7753_v5  ;;  %v5932_v55 = vmul.f32 0.5, %v11702_v35 }
 0xc63   : > { %v5965_v60 = vmul.f32 0.044715, %v11710_v10  ;;  %v11717_v16 = vadd.f32 %v6871_v31, %v11574_v58  ;;  %v6091_v38 = vmul.f32 0.7978846, %v6059_v33  ;;  %v6060_v52 = vadd.f32 %v6028_v62, %v11702_v35 }
 0xc64   : > { %7007 = vmatprep.mubr.f32.mxu0 %v6183_v22  ;;  %v6184_v30 = vmul.f32 %v6152_v2, %v5928_v49 }
 0xc65   : > { %v5966_v21 = vmul.f32 0.044715, %v11717_v16  ;;  %v6872_v3 = vpop.f32.mrb[180].mxu1  ;;  %7758 = vtanh.f32 %v6091_v38  ;;  %v6092_v14 = vmul.f32 0.7978846, %v6060_v52  ;;  %v5997_v59 = vmul.f32 %v5965_v60, %v11710_v10 }
 0xc66   : > { %v6873_v0 = vpop.f32.mrb[181].mxu1  ;;  %7008 = vmatmul.mubr.f32.gmra.mrb[96].mxu0 %v6184_v30 }
 0xc67   : > { %v7755_v13 = vpop.eup %7754  ;;  %v6874_v40 = vadd.f32 %v6873_v0, %v6872_v3  ;;  %v6875_v27 = vpop.f32.mrb[182].mxu1  ;;  %7760 = vtanh.f32 %v6092_v14  ;;  %v6029_v36 = vmul.f32 %v5997_v59, %v11710_v10  ;;  %v5998_v39 = vmul.f32 %v5966_v21, %v11717_v16 }
 0xc68   : > { %v6876_v18 = vpop.f32.mrb[183].mxu1  ;;  %v6153_v20 = vadd.f32 1.0, %v7755_v13  ;;  %v5933_v14 = vmul.f32 0.5, %v11710_v10 }
 0xc69   : > { %v7757_v47 = vpop.eup %7756  ;;  %v11726_v23 = vadd.f32 %v6874_v40, %v11574_v58  ;;  %v6877_v4 = vadd.f32 %v6876_v18, %v6875_v27  ;;  %v6061_v46 = vadd.f32 %v6029_v36, %v11710_v10  ;;  %v6030_v37 = vmul.f32 %v5998_v39, %v11717_v16 }
 0xc6a   : > { %v6185_v50 = vmul.f32 %v6153_v20, %v5929_v11  ;;  %v6154_v1 = vadd.f32 1.0, %v7757_v47  ;;  %v5934_v18 = vmul.f32 0.5, %v11717_v16 }
 0xc6b   : > { %v5967_v53 = vmul.f32 0.044715, %v11726_v23  ;;  %v11733_v26 = vadd.f32 %v6877_v4, %v11574_v58  ;;  %v6093_v51 = vmul.f32 0.7978846, %v6061_v46  ;;  %v6062_v43 = vadd.f32 %v6030_v37, %v11717_v16 }
 0xc6c   : > { %7010 = vmatprep.mubr.f32.mxu0 %v6185_v50  ;;  %v6186_v9 = vmul.f32 %v6154_v1, %v5930_v42 }
 0xc6d   : > { %v5968_v12 = vmul.f32 0.044715, %v11733_v26  ;;  %v6878_v61 = vpop.f32.mrb[184].mxu1  ;;  %7762 = vtanh.f32 %v6093_v51  ;;  %v6094_v34 = vmul.f32 0.7978846, %v6062_v43  ;;  %v5999_v48 = vmul.f32 %v5967_v53, %v11726_v23 }
 0xc6e   : > { %v6879_v25 = vpop.f32.mrb[185].mxu1  ;;  %7011 = vmatmul.mubr.f32.gmra.mrb[98].mxu0 %v6186_v9 }
 0xc6f   : > { %v7759_v17 = vpop.eup %7758  ;;  %v6880_v24 = vadd.f32 %v6879_v25, %v6878_v61  ;;  %v6881_v6 = vpop.f32.mrb[186].mxu1  ;;  %7764 = vtanh.f32 %v6094_v34  ;;  %v6031_v54 = vmul.f32 %v5999_v48, %v11726_v23  ;;  %v6000_v19 = vmul.f32 %v5968_v12, %v11733_v26 }
 0xc70   : > { %v6882_v15 = vpop.f32.mrb[187].mxu1  ;;  %v6155_v57 = vadd.f32 1.0, %v7759_v17  ;;  %v5935_v34 = vmul.f32 0.5, %v11726_v23 }
 0xc71   : > { %v7761_v45 = vpop.eup %7760  ;;  %v11742_v8 = vadd.f32 %v6880_v24, %v11574_v58  ;;  %v6883_v44 = vadd.f32 %v6882_v15, %v6881_v6  ;;  %v6063_v28 = vadd.f32 %v6031_v54, %v11726_v23  ;;  %v6032_v63 = vmul.f32 %v6000_v19, %v11733_v26 }
 0xc72   : > { %v6187_v41 = vmul.f32 %v6155_v57, %v5931_v56  ;;  %v6156_v32 = vadd.f32 1.0, %v7761_v45  ;;  %v5936_v15 = vmul.f32 0.5, %v11733_v26 }
 0xc73   : > { %v5969_v7 = vmul.f32 0.044715, %v11742_v8  ;;  %v11749_v5 = vadd.f32 %v6883_v44, %v11574_v58  ;;  %v6095_v29 = vmul.f32 0.7978846, %v6063_v28  ;;  %v6064_v31 = vadd.f32 %v6032_v63, %v11733_v26 }
 0xc74   : > { %7013 = vmatprep.mubr.f32.mxu0 %v6187_v41  ;;  %v6188_v33 = vmul.f32 %v6156_v32, %v5932_v55  ;;  %v5937_v26 = vmul.f32 0.5, %v11742_v8 }
 0xc75   : > { %v5970_v62 = vmul.f32 0.044715, %v11749_v5  ;;  %v6884_v22 = vpop.f32.mrb[188].mxu1  ;;  %7766 = vtanh.f32 %v6095_v29  ;;  %v6096_v49 = vmul.f32 0.7978846, %v6064_v31  ;;  %v6001_v2 = vmul.f32 %v5969_v7, %v11742_v8 }
 0xc76   : > { %v6885_v60 = vpop.f32.mrb[189].mxu1  ;;  %7014 = vmatmul.mubr.f32.gmra.mrb[100].mxu0 %v6188_v33 }
 0xc77   : > { %v7763_v35 = vpop.eup %7762  ;;  %v6886_v38 = vadd.f32 %v6885_v60, %v6884_v22  ;;  %v6887_v52 = vpop.f32.mrb[190].mxu1  ;;  %7768 = vtanh.f32 %v6096_v49  ;;  %v6033_v30 = vmul.f32 %v6001_v2, %v11742_v8  ;;  %v6002_v21 = vmul.f32 %v5970_v62, %v11749_v5 }
 0xc78   : > { %v6888_v3 = vpop.f32.mrb[191].mxu1  ;;  %v6157_v59 = vadd.f32 1.0, %v7763_v35  ;;  %v5938_v49 = vmul.f32 0.5, %v11749_v5 }
 0xc79   : > { %v7765_v0 = vpop.eup %7764  ;;  %v11758_v13 = vadd.f32 %v6886_v38, %v11574_v58  ;;  %v6889_v40 = vadd.f32 %v6888_v3, %v6887_v52  ;;  %v6065_v27 = vadd.f32 %v6033_v30, %v11742_v8  ;;  %v6034_v36 = vmul.f32 %v6002_v21, %v11749_v5 }
 0xc7a   : > { %v6189_v39 = vmul.f32 %v6157_v59, %v5933_v14  ;;  %v6158_v11 = vadd.f32 1.0, %v7765_v0 }
 0xc7b   : > { %v5971_v20 = vmul.f32 0.044715, %v11758_v13  ;;  %v11765_v47 = vadd.f32 %v6889_v40, %v11574_v58  ;;  %v6097_v10 = vmul.f32 0.7978846, %v6065_v27  ;;  %v6066_v4 = vadd.f32 %v6034_v36, %v11749_v5 }
 0xc7c   : > { %7016 = vmatprep.mubr.f32.mxu0 %v6189_v39  ;;  %v6190_v46 = vmul.f32 %v6158_v11, %v5934_v18  ;;  %v5939_v21 = vmul.f32 0.5, %v11758_v13 }
 0xc7d   : > { %v5972_v37 = vmul.f32 0.044715, %v11765_v47  ;;  %v6890_v50 = vpop.f32.mrb[192].mxu1  ;;  %7770 = vtanh.f32 %v6097_v10  ;;  %v6098_v42 = vmul.f32 0.7978846, %v6066_v4  ;;  %v6003_v1 = vmul.f32 %v5971_v20, %v11758_v13 }
 0xc7e   : > { %v6891_v53 = vpop.f32.mrb[193].mxu1  ;;  %7017 = vmatmul.mubr.f32.gmra.mrb[102].mxu0 %v6190_v46  ;;  %v5940_v59 = vmul.f32 0.5, %v11765_v47 }
 0xc7f   : > { %v7767_v16 = vpop.eup %7766  ;;  %v6892_v51 = vadd.f32 %v6891_v53, %v6890_v50  ;;  %v6893_v43 = vpop.f32.mrb[194].mxu1  ;;  %7772 = vtanh.f32 %v6098_v42  ;;  %v6035_v9 = vmul.f32 %v6003_v1, %v11758_v13  ;;  %v6004_v12 = vmul.f32 %v5972_v37, %v11765_v47 }
 0xc80   : > { %v6894_v61 = vpop.f32.mrb[195].mxu1  ;;  %v6159_v48 = vadd.f32 1.0, %v7767_v16 }
 0xc81   : > { %v7769_v25 = vpop.eup %7768  ;;  %v5905_v17 = vadd.f32 %v6892_v51, %v11574_v58  ;;  %v6895_v24 = vadd.f32 %v6894_v61, %v6893_v43  ;;  %v6067_v6 = vadd.f32 %v6035_v9, %v11758_v13  ;;  %v6036_v54 = vmul.f32 %v6004_v12, %v11765_v47  ;;  %v11787_v13 = vld [vmem:[%s12558_s0] ss:$0 sm:$0xff] }
 0xc82   : > { %v6191_v19 = vmul.f32 %v6159_v48, %v5935_v34  ;;  %v6160_v56 = vadd.f32 1.0, %v7769_v25 }
 0xc83   : > { %v5973_v57 = vmul.f32 0.044715, %v5905_v17  ;;  %v5908_v45 = vadd.f32 %v6895_v24, %v11574_v58  ;;  %v6099_v44 = vmul.f32 0.7978846, %v6067_v6  ;;  %v6068_v28 = vadd.f32 %v6036_v54, %v11765_v47 }
 0xc84   : > { %7019 = vmatprep.mubr.f32.mxu0 %v6191_v19  ;;  %v6192_v23 = vmul.f32 %v6160_v56, %v5936_v15  ;;  %v5941_v27 = vmul.f32 0.5, %v5905_v17 }
 0xc85   : > { %v5974_v63 = vmul.f32 0.044715, %v5908_v45  ;;  %7774 = vtanh.f32 %v6099_v44  ;;  %v6100_v41 = vmul.f32 0.7978846, %v6068_v28  ;;  %v6005_v55 = vmul.f32 %v5973_v57, %v5905_v17 }
 0xc86   : > { %7020 = vmatmul.mubr.f32.gmra.mrb[104].mxu0 %v6192_v23  ;;  %v5942_v11 = vmul.f32 0.5, %v5908_v45 }
 0xc87   : > { %v7771_v32 = vpop.eup %7770  ;;  %7776 = vtanh.f32 %v6100_v41  ;;  %v6037_v7 = vmul.f32 %v6005_v55, %v5905_v17  ;;  %v6006_v29 = vmul.f32 %v5974_v63, %v5908_v45 }
 0xc88   : > { %v6161_v31 = vadd.f32 1.0, %v7771_v32 }
 0xc89   : > { %v7773_v33 = vpop.eup %7772  ;;  %v6069_v62 = vadd.f32 %v6037_v7, %v5905_v17  ;;  %v6038_v58 = vmul.f32 %v6006_v29, %v5908_v45 }
 0xc8a   : > { %v6193_v22 = vmul.f32 %v6161_v31, %v5937_v26  ;;  %v6162_v2 = vadd.f32 1.0, %v7773_v33 }
 0xc8b   : > { %v6101_v60 = vmul.f32 0.7978846, %v6069_v62  ;;  %v6070_v35 = vadd.f32 %v6038_v58, %v5908_v45 }
 0xc8c   : > { %7022 = vmatprep.mubr.f32.mxu0 %v6193_v22  ;;  %v6194_v38 = vmul.f32 %v6162_v2, %v5938_v49 }
 0xc8d   : > { %7778 = vtanh.f32 %v6101_v60  ;;  %v6102_v52 = vmul.f32 0.7978846, %v6070_v35 }
 0xc8e   : > { %7023 = vmatmul.mubr.f32.gmra.mrb[106].mxu0 %v6194_v38 }
 0xc8f   : > { %v7775_v30 = vpop.eup %7774  ;;  %7780 = vtanh.f32 %v6102_v52 }
 0xc90   : > { %v6163_v8 = vadd.f32 1.0, %v7775_v30 }
 0xc91   : > { %v7777_v3 = vpop.eup %7776 }
 0xc92   : > { %v6195_v14 = vmul.f32 %v6163_v8, %v5939_v21  ;;  %v6164_v0 = vadd.f32 1.0, %v7777_v3 }
 0xc94   : > { %7025 = vmatprep.mubr.f32.mxu0 %v6195_v14  ;;  %v6196_v5 = vmul.f32 %v6164_v0, %v5940_v59 }
 0xc96   : > { %7026 = vmatmul.mubr.f32.gmra.mrb[108].mxu0 %v6196_v5 }
 0xc97   : > { %v7779_v40 = vpop.eup %7778 }
 0xc98   : > { %v6165_v36 = vadd.f32 1.0, %v7779_v40 }
 0xc99   : > { %v7781_v39 = vpop.eup %7780 }
 0xc9a   : > { %v6197_v18 = vmul.f32 %v6165_v36, %v5941_v27  ;;  %v6166_v20 = vadd.f32 1.0, %v7781_v39 }
 0xc9c   : > { %7028 = vmatprep.mubr.f32.mxu0 %v6197_v18  ;;  %v6198_v10 = vmul.f32 %v6166_v20, %v5942_v11 }
 0xc9e   : > { %7029 = vmatmul.mubr.f32.gmra.mrb[110].mxu0 %v6198_v10 }
 0xced   : > { %v6985_v47 = vpop.f32.mrb[80].mxu0 }
 0xcee   : > { %v6294_v4 = vadd.f32 %v6985_v47, %v11787_v13  ;;  %v6288_v46 = vpop.f32.mrb[81].mxu0 }
 0xcef   : > { %v6289_v37 = vadd.f32 %v11787_v13, %v6288_v46 }
 0xcf0   : > { %6449 = vst.msk [vmem:[%s11792_s23 + $0x8] sm:$0xff] %vm6447_vm9, %v6294_v4 }
 0xcf1   : > { %6448 = vst.msk [vmem:[%s11792_s23] sm:$0xff] %vm6447_vm9, %v6289_v37 }
 0xcf5   : > { %v6988_v50 = vpop.f32.mrb[82].mxu0 }
 0xcf6   : > { %v6304_v42 = vadd.f32 %v6988_v50, %v11787_v13  ;;  %v6298_v1 = vpop.f32.mrb[83].mxu0 }
 0xcf7   : > { %v6299_v53 = vadd.f32 %v11787_v13, %v6298_v1 }
 0xcf8   : > { %6451 = vst.msk [vmem:[%s11792_s23 + $0x18] sm:$0xff] %vm6447_vm9, %v6304_v42 }
 0xcf9   : > { %6450 = vst.msk [vmem:[%s11792_s23 + $0x10] sm:$0xff] %vm6447_vm9, %v6299_v53 }
 0xcfd   : > { %v6991_v16 = vpop.f32.mrb[84].mxu0 }
 0xcfe   : > { %v6314_v51 = vadd.f32 %v6991_v16, %v11787_v13  ;;  %v6308_v43 = vpop.f32.mrb[85].mxu0 }
 0xcff   : > { %v6309_v9 = vadd.f32 %v11787_v13, %v6308_v43 }
 0xd00   : > { %6453 = vst.msk [vmem:[%s11792_s23 + $0x28] sm:$0xff] %vm6447_vm9, %v6314_v51 }
 0xd01   : > { %6452 = vst.msk [vmem:[%s11792_s23 + $0x20] sm:$0xff] %vm6447_vm9, %v6309_v9 }
 0xd05   : > { %v6994_v12 = vpop.f32.mrb[86].mxu0 }
 0xd06   : > { %v6324_v61 = vadd.f32 %v6994_v12, %v11787_v13  ;;  %v6318_v34 = vpop.f32.mrb[87].mxu0 }
 0xd07   : > { %v6319_v48 = vadd.f32 %v11787_v13, %v6318_v34 }
 0xd08   : > { %6455 = vst.msk [vmem:[%s11792_s23 + $0x38] sm:$0xff] %vm6447_vm9, %v6324_v61 }
 0xd09   : > { %6454 = vst.msk [vmem:[%s11792_s23 + $0x30] sm:$0xff] %vm6447_vm9, %v6319_v48 }
 0xd0d   : > { %v6997_v25 = vpop.f32.mrb[88].mxu0 }
 0xd0e   : > { %v6334_v17 = vadd.f32 %v6997_v25, %v11787_v13  ;;  %v6328_v24 = vpop.f32.mrb[89].mxu0 }
 0xd0f   : > { %v6329_v6 = vadd.f32 %v11787_v13, %v6328_v24 }
 0xd10   : > { %6457 = vst.msk [vmem:[%s11792_s23 + $0x48] sm:$0xff] %vm6447_vm9, %v6334_v17 }
 0xd11   : > { %6456 = vst.msk [vmem:[%s11792_s23 + $0x40] sm:$0xff] %vm6447_vm9, %v6329_v6 }
 0xd15   : > { %v7000_v54 = vpop.f32.mrb[90].mxu0 }
 0xd16   : > { %v6344_v19 = vadd.f32 %v7000_v54, %v11787_v13  ;;  %v6338_v15 = vpop.f32.mrb[91].mxu0 }
 0xd17   : > { %v6339_v56 = vadd.f32 %v11787_v13, %v6338_v15 }
 0xd18   : > { %6459 = vst.msk [vmem:[%s11792_s23 + $0x58] sm:$0xff] %vm6447_vm9, %v6344_v19 }
 0xd19   : > { %6458 = vst.msk [vmem:[%s11792_s23 + $0x50] sm:$0xff] %vm6447_vm9, %v6339_v56 }
 0xd1d   : > { %v7003_v57 = vpop.f32.mrb[92].mxu0 }
 0xd1e   : > { %v6354_v45 = vadd.f32 %v7003_v57, %v11787_v13  ;;  %v6348_v44 = vpop.f32.mrb[93].mxu0 }
 0xd1f   : > { %v6349_v28 = vadd.f32 %v11787_v13, %v6348_v44 }
 0xd20   : > { %6461 = vst.msk [vmem:[%s11792_s23 + $0x68] sm:$0xff] %vm6447_vm9, %v6354_v45 }
 0xd21   : > { %6460 = vst.msk [vmem:[%s11792_s23 + $0x60] sm:$0xff] %vm6447_vm9, %v6349_v28 }
 0xd25   : > { %v7006_v23 = vpop.f32.mrb[94].mxu0 }
 0xd26   : > { %v6364_v63 = vadd.f32 %v7006_v23, %v11787_v13  ;;  %v6358_v41 = vpop.f32.mrb[95].mxu0 }
 0xd27   : > { %v6359_v55 = vadd.f32 %v11787_v13, %v6358_v41 }
 0xd28   : > { %6463 = vst.msk [vmem:[%s11792_s23 + $0x78] sm:$0xff] %vm6447_vm9, %v6364_v63 }
 0xd29   : > { %6462 = vst.msk [vmem:[%s11792_s23 + $0x70] sm:$0xff] %vm6447_vm9, %v6359_v55 }
 0xd39   : > { %v7009_v32 = vpop.f32.mrb[96].mxu0 }
 0xd3a   : > { %v6374_v7 = vadd.f32 %v7009_v32, %v11787_v13  ;;  %v6368_v29 = vpop.f32.mrb[97].mxu0 }
 0xd3b   : > { %v6369_v26 = vadd.f32 %v11787_v13, %v6368_v29 }
 0xd3c   : > { %6465 = vst.msk [vmem:[%s11792_s23 + $0x88] sm:$0xff] %vm6447_vm9, %v6374_v7 }
 0xd3d   : > { %6464 = vst.msk [vmem:[%s11792_s23 + $0x80] sm:$0xff] %vm6447_vm9, %v6369_v26 }
 0xd41   : > { %v7012_v31 = vpop.f32.mrb[98].mxu0 }
 0xd42   : > { %v6384_v33 = vadd.f32 %v7012_v31, %v11787_v13  ;;  %v6378_v62 = vpop.f32.mrb[99].mxu0 }
 0xd43   : > { %v6379_v58 = vadd.f32 %v11787_v13, %v6378_v62 }
 0xd44   : > { %6467 = vst.msk [vmem:[%s11792_s23 + $0x98] sm:$0xff] %vm6447_vm9, %v6384_v33 }
 0xd45   : > { %6466 = vst.msk [vmem:[%s11792_s23 + $0x90] sm:$0xff] %vm6447_vm9, %v6379_v58 }
 0xd49   : > { %v7015_v22 = vpop.f32.mrb[100].mxu0 }
 0xd4a   : > { %v6394_v49 = vadd.f32 %v7015_v22, %v11787_v13  ;;  %v6388_v2 = vpop.f32.mrb[101].mxu0 }
 0xd4b   : > { %v6389_v60 = vadd.f32 %v11787_v13, %v6388_v2 }
 0xd4c   : > { %6469 = vst.msk [vmem:[%s11792_s23 + $0xa8] sm:$0xff] %vm6447_vm9, %v6394_v49 }
 0xd4d   : > { %6468 = vst.msk [vmem:[%s11792_s23 + $0xa0] sm:$0xff] %vm6447_vm9, %v6389_v60 }
 0xd51   : > { %v7018_v35 = vpop.f32.mrb[102].mxu0 }
 0xd52   : > { %v6404_v38 = vadd.f32 %v7018_v35, %v11787_v13  ;;  %v6398_v52 = vpop.f32.mrb[103].mxu0 }
 0xd53   : > { %v6399_v30 = vadd.f32 %v11787_v13, %v6398_v52 }
 0xd54   : > { %6471 = vst.msk [vmem:[%s11792_s23 + $0xb8] sm:$0xff] %vm6447_vm9, %v6404_v38 }
 0xd55   : > { %6470 = vst.msk [vmem:[%s11792_s23 + $0xb0] sm:$0xff] %vm6447_vm9, %v6399_v30 }
 0xd59   : > { %v7021_v21 = vpop.f32.mrb[104].mxu0 }
 0xd5a   : > { %v6414_v8 = vadd.f32 %v7021_v21, %v11787_v13  ;;  %v6408_v3 = vpop.f32.mrb[105].mxu0 }
 0xd5b   : > { %v6409_v14 = vadd.f32 %v11787_v13, %v6408_v3 }
 0xd5c   : > { %6473 = vst.msk [vmem:[%s11792_s23 + $0xc8] sm:$0xff] %vm6447_vm9, %v6414_v8 }
 0xd5d   : > { %6472 = vst.msk [vmem:[%s11792_s23 + $0xc0] sm:$0xff] %vm6447_vm9, %v6409_v14 }
 0xd61   : > { %v7024_v59 = vpop.f32.mrb[106].mxu0 }
 0xd62   : > { %v6424_v0 = vadd.f32 %v7024_v59, %v11787_v13  ;;  %v6418_v5 = vpop.f32.mrb[107].mxu0 }
 0xd63   : > { %v6419_v40 = vadd.f32 %v11787_v13, %v6418_v5 }
 0xd64   : > { %6475 = vst.msk [vmem:[%s11792_s23 + $0xd8] sm:$0xff] %vm6447_vm9, %v6424_v0 }
 0xd65   : > { %6474 = vst.msk [vmem:[%s11792_s23 + $0xd0] sm:$0xff] %vm6447_vm9, %v6419_v40 }
 0xd69   : > { %v7027_v27 = vpop.f32.mrb[108].mxu0 }
 0xd6a   : > { %v6434_v36 = vadd.f32 %v7027_v27, %v11787_v13  ;;  %v6428_v39 = vpop.f32.mrb[109].mxu0 }
 0xd6b   : > { %v6429_v18 = vadd.f32 %v11787_v13, %v6428_v39 }
 0xd6c   : > { %6477 = vst.msk [vmem:[%s11792_s23 + $0xe8] sm:$0xff] %vm6447_vm9, %v6434_v36 }
 0xd6d   : > { %6476 = vst.msk [vmem:[%s11792_s23 + $0xe0] sm:$0xff] %vm6447_vm9, %v6429_v18 }
 0xd71   : > { %v7030_v11 = vpop.f32.mrb[110].mxu0 }
 0xd72   : > { %v6444_v20 = vadd.f32 %v7030_v11, %v11787_v13  ;;  %v6438_v10 = vpop.f32.mrb[111].mxu0 }
 0xd73   : > { %v6439_v47 = vadd.f32 %v11787_v13, %v6438_v10 }
 0xd74   : > { %6479 = vst.msk [vmem:[%s11792_s23 + $0xf8] sm:$0xff] %vm6447_vm9, %v6444_v20 }
 0xd75   : > { %6478 = vst.msk [vmem:[%s11792_s23 + $0xf0] sm:$0xff] %vm6447_vm9, %v6439_v47 }
 0xd76 PF: > { %s35_s2 = sadd.s32 1, %s8000_s2  }
 0xd77   : > { %p32_p2 = scmp.ge.s32.totalorder %s35_s2, 4  }
 0xd79   :  { %34 = sbr.rel (!%p32_p2) target bundleno = 16 (0x10), region = 171 }
 0xd80   :  { %6504 = vsyncpa [#allocation5], 1 }
 0xd81   :  { %6506 = vsyncpa [#allocation5 + $0x1], 1 }
 0xd82   :  { %6507 = vsyncpa [#allocation7], 1 }
 0xd83   :  { %6508 = vsyncpa [#allocation10], 1 }
 0xd84   :  { %6509 = vsyncpa [#allocation13], 1 }

</bundles_post_ra>
